<compile_context>
chip_gen: v7x
topology: tpu7x:2x2x1
jax: 0.10.0
libtpu: 0.0.40
codegen_flags: <defaults>
</compile_context>

<pallas_src>
import jax
import jax.numpy as jnp
from jax.experimental import pallas as pl
from jax.experimental.pallas import tpu as pltpu

EPS = 1e-5
K3 = 3                                    # conv kernel size
D0 = H0 = W0 = 12                         # input spatial size used in this script
N_LAYERS = 5
MAX_TAP_OFF = (K3 - 1) * H0 + (K3 - 1)    # 26: largest (kd, kh) row shift
# Per-layer useful output rows (multiples of 8): layer l computes only the rows
# the next layer / head actually reads (last needed row + MAX_TAP_OFF guard).
M_OUT = (144, 112, 80, 48, 16)
D5 = D0 - N_LAYERS * (K3 - 1)             # 2
H5 = H0 - N_LAYERS * (K3 - 1)             # 2
W5 = W0 - N_LAYERS * (K3 - 1)             # 2
OUT_LANES = 128                           # lane-dense (padded) output width


# ---------------------------------------------------------------------------
# Fused Pallas kernel: 5x (conv+bn) + avg-pool + 2x linear, one image per step
# ---------------------------------------------------------------------------
def tinycnn_kernel(x9_ref,
                   wb1_ref, bz1_ref, wb2_ref, bz2_ref, wb3_ref, bz3_ref,
                   wb4_ref, bz4_ref, wb5_ref, bz5_ref,
                   w1e_ref, b1_ref, w2t_ref, b2_ref,
                   out_ref,
                   a1, a2, a3, a4, a5):
    # ---- Layer 1: all nine (kd,kh) taps pre-concatenated on the lane axis
    # host-side, so conv1+bn1 is a single K=128 (zero-padded) matmul.
    y1 = jnp.dot(x9_ref[...], wb1_ref[...], preferred_element_type=jnp.float32)
    a1[...] = (y1 + bz1_ref[...]).astype(a1.dtype)

    # ---- Layers 2..5: Conv3d(k=3, valid)+BN as 9 row-shifted banded matmuls,
    # trimmed to the rows the next consumer reads.  Accumulators fit in vregs.
    def conv_bn(in_ref, wb_ref, bias_ref, out_sc):
        m_out = out_sc.shape[0]
        acc = jnp.dot(in_ref[pl.ds(0, m_out), :], wb_ref[0],
                      preferred_element_type=jnp.float32)
        for t in range(1, K3 * K3):
            off = (t // K3) * H0 + (t % K3)          # kd*H0 + kh (static)
            acc = acc + jnp.dot(in_ref[pl.ds(off, m_out), :], wb_ref[t],
                                preferred_element_type=jnp.float32)
        out_sc[...] = (acc + bias_ref[...]).astype(out_sc.dtype)

    conv_bn(a1, wb2_ref, bz2_ref, a2)
    conv_bn(a2, wb3_ref, bz3_ref, a3)
    conv_bn(a3, wb4_ref, bz4_ref, a4)
    conv_bn(a4, wb5_ref, bz5_ref, a5)

    # ---- Head: adaptive avg-pool = sum of the D5*H5 valid (d,h) rows (three
    # VPU adds; 1/(D5*H5*W5) mean + W-lane packing folded into w1e), then
    # Linear(16,12) and Linear(12,3).  Dropouts are identity in eval mode.
    pool_rows = [d * H0 + h for d in range(D5) for h in range(H5)]
    s = a5[pool_rows[0]:pool_rows[0] + 1, :]
    for r in pool_rows[1:]:
        s = s + a5[r:r + 1, :]
    h = jnp.dot(s, w1e_ref[...], preferred_element_type=jnp.float32) + b1_ref[...]
    y = jnp.dot(h, w2t_ref[...], preferred_element_type=jnp.float32) + b2_ref[...]
    out_ref[0] = y                                   # (1, 1, OUT_LANES) block


# ---------------------------------------------------------------------------
# Host-side (one-time) parameter preparation: BN fold + banded weights + head
# ---------------------------------------------------------------------------
def banded_weight(w_fold, w_in):
    """Build the 9 per-(kd,kh) banded matrices for the lane-packed (W*C) layout.

    w_fold: (Cout, Cin, 3, 3, 3) conv weight with BN scale folded in.
    Returns (9, w_in*Cin, (w_in-2)*Cout) f32 mapping input lane p = wi*Cin+ci
    to output lane q = wo*Cout+co with value w_fold[co, ci, kd, kh, wi-wo].
    """
    cout, cin = w_fold.shape[0], w_fold.shape[1]
    w_out = w_in - K3 + 1
    p = jnp.arange(w_in * cin)
    q = jnp.arange(w_out * cout)
    wi, ci = p // cin, p % cin
    wo, co = q // cout, q % cout
    kw = wi[:, None] - wo[None, :]                   # (K, Nq)
    valid = (kw >= 0) & (kw < K3)
    kw_c = jnp.clip(kw, 0, K3 - 1)
    mats = []
    for kd in range(K3):
        for kh in range(K3):
            tap = w_fold[:, :, kd, kh, :]            # (Cout, Cin, 3)
            vals = tap[co[None, :], ci[:, None], kw_c]
            mats.append(jnp.where(valid, vals, 0.0))
    return jnp.stack(mats, axis=0).astype(jnp.float32)


def prepare_fused(params):
    """Fold BN/bias into banded bf16 conv weights; build the fused head."""
    # Trimming invariants: every shifted read of layer l+1 stays inside the
    # rows layer l writes; head rows stay inside layer 5's rows.
    assert all(M_OUT[l + 1] + MAX_TAP_OFF <= M_OUT[l] for l in range(N_LAYERS - 1))
    assert (D5 - 1) * H0 + (H5 - 1) < M_OUT[-1]

    fused = {}
    w_in = W0
    wbs, bzs = [], []
    for (w, b), (g, be, rm, rv) in zip(params["convs"], params["bns"]):
        scale = g / jnp.sqrt(rv + EPS)                        # (Cout,)
        w_fold = w * scale[:, None, None, None, None]         # (Cout,Cin,3,3,3)
        b_fold = (b - rm) * scale + be                        # (Cout,)
        wbs.append(banded_weight(w_fold, w_in))
        bzs.append(jnp.tile(b_fold, w_in - (K3 - 1))[None, :].astype(jnp.float32))
        w_in -= (K3 - 1)

    # Layer 1: fuse the 9 taps into one (K, 640) matrix, K zero-padded to 128.
    t, k1, n1 = wbs[0].shape
    k1_pad = pl.cdiv(t * k1, 128) * 128
    wb1 = wbs[0].reshape(t * k1, n1)
    fused["wb1"] = (jnp.zeros((k1_pad, n1), jnp.float32)
                    .at[:t * k1].set(wb1).astype(jnp.bfloat16))
    fused["bz1"] = bzs[0]
    for l in range(1, N_LAYERS):
        fused[f"wb{l + 1}"] = wbs[l].astype(jnp.bfloat16)
        fused[f"bz{l + 1}"] = bzs[l]

    # Head: mean factor + W-lane packing folded into w1e; out weight/bias
    # zero-padded to OUT_LANES lanes for a dense single-shot writeback.
    w1, b1 = params["features"]              # (12, 16), (12,)
    w2, b2 = params["out"]                   # (3, 12), (3,)
    fused["w1e"] = (jnp.tile(w1.T, (W5, 1)) / float(D5 * H5 * W5)).astype(jnp.float32)
    fused["b1"] = b1[None, :].astype(jnp.float32)
    n_out = w2.shape[0]
    fused["w2t"] = (jnp.zeros((w2.shape[1], OUT_LANES), jnp.float32)
                    .at[:, :n_out].set(w2.T))
    fused["b2"] = jnp.zeros((1, OUT_LANES), jnp.float32).at[0, :n_out].set(b2)
    return fused


# ---------------------------------------------------------------------------
# Forward pass wrapper (single fused pallas_call)
# ---------------------------------------------------------------------------
@jax.jit
def tinycnn_forward(fused, x_ncdhw):
    n, c_in = x_ncdhw.shape[0], x_ncdhw.shape[1]
    k1_pad = fused["wb1"].shape[0]
    m1 = M_OUT[0]

    # NCDHW -> NDHWC -> per-image slab (row = d*H0 + h, lane = w*C + c), then
    # concatenate the 9 (kd,kh) row shifts on the lane axis for layer 1.
    x = jnp.transpose(x_ncdhw, (0, 2, 3, 4, 1)).astype(jnp.float32)
    x = x.reshape(n, D0 * H0, W0 * c_in)
    x = jnp.pad(x, ((0, 0), (0, MAX_TAP_OFF), (0, 0)))        # zero guard rows
    taps = [x[:, kd * H0 + kh: kd * H0 + kh + m1, :]
            for kd in range(K3) for kh in range(K3)]
    x9 = jnp.concatenate(taps, axis=-1)                       # (n, 144, 9*W0*C)
    x9 = jnp.pad(x9, ((0, 0), (0, 0), (0, k1_pad - x9.shape[-1])))
    x9 = x9.reshape(n * m1, k1_pad).astype(jnp.bfloat16)

    const2 = lambda i: (0, 0)
    const3 = lambda i: (0, 0, 0)
    operands = [x9,
                fused["wb1"], fused["bz1"], fused["wb2"], fused["bz2"],
                fused["wb3"], fused["bz3"], fused["wb4"], fused["bz4"],
                fused["wb5"], fused["bz5"],
                fused["w1e"], fused["b1"], fused["w2t"], fused["b2"]]
    in_specs = [pl.BlockSpec((m1, k1_pad), lambda i: (i, 0))]
    in_specs += [pl.BlockSpec(op.shape, const3 if op.ndim == 3 else const2)
                 for op in operands[1:]]

    widths = [fused[f"wb{l + 1}"].shape[-1] for l in range(N_LAYERS)]
    scratch = [pltpu.VMEM((M_OUT[l], widths[l]),
                          jnp.float32 if l == N_LAYERS - 1 else jnp.bfloat16)
               for l in range(N_LAYERS)]

    out = pl.pallas_call(
        tinycnn_kernel,
        out_shape=jax.ShapeDtypeStruct((n, 1, OUT_LANES), jnp.float32),
        grid_spec=pltpu.PrefetchScalarGridSpec(
            num_scalar_prefetch=0,
            grid=(n,),
            in_specs=in_specs,
            out_specs=pl.BlockSpec((1, 1, OUT_LANES), lambda i: (i, 0, 0)),
            scratch_shapes=scratch),
        compiler_params=pltpu.CompilerParams(
            dimension_semantics=("parallel",),
            vmem_limit_bytes=24 * 1024 * 1024),
    )(*operands)
    return out[:, 0, :]              # (n, OUT_LANES); caller slices true n_out


# ---------------------------------------------------------------------------
# Parameter init (deterministic, PyTorch-like uniform(-1/sqrt(fan_in), ...))
# ---------------------------------------------------------------------------
def init_conv(key, cout, cin):
    k_w, k_b = jax.random.split(key)
    fan_in = cin * K3 * K3 * K3
    bound = 1.0 / jnp.sqrt(fan_in)
    w = jax.random.uniform(k_w, (cout, cin, K3, K3, K3), jnp.float32, -bound, bound)
    b = jax.random.uniform(k_b, (cout,), jnp.float32, -bound, bound)
    return w, b


def init_bn(key, c):
    k1, k2, k3, k4 = jax.random.split(key, 4)
    gamma = 1.0 + 0.1 * jax.random.normal(k1, (c,), jnp.float32)
    beta = 0.1 * jax.random.normal(k2, (c,), jnp.float32)
    rmean = 0.1 * jax.random.normal(k3, (c,), jnp.float32)
    rvar = 1.0 + 0.1 * jax.random.uniform(k4, (c,), jnp.float32)
    return gamma, beta, rmean, rvar


def init_linear(key, cout, cin):
    k_w, k_b = jax.random.split(key)
    bound = 1.0 / jnp.sqrt(cin)
    w = jax.random.uniform(k_w, (cout, cin), jnp.float32, -bound, bound)
    b = jax.random.uniform(k_b, (cout,), jnp.float32, -bound, bound)
    return w, b


def init_params(key, in_channels=1, out_channels=3, feature_channels=12):
    chans = [(64, in_channels), (32, 64), (32, 32), (16, 32), (16, 16)]
    keys = jax.random.split(key, 2 * len(chans) + 2)
    params = {"convs": [], "bns": []}
    for i, (co, ci) in enumerate(chans):
        params["convs"].append(init_conv(keys[2 * i], co, ci))
        params["bns"].append(init_bn(keys[2 * i + 1], co))
    params["features"] = init_linear(keys[-2], feature_channels, 16)
    params["out"] = init_linear(keys[-1], out_channels, feature_channels)
    return params


# ---------------------------------------------------------------------------
# Pure-JAX f32 reference (independent of the banded-weight lowering)
# ---------------------------------------------------------------------------
def im2col_3d(x):
    N, D, H, W, C = x.shape
    Do, Ho, Wo = D - K3 + 1, H - K3 + 1, W - K3 + 1
    cols = []
    for kd in range(K3):
        for kh in range(K3):
            for kw in range(K3):
                cols.append(x[:, kd:kd + Do, kh:kh + Ho, kw:kw + Wo, :])
    patches = jnp.stack(cols, axis=-2)               # (N, Do, Ho, Wo, 27, C)
    return patches.reshape(N * Do * Ho * Wo, K3 * K3 * K3 * C), (N, Do, Ho, Wo)


def tinycnn_reference(params, x_ncdhw):
    x = jnp.transpose(x_ncdhw, (0, 2, 3, 4, 1)).astype(jnp.float32)
    for (w, b), (g, be, rm, rv) in zip(params["convs"], params["bns"]):
        cout, cin = w.shape[0], w.shape[1]
        w_mat = jnp.transpose(w, (2, 3, 4, 1, 0)).reshape(27 * cin, cout)
        patches, (n, do, ho, wo) = im2col_3d(x)
        y = patches @ w_mat + b
        scale = g / jnp.sqrt(rv + EPS)
        y = (y - rm) * scale + be
        x = y.reshape(n, do, ho, wo, cout)
    pooled = jnp.mean(x, axis=(1, 2, 3))
    w1, b1 = params["features"]
    w2, b2 = params["out"]
    h = pooled @ w1.T + b1
    return h @ w2.T + b2


# ---------------------------------------------------------------------------
if __name__ == "__main__":
    key = jax.random.PRNGKey(0)
    k_param, k_x = jax.random.split(key)

    params = init_params(k_param, in_channels=1, out_channels=3,
                         feature_channels=12)

    # batch=2, channels=1, 12^3 spatial (5 valid 3x3x3 convs shrink to 2^3).
    x = jax.random.normal(k_x, (2, 1, D0, H0, W0), jnp.float32)

    fused = prepare_fused(params)        # one-time: BN fold + banded bf16 weights

    out_pad = tinycnn_forward(fused, x)
    out_pad = jax.block_until_ready(out_pad)
    out = out_pad[:, :3]

    ref = tinycnn_reference(params, x)
    assert out.shape == (2, 3), out.shape
    assert jnp.allclose(out, ref, atol=2e-2, rtol=2e-2), (out, ref)

    print("KERNEL_OK")
</pallas_src>

<mosaic_0001>
module attributes {stable_mosaic.version = 11 : i64} {
  func.func @tinycnn_kernel(%arg0: i32, %arg1: memref<144x128xbf16, #tpu.memory_space<vmem>>, %arg2: memref<128x640xbf16, #tpu.memory_space<vmem>>, %arg3: memref<1x640xf32, #tpu.memory_space<vmem>>, %arg4: memref<9x640x256xbf16, #tpu.memory_space<vmem>>, %arg5: memref<1x256xf32, #tpu.memory_space<vmem>>, %arg6: memref<9x256x192xbf16, #tpu.memory_space<vmem>>, %arg7: memref<1x192xf32, #tpu.memory_space<vmem>>, %arg8: memref<9x192x64xbf16, #tpu.memory_space<vmem>>, %arg9: memref<1x64xf32, #tpu.memory_space<vmem>>, %arg10: memref<9x64x32xbf16, #tpu.memory_space<vmem>>, %arg11: memref<1x32xf32, #tpu.memory_space<vmem>>, %arg12: memref<32x12xf32, #tpu.memory_space<vmem>>, %arg13: memref<1x12xf32, #tpu.memory_space<vmem>>, %arg14: memref<12x128xf32, #tpu.memory_space<vmem>>, %arg15: memref<1x128xf32, #tpu.memory_space<vmem>>, %arg16: memref<1x1x128xf32, #tpu.memory_space<vmem>>, %arg17: memref<144x640xbf16, #tpu.memory_space<vmem>>, %arg18: memref<112x256xbf16, #tpu.memory_space<vmem>>, %arg19: memref<80x192xbf16, #tpu.memory_space<vmem>>, %arg20: memref<48x64xbf16, #tpu.memory_space<vmem>>, %arg21: memref<16x32xf32, #tpu.memory_space<vmem>>) attributes {dimension_semantics = [#tpu.dimension_semantics<parallel>], iteration_bounds = array<i64: 2>, scalar_prefetch = 0 : i64, scratch_operands = 5 : i64, tpu.core_type = #tpu.core_type<tc>, window_params = [{transform_indices = @transform_0, window_bounds = array<i64: 144, 128>}, {pipeline_mode = #tpu.pipeline_mode<synchronous>, transform_indices = @transform_1, window_bounds = array<i64: 128, 640>}, {pipeline_mode = #tpu.pipeline_mode<synchronous>, transform_indices = @transform_2, window_bounds = array<i64: 1, 640>}, {pipeline_mode = #tpu.pipeline_mode<synchronous>, transform_indices = @transform_3, window_bounds = array<i64: 9, 640, 256>}, {pipeline_mode = #tpu.pipeline_mode<synchronous>, transform_indices = @transform_4, window_bounds = array<i64: 1, 256>}, {pipeline_mode = #tpu.pipeline_mode<synchronous>, transform_indices = @transform_5, window_bounds = array<i64: 9, 256, 192>}, {pipeline_mode = #tpu.pipeline_mode<synchronous>, transform_indices = @transform_6, window_bounds = array<i64: 1, 192>}, {pipeline_mode = #tpu.pipeline_mode<synchronous>, transform_indices = @transform_7, window_bounds = array<i64: 9, 192, 64>}, {pipeline_mode = #tpu.pipeline_mode<synchronous>, transform_indices = @transform_8, window_bounds = array<i64: 1, 64>}, {pipeline_mode = #tpu.pipeline_mode<synchronous>, transform_indices = @transform_9, window_bounds = array<i64: 9, 64, 32>}, {pipeline_mode = #tpu.pipeline_mode<synchronous>, transform_indices = @transform_10, window_bounds = array<i64: 1, 32>}, {pipeline_mode = #tpu.pipeline_mode<synchronous>, transform_indices = @transform_11, window_bounds = array<i64: 32, 12>}, {pipeline_mode = #tpu.pipeline_mode<synchronous>, transform_indices = @transform_12, window_bounds = array<i64: 1, 12>}, {pipeline_mode = #tpu.pipeline_mode<synchronous>, transform_indices = @transform_13, window_bounds = array<i64: 12, 128>}, {pipeline_mode = #tpu.pipeline_mode<synchronous>, transform_indices = @transform_14, window_bounds = array<i64: 1, 128>}, {transform_indices = @transform_15, window_bounds = array<i64: 1, 1, 128>}]} {
    %c0 = arith.constant 0 : index
    %c0_0 = arith.constant 0 : index
    %0 = vector.load %arg1[%c0, %c0_0] : memref<144x128xbf16, #tpu.memory_space<vmem>>, vector<144x128xbf16>
    %c0_1 = arith.constant 0 : index
    %c0_2 = arith.constant 0 : index
    %1 = vector.load %arg2[%c0_1, %c0_2] : memref<128x640xbf16, #tpu.memory_space<vmem>>, vector<128x640xbf16>
    %cst = arith.constant dense<0.000000e+00> : vector<144x640xf32>
    %2 = tpu.matmul %0, %1, %cst {dimension_numbers = #tpu.dot_dimension_numbers<[1], [0], [0], [1], [0, 0, 1, 1], [], []>} : vector<144x128xbf16>, vector<128x640xbf16>, vector<144x640xf32> -> vector<144x640xf32>
    %c0_3 = arith.constant 0 : index
    %c0_4 = arith.constant 0 : index
    %3 = vector.load %arg3[%c0_3, %c0_4] : memref<1x640xf32, #tpu.memory_space<vmem>>, vector<1x640xf32>
    %4 = vector.broadcast %3 : vector<1x640xf32> to vector<144x640xf32>
    %5 = arith.addf %2, %4 : vector<144x640xf32>
    %6 = arith.truncf %5 : vector<144x640xf32> to vector<144x640xbf16>
    %c0_5 = arith.constant 0 : index
    %c0_6 = arith.constant 0 : index
    %7 = vector.load %arg17[%c0_5, %c0_6] : memref<144x640xbf16, #tpu.memory_space<vmem>>, vector<144x640xbf16>
    tpu.vector_store %arg17[%c0_5, %c0_6], %6 {strides = array<i32>} : memref<144x640xbf16, #tpu.memory_space<vmem>>, vector<144x640xbf16>,
    %c0_7 = arith.constant 0 : index
    %c0_8 = arith.constant 0 : index
    %8 = vector.load %arg17[%c0_7, %c0_8] : memref<144x640xbf16, #tpu.memory_space<vmem>>, vector<112x640xbf16>
    %c0_9 = arith.constant 0 : index
    %c0_10 = arith.constant 0 : index
    %c0_11 = arith.constant 0 : index
    %9 = vector.load %arg4[%c0_9, %c0_10, %c0_11] : memref<9x640x256xbf16, #tpu.memory_space<vmem>>, vector<1x640x256xbf16>
    %10 = vector.shape_cast %9 : vector<1x640x256xbf16> to vector<640x256xbf16>
    %cst_12 = arith.constant dense<0.000000e+00> : vector<112x256xf32>
    %11 = tpu.matmul %8, %10, %cst_12 {dimension_numbers = #tpu.dot_dimension_numbers<[1], [0], [0], [1], [0, 0, 1, 1], [], []>} : vector<112x640xbf16>, vector<640x256xbf16>, vector<112x256xf32> -> vector<112x256xf32>
    %c1 = arith.constant 1 : index
    %c0_13 = arith.constant 0 : index
    %12 = vector.load %arg17[%c1, %c0_13] : memref<144x640xbf16, #tpu.memory_space<vmem>>, vector<112x640xbf16>
    %c1_14 = arith.constant 1 : index
    %c0_15 = arith.constant 0 : index
    %c0_16 = arith.constant 0 : index
    %13 = vector.load %arg4[%c1_14, %c0_15, %c0_16] : memref<9x640x256xbf16, #tpu.memory_space<vmem>>, vector<1x640x256xbf16>
    %14 = vector.shape_cast %13 : vector<1x640x256xbf16> to vector<640x256xbf16>
    %cst_17 = arith.constant dense<0.000000e+00> : vector<112x256xf32>
    %15 = tpu.matmul %12, %14, %cst_17 {dimension_numbers = #tpu.dot_dimension_numbers<[1], [0], [0], [1], [0, 0, 1, 1], [], []>} : vector<112x640xbf16>, vector<640x256xbf16>, vector<112x256xf32> -> vector<112x256xf32>
    %16 = arith.addf %11, %15 : vector<112x256xf32>
    %c2 = arith.constant 2 : index
    %c0_18 = arith.constant 0 : index
    %17 = vector.load %arg17[%c2, %c0_18] : memref<144x640xbf16, #tpu.memory_space<vmem>>, vector<112x640xbf16>
    %c2_19 = arith.constant 2 : index
    %c0_20 = arith.constant 0 : index
    %c0_21 = arith.constant 0 : index
    %18 = vector.load %arg4[%c2_19, %c0_20, %c0_21] : memref<9x640x256xbf16, #tpu.memory_space<vmem>>, vector<1x640x256xbf16>
    %19 = vector.shape_cast %18 : vector<1x640x256xbf16> to vector<640x256xbf16>
    %cst_22 = arith.constant dense<0.000000e+00> : vector<112x256xf32>
    %20 = tpu.matmul %17, %19, %cst_22 {dimension_numbers = #tpu.dot_dimension_numbers<[1], [0], [0], [1], [0, 0, 1, 1], [], []>} : vector<112x640xbf16>, vector<640x256xbf16>, vector<112x256xf32> -> vector<112x256xf32>
    %21 = arith.addf %16, %20 : vector<112x256xf32>
    %c12 = arith.constant 12 : index
    %c0_23 = arith.constant 0 : index
    %22 = vector.load %arg17[%c12, %c0_23] : memref<144x640xbf16, #tpu.memory_space<vmem>>, vector<112x640xbf16>
    %c3 = arith.constant 3 : index
    %c0_24 = arith.constant 0 : index
    %c0_25 = arith.constant 0 : index
    %23 = vector.load %arg4[%c3, %c0_24, %c0_25] : memref<9x640x256xbf16, #tpu.memory_space<vmem>>, vector<1x640x256xbf16>
    %24 = vector.shape_cast %23 : vector<1x640x256xbf16> to vector<640x256xbf16>
    %cst_26 = arith.constant dense<0.000000e+00> : vector<112x256xf32>
    %25 = tpu.matmul %22, %24, %cst_26 {dimension_numbers = #tpu.dot_dimension_numbers<[1], [0], [0], [1], [0, 0, 1, 1], [], []>} : vector<112x640xbf16>, vector<640x256xbf16>, vector<112x256xf32> -> vector<112x256xf32>
    %26 = arith.addf %21, %25 : vector<112x256xf32>
    %c13 = arith.constant 13 : index
    %c0_27 = arith.constant 0 : index
    %27 = vector.load %arg17[%c13, %c0_27] : memref<144x640xbf16, #tpu.memory_space<vmem>>, vector<112x640xbf16>
    %c4 = arith.constant 4 : index
    %c0_28 = arith.constant 0 : index
    %c0_29 = arith.constant 0 : index
    %28 = vector.load %arg4[%c4, %c0_28, %c0_29] : memref<9x640x256xbf16, #tpu.memory_space<vmem>>, vector<1x640x256xbf16>
    %29 = vector.shape_cast %28 : vector<1x640x256xbf16> to vector<640x256xbf16>
    %cst_30 = arith.constant dense<0.000000e+00> : vector<112x256xf32>
    %30 = tpu.matmul %27, %29, %cst_30 {dimension_numbers = #tpu.dot_dimension_numbers<[1], [0], [0], [1], [0, 0, 1, 1], [], []>} : vector<112x640xbf16>, vector<640x256xbf16>, vector<112x256xf32> -> vector<112x256xf32>
    %31 = arith.addf %26, %30 : vector<112x256xf32>
    %c14 = arith.constant 14 : index
    %c0_31 = arith.constant 0 : index
    %32 = vector.load %arg17[%c14, %c0_31] : memref<144x640xbf16, #tpu.memory_space<vmem>>, vector<112x640xbf16>
    %c5 = arith.constant 5 : index
    %c0_32 = arith.constant 0 : index
    %c0_33 = arith.constant 0 : index
    %33 = vector.load %arg4[%c5, %c0_32, %c0_33] : memref<9x640x256xbf16, #tpu.memory_space<vmem>>, vector<1x640x256xbf16>
    %34 = vector.shape_cast %33 : vector<1x640x256xbf16> to vector<640x256xbf16>
    %cst_34 = arith.constant dense<0.000000e+00> : vector<112x256xf32>
    %35 = tpu.matmul %32, %34, %cst_34 {dimension_numbers = #tpu.dot_dimension_numbers<[1], [0], [0], [1], [0, 0, 1, 1], [], []>} : vector<112x640xbf16>, vector<640x256xbf16>, vector<112x256xf32> -> vector<112x256xf32>
    %36 = arith.addf %31, %35 : vector<112x256xf32>
    %c24 = arith.constant 24 : index
    %c0_35 = arith.constant 0 : index
    %37 = vector.load %arg17[%c24, %c0_35] : memref<144x640xbf16, #tpu.memory_space<vmem>>, vector<112x640xbf16>
    %c6 = arith.constant 6 : index
    %c0_36 = arith.constant 0 : index
    %c0_37 = arith.constant 0 : index
    %38 = vector.load %arg4[%c6, %c0_36, %c0_37] : memref<9x640x256xbf16, #tpu.memory_space<vmem>>, vector<1x640x256xbf16>
    %39 = vector.shape_cast %38 : vector<1x640x256xbf16> to vector<640x256xbf16>
    %cst_38 = arith.constant dense<0.000000e+00> : vector<112x256xf32>
    %40 = tpu.matmul %37, %39, %cst_38 {dimension_numbers = #tpu.dot_dimension_numbers<[1], [0], [0], [1], [0, 0, 1, 1], [], []>} : vector<112x640xbf16>, vector<640x256xbf16>, vector<112x256xf32> -> vector<112x256xf32>
    %41 = arith.addf %36, %40 : vector<112x256xf32>
    %c25 = arith.constant 25 : index
    %c0_39 = arith.constant 0 : index
    %42 = vector.load %arg17[%c25, %c0_39] : memref<144x640xbf16, #tpu.memory_space<vmem>>, vector<112x640xbf16>
    %c7 = arith.constant 7 : index
    %c0_40 = arith.constant 0 : index
    %c0_41 = arith.constant 0 : index
    %43 = vector.load %arg4[%c7, %c0_40, %c0_41] : memref<9x640x256xbf16, #tpu.memory_space<vmem>>, vector<1x640x256xbf16>
    %44 = vector.shape_cast %43 : vector<1x640x256xbf16> to vector<640x256xbf16>
    %cst_42 = arith.constant dense<0.000000e+00> : vector<112x256xf32>
    %45 = tpu.matmul %42, %44, %cst_42 {dimension_numbers = #tpu.dot_dimension_numbers<[1], [0], [0], [1], [0, 0, 1, 1], [], []>} : vector<112x640xbf16>, vector<640x256xbf16>, vector<112x256xf32> -> vector<112x256xf32>
    %46 = arith.addf %41, %45 : vector<112x256xf32>
    %c26 = arith.constant 26 : index
    %c0_43 = arith.constant 0 : index
    %47 = vector.load %arg17[%c26, %c0_43] : memref<144x640xbf16, #tpu.memory_space<vmem>>, vector<112x640xbf16>
    %c8 = arith.constant 8 : index
    %c0_44 = arith.constant 0 : index
    %c0_45 = arith.constant 0 : index
    %48 = vector.load %arg4[%c8, %c0_44, %c0_45] : memref<9x640x256xbf16, #tpu.memory_space<vmem>>, vector<1x640x256xbf16>
    %49 = vector.shape_cast %48 : vector<1x640x256xbf16> to vector<640x256xbf16>
    %cst_46 = arith.constant dense<0.000000e+00> : vector<112x256xf32>
    %50 = tpu.matmul %47, %49, %cst_46 {dimension_numbers = #tpu.dot_dimension_numbers<[1], [0], [0], [1], [0, 0, 1, 1], [], []>} : vector<112x640xbf16>, vector<640x256xbf16>, vector<112x256xf32> -> vector<112x256xf32>
    %51 = arith.addf %46, %50 : vector<112x256xf32>
    %c0_47 = arith.constant 0 : index
    %c0_48 = arith.constant 0 : index
    %52 = vector.load %arg5[%c0_47, %c0_48] : memref<1x256xf32, #tpu.memory_space<vmem>>, vector<1x256xf32>
    %53 = vector.broadcast %52 : vector<1x256xf32> to vector<112x256xf32>
    %54 = arith.addf %51, %53 : vector<112x256xf32>
    %55 = arith.truncf %54 : vector<112x256xf32> to vector<112x256xbf16>
    %c0_49 = arith.constant 0 : index
    %c0_50 = arith.constant 0 : index
    %56 = vector.load %arg18[%c0_49, %c0_50] : memref<112x256xbf16, #tpu.memory_space<vmem>>, vector<112x256xbf16>
    tpu.vector_store %arg18[%c0_49, %c0_50], %55 {strides = array<i32>} : memref<112x256xbf16, #tpu.memory_space<vmem>>, vector<112x256xbf16>,
    %c0_51 = arith.constant 0 : index
    %c0_52 = arith.constant 0 : index
    %57 = vector.load %arg18[%c0_51, %c0_52] : memref<112x256xbf16, #tpu.memory_space<vmem>>, vector<80x256xbf16>
    %c0_53 = arith.constant 0 : index
    %c0_54 = arith.constant 0 : index
    %c0_55 = arith.constant 0 : index
    %58 = vector.load %arg6[%c0_53, %c0_54, %c0_55] : memref<9x256x192xbf16, #tpu.memory_space<vmem>>, vector<1x256x192xbf16>
    %59 = vector.shape_cast %58 : vector<1x256x192xbf16> to vector<256x192xbf16>
    %cst_56 = arith.constant dense<0.000000e+00> : vector<80x192xf32>
    %60 = tpu.matmul %57, %59, %cst_56 {dimension_numbers = #tpu.dot_dimension_numbers<[1], [0], [0], [1], [0, 0, 1, 1], [], []>} : vector<80x256xbf16>, vector<256x192xbf16>, vector<80x192xf32> -> vector<80x192xf32>
    %c1_57 = arith.constant 1 : index
    %c0_58 = arith.constant 0 : index
    %61 = vector.load %arg18[%c1_57, %c0_58] : memref<112x256xbf16, #tpu.memory_space<vmem>>, vector<80x256xbf16>
    %c1_59 = arith.constant 1 : index
    %c0_60 = arith.constant 0 : index
    %c0_61 = arith.constant 0 : index
    %62 = vector.load %arg6[%c1_59, %c0_60, %c0_61] : memref<9x256x192xbf16, #tpu.memory_space<vmem>>, vector<1x256x192xbf16>
    %63 = vector.shape_cast %62 : vector<1x256x192xbf16> to vector<256x192xbf16>
    %cst_62 = arith.constant dense<0.000000e+00> : vector<80x192xf32>
    %64 = tpu.matmul %61, %63, %cst_62 {dimension_numbers = #tpu.dot_dimension_numbers<[1], [0], [0], [1], [0, 0, 1, 1], [], []>} : vector<80x256xbf16>, vector<256x192xbf16>, vector<80x192xf32> -> vector<80x192xf32>
    %65 = arith.addf %60, %64 : vector<80x192xf32>
    %c2_63 = arith.constant 2 : index
    %c0_64 = arith.constant 0 : index
    %66 = vector.load %arg18[%c2_63, %c0_64] : memref<112x256xbf16, #tpu.memory_space<vmem>>, vector<80x256xbf16>
    %c2_65 = arith.constant 2 : index
    %c0_66 = arith.constant 0 : index
    %c0_67 = arith.constant 0 : index
    %67 = vector.load %arg6[%c2_65, %c0_66, %c0_67] : memref<9x256x192xbf16, #tpu.memory_space<vmem>>, vector<1x256x192xbf16>
    %68 = vector.shape_cast %67 : vector<1x256x192xbf16> to vector<256x192xbf16>
    %cst_68 = arith.constant dense<0.000000e+00> : vector<80x192xf32>
    %69 = tpu.matmul %66, %68, %cst_68 {dimension_numbers = #tpu.dot_dimension_numbers<[1], [0], [0], [1], [0, 0, 1, 1], [], []>} : vector<80x256xbf16>, vector<256x192xbf16>, vector<80x192xf32> -> vector<80x192xf32>
    %70 = arith.addf %65, %69 : vector<80x192xf32>
    %c12_69 = arith.constant 12 : index
    %c0_70 = arith.constant 0 : index
    %71 = vector.load %arg18[%c12_69, %c0_70] : memref<112x256xbf16, #tpu.memory_space<vmem>>, vector<80x256xbf16>
    %c3_71 = arith.constant 3 : index
    %c0_72 = arith.constant 0 : index
    %c0_73 = arith.constant 0 : index
    %72 = vector.load %arg6[%c3_71, %c0_72, %c0_73] : memref<9x256x192xbf16, #tpu.memory_space<vmem>>, vector<1x256x192xbf16>
    %73 = vector.shape_cast %72 : vector<1x256x192xbf16> to vector<256x192xbf16>
    %cst_74 = arith.constant dense<0.000000e+00> : vector<80x192xf32>
    %74 = tpu.matmul %71, %73, %cst_74 {dimension_numbers = #tpu.dot_dimension_numbers<[1], [0], [0], [1], [0, 0, 1, 1], [], []>} : vector<80x256xbf16>, vector<256x192xbf16>, vector<80x192xf32> -> vector<80x192xf32>
    %75 = arith.addf %70, %74 : vector<80x192xf32>
    %c13_75 = arith.constant 13 : index
    %c0_76 = arith.constant 0 : index
    %76 = vector.load %arg18[%c13_75, %c0_76] : memref<112x256xbf16, #tpu.memory_space<vmem>>, vector<80x256xbf16>
    %c4_77 = arith.constant 4 : index
    %c0_78 = arith.constant 0 : index
    %c0_79 = arith.constant 0 : index
    %77 = vector.load %arg6[%c4_77, %c0_78, %c0_79] : memref<9x256x192xbf16, #tpu.memory_space<vmem>>, vector<1x256x192xbf16>
    %78 = vector.shape_cast %77 : vector<1x256x192xbf16> to vector<256x192xbf16>
    %cst_80 = arith.constant dense<0.000000e+00> : vector<80x192xf32>
    %79 = tpu.matmul %76, %78, %cst_80 {dimension_numbers = #tpu.dot_dimension_numbers<[1], [0], [0], [1], [0, 0, 1, 1], [], []>} : vector<80x256xbf16>, vector<256x192xbf16>, vector<80x192xf32> -> vector<80x192xf32>
    %80 = arith.addf %75, %79 : vector<80x192xf32>
    %c14_81 = arith.constant 14 : index
    %c0_82 = arith.constant 0 : index
    %81 = vector.load %arg18[%c14_81, %c0_82] : memref<112x256xbf16, #tpu.memory_space<vmem>>, vector<80x256xbf16>
    %c5_83 = arith.constant 5 : index
    %c0_84 = arith.constant 0 : index
    %c0_85 = arith.constant 0 : index
    %82 = vector.load %arg6[%c5_83, %c0_84, %c0_85] : memref<9x256x192xbf16, #tpu.memory_space<vmem>>, vector<1x256x192xbf16>
    %83 = vector.shape_cast %82 : vector<1x256x192xbf16> to vector<256x192xbf16>
    %cst_86 = arith.constant dense<0.000000e+00> : vector<80x192xf32>
    %84 = tpu.matmul %81, %83, %cst_86 {dimension_numbers = #tpu.dot_dimension_numbers<[1], [0], [0], [1], [0, 0, 1, 1], [], []>} : vector<80x256xbf16>, vector<256x192xbf16>, vector<80x192xf32> -> vector<80x192xf32>
    %85 = arith.addf %80, %84 : vector<80x192xf32>
    %c24_87 = arith.constant 24 : index
    %c0_88 = arith.constant 0 : index
    %86 = vector.load %arg18[%c24_87, %c0_88] : memref<112x256xbf16, #tpu.memory_space<vmem>>, vector<80x256xbf16>
    %c6_89 = arith.constant 6 : index
    %c0_90 = arith.constant 0 : index
    %c0_91 = arith.constant 0 : index
    %87 = vector.load %arg6[%c6_89, %c0_90, %c0_91] : memref<9x256x192xbf16, #tpu.memory_space<vmem>>, vector<1x256x192xbf16>
    %88 = vector.shape_cast %87 : vector<1x256x192xbf16> to vector<256x192xbf16>
    %cst_92 = arith.constant dense<0.000000e+00> : vector<80x192xf32>
    %89 = tpu.matmul %86, %88, %cst_92 {dimension_numbers = #tpu.dot_dimension_numbers<[1], [0], [0], [1], [0, 0, 1, 1], [], []>} : vector<80x256xbf16>, vector<256x192xbf16>, vector<80x192xf32> -> vector<80x192xf32>
    %90 = arith.addf %85, %89 : vector<80x192xf32>
    %c25_93 = arith.constant 25 : index
    %c0_94 = arith.constant 0 : index
    %91 = vector.load %arg18[%c25_93, %c0_94] : memref<112x256xbf16, #tpu.memory_space<vmem>>, vector<80x256xbf16>
    %c7_95 = arith.constant 7 : index
    %c0_96 = arith.constant 0 : index
    %c0_97 = arith.constant 0 : index
    %92 = vector.load %arg6[%c7_95, %c0_96, %c0_97] : memref<9x256x192xbf16, #tpu.memory_space<vmem>>, vector<1x256x192xbf16>
    %93 = vector.shape_cast %92 : vector<1x256x192xbf16> to vector<256x192xbf16>
    %cst_98 = arith.constant dense<0.000000e+00> : vector<80x192xf32>
    %94 = tpu.matmul %91, %93, %cst_98 {dimension_numbers = #tpu.dot_dimension_numbers<[1], [0], [0], [1], [0, 0, 1, 1], [], []>} : vector<80x256xbf16>, vector<256x192xbf16>, vector<80x192xf32> -> vector<80x192xf32>
    %95 = arith.addf %90, %94 : vector<80x192xf32>
    %c26_99 = arith.constant 26 : index
    %c0_100 = arith.constant 0 : index
    %96 = vector.load %arg18[%c26_99, %c0_100] : memref<112x256xbf16, #tpu.memory_space<vmem>>, vector<80x256xbf16>
    %c8_101 = arith.constant 8 : index
    %c0_102 = arith.constant 0 : index
    %c0_103 = arith.constant 0 : index
    %97 = vector.load %arg6[%c8_101, %c0_102, %c0_103] : memref<9x256x192xbf16, #tpu.memory_space<vmem>>, vector<1x256x192xbf16>
    %98 = vector.shape_cast %97 : vector<1x256x192xbf16> to vector<256x192xbf16>
    %cst_104 = arith.constant dense<0.000000e+00> : vector<80x192xf32>
    %99 = tpu.matmul %96, %98, %cst_104 {dimension_numbers = #tpu.dot_dimension_numbers<[1], [0], [0], [1], [0, 0, 1, 1], [], []>} : vector<80x256xbf16>, vector<256x192xbf16>, vector<80x192xf32> -> vector<80x192xf32>
    %100 = arith.addf %95, %99 : vector<80x192xf32>
    %c0_105 = arith.constant 0 : index
    %c0_106 = arith.constant 0 : index
    %101 = vector.load %arg7[%c0_105, %c0_106] : memref<1x192xf32, #tpu.memory_space<vmem>>, vector<1x192xf32>
    %102 = vector.broadcast %101 : vector<1x192xf32> to vector<80x192xf32>
    %103 = arith.addf %100, %102 : vector<80x192xf32>
    %104 = arith.truncf %103 : vector<80x192xf32> to vector<80x192xbf16>
    %c0_107 = arith.constant 0 : index
    %c0_108 = arith.constant 0 : index
    %105 = vector.load %arg19[%c0_107, %c0_108] : memref<80x192xbf16, #tpu.memory_space<vmem>>, vector<80x192xbf16>
    tpu.vector_store %arg19[%c0_107, %c0_108], %104 {strides = array<i32>} : memref<80x192xbf16, #tpu.memory_space<vmem>>, vector<80x192xbf16>,
    %c0_109 = arith.constant 0 : index
    %c0_110 = arith.constant 0 : index
    %106 = vector.load %arg19[%c0_109, %c0_110] : memref<80x192xbf16, #tpu.memory_space<vmem>>, vector<48x192xbf16>
    %c0_111 = arith.constant 0 : index
    %c0_112 = arith.constant 0 : index
    %c0_113 = arith.constant 0 : index
    %107 = vector.load %arg8[%c0_111, %c0_112, %c0_113] : memref<9x192x64xbf16, #tpu.memory_space<vmem>>, vector<1x192x64xbf16>
    %108 = vector.shape_cast %107 : vector<1x192x64xbf16> to vector<192x64xbf16>
    %cst_114 = arith.constant dense<0.000000e+00> : vector<48x64xf32>
    %109 = tpu.matmul %106, %108, %cst_114 {dimension_numbers = #tpu.dot_dimension_numbers<[1], [0], [0], [1], [0, 0, 1, 1], [], []>} : vector<48x192xbf16>, vector<192x64xbf16>, vector<48x64xf32> -> vector<48x64xf32>
    %c1_115 = arith.constant 1 : index
    %c0_116 = arith.constant 0 : index
    %110 = vector.load %arg19[%c1_115, %c0_116] : memref<80x192xbf16, #tpu.memory_space<vmem>>, vector<48x192xbf16>
    %c1_117 = arith.constant 1 : index
    %c0_118 = arith.constant 0 : index
    %c0_119 = arith.constant 0 : index
    %111 = vector.load %arg8[%c1_117, %c0_118, %c0_119] : memref<9x192x64xbf16, #tpu.memory_space<vmem>>, vector<1x192x64xbf16>
    %112 = vector.shape_cast %111 : vector<1x192x64xbf16> to vector<192x64xbf16>
    %cst_120 = arith.constant dense<0.000000e+00> : vector<48x64xf32>
    %113 = tpu.matmul %110, %112, %cst_120 {dimension_numbers = #tpu.dot_dimension_numbers<[1], [0], [0], [1], [0, 0, 1, 1], [], []>} : vector<48x192xbf16>, vector<192x64xbf16>, vector<48x64xf32> -> vector<48x64xf32>
    %114 = arith.addf %109, %113 : vector<48x64xf32>
    %c2_121 = arith.constant 2 : index
    %c0_122 = arith.constant 0 : index
    %115 = vector.load %arg19[%c2_121, %c0_122] : memref<80x192xbf16, #tpu.memory_space<vmem>>, vector<48x192xbf16>
    %c2_123 = arith.constant 2 : index
    %c0_124 = arith.constant 0 : index
    %c0_125 = arith.constant 0 : index
    %116 = vector.load %arg8[%c2_123, %c0_124, %c0_125] : memref<9x192x64xbf16, #tpu.memory_space<vmem>>, vector<1x192x64xbf16>
    %117 = vector.shape_cast %116 : vector<1x192x64xbf16> to vector<192x64xbf16>
    %cst_126 = arith.constant dense<0.000000e+00> : vector<48x64xf32>
    %118 = tpu.matmul %115, %117, %cst_126 {dimension_numbers = #tpu.dot_dimension_numbers<[1], [0], [0], [1], [0, 0, 1, 1], [], []>} : vector<48x192xbf16>, vector<192x64xbf16>, vector<48x64xf32> -> vector<48x64xf32>
    %119 = arith.addf %114, %118 : vector<48x64xf32>
    %c12_127 = arith.constant 12 : index
    %c0_128 = arith.constant 0 : index
    %120 = vector.load %arg19[%c12_127, %c0_128] : memref<80x192xbf16, #tpu.memory_space<vmem>>, vector<48x192xbf16>
    %c3_129 = arith.constant 3 : index
    %c0_130 = arith.constant 0 : index
    %c0_131 = arith.constant 0 : index
    %121 = vector.load %arg8[%c3_129, %c0_130, %c0_131] : memref<9x192x64xbf16, #tpu.memory_space<vmem>>, vector<1x192x64xbf16>
    %122 = vector.shape_cast %121 : vector<1x192x64xbf16> to vector<192x64xbf16>
    %cst_132 = arith.constant dense<0.000000e+00> : vector<48x64xf32>
    %123 = tpu.matmul %120, %122, %cst_132 {dimension_numbers = #tpu.dot_dimension_numbers<[1], [0], [0], [1], [0, 0, 1, 1], [], []>} : vector<48x192xbf16>, vector<192x64xbf16>, vector<48x64xf32> -> vector<48x64xf32>
    %124 = arith.addf %119, %123 : vector<48x64xf32>
    %c13_133 = arith.constant 13 : index
    %c0_134 = arith.constant 0 : index
    %125 = vector.load %arg19[%c13_133, %c0_134] : memref<80x192xbf16, #tpu.memory_space<vmem>>, vector<48x192xbf16>
    %c4_135 = arith.constant 4 : index
    %c0_136 = arith.constant 0 : index
    %c0_137 = arith.constant 0 : index
    %126 = vector.load %arg8[%c4_135, %c0_136, %c0_137] : memref<9x192x64xbf16, #tpu.memory_space<vmem>>, vector<1x192x64xbf16>
    %127 = vector.shape_cast %126 : vector<1x192x64xbf16> to vector<192x64xbf16>
    %cst_138 = arith.constant dense<0.000000e+00> : vector<48x64xf32>
    %128 = tpu.matmul %125, %127, %cst_138 {dimension_numbers = #tpu.dot_dimension_numbers<[1], [0], [0], [1], [0, 0, 1, 1], [], []>} : vector<48x192xbf16>, vector<192x64xbf16>, vector<48x64xf32> -> vector<48x64xf32>
    %129 = arith.addf %124, %128 : vector<48x64xf32>
    %c14_139 = arith.constant 14 : index
    %c0_140 = arith.constant 0 : index
    %130 = vector.load %arg19[%c14_139, %c0_140] : memref<80x192xbf16, #tpu.memory_space<vmem>>, vector<48x192xbf16>
    %c5_141 = arith.constant 5 : index
    %c0_142 = arith.constant 0 : index
    %c0_143 = arith.constant 0 : index
    %131 = vector.load %arg8[%c5_141, %c0_142, %c0_143] : memref<9x192x64xbf16, #tpu.memory_space<vmem>>, vector<1x192x64xbf16>
    %132 = vector.shape_cast %131 : vector<1x192x64xbf16> to vector<192x64xbf16>
    %cst_144 = arith.constant dense<0.000000e+00> : vector<48x64xf32>
    %133 = tpu.matmul %130, %132, %cst_144 {dimension_numbers = #tpu.dot_dimension_numbers<[1], [0], [0], [1], [0, 0, 1, 1], [], []>} : vector<48x192xbf16>, vector<192x64xbf16>, vector<48x64xf32> -> vector<48x64xf32>
    %134 = arith.addf %129, %133 : vector<48x64xf32>
    %c24_145 = arith.constant 24 : index
    %c0_146 = arith.constant 0 : index
    %135 = vector.load %arg19[%c24_145, %c0_146] : memref<80x192xbf16, #tpu.memory_space<vmem>>, vector<48x192xbf16>
    %c6_147 = arith.constant 6 : index
    %c0_148 = arith.constant 0 : index
    %c0_149 = arith.constant 0 : index
    %136 = vector.load %arg8[%c6_147, %c0_148, %c0_149] : memref<9x192x64xbf16, #tpu.memory_space<vmem>>, vector<1x192x64xbf16>
    %137 = vector.shape_cast %136 : vector<1x192x64xbf16> to vector<192x64xbf16>
    %cst_150 = arith.constant dense<0.000000e+00> : vector<48x64xf32>
    %138 = tpu.matmul %135, %137, %cst_150 {dimension_numbers = #tpu.dot_dimension_numbers<[1], [0], [0], [1], [0, 0, 1, 1], [], []>} : vector<48x192xbf16>, vector<192x64xbf16>, vector<48x64xf32> -> vector<48x64xf32>
    %139 = arith.addf %134, %138 : vector<48x64xf32>
    %c25_151 = arith.constant 25 : index
    %c0_152 = arith.constant 0 : index
    %140 = vector.load %arg19[%c25_151, %c0_152] : memref<80x192xbf16, #tpu.memory_space<vmem>>, vector<48x192xbf16>
    %c7_153 = arith.constant 7 : index
    %c0_154 = arith.constant 0 : index
    %c0_155 = arith.constant 0 : index
    %141 = vector.load %arg8[%c7_153, %c0_154, %c0_155] : memref<9x192x64xbf16, #tpu.memory_space<vmem>>, vector<1x192x64xbf16>
    %142 = vector.shape_cast %141 : vector<1x192x64xbf16> to vector<192x64xbf16>
    %cst_156 = arith.constant dense<0.000000e+00> : vector<48x64xf32>
    %143 = tpu.matmul %140, %142, %cst_156 {dimension_numbers = #tpu.dot_dimension_numbers<[1], [0], [0], [1], [0, 0, 1, 1], [], []>} : vector<48x192xbf16>, vector<192x64xbf16>, vector<48x64xf32> -> vector<48x64xf32>
    %144 = arith.addf %139, %143 : vector<48x64xf32>
    %c26_157 = arith.constant 26 : index
    %c0_158 = arith.constant 0 : index
    %145 = vector.load %arg19[%c26_157, %c0_158] : memref<80x192xbf16, #tpu.memory_space<vmem>>, vector<48x192xbf16>
    %c8_159 = arith.constant 8 : index
    %c0_160 = arith.constant 0 : index
    %c0_161 = arith.constant 0 : index
    %146 = vector.load %arg8[%c8_159, %c0_160, %c0_161] : memref<9x192x64xbf16, #tpu.memory_space<vmem>>, vector<1x192x64xbf16>
    %147 = vector.shape_cast %146 : vector<1x192x64xbf16> to vector<192x64xbf16>
    %cst_162 = arith.constant dense<0.000000e+00> : vector<48x64xf32>
    %148 = tpu.matmul %145, %147, %cst_162 {dimension_numbers = #tpu.dot_dimension_numbers<[1], [0], [0], [1], [0, 0, 1, 1], [], []>} : vector<48x192xbf16>, vector<192x64xbf16>, vector<48x64xf32> -> vector<48x64xf32>
    %149 = arith.addf %144, %148 : vector<48x64xf32>
    %c0_163 = arith.constant 0 : index
    %c0_164 = arith.constant 0 : index
    %150 = vector.load %arg9[%c0_163, %c0_164] : memref<1x64xf32, #tpu.memory_space<vmem>>, vector<1x64xf32>
    %151 = vector.broadcast %150 : vector<1x64xf32> to vector<48x64xf32>
    %152 = arith.addf %149, %151 : vector<48x64xf32>
    %153 = arith.truncf %152 : vector<48x64xf32> to vector<48x64xbf16>
    %c0_165 = arith.constant 0 : index
    %c0_166 = arith.constant 0 : index
    %154 = vector.load %arg20[%c0_165, %c0_166] : memref<48x64xbf16, #tpu.memory_space<vmem>>, vector<48x64xbf16>
    tpu.vector_store %arg20[%c0_165, %c0_166], %153 {strides = array<i32>} : memref<48x64xbf16, #tpu.memory_space<vmem>>, vector<48x64xbf16>,
    %c0_167 = arith.constant 0 : index
    %c0_168 = arith.constant 0 : index
    %155 = vector.load %arg20[%c0_167, %c0_168] : memref<48x64xbf16, #tpu.memory_space<vmem>>, vector<16x64xbf16>
    %c0_169 = arith.constant 0 : index
    %c0_170 = arith.constant 0 : index
    %c0_171 = arith.constant 0 : index
    %156 = vector.load %arg10[%c0_169, %c0_170, %c0_171] : memref<9x64x32xbf16, #tpu.memory_space<vmem>>, vector<1x64x32xbf16>
    %157 = vector.shape_cast %156 : vector<1x64x32xbf16> to vector<64x32xbf16>
    %cst_172 = arith.constant dense<0.000000e+00> : vector<16x32xf32>
    %158 = tpu.matmul %155, %157, %cst_172 {dimension_numbers = #tpu.dot_dimension_numbers<[1], [0], [0], [1], [0, 0, 1, 1], [], []>} : vector<16x64xbf16>, vector<64x32xbf16>, vector<16x32xf32> -> vector<16x32xf32>
    %c1_173 = arith.constant 1 : index
    %c0_174 = arith.constant 0 : index
    %159 = vector.load %arg20[%c1_173, %c0_174] : memref<48x64xbf16, #tpu.memory_space<vmem>>, vector<16x64xbf16>
    %c1_175 = arith.constant 1 : index
    %c0_176 = arith.constant 0 : index
    %c0_177 = arith.constant 0 : index
    %160 = vector.load %arg10[%c1_175, %c0_176, %c0_177] : memref<9x64x32xbf16, #tpu.memory_space<vmem>>, vector<1x64x32xbf16>
    %161 = vector.shape_cast %160 : vector<1x64x32xbf16> to vector<64x32xbf16>
    %cst_178 = arith.constant dense<0.000000e+00> : vector<16x32xf32>
    %162 = tpu.matmul %159, %161, %cst_178 {dimension_numbers = #tpu.dot_dimension_numbers<[1], [0], [0], [1], [0, 0, 1, 1], [], []>} : vector<16x64xbf16>, vector<64x32xbf16>, vector<16x32xf32> -> vector<16x32xf32>
    %163 = arith.addf %158, %162 : vector<16x32xf32>
    %c2_179 = arith.constant 2 : index
    %c0_180 = arith.constant 0 : index
    %164 = vector.load %arg20[%c2_179, %c0_180] : memref<48x64xbf16, #tpu.memory_space<vmem>>, vector<16x64xbf16>
    %c2_181 = arith.constant 2 : index
    %c0_182 = arith.constant 0 : index
    %c0_183 = arith.constant 0 : index
    %165 = vector.load %arg10[%c2_181, %c0_182, %c0_183] : memref<9x64x32xbf16, #tpu.memory_space<vmem>>, vector<1x64x32xbf16>
    %166 = vector.shape_cast %165 : vector<1x64x32xbf16> to vector<64x32xbf16>
    %cst_184 = arith.constant dense<0.000000e+00> : vector<16x32xf32>
    %167 = tpu.matmul %164, %166, %cst_184 {dimension_numbers = #tpu.dot_dimension_numbers<[1], [0], [0], [1], [0, 0, 1, 1], [], []>} : vector<16x64xbf16>, vector<64x32xbf16>, vector<16x32xf32> -> vector<16x32xf32>
    %168 = arith.addf %163, %167 : vector<16x32xf32>
    %c12_185 = arith.constant 12 : index
    %c0_186 = arith.constant 0 : index
    %169 = vector.load %arg20[%c12_185, %c0_186] : memref<48x64xbf16, #tpu.memory_space<vmem>>, vector<16x64xbf16>
    %c3_187 = arith.constant 3 : index
    %c0_188 = arith.constant 0 : index
    %c0_189 = arith.constant 0 : index
    %170 = vector.load %arg10[%c3_187, %c0_188, %c0_189] : memref<9x64x32xbf16, #tpu.memory_space<vmem>>, vector<1x64x32xbf16>
    %171 = vector.shape_cast %170 : vector<1x64x32xbf16> to vector<64x32xbf16>
    %cst_190 = arith.constant dense<0.000000e+00> : vector<16x32xf32>
    %172 = tpu.matmul %169, %171, %cst_190 {dimension_numbers = #tpu.dot_dimension_numbers<[1], [0], [0], [1], [0, 0, 1, 1], [], []>} : vector<16x64xbf16>, vector<64x32xbf16>, vector<16x32xf32> -> vector<16x32xf32>
    %173 = arith.addf %168, %172 : vector<16x32xf32>
    %c13_191 = arith.constant 13 : index
    %c0_192 = arith.constant 0 : index
    %174 = vector.load %arg20[%c13_191, %c0_192] : memref<48x64xbf16, #tpu.memory_space<vmem>>, vector<16x64xbf16>
    %c4_193 = arith.constant 4 : index
    %c0_194 = arith.constant 0 : index
    %c0_195 = arith.constant 0 : index
    %175 = vector.load %arg10[%c4_193, %c0_194, %c0_195] : memref<9x64x32xbf16, #tpu.memory_space<vmem>>, vector<1x64x32xbf16>
    %176 = vector.shape_cast %175 : vector<1x64x32xbf16> to vector<64x32xbf16>
    %cst_196 = arith.constant dense<0.000000e+00> : vector<16x32xf32>
    %177 = tpu.matmul %174, %176, %cst_196 {dimension_numbers = #tpu.dot_dimension_numbers<[1], [0], [0], [1], [0, 0, 1, 1], [], []>} : vector<16x64xbf16>, vector<64x32xbf16>, vector<16x32xf32> -> vector<16x32xf32>
    %178 = arith.addf %173, %177 : vector<16x32xf32>
    %c14_197 = arith.constant 14 : index
    %c0_198 = arith.constant 0 : index
    %179 = vector.load %arg20[%c14_197, %c0_198] : memref<48x64xbf16, #tpu.memory_space<vmem>>, vector<16x64xbf16>
    %c5_199 = arith.constant 5 : index
    %c0_200 = arith.constant 0 : index
    %c0_201 = arith.constant 0 : index
    %180 = vector.load %arg10[%c5_199, %c0_200, %c0_201] : memref<9x64x32xbf16, #tpu.memory_space<vmem>>, vector<1x64x32xbf16>
    %181 = vector.shape_cast %180 : vector<1x64x32xbf16> to vector<64x32xbf16>
    %cst_202 = arith.constant dense<0.000000e+00> : vector<16x32xf32>
    %182 = tpu.matmul %179, %181, %cst_202 {dimension_numbers = #tpu.dot_dimension_numbers<[1], [0], [0], [1], [0, 0, 1, 1], [], []>} : vector<16x64xbf16>, vector<64x32xbf16>, vector<16x32xf32> -> vector<16x32xf32>
    %183 = arith.addf %178, %182 : vector<16x32xf32>
    %c24_203 = arith.constant 24 : index
    %c0_204 = arith.constant 0 : index
    %184 = vector.load %arg20[%c24_203, %c0_204] : memref<48x64xbf16, #tpu.memory_space<vmem>>, vector<16x64xbf16>
    %c6_205 = arith.constant 6 : index
    %c0_206 = arith.constant 0 : index
    %c0_207 = arith.constant 0 : index
    %185 = vector.load %arg10[%c6_205, %c0_206, %c0_207] : memref<9x64x32xbf16, #tpu.memory_space<vmem>>, vector<1x64x32xbf16>
    %186 = vector.shape_cast %185 : vector<1x64x32xbf16> to vector<64x32xbf16>
    %cst_208 = arith.constant dense<0.000000e+00> : vector<16x32xf32>
    %187 = tpu.matmul %184, %186, %cst_208 {dimension_numbers = #tpu.dot_dimension_numbers<[1], [0], [0], [1], [0, 0, 1, 1], [], []>} : vector<16x64xbf16>, vector<64x32xbf16>, vector<16x32xf32> -> vector<16x32xf32>
    %188 = arith.addf %183, %187 : vector<16x32xf32>
    %c25_209 = arith.constant 25 : index
    %c0_210 = arith.constant 0 : index
    %189 = vector.load %arg20[%c25_209, %c0_210] : memref<48x64xbf16, #tpu.memory_space<vmem>>, vector<16x64xbf16>
    %c7_211 = arith.constant 7 : index
    %c0_212 = arith.constant 0 : index
    %c0_213 = arith.constant 0 : index
    %190 = vector.load %arg10[%c7_211, %c0_212, %c0_213] : memref<9x64x32xbf16, #tpu.memory_space<vmem>>, vector<1x64x32xbf16>
    %191 = vector.shape_cast %190 : vector<1x64x32xbf16> to vector<64x32xbf16>
    %cst_214 = arith.constant dense<0.000000e+00> : vector<16x32xf32>
    %192 = tpu.matmul %189, %191, %cst_214 {dimension_numbers = #tpu.dot_dimension_numbers<[1], [0], [0], [1], [0, 0, 1, 1], [], []>} : vector<16x64xbf16>, vector<64x32xbf16>, vector<16x32xf32> -> vector<16x32xf32>
    %193 = arith.addf %188, %192 : vector<16x32xf32>
    %c26_215 = arith.constant 26 : index
    %c0_216 = arith.constant 0 : index
    %194 = vector.load %arg20[%c26_215, %c0_216] : memref<48x64xbf16, #tpu.memory_space<vmem>>, vector<16x64xbf16>
    %c8_217 = arith.constant 8 : index
    %c0_218 = arith.constant 0 : index
    %c0_219 = arith.constant 0 : index
    %195 = vector.load %arg10[%c8_217, %c0_218, %c0_219] : memref<9x64x32xbf16, #tpu.memory_space<vmem>>, vector<1x64x32xbf16>
    %196 = vector.shape_cast %195 : vector<1x64x32xbf16> to vector<64x32xbf16>
    %cst_220 = arith.constant dense<0.000000e+00> : vector<16x32xf32>
    %197 = tpu.matmul %194, %196, %cst_220 {dimension_numbers = #tpu.dot_dimension_numbers<[1], [0], [0], [1], [0, 0, 1, 1], [], []>} : vector<16x64xbf16>, vector<64x32xbf16>, vector<16x32xf32> -> vector<16x32xf32>
    %198 = arith.addf %193, %197 : vector<16x32xf32>
    %c0_221 = arith.constant 0 : index
    %c0_222 = arith.constant 0 : index
    %199 = vector.load %arg11[%c0_221, %c0_222] : memref<1x32xf32, #tpu.memory_space<vmem>>, vector<1x32xf32>
    %200 = vector.broadcast %199 : vector<1x32xf32> to vector<16x32xf32>
    %201 = arith.addf %198, %200 : vector<16x32xf32>
    %c0_223 = arith.constant 0 : index
    %c0_224 = arith.constant 0 : index
    %202 = vector.load %arg21[%c0_223, %c0_224] : memref<16x32xf32, #tpu.memory_space<vmem>>, vector<16x32xf32>
    tpu.vector_store %arg21[%c0_223, %c0_224], %201 {strides = array<i32>} : memref<16x32xf32, #tpu.memory_space<vmem>>, vector<16x32xf32>,
    %c0_225 = arith.constant 0 : index
    %c0_226 = arith.constant 0 : index
    %203 = vector.load %arg21[%c0_225, %c0_226] : memref<16x32xf32, #tpu.memory_space<vmem>>, vector<1x32xf32>
    %c1_227 = arith.constant 1 : index
    %c0_228 = arith.constant 0 : index
    %204 = vector.load %arg21[%c1_227, %c0_228] : memref<16x32xf32, #tpu.memory_space<vmem>>, vector<1x32xf32>
    %205 = arith.addf %203, %204 : vector<1x32xf32>
    %c12_229 = arith.constant 12 : index
    %c0_230 = arith.constant 0 : index
    %206 = vector.load %arg21[%c12_229, %c0_230] : memref<16x32xf32, #tpu.memory_space<vmem>>, vector<1x32xf32>
    %207 = arith.addf %205, %206 : vector<1x32xf32>
    %c13_231 = arith.constant 13 : index
    %c0_232 = arith.constant 0 : index
    %208 = vector.load %arg21[%c13_231, %c0_232] : memref<16x32xf32, #tpu.memory_space<vmem>>, vector<1x32xf32>
    %209 = arith.addf %207, %208 : vector<1x32xf32>
    %c0_233 = arith.constant 0 : index
    %c0_234 = arith.constant 0 : index
    %210 = vector.load %arg12[%c0_233, %c0_234] : memref<32x12xf32, #tpu.memory_space<vmem>>, vector<32x12xf32>
    %cst_235 = arith.constant dense<0.000000e+00> : vector<1x12xf32>
    %211 = tpu.matmul %209, %210, %cst_235 {dimension_numbers = #tpu.dot_dimension_numbers<[1], [0], [0], [1], [0, 0, 1, 1], [], []>} : vector<1x32xf32>, vector<32x12xf32>, vector<1x12xf32> -> vector<1x12xf32>
    %c0_236 = arith.constant 0 : index
    %c0_237 = arith.constant 0 : index
    %212 = vector.load %arg13[%c0_236, %c0_237] : memref<1x12xf32, #tpu.memory_space<vmem>>, vector<1x12xf32>
    %213 = arith.addf %211, %212 : vector<1x12xf32>
    %c0_238 = arith.constant 0 : index
    %c0_239 = arith.constant 0 : index
    %214 = vector.load %arg14[%c0_238, %c0_239] : memref<12x128xf32, #tpu.memory_space<vmem>>, vector<12x128xf32>
    %cst_240 = arith.constant dense<0.000000e+00> : vector<1x128xf32>
    %215 = tpu.matmul %213, %214, %cst_240 {dimension_numbers = #tpu.dot_dimension_numbers<[1], [0], [0], [1], [0, 0, 1, 1], [], []>} : vector<1x12xf32>, vector<12x128xf32>, vector<1x128xf32> -> vector<1x128xf32>
    %c0_241 = arith.constant 0 : index
    %c0_242 = arith.constant 0 : index
    %216 = vector.load %arg15[%c0_241, %c0_242] : memref<1x128xf32, #tpu.memory_space<vmem>>, vector<1x128xf32>
    %217 = arith.addf %215, %216 : vector<1x128xf32>
    %c0_243 = arith.constant 0 : index
    %c0_244 = arith.constant 0 : index
    %c0_245 = arith.constant 0 : index
    %218 = vector.load %arg16[%c0_243, %c0_244, %c0_245] : memref<1x1x128xf32, #tpu.memory_space<vmem>>, vector<1x1x128xf32>
    %219 = vector.shape_cast %218 : vector<1x1x128xf32> to vector<1x128xf32>
    %220 = vector.shape_cast %217 : vector<1x128xf32> to vector<1x1x128xf32>
    tpu.vector_store %arg16[%c0_243, %c0_244, %c0_245], %220 {strides = array<i32>} : memref<1x1x128xf32, #tpu.memory_space<vmem>>, vector<1x1x128xf32>,
    return
  }
  func.func @transform_0(%arg0: i32) -> (i32, i32) {
    %c0_i32 = arith.constant 0 : i32
    %c0_i32_0 = arith.constant 0 : i32
    return %arg0, %c0_i32 : i32, i32
  }
  func.func @transform_1(%arg0: i32) -> (i32, i32) {
    %c0_i32 = arith.constant 0 : i32
    %c0_i32_0 = arith.constant 0 : i32
    %c0_i32_1 = arith.constant 0 : i32
    return %c0_i32, %c0_i32_0 : i32, i32
  }
  func.func @transform_2(%arg0: i32) -> (i32, i32) {
    %c0_i32 = arith.constant 0 : i32
    %c0_i32_0 = arith.constant 0 : i32
    %c0_i32_1 = arith.constant 0 : i32
    return %c0_i32, %c0_i32_0 : i32, i32
  }
  func.func @transform_3(%arg0: i32) -> (i32, i32, i32) {
    %c0_i32 = arith.constant 0 : i32
    %c0_i32_0 = arith.constant 0 : i32
    %c0_i32_1 = arith.constant 0 : i32
    %c0_i32_2 = arith.constant 0 : i32
    return %c0_i32, %c0_i32_0, %c0_i32_1 : i32, i32, i32
  }
  func.func @transform_4(%arg0: i32) -> (i32, i32) {
    %c0_i32 = arith.constant 0 : i32
    %c0_i32_0 = arith.constant 0 : i32
    %c0_i32_1 = arith.constant 0 : i32
    return %c0_i32, %c0_i32_0 : i32, i32
  }
  func.func @transform_5(%arg0: i32) -> (i32, i32, i32) {
    %c0_i32 = arith.constant 0 : i32
    %c0_i32_0 = arith.constant 0 : i32
    %c0_i32_1 = arith.constant 0 : i32
    %c0_i32_2 = arith.constant 0 : i32
    return %c0_i32, %c0_i32_0, %c0_i32_1 : i32, i32, i32
  }
  func.func @transform_6(%arg0: i32) -> (i32, i32) {
    %c0_i32 = arith.constant 0 : i32
    %c0_i32_0 = arith.constant 0 : i32
    %c0_i32_1 = arith.constant 0 : i32
    return %c0_i32, %c0_i32_0 : i32, i32
  }
  func.func @transform_7(%arg0: i32) -> (i32, i32, i32) {
    %c0_i32 = arith.constant 0 : i32
    %c0_i32_0 = arith.constant 0 : i32
    %c0_i32_1 = arith.constant 0 : i32
    %c0_i32_2 = arith.constant 0 : i32
    return %c0_i32, %c0_i32_0, %c0_i32_1 : i32, i32, i32
  }
  func.func @transform_8(%arg0: i32) -> (i32, i32) {
    %c0_i32 = arith.constant 0 : i32
    %c0_i32_0 = arith.constant 0 : i32
    %c0_i32_1 = arith.constant 0 : i32
    return %c0_i32, %c0_i32_0 : i32, i32
  }
  func.func @transform_9(%arg0: i32) -> (i32, i32, i32) {
    %c0_i32 = arith.constant 0 : i32
    %c0_i32_0 = arith.constant 0 : i32
    %c0_i32_1 = arith.constant 0 : i32
    %c0_i32_2 = arith.constant 0 : i32
    return %c0_i32, %c0_i32_0, %c0_i32_1 : i32, i32, i32
  }
  func.func @transform_10(%arg0: i32) -> (i32, i32) {
    %c0_i32 = arith.constant 0 : i32
    %c0_i32_0 = arith.constant 0 : i32
    %c0_i32_1 = arith.constant 0 : i32
    return %c0_i32, %c0_i32_0 : i32, i32
  }
  func.func @transform_11(%arg0: i32) -> (i32, i32) {
    %c0_i32 = arith.constant 0 : i32
    %c0_i32_0 = arith.constant 0 : i32
    %c0_i32_1 = arith.constant 0 : i32
    return %c0_i32, %c0_i32_0 : i32, i32
  }
  func.func @transform_12(%arg0: i32) -> (i32, i32) {
    %c0_i32 = arith.constant 0 : i32
    %c0_i32_0 = arith.constant 0 : i32
    %c0_i32_1 = arith.constant 0 : i32
    return %c0_i32, %c0_i32_0 : i32, i32
  }
  func.func @transform_13(%arg0: i32) -> (i32, i32) {
    %c0_i32 = arith.constant 0 : i32
    %c0_i32_0 = arith.constant 0 : i32
    %c0_i32_1 = arith.constant 0 : i32
    return %c0_i32, %c0_i32_0 : i32, i32
  }
  func.func @transform_14(%arg0: i32) -> (i32, i32) {
    %c0_i32 = arith.constant 0 : i32
    %c0_i32_0 = arith.constant 0 : i32
    %c0_i32_1 = arith.constant 0 : i32
    return %c0_i32, %c0_i32_0 : i32, i32
  }
  func.func @transform_15(%arg0: i32) -> (i32, i32, i32) {
    %c0_i32 = arith.constant 0 : i32
    %c0_i32_0 = arith.constant 0 : i32
    %c0_i32_1 = arith.constant 0 : i32
    return %arg0, %c0_i32, %c0_i32_0 : i32, i32, i32
  }
}

</mosaic_0001>

<bundles_post_ra>
// kernel: tinycnn_forward.1
= control target key start
LH: loop header
LB: loop body
LE: loop exit
PB: predicated region body
PF: predicated region fallthrough
CT: control target
= control target key end

     0   :  { %20 = vsyncpa [#allocation8], 0  ;;  %s28254_s0 = inlined_call_operand.vmem [shape: bf16[288,128], index: 0, kind: input, shape index: {}]   ;;  %s28255_s1 = inlined_call_operand.vmem [shape: bf16[128,640], index: 1, kind: input, shape index: {}]   ;;  %s28256_s2 = inlined_call_operand.vmem [shape: f32[1,640], index: 2, kind: input, shape index: {}]   ;;  %s28257_s3 = inlined_call_operand.vmem [shape: bf16[9,640,256], index: 3, kind: input, shape index: {}]   ;;  %s28258_s4 = inlined_call_operand.vmem [shape: f32[1,256], index: 4, kind: input, shape index: {}]   ;;  %s28259_s5 = inlined_call_operand.vmem [shape: bf16[9,256,192], index: 5, kind: input, shape index: {}]   ;;  %s28260_s6 = inlined_call_operand.vmem [shape: f32[1,192], index: 6, kind: input, shape index: {}]   ;;  %s28261_s7 = inlined_call_operand.vmem [shape: bf16[9,192,64], index: 7, kind: input, shape index: {}]   ;;  %s28262_s8 = inlined_call_operand.vmem [shape: f32[1,64], index: 8, kind: input, shape index: {}]   ;;  %s28263_s9 = inlined_call_operand.vmem [shape: bf16[9,64,32], index: 9, kind: input, shape index: {}]   ;;  %s28264_s10 = inlined_call_operand.vmem [shape: f32[1,32], index: 10, kind: input, shape index: {}]   ;;  %s28265_s11 = inlined_call_operand.vmem [shape: f32[32,12], index: 11, kind: input, shape index: {}]   ;;  %s28266_s12 = inlined_call_operand.vmem [shape: f32[1,12], index: 12, kind: input, shape index: {}]   ;;  %s28267_s13 = inlined_call_operand.vmem [shape: f32[12,128], index: 13, kind: input, shape index: {}]   ;;  %s28268_s14 = inlined_call_operand.vmem [shape: f32[1,128], index: 14, kind: input, shape index: {}]   ;;  %s28269_s15 = inlined_call_operand.hbm [shape: f32[2,1,128], index: 15, kind: output, shape index: {}]  }
   0x1   :  { %22 = vsyncpa [#allocation8 + $0x1], 0  ;;  %s22108_s18 = smov 0   ;;  %s22110_s19 = smov 0  }
   0x2   :  { %s22112_s20 = smov 0   ;;  %s22114_s21 = smov 0  }
   0x3 LB: > { %28360 = sst [smem:[#allocation10_spill]] %s22008_s18  ;;  %s22129_s22 = sadd.s32 4294967295, %s22020_s21   ;;  %s22020_s21 = sphi %s22114_s21, %s28514_s21   ;;  %s22016_s20 = sphi %s22112_s20, %s28519_s20   ;;  %s22012_s19 = sphi %s22110_s19, %s28518_s19   ;;  %s22008_s18 = sphi %s22108_s18, %s28517_s18  }
   0x4   : > { %28361 = sst [smem:[#allocation11_spill]] %s22016_s20  ;;  %s16498_s23 = sadd.s32 4294967294, %s22020_s21  }
   0x5   : > { %28362 = sst [smem:[#allocation12_spill]] %s22020_s21  ;;  %s22133_s24 = sadd.s32 1, %s22020_s21  }
   0x6   : > { %28363 = sst [smem:[#allocation13_spill]] %s22133_s24  ;;  %s355_s25 = sadd.s32 1, %s22016_s20 }
   0x7   : > { %s352_s26 = ssub.s32 %s22020_s21, %s22133_s24  ;;  %p365_p0 = scmp.ne.s32.totalorder %s22016_s20, %s22012_s19 }
   0x8   : > { %p353_p1 = scmp.eq.s32.totalorder %s352_s26, 0  ;;  %p366_p2 = scmp.eq.s32.totalorder %s22129_s22, 1 }
   0x9   : > { %p371_p3 = scmp.ne.s32.totalorder %s22012_s19, %s22008_s18  ;;  %p372_p4 = scmp.eq.s32.totalorder %s16498_s23, 1 }
   0xa   : > { %s22144_s27 = scalar_select %p353_p1, %s22016_s20, %s355_s25  }
   0xb   : > { %p22146_p5 = por %p366_p2, %p365_p0  ;;  %p22150_p6 = por %p372_p4, %p371_p3 }
   0xc   : > { %28364 = sst [smem:[#allocation14_spill]] %s22144_s27  ;;  %p16501_p7 = scmp.ge.s32.totalorder %s22020_s21, 1 }
   0xd   : > { %s28366_s29 = scalar_select %p22150_p6, 1, 0 }
   0xe   : > { %p441_p8 = scmp.lt.s32.totalorder %s22020_s21, 3 }
   0xf   : > { %28367 = sst [smem:[#allocation15_spill]] %s28366_s29 }
  0x10   : > { %p442_p9 = pnand %p16501_p7, %p441_p8 }
  0x12   : > { %445 = sbr.rel (%p442_p9) target bundleno = 4029 (0xfbd), region = 80 }
  0x19   : > { %v20090_v0 = vld [vmem:[%s28255_s1 + $0x4] ss:$20 sps:$4 sm:$0xff]   ;;  %v20092_v1 = vld [vmem:[%s28255_s1 + $0xc] ss:$20 sps:$4 sm:$0xff]   ;;  %v28325_v2 = vmov 0   ;;  %s488_s20 = smul.u32 18, %s22129_s22 }
  0x1a   : > { %882 = vmatprep.mubr.bf16.mxu0 %v28325_v2  ;;  %1005 = vmatprep.mubr.bf16.mxu1 %v28325_v2  ;;  %v20094_v3 = vld [vmem:[%s28255_s1] ss:$20 sps:$4 sm:$0xff]   ;;  %v20095_v4 = vld [vmem:[%s28255_s1 + $0x8] ss:$20 sps:$4 sm:$0xff]   ;;  %v20101_v8 = vld [vmem:[%s28255_s1 + $0x30] ss:$20 sps:$4 sm:$0xff]  }
  0x1b   : > { %850 = vmatprep.subr.bf16.mxu0 %v20090_v0  ;;  %973 = vmatprep.subr.bf16.mxu1 %v20092_v1  ;;  %v20096_v5 = vld [vmem:[%s28255_s1 + $0x2c] ss:$20 sps:$4 sm:$0xff]   ;;  %v20098_v6 = vld [vmem:[%s28255_s1 + $0x34] ss:$20 sps:$4 sm:$0xff]   ;;  %v20104_v10 = vld [vmem:[%s28255_s1 + $0x5c] ss:$20 sps:$4 sm:$0xff]  }
  0x1c   : > { %851 = vmatpush1.bf16.msra.mxu0 %v20094_v3  ;;  %974 = vmatpush1.bf16.msra.mxu1 %v20095_v4  ;;  %v20100_v7 = vld [vmem:[%s28255_s1 + $0x28] ss:$20 sps:$4 sm:$0xff]   ;;  %v20106_v11 = vld [vmem:[%s28255_s1 + $0x50] ss:$20 sps:$4 sm:$0xff]   ;;  %v20107_v12 = vld [vmem:[%s28255_s1 + $0x58] ss:$20 sps:$4 sm:$0xff]  }
  0x1d   : > { %852 = vmatprep.subr.bf16.mxu0 %v20096_v5  ;;  %975 = vmatprep.subr.bf16.mxu1 %v20098_v6  ;;  %v20102_v9 = vld [vmem:[%s28255_s1 + $0x54] ss:$20 sps:$4 sm:$0xff]   ;;  %v20108_v13 = vld [vmem:[%s28255_s1 + $0x7c] ss:$20 sps:$4 sm:$0xff]   ;;  %v20110_v14 = vld [vmem:[%s28255_s1 + $0x84] ss:$20 sps:$4 sm:$0xff]  }
  0x1e   : > { %p489_p10 = scmp.lt.s32.totalorder %s488_s20, 35  ;;  %v20112_v15 = vld [vmem:[%s28255_s1 + $0x78] ss:$20 sps:$4 sm:$0xff]   ;;  %v20113_v16 = vld [vmem:[%s28255_s1 + $0x80] ss:$20 sps:$4 sm:$0xff]   ;;  %v28276_v35 = vmov 0.0  }
  0x1f   : > { %v20114_v17 = vld [vmem:[%s28255_s1 + $0xa4] ss:$20 sps:$4 sm:$0xff]   ;;  %v20116_v18 = vld [vmem:[%s28255_s1 + $0xac] ss:$20 sps:$4 sm:$0xff]   ;;  %v20119_v20 = vld [vmem:[%s28255_s1 + $0xa8] ss:$20 sps:$4 sm:$0xff]  }
  0x20   : > { %853 = vmatpush1.bf16.msra.mxu0 %v20100_v7  ;;  %976 = vmatpush1.bf16.msra.mxu1 %v20101_v8  ;;  %s28521_s20 = smov (!%p489_p10, %s488_s20), 35  ;;  %v20118_v19 = vld [vmem:[%s28255_s1 + $0xa0] ss:$20 sps:$4 sm:$0xff]   ;;  %v20124_v23 = vld [vmem:[%s28255_s1 + $0xc8] ss:$20 sps:$4 sm:$0xff]   ;;  %vm22024_vm0 = vmmov 0  }
  0x21   : > { %854 = vmatprep.subr.bf16.mxu0 %v20102_v9  ;;  %977 = vmatprep.subr.bf16.mxu1 %v20104_v10  ;;  %v20120_v21 = vld [vmem:[%s28255_s1 + $0xcc] ss:$20 sps:$4 sm:$0xff]   ;;  %v20122_v22 = vld [vmem:[%s28255_s1 + $0xd4] ss:$20 sps:$4 sm:$0xff]   ;;  %s16502_s25 = sshll.u32 %s28521_s20, 2  ;;  %vm3372_vm3 = vcmask 1046528  }
  0x22   : > { %v20125_v24 = vld [vmem:[%s28255_s1 + $0xd0] ss:$20 sps:$4 sm:$0xff]   ;;  %v20126_v25 = vld [vmem:[%s28255_s1 + $0xf4] ss:$20 sps:$4 sm:$0xff]   ;;  %s22237_s24 = scalar_lea.vmem %s28254_s0, %s16502_s25  ;;  %v20131_v28 = vld [vmem:[%s28255_s1 + $0xf8] ss:$20 sps:$4 sm:$0xff]  }
  0x23   : > { %v20128_v26 = vld [vmem:[%s28255_s1 + $0xfc] ss:$20 sps:$4 sm:$0xff]   ;;  %v20134_v30 = vld [vmem:[%s28255_s1 + $0x124] ss:$20 sps:$4 sm:$0xff]   ;;  %v20137_v32 = vld [vmem:[%s28255_s1 + $0x120] ss:$20 sps:$4 sm:$0xff]  }
  0x24   : > { %855 = vmatpush1.bf16.msra.mxu0 %v20106_v11  ;;  %978 = vmatpush1.bf16.msra.mxu1 %v20107_v12  ;;  %v20130_v27 = vld [vmem:[%s28255_s1 + $0xf0] ss:$20 sps:$4 sm:$0xff]   ;;  %v20136_v31 = vld [vmem:[%s28255_s1 + $0x118] ss:$20 sps:$4 sm:$0xff]   ;;  %v20155_v38 = vld [vmem:[%s28257_s3 + $0x380] ss:$8 sps:$4 sm:$0xff]  }
  0x25   : > { %856 = vmatprep.subr.bf16.mxu0 %v20108_v13  ;;  %979 = vmatprep.subr.bf16.mxu1 %v20110_v14  ;;  %v20132_v29 = vld [vmem:[%s28255_s1 + $0x11c] ss:$20 sps:$4 sm:$0xff]   ;;  %v22261_v33 = vld [vmem:[%s22237_s24] sm:$0xff]   ;;  %v20141_v36 = vld [vmem:[%s28255_s1 + $0x38] ss:$20 sps:$4 sm:$0xff]   ;;  %vm6329_vm4 = vcmask 1040384  }
  0x26   : > { %v20139_v34 = vld [vmem:[%s28255_s1 + $0x10] ss:$20 sps:$4 sm:$0xff]   ;;  %v22276_v37 = vld [vmem:[%s22237_s24 + $0x8] sm:$0xff]   ;;  %v20143_v40 = vld [vmem:[%s28255_s1 + $0x60] ss:$20 sps:$4 sm:$0xff]   ;;  %vm4321_vm5 = vcmask 1041408  }
  0x27   : > { %v20157_v39 = vld [vmem:[%s28257_s3 + $0x384] ss:$8 sps:$4 sm:$0xff]   ;;  %v20160_v41 = vld [vmem:[%s28257_s3 + $0x394] ss:$8 sps:$4 sm:$0xff]   ;;  %v20158_v42 = vld [vmem:[%s28257_s3 + $0x390] ss:$8 sps:$4 sm:$0xff]  }
  0x28   : > { %857 = vmatpush1.bf16.msra.mxu0 %v20112_v15  ;;  %980 = vmatpush1.bf16.msra.mxu1 %v20113_v16  ;;  %v20166_v43 = vld [vmem:[%s28257_s3 + $0x3a4] ss:$8 sps:$4 sm:$0xff]   ;;  %v20145_v44 = vld [vmem:[%s28255_s1 + $0x88] ss:$20 sps:$4 sm:$0xff]   ;;  %v22309_v46 = vld [vmem:[%s22237_s24 + $0x10] sm:$0xff]   ;;  %vm7338_vm6 = vcmask 1043456  }
  0x29   : > { %858 = vmatprep.subr.bf16.mxu0 %v20114_v17  ;;  %981 = vmatprep.subr.bf16.mxu1 %v20116_v18  ;;  %v20164_v45 = vld [vmem:[%s28257_s3 + $0x3a0] ss:$8 sps:$4 sm:$0xff]   ;;  %v20147_v47 = vld [vmem:[%s28255_s1 + $0xb0] ss:$20 sps:$4 sm:$0xff]   ;;  %v20172_v48 = vld [vmem:[%s28257_s3 + $0x3b4] ss:$8 sps:$4 sm:$0xff]  }
  0x2a   : > { %v20170_v49 = vld [vmem:[%s28257_s3 + $0x3b0] ss:$8 sps:$4 sm:$0xff]   ;;  %v20178_v50 = vld [vmem:[%s28257_s3 + $0x3c4] ss:$8 sps:$4 sm:$0xff]   ;;  %v20176_v52 = vld [vmem:[%s28257_s3 + $0x3c0] ss:$8 sps:$4 sm:$0xff]  }
  0x2b   : > { %v20149_v51 = vld [vmem:[%s28255_s1 + $0xd8] ss:$20 sps:$4 sm:$0xff]   ;;  %v20151_v54 = vld [vmem:[%s28255_s1 + $0x100] ss:$20 sps:$4 sm:$0xff]   ;;  %v20154_v59 = vld [vmem:[%s28255_s1 + $0x128] ss:$20 sps:$4 sm:$0xff]  }
  0x2c   : > { %859 = vmatpush1.bf16.msra.mxu0 %v20118_v19  ;;  %982 = vmatpush1.bf16.msra.mxu1 %v20119_v20  ;;  %v22336_v53 = vld [vmem:[%s22237_s24 + $0x18] sm:$0xff]   ;;  %v20193_v57 = vld [vmem:[%s28257_s3 + $0x3e4] ss:$8 sps:$4 sm:$0xff]   ;;  %v20191_v61 = vld [vmem:[%s28257_s3 + $0x3e0] ss:$8 sps:$4 sm:$0xff]   ;;  %vm9496_vm8 = vcmask 1042432  }
  0x2d   : > { %860 = vmatprep.subr.bf16.mxu0 %v20120_v21  ;;  %983 = vmatprep.subr.bf16.mxu1 %v20122_v22  ;;  %v20187_v55 = vld [vmem:[%s28257_s3 + $0x3d4] ss:$8 sps:$4 sm:$0xff]   ;;  %v20185_v56 = vld [vmem:[%s28257_s3 + $0x3d0] ss:$8 sps:$4 sm:$0xff]   ;;  %v22356_v58 = vld [vmem:[%s22237_s24 + $0x20] sm:$0xff]   ;;  %vm13602_vm9 = vcmask 523264  }
  0x2e   : > { %v20163_v60 = vld [vmem:[%s28257_s3 + $0x284] ss:$8 sps:$4 sm:$0xff]   ;;  %v20199_v62 = vld [vmem:[%s28257_s3 + $0x3f4] ss:$8 sps:$4 sm:$0xff]   ;;  %v20197_v63 = vld [vmem:[%s28257_s3 + $0x3f0] ss:$8 sps:$4 sm:$0xff]  }
  0x2f   : > { %v20205_v0 = vld [vmem:[%s28257_s3 + $0x404] ss:$8 sps:$4 sm:$0xff]   ;;  %v20203_v1 = vld [vmem:[%s28257_s3 + $0x400] ss:$8 sps:$4 sm:$0xff]   ;;  %v22392_v4 = vld [vmem:[%s22237_s24 + $0x30] sm:$0xff]   ;;  %vm22026_vm10 = vmmov 1  }
  0x30   : > { %861 = vmatpush1.bf16.msra.mxu0 %v20124_v23  ;;  %984 = vmatpush1.bf16.msra.mxu1 %v20125_v24  ;;  %v22385_v3 = vld [vmem:[%s22237_s24 + $0x28] sm:$0xff]   ;;  %v22399_v5 = vld [vmem:[%s22237_s24 + $0x38] sm:$0xff]   ;;  %v22406_v6 = vld [vmem:[%s22237_s24 + $0x40] sm:$0xff]   ;;  %vm1492_vm1 = vsmask.f32 7424  ;;  %vm16260_vm12 = vcmask 261120  }
  0x31   : > { %862 = vmatprep.subr.bf16.mxu0 %v20126_v25  ;;  %985 = vmatprep.subr.bf16.mxu1 %v20128_v26  ;;  %v20161_v7 = vld [vmem:[%s28257_s3 + $0x280] ss:$8 sps:$4 sm:$0xff]   ;;  %v20169_v8 = vld [vmem:[%s28257_s3 + $0x294] ss:$8 sps:$4 sm:$0xff]   ;;  %v20167_v9 = vld [vmem:[%s28257_s3 + $0x290] ss:$8 sps:$4 sm:$0xff]  }
  0x32   : > { %v20175_v10 = vld [vmem:[%s28257_s3 + $0x2a4] ss:$8 sps:$4 sm:$0xff]   ;;  %v20173_v11 = vld [vmem:[%s28257_s3 + $0x2a0] ss:$8 sps:$4 sm:$0xff]   ;;  %v20211_v12 = vld [vmem:[%s28257_s3 + $0x414] ss:$8 sps:$4 sm:$0xff]  }
  0x33   : > { %v20181_v13 = vld [vmem:[%s28257_s3 + $0x2b4] ss:$8 sps:$4 sm:$0xff]   ;;  %v20209_v14 = vld [vmem:[%s28257_s3 + $0x410] ss:$8 sps:$4 sm:$0xff]   ;;  %v20217_v16 = vld [vmem:[%s28257_s3 + $0x424] ss:$8 sps:$4 sm:$0xff]  }
  0x34   : > { %863 = vmatpush1.bf16.msra.mxu0 %v20130_v27  ;;  %986 = vmatpush1.bf16.msra.mxu1 %v20131_v28  ;;  %v20179_v15 = vld [vmem:[%s28257_s3 + $0x2b0] ss:$8 sps:$4 sm:$0xff]   ;;  %v20184_v17 = vld [vmem:[%s28257_s3 + $0x2c4] ss:$8 sps:$4 sm:$0xff]   ;;  %v20215_v18 = vld [vmem:[%s28257_s3 + $0x420] ss:$8 sps:$4 sm:$0xff]  }
  0x35   : > { %864 = vmatprep.subr.bf16.mxu0 %v20132_v29  ;;  %987 = vmatprep.subr.bf16.mxu1 %v20134_v30  ;;  %v20182_v19 = vld [vmem:[%s28257_s3 + $0x2c0] ss:$8 sps:$4 sm:$0xff]   ;;  %v20223_v20 = vld [vmem:[%s28257_s3 + $0x434] ss:$8 sps:$4 sm:$0xff]   ;;  %v20221_v22 = vld [vmem:[%s28257_s3 + $0x430] ss:$8 sps:$4 sm:$0xff]  }
  0x36   : > { %v20190_v21 = vld [vmem:[%s28257_s3 + $0x2d4] ss:$8 sps:$4 sm:$0xff]   ;;  %v20188_v23 = vld [vmem:[%s28257_s3 + $0x2d0] ss:$8 sps:$4 sm:$0xff]   ;;  %v20229_v24 = vld [vmem:[%s28257_s3 + $0x444] ss:$8 sps:$4 sm:$0xff]  }
  0x37   : > { %v20196_v25 = vld [vmem:[%s28257_s3 + $0x2e4] ss:$8 sps:$4 sm:$0xff]   ;;  %v20227_v26 = vld [vmem:[%s28257_s3 + $0x440] ss:$8 sps:$4 sm:$0xff]   ;;  %v20238_v28 = vld [vmem:[%s28257_s3 + $0x454] ss:$8 sps:$4 sm:$0xff]  }
  0x38   : > { %865 = vmatpush1.bf16.msra.mxu0 %v20136_v31  ;;  %988 = vmatpush1.bf16.msra.mxu1 %v20137_v32  ;;  %v20194_v27 = vld [vmem:[%s28257_s3 + $0x2e0] ss:$8 sps:$4 sm:$0xff]   ;;  %v20202_v29 = vld [vmem:[%s28257_s3 + $0x2f4] ss:$8 sps:$4 sm:$0xff]   ;;  %v20236_v30 = vld [vmem:[%s28257_s3 + $0x450] ss:$8 sps:$4 sm:$0xff]  }
  0x39   : > { %18970 = vmatprep.subr.bf16.mxu0 %v28276_v35  ;;  %2331 = vmatprep.subr.bf16.mxu1 %v20157_v39  ;;  %v20200_v31 = vld [vmem:[%s28257_s3 + $0x2f0] ss:$8 sps:$4 sm:$0xff]   ;;  %v20244_v32 = vld [vmem:[%s28257_s3 + $0x464] ss:$8 sps:$4 sm:$0xff]   ;;  %vm5255_vm2 = vsmask.f32 1280  ;;  %vm19156_vm11 = vmpackc.low %vm7338_vm6, %vm22026_vm10 }
  0x3a   : > { %v20248_v39 = vld [vmem:[%s28257_s3 + $0x470] ss:$8 sps:$4 sm:$0xff]   ;;  %vm8272_vm7 = vsmask.f32 3328  ;;  %vm16351_vm13 = vcmask 97280   ;;  %s486_s20 = sand.u32 1, %s22012_s19  }
  0x3b   : > { %883 = vmatmul.mubr.bf16.vlgmr.msra.gmra.mrb[0].mxu0 %v22261_v33  ;;  %1006 = vmatmul.mubr.bf16.vlgmr.msra.gmra.mrb[0].mxu1 %v22261_v33  ;;  %s18897_s27 = sshll.u32 %s22129_s22, 4  ;;  %s487_s30 = scalar_lea.vmem [#allocation7], %s486_s20 }
  0x3c   : > { %18971 = vmatpush3.bf16.msra.mxu0 %v20139_v34  ;;  %892 = vmatprep.mubr.bf16.mxu0 %v28325_v2  ;;  %v20242_v34 = vld [vmem:[%s28257_s3 + $0x460] ss:$8 sps:$4 sm:$0xff]   ;;  %s16443_s18 = sshll.u32 %s487_s30, 4  ;;  %s28212_s24 = scalar_lea.hbm %s28269_s15, %s18897_s27  ;;  %s28214_s18 = int_to_ptr.vmem [resolvable:$true] %s16443_s18 }
  0x3d   : > { %1015 = vmatprep.mubr.bf16.mxu1 %v28325_v2  ;;  %18972 = vmatprep.subr.bf16.mxu0 %v28276_v35  ;;  %s16431_s16 = scalar_lea.sflag [#allocation8], %s486_s20  ;;  %s21958_s17 = scalar_lea.vmem %s28214_s18, 16 }
  0x3e   : > { %2332 = vmatpush1.bf16.msra.mxu1 %v20155_v38  ;;  %v20214_v38 = vld [vmem:[%s28257_s3 + $0x314] ss:$8 sps:$4 sm:$0xff]   ;;  %p21959_p11 = scmp.ne.s32.totalorder %s28214_s18, %s21958_s17  ;;  %s22027_s22 = smov [#allocation7]  }
  0x3f   : > { %2333 = vmatprep.subr.bf16.mxu1 %v20160_v41  ;;  %v20220_v41 = vld [vmem:[%s28257_s3 + $0x324] ss:$8 sps:$4 sm:$0xff]   ;;  %s21962_s23 = sshll.u32 %s22027_s22, 4  ;;  %s21963_s23 = int_to_ptr.vmem [resolvable:$false] %s21962_s23 }
  0x40   : > { %18973 = vmatpush3.bf16.msra.mxu0 %v20141_v36  ;;  %v20206_v36 = vld [vmem:[%s28257_s3 + $0x300] ss:$8 sps:$4 sm:$0xff]   ;;  %p21960_p12 = pnand %p21959_p11, %p22146_p5  ;;  %s21964_s29 = scalar_lea.vmem %s21963_s23, 32 }
  0x41   : > { %18974 = vmatprep.subr.bf16.mxu0 %v28276_v35  ;;  %p21965_p0 = scmp.lt.s32.totalorder %s28214_s18, %s21963_s23  ;;  %p21966_p1 = scmp.lt.s32.totalorder %s21964_s29, %s21958_s17 }
  0x42   : > { %2334 = vmatpush1.bf16.msra.mxu1 %v20158_v42  ;;  %v20218_v42 = vld [vmem:[%s28257_s3 + $0x320] ss:$8 sps:$4 sm:$0xff]   ;;  %p21961_p13 = pneg %p21960_p12 }
  0x43   : > { %893 = vmatmul.mubr.bf16.gmra.mrb[4].mxu0 %v22276_v37  ;;  %1016 = vmatmul.mubr.bf16.gmra.mrb[4].mxu1 %v22276_v37  ;;  %p21967_p2 = por %p21966_p1, %p21965_p0 }
  0x44   : > { %902 = vmatprep.mubr.bf16.mxu0 %v28325_v2  ;;  %1025 = vmatprep.mubr.bf16.mxu1 %v28325_v2 }
  0x45   : > { %18975 = vmatpush3.bf16.msra.mxu0 %v20143_v40  ;;  %2335 = vmatprep.subr.bf16.mxu1 %v20166_v43  ;;  %v20212_v40 = vld [vmem:[%s28257_s3 + $0x310] ss:$8 sps:$4 sm:$0xff]   ;;  %v20226_v43 = vld [vmem:[%s28257_s3 + $0x334] ss:$8 sps:$4 sm:$0xff]   ;;  %p21968_p3 = pnand %p21967_p2, %p21961_p13 }
  0x46   : > { %18976 = vmatprep.subr.bf16.mxu0 %v28276_v35  ;;  %2336 = vmatpush1.bf16.msra.mxu1 %v20164_v45  ;;  %v20232_v45 = vld [vmem:[%s28257_s3 + $0x344] ss:$8 sps:$4 sm:$0xff]  }
  0x47   : > { %2337 = vmatprep.subr.bf16.mxu1 %v20172_v48  ;;  %v20235_v48 = vld [vmem:[%s28257_s3 + $0x354] ss:$8 sps:$4 sm:$0xff]  }
  0x49   : > { %18977 = vmatpush3.bf16.msra.mxu0 %v20145_v44  ;;  %v20224_v44 = vld [vmem:[%s28257_s3 + $0x330] ss:$8 sps:$4 sm:$0xff]  }
  0x4a   : > { %18978 = vmatprep.subr.bf16.mxu0 %v28276_v35  ;;  %2338 = vmatpush1.bf16.msra.mxu1 %v20170_v49  ;;  %v20233_v49 = vld [vmem:[%s28257_s3 + $0x350] ss:$8 sps:$4 sm:$0xff]  }
  0x4b   : > { %903 = vmatmul.mubr.bf16.gmra.mrb[8].mxu0 %v22309_v46  ;;  %1026 = vmatmul.mubr.bf16.gmra.mrb[8].mxu1 %v22309_v46 }
  0x4c   : > { %912 = vmatprep.mubr.bf16.mxu0 %v28325_v2  ;;  %1035 = vmatprep.mubr.bf16.mxu1 %v28325_v2 }
  0x4d   : > { %18979 = vmatpush3.bf16.msra.mxu0 %v20147_v47  ;;  %2339 = vmatprep.subr.bf16.mxu1 %v20178_v50  ;;  %v20253_v47 = vld [vmem:[%s28257_s3 + $0x204] ss:$8 sps:$4 sm:$0xff]  }
  0x4e   : > { %18980 = vmatprep.subr.bf16.mxu0 %v28276_v35  ;;  %2340 = vmatpush1.bf16.msra.mxu1 %v20176_v52  ;;  %v20241_v50 = vld [vmem:[%s28257_s3 + $0x364] ss:$8 sps:$4 sm:$0xff]   ;;  %v20247_v52 = vld [vmem:[%s28257_s3 + $0x374] ss:$8 sps:$4 sm:$0xff]  }
  0x4f   : > { %2341 = vmatprep.subr.bf16.mxu1 %v20187_v55  ;;  %v563_v55 = vlaneseq }
  0x51   : > { %18981 = vmatpush3.bf16.msra.mxu0 %v20149_v51  ;;  %v20239_v51 = vld [vmem:[%s28257_s3 + $0x360] ss:$8 sps:$4 sm:$0xff]  }
  0x52   : > { %18982 = vmatprep.subr.bf16.mxu0 %v28276_v35  ;;  %2342 = vmatpush1.bf16.msra.mxu1 %v20185_v56  ;;  %v22578_v56 = vshrl.u32 %v563_v55, 7 }
  0x53   : > { %913 = vmatmul.mubr.bf16.gmra.mrb[12].mxu0 %v22336_v53  ;;  %1036 = vmatmul.mubr.bf16.gmra.mrb[12].mxu1 %v22336_v53 }
  0x54   : > { %922 = vmatprep.mubr.bf16.mxu0 %v28325_v2  ;;  %1045 = vmatprep.mubr.bf16.mxu1 %v28325_v2 }
  0x55   : > { %18983 = vmatpush3.bf16.msra.mxu0 %v20151_v54  ;;  %2343 = vmatprep.subr.bf16.mxu1 %v20193_v57  ;;  %v20271_v54 = vld [vmem:[%s28257_s3 + $0x484] ss:$8 sps:$4 sm:$0xff]   ;;  %v22581_v57 = vsub.s32 0, %v22578_v56 }
  0x56   : > { %18984 = vmatprep.subr.bf16.mxu0 %v28276_v35  ;;  %2344 = vmatpush1.bf16.msra.mxu1 %v20191_v61  ;;  %v577_v61 = vsub.s32 3, %v22578_v56 }
  0x57   : > { %2345 = vmatprep.subr.bf16.mxu1 %v20199_v62  ;;  %28368 = vst [vmem:[#allocation16_spill] sm:$0xff] %v22581_v57 }
  0x59   : > { %18985 = vmatpush3.bf16.msra.mxu0 %v20154_v59  ;;  %v573_v59 = vsub.s32 2, %v22578_v56 }
  0x5a   : > { %2228 = vmatprep.subr.bf16.mxu0 %v20163_v60  ;;  %2346 = vmatpush1.bf16.msra.mxu1 %v20197_v63  ;;  %v22590_v60 = vld [vmem:[%s28256_s2] sm:$0x1f] }
  0x5b   : > { %923 = vmatmul.mubr.bf16.gmra.mrb[16].mxu0 %v22356_v58  ;;  %1046 = vmatmul.mubr.bf16.gmra.mrb[16].mxu1 %v22356_v58  ;;  %v22595_v62 = vrot.slane %v22590_v60, %v22581_v57 }
  0x5c   : > { %932 = vmatprep.mubr.bf16.mxu0 %v28325_v2  ;;  %1055 = vmatprep.mubr.bf16.mxu1 %v28325_v2 }
  0x5d   : > { %2347 = vmatprep.subr.bf16.mxu1 %v20205_v0  ;;  %v22602_v0 = vrot.slane %v22590_v60, %v573_v59 }
  0x5e   : > { %2348 = vmatpush1.bf16.msra.mxu1 %v20203_v1 }
  0x5f   : > { %2349 = vmatprep.subr.bf16.mxu1 %v20211_v12 }
  0x62   : > { %2350 = vmatpush1.bf16.msra.mxu1 %v20209_v14 }
  0x63   : > { %933 = vmatmul.mubr.bf16.gmra.mrb[20].mxu0 %v22385_v3  ;;  %1056 = vmatmul.mubr.bf16.gmra.mrb[20].mxu1 %v22385_v3 }
  0x64   : > { %942 = vmatprep.mubr.bf16.mxu0 %v28325_v2  ;;  %1065 = vmatprep.mubr.bf16.mxu1 %v28325_v2 }
  0x65   : > { %2351 = vmatprep.subr.bf16.mxu1 %v20217_v16 }
  0x66   : > { %2352 = vmatpush1.bf16.msra.mxu1 %v20215_v18 }
  0x67   : > { %2353 = vmatprep.subr.bf16.mxu1 %v20223_v20 }
  0x6a   : > { %2354 = vmatpush1.bf16.msra.mxu1 %v20221_v22 }
  0x6b   : > { %943 = vmatmul.mubr.bf16.gmra.mrb[24].mxu0 %v22392_v4  ;;  %1066 = vmatmul.mubr.bf16.gmra.mrb[24].mxu1 %v22392_v4 }
  0x6c   : > { %952 = vmatprep.mubr.bf16.mxu0 %v28325_v2  ;;  %1075 = vmatprep.mubr.bf16.mxu1 %v28325_v2 }
  0x6d   : > { %2355 = vmatprep.subr.bf16.mxu1 %v20229_v24 }
  0x6e   : > { %2356 = vmatpush1.bf16.msra.mxu1 %v20227_v26 }
  0x6f   : > { %2357 = vmatprep.subr.bf16.mxu1 %v20238_v28 }
  0x72   : > { %2358 = vmatpush1.bf16.msra.mxu1 %v20236_v30 }
  0x73   : > { %953 = vmatmul.mubr.bf16.gmra.mrb[28].mxu0 %v22399_v5  ;;  %1076 = vmatmul.mubr.bf16.gmra.mrb[28].mxu1 %v22399_v5 }
  0x74   : > { %962 = vmatprep.mubr.bf16.mxu0 %v28325_v2  ;;  %1085 = vmatprep.mubr.bf16.mxu1 %v28325_v2 }
  0x75   : > { %2359 = vmatprep.subr.bf16.mxu1 %v20244_v32 }
  0x76   : > { %2360 = vmatpush1.bf16.msra.mxu1 %v20242_v34 }
  0x7b   : > { %963 = vmatmul.mubr.bf16.gmra.mrb[32].mxu0 %v22406_v6  ;;  %1086 = vmatmul.mubr.bf16.gmra.mrb[32].mxu1 %v22406_v6 }
  0x7c   : > { %18986 = vmatprep.mubr.msk.bf16.mxu0 %vm22024_vm0, %v28276_v35 }
  0x83   : > { %18987 = vmatmul.mubr.bf16.vlgmr.msra.gmra.mrb[36].mxu0 %v22261_v33  ;;  %v20208_v33 = vld [vmem:[%s28257_s3 + $0x304] ss:$8 sps:$4 sm:$0xff]  }
  0x84   : > { %18990 = vmatprep.mubr.msk.bf16.mxu0 %vm22024_vm0, %v28276_v35  ;;  %2229 = vmatpush1.bf16.msra.mxu0 %v20161_v7 }
  0x85   : > { %2230 = vmatprep.subr.bf16.mxu0 %v20169_v8 }
  0x88   : > { %2231 = vmatpush1.bf16.msra.mxu0 %v20167_v9 }
  0x89   : > { %2232 = vmatprep.subr.bf16.mxu0 %v20175_v10 }
  0x8b   : > { %18991 = vmatmul.mubr.bf16.gmra.mrb[40].mxu0 %v22276_v37  ;;  %v20250_v37 = vld [vmem:[%s28257_s3 + $0x474] ss:$8 sps:$4 sm:$0xff]  }
  0x8c   : > { %18994 = vmatprep.mubr.msk.bf16.mxu0 %vm22024_vm0, %v28276_v35  ;;  %2233 = vmatpush1.bf16.msra.mxu0 %v20173_v11 }
  0x8d   : > { %2234 = vmatprep.subr.bf16.mxu0 %v20181_v13  ;;  %2361 = vmatprep.subr.bf16.mxu1 %v20250_v37 }
  0x8e   : > { %2362 = vmatpush1.bf16.msra.mxu1 %v20248_v39 }
  0x8f   : > { %3143 = vmatprep.subr.bf16.mxu1 %v20253_v47 }
  0x90   : > { %2235 = vmatpush1.bf16.msra.mxu0 %v20179_v15 }
  0x91   : > { %2236 = vmatprep.subr.bf16.mxu0 %v20184_v17 }
  0x93   : > { %18995 = vmatmul.mubr.bf16.gmra.mrb[44].mxu0 %v22309_v46  ;;  %v20230_v46 = vld [vmem:[%s28257_s3 + $0x340] ss:$8 sps:$4 sm:$0xff]  }
  0x94   : > { %18998 = vmatprep.mubr.msk.bf16.mxu0 %vm22024_vm0, %v28276_v35  ;;  %2237 = vmatpush1.bf16.msra.mxu0 %v20182_v19 }
  0x95   : > { %2238 = vmatprep.subr.bf16.mxu0 %v20190_v21 }
  0x98   : > { %2239 = vmatpush1.bf16.msra.mxu0 %v20188_v23 }
  0x99   : > { %2240 = vmatprep.subr.bf16.mxu0 %v20196_v25 }
  0x9b   : > { %18999 = vmatmul.mubr.bf16.gmra.mrb[48].mxu0 %v22336_v53  ;;  %v20245_v53 = vld [vmem:[%s28257_s3 + $0x370] ss:$8 sps:$4 sm:$0xff]  }
  0x9c   : > { %19002 = vmatprep.mubr.msk.bf16.mxu0 %vm22024_vm0, %v28276_v35  ;;  %2241 = vmatpush1.bf16.msra.mxu0 %v20194_v27 }
  0x9d   : > { %2242 = vmatprep.subr.bf16.mxu0 %v20202_v29 }
  0xa0   : > { %2243 = vmatpush1.bf16.msra.mxu0 %v20200_v31 }
  0xa1   : > { %2244 = vmatprep.subr.bf16.mxu0 %v20208_v33 }
  0xa3   : > { %19003 = vmatmul.mubr.bf16.gmra.mrb[52].mxu0 %v22356_v58  ;;  %v22584_v58 = vsub.s32 1, %v22578_v56 }
  0xa4   : > { %19006 = vmatprep.mubr.msk.bf16.mxu0 %vm22024_vm0, %v28276_v35  ;;  %2245 = vmatpush1.bf16.msra.mxu0 %v20206_v36 }
  0xa5   : > { %2246 = vmatprep.subr.bf16.mxu0 %v20214_v38  ;;  %28369 = vst [vmem:[#allocation17_spill] sm:$0xff] %v22584_v58  ;;  %v22599_v63 = vrot.slane %v22590_v60, %v22584_v58 }
  0xa8   : > { %2247 = vmatpush1.bf16.msra.mxu0 %v20212_v40 }
  0xa9   : > { %2248 = vmatprep.subr.bf16.mxu0 %v20220_v41 }
  0xab   : > { %19007 = vmatmul.mubr.bf16.gmra.mrb[56].mxu0 %v22385_v3 }
  0xac   : > { %19010 = vmatprep.mubr.msk.bf16.mxu0 %vm22024_vm0, %v28276_v35  ;;  %2249 = vmatpush1.bf16.msra.mxu0 %v20218_v42 }
  0xad   : > { %2250 = vmatprep.subr.bf16.mxu0 %v20226_v43 }
  0xb0   : > { %2251 = vmatpush1.bf16.msra.mxu0 %v20224_v44 }
  0xb1   : > { %2252 = vmatprep.subr.bf16.mxu0 %v20232_v45 }
  0xb3   : > { %19011 = vmatmul.mubr.bf16.gmra.mrb[60].mxu0 %v22392_v4  ;;  %v22605_v4 = vrot.slane %v22590_v60, %v577_v61 }
  0xb4   : > { %19014 = vmatprep.mubr.msk.bf16.mxu0 %vm22024_vm0, %v28276_v35  ;;  %2253 = vmatpush1.bf16.msra.mxu0 %v20230_v46 }
  0xb5   : > { %2254 = vmatprep.subr.bf16.mxu0 %v20235_v48 }
  0xb8   : > { %2255 = vmatpush1.bf16.msra.mxu0 %v20233_v49 }
  0xb9   : > { %2256 = vmatprep.subr.bf16.mxu0 %v20241_v50 }
  0xbb   : > { %19015 = vmatmul.mubr.bf16.gmra.mrb[64].mxu0 %v22399_v5 }
  0xbc   : > { %19018 = vmatprep.mubr.msk.bf16.mxu0 %vm22024_vm0, %v28276_v35  ;;  %2257 = vmatpush1.bf16.msra.mxu0 %v20239_v51 }
  0xbd   : > { %2258 = vmatprep.subr.bf16.mxu0 %v20247_v52 }
  0xc0   : > { %2259 = vmatpush1.bf16.msra.mxu0 %v20245_v53 }
  0xc1   : > { %2434 = vmatprep.subr.bf16.mxu0 %v20271_v54 }
  0xc3   : > { %19019 = vmatmul.mubr.bf16.gmra.mrb[68].mxu0 %v22406_v6 }
 0x10e   : > { %v884_v1 = vpop.f32.mrb[0].mxu0  ;;  %v1007_v3 = vpop.f32.mrb[0].mxu1 }
 0x10f   : > { %v885_v5 = vadd.f32 %v884_v1, %v22595_v62  ;;  %v886_v6 = vpop.f32.mrb[1].mxu0  ;;  %v1009_v7 = vpop.f32.mrb[1].mxu1  ;;  %v1008_v11 = vadd.f32 %v1007_v3, %v22602_v0 }
 0x110   : > { %v887_v8 = vadd.f32 %v886_v6, %v22599_v63  ;;  %v888_v9 = vpop.f32.mrb[2].mxu0  ;;  %v1011_v10 = vpop.f32.mrb[2].mxu1  ;;  %v1010_v16 = vadd.f32 %v1009_v7, %v22605_v4 }
 0x111   : > { %v889_v12 = vadd.f32 %v888_v9, %v22595_v62  ;;  %v1012_v13 = vadd.f32 %v1011_v10, %v22602_v0  ;;  %v890_v14 = vpop.f32.mrb[3].mxu0  ;;  %v1013_v15 = vpop.f32.mrb[3].mxu1 }
 0x112   : > { %v891_v17 = vadd.f32 %v890_v14, %v22599_v63  ;;  %v1014_v18 = vadd.f32 %v1013_v15, %v22605_v4 }
 0x113   : > { %v1201_v19 = vpack.c.bf16 %v889_v12, %v885_v5  ;;  %v1203_v20 = vpack.c.bf16 %v1012_v13, %v1008_v11 }
 0x114   : > { %v1202_v21 = vpack.c.bf16 %v891_v17, %v887_v8  ;;  %v1204_v22 = vpack.c.bf16 %v1014_v18, %v1010_v16 }
 0x115   : > { %1246 = vst [vmem:[#allocation2] sm:$0xff] %v1201_v19  ;;  %1248 = vst [vmem:[#allocation2 + $0x10] sm:$0xff] %v1203_v20  ;;  %v1496_v23 = vshll.u32 %v1201_v19, 16  ;;  %v1520_v24 = vshll.u32 %v1203_v20, 16  ;;  %v1494_v32 = vshrl.u32 %v1201_v19, 16  ;;  %v1518_v52 = vshrl.u32 %v1203_v20, 16 }
 0x116   : > { %1247 = vst [vmem:[#allocation2 + $0x8] sm:$0xff] %v1202_v21  ;;  %1249 = vst [vmem:[#allocation2 + $0x18] sm:$0xff] %v1204_v22  ;;  %v894_v25 = vpop.f32.mrb[4].mxu0  ;;  %v1017_v26 = vpop.f32.mrb[4].mxu1  ;;  %v1508_v27 = vshll.u32 %v1202_v21, 16  ;;  %v1532_v28 = vshll.u32 %v1204_v22, 16 }
 0x117   : > { %v895_v29 = vadd.f32 %v894_v25, %v22595_v62  ;;  %v896_v30 = vpop.f32.mrb[5].mxu0  ;;  %v1019_v31 = vpop.f32.mrb[5].mxu1  ;;  %v1018_v33 = vadd.f32 %v1017_v26, %v22602_v0  ;;  %v1506_v38 = vshrl.u32 %v1202_v21, 16  ;;  %v1498_v39 = vrot.slane %v1496_v23, 1 }
 0x118   : > { %v897_v34 = vadd.f32 %v896_v30, %v22599_v63  ;;  %v898_v36 = vpop.f32.mrb[6].mxu0  ;;  %v1021_v37 = vpop.f32.mrb[6].mxu1  ;;  %v1510_v44 = vrot.slane %v1508_v27, 1  ;;  %v1522_v45 = vrot.slane %v1520_v24, 1  ;;  %v1020_v46 = vadd.f32 %v1019_v31, %v22605_v4  ;;  %v20251_v30 = vld [vmem:[%s28257_s3 + $0x200] ss:$8 sps:$4 sm:$0xff]  }
 0x119   : > { %v899_v40 = vadd.f32 %v898_v36, %v22595_v62  ;;  %v1022_v41 = vadd.f32 %v1021_v37, %v22602_v0  ;;  %v900_v42 = vpop.f32.mrb[7].mxu0  ;;  %v1023_v43 = vpop.f32.mrb[7].mxu1  ;;  %v1534_v49 = vrot.slane %v1532_v28, 1  ;;  %v1530_v55 = vshrl.u32 %v1204_v22, 16  ;;  %v20269_v31 = vld [vmem:[%s28257_s3 + $0x480] ss:$8 sps:$4 sm:$0xff]  }
 0x11a   : > { %v901_v47 = vadd.f32 %v900_v42, %v22599_v63  ;;  %v1024_v48 = vadd.f32 %v1023_v43, %v22605_v4  ;;  %v1499_v59 = vor.u32 %v1498_v39, %v1494_v32  ;;  %v1511_v61 = vor.u32 %v1510_v44, %v1506_v38  ;;  %v20256_v37 = vld [vmem:[%s28257_s3 + $0x214] ss:$8 sps:$4 sm:$0xff]  }
 0x11b   : > { %v22623_v50 = vpack.c.bf16 %v899_v40, %v895_v29  ;;  %v22625_v51 = vpack.c.bf16 %v1022_v41, %v1018_v33  ;;  %v1523_v3 = vor.u32 %v1522_v45, %v1518_v52  ;;  %v1535_v9 = vor.u32 %v1534_v49, %v1530_v55  ;;  %v20274_v38 = vld [vmem:[%s28257_s3 + $0x494] ss:$8 sps:$4 sm:$0xff]   ;;  %v20254_v49 = vld [vmem:[%s28257_s3 + $0x210] ss:$8 sps:$4 sm:$0xff]  }
 0x11c   : > { %v22627_v53 = vpack.c.bf16 %v901_v47, %v897_v34  ;;  %v22629_v54 = vpack.c.bf16 %v1024_v48, %v1020_v46 }
 0x11d   : > { %1251 = vst [vmem:[#allocation2 + $0x28] sm:$0xff] %v22623_v50  ;;  %1253 = vst [vmem:[#allocation2 + $0x38] sm:$0xff] %v22625_v51  ;;  %v1501_v1 = vshll.u32 %v22623_v50, 16  ;;  %v1525_v5 = vshll.u32 %v22625_v51, 16  ;;  %v1553_v11 = vshrl.u32 %v22623_v50, 16  ;;  %v1569_v47 = vshrl.u32 %v22625_v51, 16 }
 0x11e   : > { %1252 = vst [vmem:[#allocation2 + $0x30] sm:$0xff] %v22627_v53  ;;  %1254 = vst [vmem:[#allocation2 + $0x40] sm:$0xff] %v22629_v54  ;;  %v904_v6 = vpop.f32.mrb[8].mxu0  ;;  %v1027_v7 = vpop.f32.mrb[8].mxu1  ;;  %v28316_v8 = vshll.u32 %v22627_v53, 16  ;;  %v28285_v10 = vshll.u32 %v22629_v54, 16 }
 0x11f   : > { %v905_v12 = vadd.f32 %v904_v6, %v22595_v62  ;;  %v906_v13 = vpop.f32.mrb[9].mxu0  ;;  %v1029_v14 = vpop.f32.mrb[9].mxu1  ;;  %v1503_v15 = vrot.slane %v1501_v1, 1  ;;  %v1527_v16 = vrot.slane %v1525_v5, 1  ;;  %v28321_v17 = vshrl.u32 %v22627_v53, 16 }
 0x120   : > { %v1028_v18 = vadd.f32 %v1027_v7, %v22602_v0  ;;  %v907_v19 = vadd.f32 %v906_v13, %v22599_v63  ;;  %v908_v20 = vpop.f32.mrb[10].mxu0  ;;  %v1031_v21 = vpop.f32.mrb[10].mxu1  ;;  %v1515_v22 = vrot.slane %v28316_v8, 1  ;;  %v1539_v23 = vrot.slane %v28285_v10, 1  ;;  %v20259_v7 = vld [vmem:[%s28257_s3 + $0x224] ss:$8 sps:$4 sm:$0xff]  }
 0x121   : > { %v1030_v24 = vadd.f32 %v1029_v14, %v22605_v4  ;;  %v909_v25 = vadd.f32 %v908_v20, %v22595_v62  ;;  %v1032_v26 = vadd.f32 %v1031_v21, %v22602_v0  ;;  %v910_v27 = vpop.f32.mrb[11].mxu0  ;;  %v1033_v28 = vpop.f32.mrb[11].mxu1  ;;  %v1504_v29 = vsel %vm1492_vm1, %v1499_v59, %v1503_v15  ;;  %v20373_v50 = vld [vmem:[%s28257_s3 + $0xa4] ss:$8 sps:$4 sm:$0xff]  }
 0x122   : > { %v911_v32 = vadd.f32 %v910_v27, %v22599_v63  ;;  %v1034_v33 = vadd.f32 %v1033_v28, %v22605_v4  ;;  %v1516_v34 = vsel %vm1492_vm1, %v1511_v61, %v1515_v22  ;;  %v1540_v36 = vsel %vm1492_vm1, %v1535_v9, %v1539_v23 }
 0x123   : > { %v22672_v39 = vpack.c.bf16 %v909_v25, %v905_v12  ;;  %v22674_v40 = vpack.c.bf16 %v1032_v26, %v1028_v18  ;;  %2260 = vmatprep.mubr.bf16.mxu0 %v1516_v34  ;;  %2363 = vmatprep.mubr.bf16.mxu1 %v1540_v36  ;;  %v1528_v41 = vsel %vm1492_vm1, %v1523_v3, %v1527_v16  ;;  %v28286_v44 = vshrl.u32 %v22629_v54, 16  ;;  %v20257_v25 = vld [vmem:[%s28257_s3 + $0x220] ss:$8 sps:$4 sm:$0xff]  }
 0x124   : > { %v22677_v42 = vpack.c.bf16 %v911_v32, %v907_v19  ;;  %v22679_v43 = vpack.c.bf16 %v1034_v33, %v1030_v24  ;;  %2261 = vmatmul.mubr.bf16.vlgmr.msra.gmra.mrb[72].mxu0 %v1504_v29  ;;  %2364 = vmatmul.mubr.bf16.vlgmr.msra.gmra.mrb[36].mxu1 %v1528_v41  ;;  %v1563_v45 = vor.u32 %v28321_v17, %v1515_v22  ;;  %v20272_v32 = vld [vmem:[%s28257_s3 + $0x490] ss:$8 sps:$4 sm:$0xff]  }
 0x125   : > { %28370 = vst [vmem:[#allocation18_spill] sm:$0xff] %v22674_v40  ;;  %1256 = vst [vmem:[#allocation2 + $0x50] sm:$0xff] %v22672_v39  ;;  %3144 = vmatpush1.bf16.msra.mxu1 %v20251_v30  ;;  %v28304_v46 = vshll.u32 %v22672_v39, 16  ;;  %v28280_v48 = vshll.u32 %v22674_v40, 16  ;;  %2435 = vmatpush1.bf16.msra.mxu0 %v20269_v31  ;;  %v1579_v61 = vor.u32 %v28286_v44, %v1539_v23  ;;  %v20262_v31 = vld [vmem:[%s28257_s3 + $0x234] ss:$8 sps:$4 sm:$0xff]  }
 0x126   : > { %28371 = vst [vmem:[#allocation19_spill] sm:$0xff] %v22679_v43  ;;  %1258 = vst [vmem:[#allocation2 + $0x60] sm:$0xff] %v22674_v40  ;;  %v914_v52 = vpop.f32.mrb[12].mxu0  ;;  %v1037_v55 = vpop.f32.mrb[12].mxu1  ;;  %v28306_v59 = vshll.u32 %v22677_v42, 16  ;;  %v28282_v3 = vshll.u32 %v22679_v43, 16  ;;  %v1555_v6 = vor.u32 %v1553_v11, %v1503_v15  ;;  %3145 = vmatprep.subr.bf16.mxu1 %v20256_v37  ;;  %2436 = vmatprep.subr.bf16.mxu0 %v20274_v38 }
 0x127   : > { %1257 = vst [vmem:[#allocation2 + $0x58] sm:$0xff] %v22677_v42  ;;  %1259 = vst [vmem:[#allocation2 + $0x68] sm:$0xff] %v22679_v43  ;;  %v915_v9 = vadd.f32 %v914_v52, %v22595_v62  ;;  %v916_v12 = vpop.f32.mrb[13].mxu0  ;;  %v1039_v13 = vpop.f32.mrb[13].mxu1  ;;  %v1559_v14 = vrot.slane %v28304_v46, 1  ;;  %v1571_v18 = vor.u32 %v1569_v47, %v1527_v16  ;;  %v1575_v19 = vrot.slane %v28280_v48, 1 }
 0x128   : > { %v1038_v15 = vadd.f32 %v1037_v55, %v22602_v0  ;;  %v917_v20 = vadd.f32 %v916_v12, %v22599_v63  ;;  %v918_v21 = vpop.f32.mrb[14].mxu0  ;;  %v1041_v22 = vpop.f32.mrb[14].mxu1  ;;  %v1567_v23 = vrot.slane %v28306_v59, 1  ;;  %v1583_v24 = vrot.slane %v28282_v3, 1  ;;  %v20280_v38 = vld [vmem:[%s28257_s3 + $0x4a4] ss:$8 sps:$4 sm:$0xff]  }
 0x129   : > { %v1040_v16 = vadd.f32 %v1039_v13, %v22605_v4  ;;  %v919_v26 = vadd.f32 %v918_v21, %v22595_v62  ;;  %v1042_v27 = vadd.f32 %v1041_v22, %v22602_v0  ;;  %v920_v28 = vpop.f32.mrb[15].mxu0  ;;  %v1043_v29 = vpop.f32.mrb[15].mxu1  ;;  %v1560_v30 = vsel %vm1492_vm1, %v1555_v6, %v1559_v14  ;;  %3146 = vmatpush1.bf16.msra.mxu1 %v20254_v49 }
 0x12a   : > { %v921_v33 = vadd.f32 %v920_v28, %v22599_v63  ;;  %v1044_v34 = vadd.f32 %v1043_v29, %v22605_v4  ;;  %v1568_v36 = vsel %vm1492_vm1, %v1563_v45, %v1567_v23  ;;  %v1584_v37 = vsel %vm1492_vm1, %v1579_v61, %v1583_v24  ;;  %3147 = vmatprep.subr.bf16.mxu1 %v20259_v7 }
 0x12b   : > { %v22736_v41 = vpack.c.bf16 %v919_v26, %v915_v9  ;;  %v22738_v49 = vpack.c.bf16 %v1042_v27, %v1038_v15  ;;  %2270 = vmatprep.mubr.bf16.mxu0 %v1568_v36  ;;  %2373 = vmatprep.mubr.bf16.mxu1 %v1584_v37  ;;  %v1576_v52 = vsel %vm1492_vm1, %v1571_v18, %v1575_v19  ;;  %v28315_v55 = vshrl.u32 %v22677_v42, 16  ;;  %v20260_v9 = vld [vmem:[%s28257_s3 + $0x230] ss:$8 sps:$4 sm:$0xff]  }
 0x12c   : > { %v22742_v6 = vpack.c.bf16 %v921_v33, %v917_v20  ;;  %v22744_v45 = vpack.c.bf16 %v1044_v34, %v1040_v16  ;;  %2271 = vmatmul.mubr.bf16.gmra.mrb[76].mxu0 %v1560_v30  ;;  %2374 = vmatmul.mubr.bf16.gmra.mrb[40].mxu1 %v1576_v52  ;;  %v28283_v61 = vshrl.u32 %v22679_v43, 16  ;;  %v28305_v7 = vshrl.u32 %v22672_v39, 16  ;;  %v20265_v20 = vld [vmem:[%s28257_s3 + $0x244] ss:$8 sps:$4 sm:$0xff]   ;;  %v20562_v43 = vld [vmem:[%s28257_s3 + $0x874] ss:$8 sps:$4 sm:$0xff]  }
 0x12d   : > { %28372 = vst [vmem:[#allocation20_spill] sm:$0xff] %v22738_v49  ;;  %1261 = vst [vmem:[#allocation2 + $0x78] sm:$0xff] %v22736_v41  ;;  %v1603_v12 = vor.u32 %v28315_v55, %v1567_v23  ;;  %v28292_v13 = vshll.u32 %v22736_v41, 16  ;;  %v28281_v18 = vshrl.u32 %v22674_v40, 16  ;;  %v28278_v15 = vshll.u32 %v22738_v49, 16  ;;  %3148 = vmatpush1.bf16.msra.mxu1 %v20257_v25  ;;  %2437 = vmatpush1.bf16.msra.mxu0 %v20272_v32 }
 0x12e   : > { %28373 = vst [vmem:[#allocation21_spill] sm:$0xff] %v22744_v45  ;;  %1263 = vst [vmem:[#allocation2 + $0x88] sm:$0xff] %v22738_v49  ;;  %v924_v21 = vpop.f32.mrb[16].mxu0  ;;  %v1047_v22 = vpop.f32.mrb[16].mxu1  ;;  %v28294_v23 = vshll.u32 %v22742_v6, 16  ;;  %v1619_v16 = vor.u32 %v28283_v61, %v1583_v24  ;;  %v28279_v26 = vshll.u32 %v22744_v45, 16  ;;  %v1595_v25 = vor.u32 %v28305_v7, %v1559_v14  ;;  %3149 = vmatprep.subr.bf16.mxu1 %v20262_v31 }
 0x12f   : > { %1262 = vst [vmem:[#allocation2 + $0x80] sm:$0xff] %v22742_v6  ;;  %1264 = vst [vmem:[#allocation2 + $0x90] sm:$0xff] %v22744_v45  ;;  %2438 = vmatprep.subr.bf16.mxu0 %v20280_v38  ;;  %v925_v27 = vadd.f32 %v924_v21, %v22595_v62  ;;  %v926_v28 = vpop.f32.mrb[17].mxu0  ;;  %v1049_v29 = vpop.f32.mrb[17].mxu1  ;;  %v1599_v30 = vrot.slane %v28292_v13, 1  ;;  %v1611_v32 = vor.u32 %v28281_v18, %v1575_v19  ;;  %v1615_v24 = vrot.slane %v28278_v15, 1 }
 0x130   : > { %v1048_v33 = vadd.f32 %v1047_v22, %v22602_v0  ;;  %v927_v34 = vadd.f32 %v926_v28, %v22599_v63  ;;  %v928_v14 = vpop.f32.mrb[18].mxu0  ;;  %v1051_v31 = vpop.f32.mrb[18].mxu1  ;;  %v1607_v36 = vrot.slane %v28294_v23, 1  ;;  %v1623_v37 = vrot.slane %v28279_v26, 1  ;;  %v20263_v38 = vld [vmem:[%s28257_s3 + $0x240] ss:$8 sps:$4 sm:$0xff]  }
 0x131   : > { %v1050_v19 = vadd.f32 %v1049_v29, %v22605_v4  ;;  %v929_v52 = vadd.f32 %v928_v14, %v22595_v62  ;;  %v1052_v21 = vadd.f32 %v1051_v31, %v22602_v0  ;;  %v930_v22 = vpop.f32.mrb[19].mxu0  ;;  %v1053_v28 = vpop.f32.mrb[19].mxu1  ;;  %v1600_v35 = vsel %vm1492_vm1, %v1595_v25, %v1599_v30  ;;  %3150 = vmatpush1.bf16.msra.mxu1 %v20260_v9  ;;  %v20268_v15 = vld [vmem:[%s28257_s3 + $0x254] ss:$8 sps:$4 sm:$0xff]   ;;  %v20278_v26 = vld [vmem:[%s28257_s3 + $0x4a0] ss:$8 sps:$4 sm:$0xff]  }
 0x132   : > { %v931_v48 = vadd.f32 %v930_v22, %v22599_v63  ;;  %v1054_v29 = vadd.f32 %v1053_v28, %v22605_v4  ;;  %v1608_v14 = vsel %vm1492_vm1, %v1603_v12, %v1607_v36  ;;  %v1624_v31 = vsel %vm1492_vm1, %v1619_v16, %v1623_v37  ;;  %3151 = vmatprep.subr.bf16.mxu1 %v20265_v20  ;;  %v20283_v9 = vld [vmem:[%s28257_s3 + $0x4b4] ss:$8 sps:$4 sm:$0xff]  }
 0x133   : > { %v22802_v25 = vpack.c.bf16 %v929_v52, %v925_v27  ;;  %v22804_v18 = vpack.c.bf16 %v1052_v21, %v1048_v33  ;;  %2280 = vmatprep.mubr.bf16.mxu0 %v1608_v14  ;;  %2383 = vmatprep.mubr.bf16.mxu1 %v1624_v31  ;;  %v1616_v3 = vsel %vm1492_vm1, %v1611_v32, %v1615_v24  ;;  %v28297_v22 = vshrl.u32 %v22742_v6, 16  ;;  %v20266_v27 = vld [vmem:[%s28257_s3 + $0x250] ss:$8 sps:$4 sm:$0xff]   ;;  %v20277_v33 = vld [vmem:[%s28257_s3 + $0x264] ss:$8 sps:$4 sm:$0xff]  }
 0x134   : > { %v22808_v28 = vpack.c.bf16 %v931_v48, %v927_v34  ;;  %v22810_v12 = vpack.c.bf16 %v1054_v29, %v1050_v19  ;;  %2281 = vmatmul.mubr.bf16.gmra.mrb[80].mxu0 %v1600_v35  ;;  %2384 = vmatmul.mubr.bf16.gmra.mrb[44].mxu1 %v1616_v3  ;;  %v28284_v20 = vshrl.u32 %v22744_v45, 16  ;;  %v28293_v16 = vshrl.u32 %v22736_v41, 16 }
 0x135   : > { %28374 = vst [vmem:[#allocation22_spill] sm:$0xff] %v22804_v18  ;;  %1266 = vst [vmem:[#allocation2 + $0xa0] sm:$0xff] %v22802_v25  ;;  %v1643_v48 = vor.u32 %v28297_v22, %v1607_v36  ;;  %v28287_v32 = vshll.u32 %v22802_v25, 16  ;;  %v28288_v35 = vshrl.u32 %v22738_v49, 16  ;;  %v28289_v3 = vshll.u32 %v22804_v18, 16  ;;  %3152 = vmatpush1.bf16.msra.mxu1 %v20263_v38  ;;  %2439 = vmatpush1.bf16.msra.mxu0 %v20278_v26 }
 0x136   : > { %28375 = vst [vmem:[#allocation23_spill] sm:$0xff] %v22810_v12  ;;  %1268 = vst [vmem:[#allocation2 + $0xb0] sm:$0xff] %v22804_v18  ;;  %v934_v34 = vpop.f32.mrb[20].mxu0  ;;  %v1057_v19 = vpop.f32.mrb[20].mxu1  ;;  %v28290_v36 = vshll.u32 %v22808_v28, 16  ;;  %v1659_v52 = vor.u32 %v28284_v20, %v1623_v37  ;;  %v28291_v21 = vshll.u32 %v22810_v12, 16  ;;  %v1635_v38 = vor.u32 %v28293_v16, %v1599_v30  ;;  %3153 = vmatprep.subr.bf16.mxu1 %v20268_v15 }
 0x137   : > { %1267 = vst [vmem:[#allocation2 + $0xa8] sm:$0xff] %v22808_v28  ;;  %1269 = vst [vmem:[#allocation2 + $0xb8] sm:$0xff] %v22810_v12  ;;  %2440 = vmatprep.subr.bf16.mxu0 %v20283_v9  ;;  %v935_v26 = vadd.f32 %v934_v34, %v22595_v62  ;;  %v936_v29 = vpop.f32.mrb[21].mxu0  ;;  %v1059_v14 = vpop.f32.mrb[21].mxu1  ;;  %v1639_v31 = vrot.slane %v28287_v32, 1  ;;  %v1651_v61 = vor.u32 %v28288_v35, %v1615_v24  ;;  %v1655_v37 = vrot.slane %v28289_v3, 1 }
 0x138   : > { %v1058_v20 = vadd.f32 %v1057_v19, %v22602_v0  ;;  %v937_v10 = vadd.f32 %v936_v29, %v22599_v63  ;;  %v938_v30 = vpop.f32.mrb[22].mxu0  ;;  %v1061_v15 = vpop.f32.mrb[22].mxu1  ;;  %v1647_v9 = vrot.slane %v28290_v36, 1  ;;  %v1663_v34 = vrot.slane %v28291_v21, 1  ;;  %v20275_v29 = vld [vmem:[%s28257_s3 + $0x260] ss:$8 sps:$4 sm:$0xff]  }
 0x139   : > { %v1060_v44 = vadd.f32 %v1059_v14, %v22605_v4  ;;  %v939_v32 = vadd.f32 %v938_v30, %v22595_v62  ;;  %v1062_v24 = vadd.f32 %v1061_v15, %v22602_v0  ;;  %v940_v35 = vpop.f32.mrb[23].mxu0  ;;  %v1063_v3 = vpop.f32.mrb[23].mxu1  ;;  %v1640_v19 = vsel %vm1492_vm1, %v1635_v38, %v1639_v31  ;;  %3154 = vmatpush1.bf16.msra.mxu1 %v20266_v27  ;;  %v20281_v36 = vld [vmem:[%s28257_s3 + $0x4b0] ss:$8 sps:$4 sm:$0xff]   ;;  %v20286_v27 = vld [vmem:[%s28257_s3 + $0x274] ss:$8 sps:$4 sm:$0xff]  }
 0x13a   : > { %v941_v21 = vadd.f32 %v940_v35, %v22599_v63  ;;  %v1064_v14 = vadd.f32 %v1063_v3, %v22605_v4  ;;  %v1648_v30 = vsel %vm1492_vm1, %v1643_v48, %v1647_v9  ;;  %v1664_v15 = vsel %vm1492_vm1, %v1659_v52, %v1663_v34  ;;  %3155 = vmatprep.subr.bf16.mxu1 %v20277_v33  ;;  %v20289_v38 = vld [vmem:[%s28257_s3 + $0x4c4] ss:$8 sps:$4 sm:$0xff]  }
 0x13b   : > { %v22868_v13 = vpack.c.bf16 %v939_v32, %v935_v26  ;;  %v22870_v16 = vpack.c.bf16 %v1062_v24, %v1058_v20  ;;  %2290 = vmatprep.mubr.bf16.mxu0 %v1648_v30  ;;  %2393 = vmatprep.mubr.bf16.mxu1 %v1664_v15  ;;  %v1656_v35 = vsel %vm1492_vm1, %v1651_v61, %v1655_v37  ;;  %v28295_v48 = vshrl.u32 %v22808_v28, 16  ;;  %v20284_v20 = vld [vmem:[%s28257_s3 + $0x270] ss:$8 sps:$4 sm:$0xff]  }
 0x13c   : > { %v22874_v3 = vpack.c.bf16 %v941_v21, %v937_v10  ;;  %v22876_v33 = vpack.c.bf16 %v1064_v14, %v1060_v44  ;;  %2291 = vmatmul.mubr.bf16.gmra.mrb[84].mxu0 %v1640_v19  ;;  %2394 = vmatmul.mubr.bf16.gmra.mrb[48].mxu1 %v1656_v35  ;;  %v28296_v52 = vshrl.u32 %v22810_v12, 16  ;;  %v28299_v23 = vshrl.u32 %v22802_v25, 16  ;;  %v20287_v21 = vld [vmem:[%s28257_s3 + $0x4c0] ss:$8 sps:$4 sm:$0xff]  }
 0x13d   : > { %28376 = vst [vmem:[#allocation24_spill] sm:$0xff] %v22870_v16  ;;  %1271 = vst [vmem:[#allocation2 + $0xc8] sm:$0xff] %v22868_v13  ;;  %v1683_v10 = vor.u32 %v28295_v48, %v1647_v9  ;;  %v28298_v44 = vshll.u32 %v22868_v13, 16  ;;  %v28300_v61 = vshrl.u32 %v22804_v18, 16  ;;  %v28301_v32 = vshll.u32 %v22870_v16, 16  ;;  %3156 = vmatpush1.bf16.msra.mxu1 %v20275_v29  ;;  %2441 = vmatpush1.bf16.msra.mxu0 %v20281_v36  ;;  %v23909_v40 = vld [vmem:[#allocation2 + $0xa0] sm:$0xff] }
 0x13e   : > { %28377 = vst [vmem:[#allocation25_spill] sm:$0xff] %v22876_v33  ;;  %1273 = vst [vmem:[#allocation2 + $0xd8] sm:$0xff] %v22870_v16  ;;  %v944_v26 = vpop.f32.mrb[24].mxu0  ;;  %v1067_v24 = vpop.f32.mrb[24].mxu1  ;;  %v28302_v9 = vshll.u32 %v22874_v3, 16  ;;  %v1699_v19 = vor.u32 %v28296_v52, %v1663_v34  ;;  %v28303_v14 = vshll.u32 %v22876_v33, 16  ;;  %v1675_v36 = vor.u32 %v28299_v23, %v1639_v31  ;;  %3157 = vmatprep.subr.bf16.mxu1 %v20286_v27 }
 0x13f   : > { %1272 = vst [vmem:[#allocation2 + $0xd0] sm:$0xff] %v22874_v3  ;;  %1274 = vst [vmem:[#allocation2 + $0xe0] sm:$0xff] %v22876_v33  ;;  %2442 = vmatprep.subr.bf16.mxu0 %v20289_v38  ;;  %v945_v29 = vadd.f32 %v944_v26, %v22595_v62  ;;  %v946_v30 = vpop.f32.mrb[25].mxu0  ;;  %v1069_v15 = vpop.f32.mrb[25].mxu1  ;;  %v1679_v35 = vrot.slane %v28298_v44, 1  ;;  %v1691_v48 = vor.u32 %v28300_v61, %v1655_v37  ;;  %v1695_v34 = vrot.slane %v28301_v32, 1 }
 0x140   : > { %v1068_v52 = vadd.f32 %v1067_v24, %v22602_v0  ;;  %v947_v22 = vadd.f32 %v946_v30, %v22599_v63  ;;  %v948_v31 = vpop.f32.mrb[26].mxu0  ;;  %v1071_v27 = vpop.f32.mrb[26].mxu1  ;;  %v1687_v38 = vrot.slane %v28302_v9, 1  ;;  %v1703_v26 = vrot.slane %v28303_v14, 1  ;;  %v20292_v30 = vld [vmem:[%s28257_s3 + $0x504] ss:$8 sps:$4 sm:$0xff]  }
 0x141   : > { %v1070_v44 = vadd.f32 %v1069_v15, %v22605_v4  ;;  %v949_v23 = vadd.f32 %v948_v31, %v22595_v62  ;;  %v1072_v37 = vadd.f32 %v1071_v27, %v22602_v0  ;;  %v950_v61 = vpop.f32.mrb[27].mxu0  ;;  %v1073_v32 = vpop.f32.mrb[27].mxu1  ;;  %v1680_v24 = vsel %vm1492_vm1, %v1675_v36, %v1679_v35  ;;  %3158 = vmatpush1.bf16.msra.mxu1 %v20284_v20  ;;  %v20295_v9 = vld [vmem:[%s28257_s3 + $0x4d4] ss:$8 sps:$4 sm:$0xff]   ;;  %v20293_v20 = vld [vmem:[%s28257_s3 + $0x4d0] ss:$8 sps:$4 sm:$0xff]  }
 0x142   : > { %v951_v14 = vadd.f32 %v950_v61, %v22599_v63  ;;  %v1074_v15 = vadd.f32 %v1073_v32, %v22605_v4  ;;  %v1688_v31 = vsel %vm1492_vm1, %v1683_v10, %v1687_v38  ;;  %v1704_v27 = vsel %vm1492_vm1, %v1699_v19, %v1703_v26  ;;  %2443 = vmatpush1.bf16.msra.mxu0 %v20287_v21  ;;  %v20301_v36 = vld [vmem:[%s28257_s3 + $0x4e4] ss:$8 sps:$4 sm:$0xff]  }
 0x143   : > { %v22934_v46 = vpack.c.bf16 %v949_v23, %v945_v29  ;;  %v22936_v7 = vpack.c.bf16 %v1072_v37, %v1068_v52  ;;  %2300 = vmatprep.mubr.bf16.mxu0 %v1688_v31  ;;  %2403 = vmatprep.mubr.bf16.mxu1 %v1704_v27  ;;  %v1696_v61 = vsel %vm1492_vm1, %v1691_v48, %v1695_v34  ;;  %v28313_v10 = vshrl.u32 %v22874_v3, 16 }
 0x144   : > { %v22940_v32 = vpack.c.bf16 %v951_v14, %v947_v22  ;;  %v22942_v21 = vpack.c.bf16 %v1074_v15, %v1070_v44  ;;  %2301 = vmatmul.mubr.bf16.gmra.mrb[88].mxu0 %v1680_v24  ;;  %2404 = vmatmul.mubr.bf16.gmra.mrb[52].mxu1 %v1696_v61  ;;  %v28307_v19 = vshrl.u32 %v22876_v33, 16  ;;  %v28308_v59 = vshrl.u32 %v22868_v13, 16  ;;  %v20299_v44 = vld [vmem:[%s28257_s3 + $0x4e0] ss:$8 sps:$4 sm:$0xff]  }
 0x145   : > { %28378 = vst [vmem:[#allocation26_spill] sm:$0xff] %v22936_v7  ;;  %1276 = vst [vmem:[#allocation2 + $0xf0] sm:$0xff] %v22934_v46  ;;  %v1723_v23 = vor.u32 %v28313_v10, %v1687_v38  ;;  %v28309_v48 = vshll.u32 %v22934_v46, 16  ;;  %v28311_v22 = vshrl.u32 %v22870_v16, 16  ;;  %v28310_v52 = vshll.u32 %v22936_v7, 16  ;;  %3883 = vmatprep.subr.bf16.mxu1 %v20292_v30  ;;  %2444 = vmatprep.subr.bf16.mxu0 %v20295_v9 }
 0x146   : > { %28379 = vst [vmem:[#allocation27_spill] sm:$0xff] %v22942_v21  ;;  %1278 = vst [vmem:[#allocation2 + $0x100] sm:$0xff] %v22936_v7  ;;  %v954_v14 = vpop.f32.mrb[28].mxu0  ;;  %v1077_v29 = vpop.f32.mrb[28].mxu1  ;;  %v28312_v38 = vshll.u32 %v22940_v32, 16  ;;  %v1739_v37 = vor.u32 %v28307_v19, %v1703_v26  ;;  %v28314_v24 = vshll.u32 %v22942_v21, 16  ;;  %v1715_v9 = vor.u32 %v28308_v59, %v1679_v35  ;;  %2445 = vmatpush1.bf16.msra.mxu0 %v20293_v20 }
 0x147   : > { %1277 = vst [vmem:[#allocation2 + $0xf8] sm:$0xff] %v22940_v32  ;;  %1279 = vst [vmem:[#allocation2 + $0x108] sm:$0xff] %v22942_v21  ;;  %v955_v30 = vadd.f32 %v954_v14, %v22595_v62  ;;  %v956_v15 = vpop.f32.mrb[29].mxu0  ;;  %v1079_v31 = vpop.f32.mrb[29].mxu1  ;;  %v22967_v27 = vrot.slane %v28309_v48, 1  ;;  %v1731_v61 = vor.u32 %v28311_v22, %v1695_v34  ;;  %v22973_v26 = vrot.slane %v28310_v52, 1  ;;  %2446 = vmatprep.subr.bf16.mxu0 %v20301_v36 }
 0x148   : > { %v1078_v19 = vadd.f32 %v1077_v29, %v22602_v0  ;;  %v957_v35 = vadd.f32 %v956_v15, %v22599_v63  ;;  %v958_v20 = vpop.f32.mrb[30].mxu0  ;;  %v1081_v14 = vpop.f32.mrb[30].mxu1  ;;  %v22979_v59 = vrot.slane %v28312_v38, 1  ;;  %v22983_v48 = vrot.slane %v28314_v24, 1  ;;  %v20307_v38 = vld [vmem:[%s28257_s3 + $0x4f4] ss:$8 sps:$4 sm:$0xff]  }
 0x149   : > { %v1080_v34 = vadd.f32 %v1079_v31, %v22605_v4  ;;  %v959_v52 = vadd.f32 %v958_v20, %v22595_v62  ;;  %v1082_v36 = vadd.f32 %v1081_v14, %v22602_v0  ;;  %v960_v22 = vpop.f32.mrb[31].mxu0  ;;  %v1083_v29 = vpop.f32.mrb[31].mxu1  ;;  %v1720_v15 = vsel %vm1492_vm1, %v1715_v9, %v22967_v27  ;;  %v20305_v14 = vld [vmem:[%s28257_s3 + $0x4f0] ss:$8 sps:$4 sm:$0xff]  }
 0x14a   : > { %v961_v10 = vadd.f32 %v960_v22, %v22599_v63  ;;  %v1084_v24 = vadd.f32 %v1083_v29, %v22605_v4  ;;  %v1728_v31 = vsel %vm1492_vm1, %v1723_v23, %v22979_v59  ;;  %v1744_v20 = vsel %vm1492_vm1, %v1739_v37, %v22983_v48  ;;  %2447 = vmatpush1.bf16.msra.mxu0 %v20299_v44  ;;  %v20313_v29 = vld [vmem:[%s28257_s3 + $0x4] ss:$8 sps:$4 sm:$0xff]  }
 0x14b   : > { %v1236_v9 = vpack.c.bf16 %v959_v52, %v955_v30  ;;  %v1238_v55 = vpack.c.bf16 %v1082_v36, %v1078_v19  ;;  %2310 = vmatprep.mubr.bf16.mxu0 %v1728_v31  ;;  %2413 = vmatprep.mubr.bf16.mxu1 %v1744_v20  ;;  %v1736_v22 = vsel %vm1492_vm1, %v1731_v61, %v22973_v26  ;;  %v581_v44 = vsub.s32 4, %v22578_v56 }
 0x14c   : > { %v1237_v23 = vpack.c.bf16 %v961_v10, %v957_v35  ;;  %v1239_v8 = vpack.c.bf16 %v1084_v24, %v1080_v34  ;;  %2311 = vmatmul.mubr.bf16.gmra.mrb[92].mxu0 %v1720_v15  ;;  %2414 = vmatmul.mubr.bf16.gmra.mrb[56].mxu1 %v1736_v22 }
 0x14d   : > { %1281 = vst [vmem:[#allocation2 + $0x118] sm:$0xff] %v1236_v9  ;;  %1283 = vst [vmem:[#allocation2 + $0x128] sm:$0xff] %v1238_v55  ;;  %2448 = vmatprep.subr.bf16.mxu0 %v20307_v38  ;;  %v23017_v9 = vrot.slane %v22590_v60, %v581_v44  ;;  %v28318_v60 = vshrl.u32 %v22942_v21, 16 }
 0x14e   : > { %1282 = vst [vmem:[#allocation2 + $0x120] sm:$0xff] %v1237_v23  ;;  %1284 = vst [vmem:[#allocation2 + $0x130] sm:$0xff] %v1239_v8  ;;  %v964_v52 = vpop.f32.mrb[32].mxu0  ;;  %v1087_v19 = vpop.f32.mrb[32].mxu1  ;;  %2449 = vmatpush1.bf16.msra.mxu0 %v20305_v14 }
 0x14f   : > { %v965_v37 = vadd.f32 %v964_v52, %v22595_v62  ;;  %v1088_v30 = vadd.f32 %v1087_v19, %v22602_v0  ;;  %v966_v61 = vpop.f32.mrb[33].mxu0  ;;  %v1089_v36 = vpop.f32.mrb[33].mxu1  ;;  %2937 = vmatprep.subr.bf16.mxu0 %v20313_v29  ;;  %v28319_v52 = vshrl.u32 %v22934_v46, 16 }
 0x150   : > { %v967_v10 = vadd.f32 %v966_v61, %v22599_v63  ;;  %v1090_v24 = vadd.f32 %v1089_v36, %v22605_v4  ;;  %v968_v55 = vpop.f32.mrb[34].mxu0  ;;  %v1091_v38 = vpop.f32.mrb[34].mxu1 }
 0x151   : > { %v969_v8 = vadd.f32 %v968_v55, %v22595_v62  ;;  %v1092_v35 = vadd.f32 %v1091_v38, %v22602_v0  ;;  %v970_v34 = vpop.f32.mrb[35].mxu0  ;;  %v1093_v15 = vpop.f32.mrb[35].mxu1  ;;  %v28317_v55 = vshrl.u32 %v22936_v7, 16 }
 0x152   : > { %v971_v56 = vadd.f32 %v970_v34, %v22599_v63  ;;  %v1094_v31 = vadd.f32 %v1093_v15, %v22605_v4  ;;  %v28320_v4 = vshrl.u32 %v22940_v32, 16  ;;  %v1779_v15 = vor.u32 %v28318_v60, %v22983_v48 }
 0x153   : > { %v1241_v20 = vpack.c.bf16 %v969_v8, %v965_v37  ;;  %v1243_v14 = vpack.c.bf16 %v1092_v35, %v1088_v30  ;;  %v5264_v60 = vrot.slane %v1553_v11, 6  ;;  %v5265_v11 = vrot.slane %v1501_v1, 7 }
 0x154   : > { %v1242_v22 = vpack.c.bf16 %v971_v56, %v967_v10  ;;  %v1244_v29 = vpack.c.bf16 %v1094_v31, %v1090_v24  ;;  %v1406_v23 = vld [vmem:[#allocation2 + $0x118] sm:$0x1]  ;;  %v1408_v19 = vld [vmem:[#allocation2 + $0x128] sm:$0x1]  ;;  %v1763_v35 = vor.u32 %v28320_v4, %v22979_v59  ;;  %v20358_v4 = vld [vmem:[%s28257_s3 + $0x5b4] ss:$8 sps:$4 sm:$0xff]  }
 0x155   : > { %1286 = vst [vmem:[#allocation2 + $0x140] sm:$0xff] %v1241_v20  ;;  %1288 = vst [vmem:[#allocation2 + $0x150] sm:$0xff] %v1243_v14  ;;  %v1407_v62 = vld [vmem:[#allocation2 + $0x120] sm:$0x1]  ;;  %v1409_v0 = vld [vmem:[#allocation2 + $0x130] sm:$0x1]  ;;  %v1755_v14 = vor.u32 %v28319_v52, %v22967_v27 }
 0x156   : > { %v1757_v61 = vshll.u32 %v1406_v23, 16  ;;  %v1773_v36 = vshll.u32 %v1408_v19, 16  ;;  %1287 = vst [vmem:[#allocation2 + $0x148] sm:$0xff] %v1242_v22  ;;  %1289 = vst [vmem:[#allocation2 + $0x158] sm:$0xff] %v1244_v29  ;;  %v1130_v63 = vpop.f32.mrb[36].mxu0  ;;  %v1765_v37 = vshll.u32 %v1407_v62, 16  ;;  %v1771_v22 = vor.u32 %v28317_v55, %v22973_v26 }
 0x157   : > { %v1781_v44 = vshll.u32 %v1409_v0, 16  ;;  %v1131_v30 = vadd.f32 %v1130_v63, %v23017_v9  ;;  %v18988_v10 = vpop.f32.mrb[37].mxu0  ;;  %v20290_v63 = vld [vmem:[%s28257_s3 + $0x500] ss:$8 sps:$4 sm:$0xff]  }
 0x158   : > { %v1759_v24 = vrot.slane %v1757_v61, 1  ;;  %v1775_v38 = vrot.slane %v1773_v36, 1  ;;  %v1133_v8 = vpop.f32.mrb[38].mxu0  ;;  %v1767_v34 = vrot.slane %v1765_v37, 1  ;;  %v20350_v55 = vld [vmem:[%s28257_s3 + $0x5a0] ss:$8 sps:$4 sm:$0xff]  }
 0x159   : > { %v1783_v56 = vrot.slane %v1781_v44, 1  ;;  %v1134_v31 = vadd.f32 %v1133_v8, %v23017_v9  ;;  %v18989_v20 = vpop.f32.mrb[39].mxu0  ;;  %v20298_v44 = vld [vmem:[%s28257_s3 + $0x514] ss:$8 sps:$4 sm:$0xff]  }
 0x15a   : > { %v1768_v29 = vsel %vm1492_vm1, %v1763_v35, %v1767_v34  ;;  %v1760_v48 = vsel %vm1492_vm1, %v1755_v14, %v1759_v24  ;;  %v1776_v19 = vsel %vm1492_vm1, %v1771_v22, %v1775_v38  ;;  %v20296_v38 = vld [vmem:[%s28257_s3 + $0x510] ss:$8 sps:$4 sm:$0xff]   ;;  %v20304_v34 = vld [vmem:[%s28257_s3 + $0x524] ss:$8 sps:$4 sm:$0xff]   ;;  %v20311_v20 = vld [vmem:[%s28257_s3] ss:$8 sps:$4 sm:$0xff]  }
 0x15b   : > { %v1784_v59 = vsel %vm1492_vm1, %v1779_v15, %v1783_v56  ;;  %v1205_v23 = vpack.c.bf16 %v1134_v31, %v1131_v30  ;;  %2320 = vmatprep.mubr.bf16.mxu0 %v1768_v29  ;;  %v20319_v29 = vld [vmem:[%s28257_s3 + $0x14] ss:$8 sps:$4 sm:$0xff]  }
 0x15c   : > { %2423 = vmatprep.mubr.bf16.mxu1 %v1784_v59  ;;  %2321 = vmatmul.mubr.bf16.gmra.mrb[96].mxu0 %v1760_v48 }
 0x15d   : > { %2424 = vmatmul.mubr.bf16.gmra.mrb[60].mxu1 %v1776_v19  ;;  %1250 = vst [vmem:[#allocation2 + $0x20] sm:$0xff] %v1205_v23  ;;  %2466 = vmatprep.mubr.bf16.mxu0 %v28325_v2  ;;  %v1544_v0 = vshll.u32 %v1205_v23, 16  ;;  %v1542_v10 = vshrl.u32 %v1205_v23, 16 }
 0x15e   : > { %3175 = vmatprep.mubr.bf16.mxu1 %v28325_v2  ;;  %v1138_v27 = vpop.f32.mrb[40].mxu0 }
 0x15f   : > { %v1139_v26 = vadd.f32 %v1138_v27, %v23017_v9  ;;  %v18992_v62 = vpop.f32.mrb[41].mxu0  ;;  %v1546_v24 = vrot.slane %v1544_v0, 1  ;;  %v20310_v27 = vld [vmem:[%s28257_s3 + $0x534] ss:$8 sps:$4 sm:$0xff]  }
 0x160   : > { %v1141_v61 = vpop.f32.mrb[42].mxu0  ;;  %v20317_v62 = vld [vmem:[%s28257_s3 + $0x10] ss:$8 sps:$4 sm:$0xff]  }
 0x161   : > { %v1142_v36 = vadd.f32 %v1141_v61, %v23017_v9  ;;  %v18993_v37 = vpop.f32.mrb[43].mxu0  ;;  %v1547_v15 = vor.u32 %v1546_v24, %v1542_v10  ;;  %v20325_v61 = vld [vmem:[%s28257_s3 + $0x24] ss:$8 sps:$4 sm:$0xff]   ;;  %v20323_v24 = vld [vmem:[%s28257_s3 + $0x20] ss:$8 sps:$4 sm:$0xff]  }
 0x163   : > { %v23051_v30 = vpack.c.bf16 %v1142_v36, %v1139_v26  ;;  %v20308_v36 = vld [vmem:[%s28257_s3 + $0x530] ss:$8 sps:$4 sm:$0xff]  }
 0x165   : > { %3176 = vmatmul.mubr.bf16.vlgmr.msra.gmra.mrb[64].mxu1 %v1205_v23  ;;  %1255 = vst [vmem:[#allocation2 + $0x48] sm:$0xff] %v23051_v30  ;;  %v1549_v8 = vshll.u32 %v23051_v30, 16  ;;  %v20302_v23 = vld [vmem:[%s28257_s3 + $0x520] ss:$8 sps:$4 sm:$0xff]   ;;  %v1585_v0 = vshrl.u32 %v23051_v30, 16 }
 0x166   : > { %3884 = vmatpush1.bf16.msra.mxu1 %v20290_v63  ;;  %3185 = vmatprep.mubr.bf16.mxu1 %v28325_v2  ;;  %v1146_v35 = vpop.f32.mrb[44].mxu0  ;;  %v20316_v63 = vld [vmem:[%s28257_s3 + $0x544] ss:$8 sps:$4 sm:$0xff]  }
 0x167   : > { %3885 = vmatprep.subr.bf16.mxu1 %v20298_v44  ;;  %v1147_v56 = vadd.f32 %v1146_v35, %v23017_v9  ;;  %v18996_v31 = vpop.f32.mrb[45].mxu0  ;;  %v1551_v14 = vrot.slane %v1549_v8, 1 }
 0x168   : > { %v1149_v22 = vpop.f32.mrb[46].mxu0 }
 0x169   : > { %v1150_v59 = vadd.f32 %v1149_v22, %v23017_v9  ;;  %v18997_v48 = vpop.f32.mrb[47].mxu0  ;;  %v1552_v19 = vsel %vm1492_vm1, %v1547_v15, %v1551_v14  ;;  %v1587_v37 = vor.u32 %v1585_v0, %v1551_v14  ;;  %v20331_v15 = vld [vmem:[%s28257_s3 + $0x34] ss:$8 sps:$4 sm:$0xff]  }
 0x16a   : > { %3886 = vmatpush1.bf16.msra.mxu1 %v20296_v38  ;;  %2467 = vmatmul.mubr.bf16.vlgmr.msra.gmra.mrb[100].mxu0 %v1552_v19  ;;  %v20337_v19 = vld [vmem:[%s28257_s3 + $0x44] ss:$8 sps:$4 sm:$0xff]  }
 0x16b   : > { %3887 = vmatprep.subr.bf16.mxu1 %v20304_v34  ;;  %v23079_v26 = vpack.c.bf16 %v1150_v59, %v1147_v56  ;;  %2938 = vmatpush1.bf16.msra.mxu0 %v20311_v20  ;;  %v20314_v20 = vld [vmem:[%s28257_s3 + $0x540] ss:$8 sps:$4 sm:$0xff]  }
 0x16c   : > { %2476 = vmatprep.mubr.bf16.mxu0 %v28325_v2  ;;  %2939 = vmatprep.subr.bf16.mxu0 %v20319_v29  ;;  %v20322_v29 = vld [vmem:[%s28257_s3 + $0x554] ss:$8 sps:$4 sm:$0xff]  }
 0x16d   : > { %3186 = vmatmul.mubr.bf16.gmra.mrb[68].mxu1 %v23051_v30  ;;  %1260 = vst [vmem:[#allocation2 + $0x70] sm:$0xff] %v23079_v26  ;;  %v1589_v44 = vshll.u32 %v23079_v26, 16  ;;  %v1625_v48 = vshrl.u32 %v23079_v26, 16 }
 0x16e   : > { %3888 = vmatpush1.bf16.msra.mxu1 %v20302_v23  ;;  %3195 = vmatprep.mubr.bf16.mxu1 %v28325_v2  ;;  %v1154_v10 = vpop.f32.mrb[48].mxu0  ;;  %v20329_v23 = vld [vmem:[%s28257_s3 + $0x30] ss:$8 sps:$4 sm:$0xff]  }
 0x16f   : > { %3889 = vmatprep.subr.bf16.mxu1 %v20310_v27  ;;  %v1155_v38 = vadd.f32 %v1154_v10, %v23017_v9  ;;  %v19000_v35 = vpop.f32.mrb[49].mxu0  ;;  %2940 = vmatpush1.bf16.msra.mxu0 %v20317_v62  ;;  %v1591_v34 = vrot.slane %v1589_v44, 1  ;;  %v20320_v27 = vld [vmem:[%s28257_s3 + $0x550] ss:$8 sps:$4 sm:$0xff]   ;;  %v20328_v62 = vld [vmem:[%s28257_s3 + $0x564] ss:$8 sps:$4 sm:$0xff]  }
 0x170   : > { %v1157_v56 = vpop.f32.mrb[50].mxu0  ;;  %2941 = vmatprep.subr.bf16.mxu0 %v20325_v61 }
 0x171   : > { %v1158_v31 = vadd.f32 %v1157_v56, %v23017_v9  ;;  %v19001_v14 = vpop.f32.mrb[51].mxu0  ;;  %v1592_v22 = vsel %vm1492_vm1, %v1587_v37, %v1591_v34  ;;  %v1627_v61 = vor.u32 %v1625_v48, %v1591_v34 }
 0x172   : > { %3890 = vmatpush1.bf16.msra.mxu1 %v20308_v36  ;;  %2477 = vmatmul.mubr.bf16.gmra.mrb[104].mxu0 %v1592_v22  ;;  %v20341_v14 = vld [vmem:[%s28257_s3 + $0x50] ss:$8 sps:$4 sm:$0xff]   ;;  %v20334_v22 = vld [vmem:[%s28257_s3 + $0x574] ss:$8 sps:$4 sm:$0xff]  }
 0x173   : > { %3891 = vmatprep.subr.bf16.mxu1 %v20316_v63  ;;  %v23118_v59 = vpack.c.bf16 %v1158_v31, %v1155_v38  ;;  %2942 = vmatpush1.bf16.msra.mxu0 %v20323_v24  ;;  %v20326_v24 = vld [vmem:[%s28257_s3 + $0x560] ss:$8 sps:$4 sm:$0xff]  }
 0x174   : > { %2486 = vmatprep.mubr.bf16.mxu0 %v28325_v2  ;;  %2943 = vmatprep.subr.bf16.mxu0 %v20331_v15  ;;  %v20335_v38 = vld [vmem:[%s28257_s3 + $0x40] ss:$8 sps:$4 sm:$0xff]   ;;  %v20343_v15 = vld [vmem:[%s28257_s3 + $0x54] ss:$8 sps:$4 sm:$0xff]  }
 0x175   : > { %3196 = vmatmul.mubr.bf16.gmra.mrb[72].mxu1 %v23079_v26  ;;  %1265 = vst [vmem:[#allocation2 + $0x98] sm:$0xff] %v23118_v59  ;;  %v28330_v36 = vshll.u32 %v23118_v59, 16 }
 0x176   : > { %3892 = vmatpush1.bf16.msra.mxu1 %v20314_v20  ;;  %3205 = vmatprep.mubr.bf16.mxu1 %v28325_v2  ;;  %v1162_v63 = vpop.f32.mrb[52].mxu0 }
 0x177   : > { %3893 = vmatprep.subr.bf16.mxu1 %v20322_v29  ;;  %v1163_v37 = vadd.f32 %v1162_v63, %v23017_v9  ;;  %v19004_v10 = vpop.f32.mrb[53].mxu0  ;;  %2944 = vmatpush1.bf16.msra.mxu0 %v20329_v23  ;;  %v1631_v35 = vrot.slane %v28330_v36, 1  ;;  %v20332_v23 = vld [vmem:[%s28257_s3 + $0x570] ss:$8 sps:$4 sm:$0xff]  }
 0x178   : > { %v1165_v34 = vpop.f32.mrb[54].mxu0  ;;  %2945 = vmatprep.subr.bf16.mxu0 %v20337_v19  ;;  %v1665_v19 = vshrl.u32 %v23118_v59, 16  ;;  %v20401_v36 = vld [vmem:[%s28257_s3 + $0xf0] ss:$8 sps:$4 sm:$0xff]  }
 0x179   : > { %v1166_v56 = vadd.f32 %v1165_v34, %v23017_v9  ;;  %v19005_v31 = vpop.f32.mrb[55].mxu0  ;;  %v1632_v20 = vsel %vm1492_vm1, %v1627_v61, %v1631_v35  ;;  %v20347_v61 = vld [vmem:[%s28257_s3 + $0x60] ss:$8 sps:$4 sm:$0xff]  }
 0x17a   : > { %3894 = vmatpush1.bf16.msra.mxu1 %v20320_v27  ;;  %2487 = vmatmul.mubr.bf16.gmra.mrb[108].mxu0 %v1632_v20  ;;  %v20349_v27 = vld [vmem:[%s28257_s3 + $0x64] ss:$8 sps:$4 sm:$0xff]   ;;  %v1667_v63 = vor.u32 %v1665_v19, %v1631_v35  ;;  %v20338_v34 = vld [vmem:[%s28257_s3 + $0x580] ss:$8 sps:$4 sm:$0xff]   ;;  %v20355_v35 = vld [vmem:[%s28257_s3 + $0x74] ss:$8 sps:$4 sm:$0xff]  }
 0x17b   : > { %3895 = vmatprep.subr.bf16.mxu1 %v20328_v62  ;;  %v23160_v29 = vpack.c.bf16 %v1166_v56, %v1163_v37  ;;  %2946 = vmatpush1.bf16.msra.mxu0 %v20335_v38  ;;  %v20340_v62 = vld [vmem:[%s28257_s3 + $0x584] ss:$8 sps:$4 sm:$0xff]  }
 0x17c   : > { %2496 = vmatprep.mubr.bf16.mxu0 %v28325_v2  ;;  %2947 = vmatprep.subr.bf16.mxu0 %v20343_v15 }
 0x17d   : > { %3206 = vmatmul.mubr.bf16.gmra.mrb[76].mxu1 %v23118_v59  ;;  %1270 = vst [vmem:[#allocation2 + $0xc0] sm:$0xff] %v23160_v29  ;;  %v28322_v37 = vshll.u32 %v23160_v29, 16 }
 0x17e   : > { %3896 = vmatpush1.bf16.msra.mxu1 %v20326_v24  ;;  %3215 = vmatprep.mubr.bf16.mxu1 %v28325_v2  ;;  %v1170_v10 = vpop.f32.mrb[56].mxu0 }
 0x17f   : > { %3897 = vmatprep.subr.bf16.mxu1 %v20334_v22  ;;  %v1171_v38 = vadd.f32 %v1170_v10, %v23017_v9  ;;  %v19008_v24 = vpop.f32.mrb[57].mxu0  ;;  %2948 = vmatpush1.bf16.msra.mxu0 %v20341_v14  ;;  %v1671_v15 = vrot.slane %v28322_v37, 1  ;;  %v20353_v10 = vld [vmem:[%s28257_s3 + $0x70] ss:$8 sps:$4 sm:$0xff]   ;;  %v20346_v14 = vld [vmem:[%s28257_s3 + $0x594] ss:$8 sps:$4 sm:$0xff]  }
 0x180   : > { %v1173_v56 = vpop.f32.mrb[58].mxu0  ;;  %2949 = vmatprep.subr.bf16.mxu0 %v20349_v27 }
 0x181   : > { %v1174_v31 = vadd.f32 %v1173_v56, %v23017_v9  ;;  %v19009_v20 = vpop.f32.mrb[59].mxu0  ;;  %v1672_v22 = vsel %vm1492_vm1, %v1667_v63, %v1671_v15  ;;  %v28324_v63 = vshrl.u32 %v23160_v29, 16 }
 0x182   : > { %3898 = vmatpush1.bf16.msra.mxu1 %v20332_v23  ;;  %2497 = vmatmul.mubr.bf16.gmra.mrb[112].mxu0 %v1672_v22  ;;  %v20361_v23 = vld [vmem:[%s28257_s3 + $0x84] ss:$8 sps:$4 sm:$0xff]  }
 0x183   : > { %3899 = vmatprep.subr.bf16.mxu1 %v20340_v62  ;;  %v23199_v27 = vpack.c.bf16 %v1174_v31, %v1171_v38  ;;  %2950 = vmatpush1.bf16.msra.mxu0 %v20347_v61  ;;  %v4220_v62 = vld [vmem:[#allocation2] sm:$0xc0]  ;;  %v20344_v38 = vld [vmem:[%s28257_s3 + $0x590] ss:$8 sps:$4 sm:$0xff]   ;;  %v1707_v24 = vor.u32 %v28324_v63, %v1671_v15  ;;  %v20367_v31 = vld [vmem:[%s28257_s3 + $0x94] ss:$8 sps:$4 sm:$0xff]  }
 0x184   : > { %2506 = vmatprep.mubr.bf16.mxu0 %v28325_v2  ;;  %2951 = vmatprep.subr.bf16.mxu0 %v20355_v35  ;;  %v20352_v61 = vld [vmem:[%s28257_s3 + $0x5a4] ss:$8 sps:$4 sm:$0xff]  }
 0x185   : > { %3216 = vmatmul.mubr.bf16.gmra.mrb[80].mxu1 %v23160_v29  ;;  %1275 = vst [vmem:[#allocation2 + $0xe8] sm:$0xff] %v23199_v27  ;;  %v28323_v56 = vshll.u32 %v23199_v27, 16 }
 0x186   : > { %3900 = vmatpush1.bf16.msra.mxu1 %v20338_v34  ;;  %3225 = vmatprep.mubr.bf16.mxu1 %v28325_v2  ;;  %v1178_v35 = vpop.f32.mrb[60].mxu0  ;;  %v20359_v34 = vld [vmem:[%s28257_s3 + $0x80] ss:$8 sps:$4 sm:$0xff]  }
 0x187   : > { %3901 = vmatprep.subr.bf16.mxu1 %v20346_v14  ;;  %v1179_v20 = vadd.f32 %v1178_v35, %v23017_v9  ;;  %v19012_v22 = vpop.f32.mrb[61].mxu0  ;;  %2952 = vmatpush1.bf16.msra.mxu0 %v20353_v10  ;;  %v1711_v15 = vrot.slane %v28323_v56, 1  ;;  %v5257_v14 = vshrl.u32 %v4220_v62, 16  ;;  %v5260_v35 = vshll.u32 %v4220_v62, 16 }
 0x188   : > { %v1181_v52 = vpop.f32.mrb[62].mxu0  ;;  %2953 = vmatprep.subr.bf16.mxu0 %v20361_v23  ;;  %v20356_v23 = vld [vmem:[%s28257_s3 + $0x5b0] ss:$8 sps:$4 sm:$0xff]   ;;  %v23253_v62 = vor.u32 %v5265_v11, %v5264_v60  ;;  %v20371_v60 = vld [vmem:[%s28257_s3 + $0xa0] ss:$8 sps:$4 sm:$0xff]  }
 0x189   : > { %v1182_v22 = vadd.f32 %v1181_v52, %v23017_v9  ;;  %v19013_v17 = vpop.f32.mrb[63].mxu0  ;;  %v1712_v10 = vsel %vm1492_vm1, %v1707_v24, %v1711_v15  ;;  %v5259_v37 = vrot.slane %v5257_v14, 6  ;;  %v5262_v56 = vrot.slane %v5260_v35, 7 }
 0x18a   : > { %3902 = vmatpush1.bf16.msra.mxu1 %v20344_v38  ;;  %2507 = vmatmul.mubr.bf16.gmra.mrb[116].mxu0 %v1712_v10  ;;  %v20365_v17 = vld [vmem:[%s28257_s3 + $0x90] ss:$8 sps:$4 sm:$0xff]   ;;  %v28328_v52 = vshrl.u32 %v23199_v27, 16  ;;  %v20364_v38 = vld [vmem:[%s28257_s3 + $0x5c4] ss:$8 sps:$4 sm:$0xff]  }
 0x18b   : > { %3903 = vmatprep.subr.bf16.mxu1 %v20352_v61  ;;  %v23239_v63 = vpack.c.bf16 %v1182_v22, %v1179_v20  ;;  %2954 = vmatpush1.bf16.msra.mxu0 %v20359_v34  ;;  %v5263_v1 = vor.u32 %v5262_v56, %v5259_v37  ;;  %v3247_v61 = vld [vmem:[#allocation2 + $0x8] sm:$0xfe]  ;;  %v23281_v22 = vld [vmem:[#allocation2 + $0x30] sm:$0xff] }
 0x18c   : > { %2516 = vmatprep.mubr.bf16.mxu0 %v28325_v2  ;;  %2955 = vmatprep.subr.bf16.mxu0 %v20367_v31  ;;  %v1747_v24 = vor.u32 %v28328_v52, %v1711_v15  ;;  %v20362_v15 = vld [vmem:[%s28257_s3 + $0x5c0] ss:$8 sps:$4 sm:$0xff]   ;;  %v3376_v35 = vrot.slane %v3247_v61, 1  ;;  %v3377_v10 = vrot.slane %v23281_v22, 1  ;;  %v20368_v61 = vld [vmem:[%s28257_s3 + $0x5d0] ss:$8 sps:$4 sm:$0xff]  }
 0x18d   : > { %28380 = vst [vmem:[#allocation28_spill] sm:$0xff] %v23239_v63  ;;  %3226 = vmatmul.mubr.bf16.gmra.mrb[84].mxu1 %v23199_v27  ;;  %1280 = vst [vmem:[#allocation2 + $0x110] sm:$0xff] %v23239_v63  ;;  %v28327_v34 = vshll.u32 %v23239_v63, 16  ;;  %v23271_v37 = vsel %vm5255_vm2, %v5263_v1, %v23253_v62 }
 0x18e   : > { %3904 = vmatpush1.bf16.msra.mxu1 %v20350_v55  ;;  %3235 = vmatprep.mubr.bf16.mxu1 %v28325_v2  ;;  %v1186_v31 = vpop.f32.mrb[64].mxu0  ;;  %v20379_v55 = vld [vmem:[%s28257_s3 + $0xb4] ss:$8 sps:$4 sm:$0xff]  }
 0x18f   : > { %3905 = vmatprep.subr.bf16.mxu1 %v20358_v4  ;;  %v1187_v56 = vadd.f32 %v1186_v31, %v23017_v9  ;;  %v19016_v20 = vpop.f32.mrb[65].mxu0  ;;  %2956 = vmatpush1.bf16.msra.mxu0 %v20365_v17  ;;  %v23279_v4 = vrot.slane %v28327_v34, 1  ;;  %v20370_v17 = vld [vmem:[%s28257_s3 + $0x5d4] ss:$8 sps:$4 sm:$0xff]  }
 0x190   : > { %v1189_v14 = vpop.f32.mrb[66].mxu0  ;;  %2957 = vmatprep.subr.bf16.mxu0 %v20373_v50  ;;  %v20377_v50 = vld [vmem:[%s28257_s3 + $0xb0] ss:$8 sps:$4 sm:$0xff]  }
 0x191   : > { %v1190_v11 = vadd.f32 %v1189_v14, %v23017_v9  ;;  %v1752_v1 = vsel %vm1492_vm1, %v1747_v24, %v23279_v4  ;;  %v19017_v31 = vpop.f32.mrb[67].mxu0  ;;  %v20376_v24 = vld [vmem:[%s28257_s3 + $0x5e4] ss:$8 sps:$4 sm:$0xff]  }
 0x192   : > { %3906 = vmatpush1.bf16.msra.mxu1 %v20356_v23  ;;  %2517 = vmatmul.mubr.bf16.gmra.mrb[120].mxu0 %v1752_v1  ;;  %v3378_v23 = vsel %vm3372_vm3, %v3376_v35, %v3377_v10  ;;  %v20382_v35 = vld [vmem:[%s28257_s3 + $0x5f4] ss:$8 sps:$4 sm:$0xff]   ;;  %v3246_v31 = vld [vmem:[#allocation2] sm:$0xfe] }
 0x193   : > { %3907 = vmatprep.subr.bf16.mxu1 %v20364_v38  ;;  %v1240_v20 = vpack.c.bf16 %v1190_v11, %v1187_v56  ;;  %2958 = vmatpush1.bf16.msra.mxu0 %v20371_v60  ;;  %v20385_v38 = vld [vmem:[%s28257_s3 + $0xc4] ss:$8 sps:$4 sm:$0xff]   ;;  %v20383_v60 = vld [vmem:[%s28257_s3 + $0xc0] ss:$8 sps:$4 sm:$0xff]   ;;  %v20391_v11 = vld [vmem:[%s28257_s3 + $0xd4] ss:$8 sps:$4 sm:$0xff]  }
 0x194   : > { %2526 = vmatprep.mubr.bf16.mxu0 %v28325_v2  ;;  %2959 = vmatprep.subr.bf16.mxu0 %v20379_v55  ;;  %v20374_v56 = vld [vmem:[%s28257_s3 + $0x5e0] ss:$8 sps:$4 sm:$0xff]  }
 0x195   : > { %3236 = vmatmul.mubr.bf16.gmra.mrb[88].mxu1 %v23239_v63  ;;  %1285 = vst [vmem:[#allocation2 + $0x138] sm:$0xff] %v1240_v20  ;;  %v23340_v2 = vld [vmem:[#allocation2 + $0x28] sm:$0xff] }
 0x196   : > { %3908 = vmatpush1.bf16.msra.mxu1 %v20362_v15  ;;  %3915 = vmatprep.mubr.bf16.mxu1 %v3378_v23  ;;  %v1194_v55 = vpop.f32.mrb[68].mxu0  ;;  %v4222_v23 = vld [vmem:[#allocation2 + $0x10] sm:$0xc0] }
 0x197   : > { %3909 = vmatprep.subr.bf16.mxu1 %v20370_v17  ;;  %2960 = vmatpush1.bf16.msra.mxu0 %v20377_v50  ;;  %v1195_v15 = vadd.f32 %v1194_v55, %v23017_v9  ;;  %v19020_v14 = vpop.f32.mrb[69].mxu0  ;;  %v20389_v50 = vld [vmem:[%s28257_s3 + $0xd0] ss:$8 sps:$4 sm:$0xff]  }
 0x198   : > { %2961 = vmatprep.subr.bf16.mxu0 %v20385_v38  ;;  %v1197_v1 = vpop.f32.mrb[70].mxu0  ;;  %v20380_v38 = vld [vmem:[%s28257_s3 + $0x5f0] ss:$8 sps:$4 sm:$0xff]  }
 0x199   : > { %v1198_v17 = vadd.f32 %v1197_v1, %v23017_v9  ;;  %v19021_v20 = vpop.f32.mrb[71].mxu0  ;;  %v20397_v9 = vld [vmem:[%s28257_s3 + $0xe4] ss:$8 sps:$4 sm:$0xff]  }
 0x19a   : > { %3910 = vmatpush1.bf16.msra.mxu1 %v20368_v61  ;;  %v20388_v61 = vld [vmem:[%s28257_s3 + $0x604] ss:$8 sps:$4 sm:$0xff]   ;;  %v20395_v20 = vld [vmem:[%s28257_s3 + $0xe0] ss:$8 sps:$4 sm:$0xff]  }
 0x19b   : > { %3911 = vmatprep.subr.bf16.mxu1 %v20376_v24  ;;  %2962 = vmatpush1.bf16.msra.mxu0 %v20383_v60  ;;  %v1245_v55 = vpack.c.bf16 %v1198_v17, %v1195_v15  ;;  %v28329_v24 = vshrl.u32 %v23239_v63, 16  ;;  %v28331_v60 = vrot.slane %v23239_v63, 1  ;;  %v5288_v17 = vrot.slane %v1569_v47, 6  ;;  %v20403_v47 = vld [vmem:[%s28257_s3 + $0xf4] ss:$8 sps:$4 sm:$0xff]  }
 0x19c   : > { %v1410_v14 = vld [vmem:[#allocation2 + $0x138] sm:$0x1]  ;;  %2963 = vmatprep.subr.bf16.mxu0 %v20391_v11  ;;  %v3373_v11 = vrot.slane %v3246_v31, 1  ;;  %v5281_v31 = vshrl.u32 %v4222_v23, 16 }
 0x19d   : > { %v1789_v1 = vshll.u32 %v1410_v14, 16  ;;  %1290 = vst [vmem:[#allocation2 + $0x160] sm:$0xff] %v1245_v55  ;;  %v3446_v15 = vrot.slane %v1410_v14, 1  ;;  %v1787_v34 = vor.u32 %v28329_v24, %v23279_v4  ;;  %v20386_v55 = vld [vmem:[%s28257_s3 + $0x600] ss:$8 sps:$4 sm:$0xff]   ;;  %v23357_v14 = vld [vmem:[#allocation2 + $0x58] sm:$0xff] }
 0x19e   : > { %3912 = vmatpush1.bf16.msra.mxu1 %v20374_v56  ;;  %v3374_v56 = vrot.slane %v23340_v2, 1  ;;  %v3390_v4 = vrot.slane %v23357_v14, 1 }
 0x19f   : > { %3913 = vmatprep.subr.bf16.mxu1 %v20382_v35  ;;  %v1791_v52 = vrot.slane %v1789_v1, 1  ;;  %2964 = vmatpush1.bf16.msra.mxu0 %v20389_v50  ;;  %v23355_v35 = vsel %vm3372_vm3, %v28331_v60, %v3446_v15  ;;  %v5284_v1 = vshll.u32 %v4222_v23, 16  ;;  %v20394_v50 = vld [vmem:[%s28257_s3 + $0x614] ss:$8 sps:$4 sm:$0xff]   ;;  %v5283_v15 = vrot.slane %v5281_v31, 6 }
 0x1a0   : > { %2965 = vmatprep.subr.bf16.mxu0 %v20397_v9  ;;  %v5289_v60 = vrot.slane %v1525_v5, 7  ;;  %v20409_v23 = vld [vmem:[%s28257_s3 + $0x104] ss:$8 sps:$4 sm:$0xff]   ;;  %v3391_v51 = vsel %vm3372_vm3, %v3377_v10, %v3390_v4  ;;  %v20398_v31 = vld [vmem:[%s28257_s3 + $0x620] ss:$8 sps:$4 sm:$0xff]  }
 0x1a1   : > { %v1792_v24 = vsel %vm1492_vm1, %v1787_v34, %v1791_v52  ;;  %v21814_v52 = vld [vmem:[#allocation2 + $0x8] sm:$0xff]  ;;  %v3375_v34 = vsel %vm3372_vm3, %v3373_v11, %v3374_v56  ;;  %v23394_v11 = vld [vmem:[#allocation2 + $0x80] sm:$0xff] }
 0x1a2   : > { %3914 = vmatpush1.bf16.msra.mxu1 %v20380_v38  ;;  %2527 = vmatmul.mubr.bf16.gmra.mrb[124].mxu0 %v1792_v24  ;;  %v5286_v38 = vrot.slane %v5284_v1, 7  ;;  %v23373_v9 = vor.u32 %v5289_v60, %v5288_v17  ;;  %v20400_v24 = vld [vmem:[%s28257_s3 + $0x624] ss:$8 sps:$4 sm:$0xff]   ;;  %v23391_v60 = vld [vmem:[#allocation2 + $0x50] sm:$0xff] }
 0x1a3   : > { %3986 = vmatprep.subr.bf16.mxu1 %v20388_v61  ;;  %2969 = vmatprep.mubr.bf16.mxu0 %v21814_v52  ;;  %v20392_v61 = vld [vmem:[%s28257_s3 + $0x610] ss:$8 sps:$4 sm:$0xff]   ;;  %v3388_v17 = vrot.slane %v23391_v60, 1  ;;  %v20406_v1 = vld [vmem:[%s28257_s3 + $0x634] ss:$8 sps:$4 sm:$0xff]  }
 0x1a4   : > { %2966 = vmatpush1.bf16.msra.mxu0 %v20395_v20  ;;  %28381 = vst [vmem:[#allocation29_spill] sm:$0xff] %v23373_v9  ;;  %v5287_v5 = vor.u32 %v5286_v38, %v5283_v15  ;;  %v20407_v20 = vld [vmem:[%s28257_s3 + $0x100] ss:$8 sps:$4 sm:$0xff]   ;;  %v20421_v15 = vld [vmem:[%s28257_s3 + $0x124] ss:$8 sps:$4 sm:$0xff]  }
 0x1a5   : > { %3916 = vmatmul.mubr.bf16.vlgmr.msra.gmra.mrb[64].mxu1 %v3375_v34  ;;  %2967 = vmatprep.subr.bf16.mxu0 %v20403_v47  ;;  %v20415_v47 = vld [vmem:[%s28257_s3 + $0x114] ss:$8 sps:$4 sm:$0xff]   ;;  %v20404_v38 = vld [vmem:[%s28257_s3 + $0x630] ss:$8 sps:$4 sm:$0xff]   ;;  %v4224_v52 = vld [vmem:[#allocation2 + $0x20] sm:$0xc0] }
 0x1a6   : > { %3925 = vmatprep.mubr.bf16.mxu1 %v3391_v51  ;;  %3987 = vmatpush1.bf16.msra.mxu1 %v20386_v55  ;;  %v23389_v10 = vsel %vm5255_vm2, %v5287_v5, %v23373_v9  ;;  %v3400_v55 = vrot.slane %v23394_v11, 1  ;;  %v20412_v51 = vld [vmem:[%s28257_s3 + $0x644] ss:$8 sps:$4 sm:$0xff]   ;;  %v5312_v5 = vrot.slane %v1585_v0, 6  ;;  %v20427_v0 = vld [vmem:[%s28257_s3 + $0x134] ss:$8 sps:$4 sm:$0xff]  }
 0x1a7   : > { %3988 = vmatprep.subr.bf16.mxu1 %v20394_v50  ;;  %28382 = vst [vmem:[#allocation30_spill] sm:$0xff] %v23389_v10  ;;  %v21817_v50 = vld [vmem:[#allocation2] sm:$0xff]  ;;  %v21852_v9 = vld [vmem:[#allocation2 + $0x50] sm:$0xff] }
 0x1a8   : > { %2968 = vmatpush1.bf16.msra.mxu0 %v20401_v36  ;;  %v20413_v36 = vld [vmem:[%s28257_s3 + $0x110] ss:$8 sps:$4 sm:$0xff]   ;;  %v3401_v34 = vsel %vm3372_vm3, %v3390_v4, %v3400_v55  ;;  %v5305_v4 = vshrl.u32 %v4224_v52, 16  ;;  %v4337_v45 = vrot.slane %v21852_v9, 6  ;;  %v20559_v9 = vld [vmem:[%s28257_s3 + $0x864] ss:$8 sps:$4 sm:$0xff]  }
 0x1a9   : > { %3040 = vmatprep.subr.bf16.mxu0 %v20409_v23  ;;  %v3389_v23 = vsel %vm3372_vm3, %v3374_v56, %v3388_v17  ;;  %v20419_v56 = vld [vmem:[%s28257_s3 + $0x120] ss:$8 sps:$4 sm:$0xff]  }
 0x1aa   : > { %3989 = vmatpush1.bf16.msra.mxu1 %v20392_v61 }
 0x1ab   : > { %3990 = vmatprep.subr.bf16.mxu1 %v20400_v24  ;;  %2970 = vmatmul.mubr.bf16.vlgmr.msra.gmra.mrb[100].mxu0 %v21817_v50  ;;  %v23429_v24 = vld [vmem:[#allocation2 + $0xa8] sm:$0xff]  ;;  %v5313_v50 = vrot.slane %v1549_v8, 7  ;;  %v5352_v8 = vrot.slane %v1665_v19, 6 }
 0x1ac   : > { %2979 = vmatprep.mubr.bf16.mxu0 %v23281_v22  ;;  %3041 = vmatpush1.bf16.msra.mxu0 %v20407_v20  ;;  %v23426_v22 = vld [vmem:[#allocation2 + $0x78] sm:$0xff]  ;;  %v3410_v20 = vrot.slane %v23429_v24, 1 }
 0x1ad   : > { %3926 = vmatmul.mubr.bf16.gmra.mrb[68].mxu1 %v3389_v23  ;;  %3042 = vmatprep.subr.bf16.mxu0 %v20415_v47  ;;  %v3398_v61 = vrot.slane %v23426_v22, 1  ;;  %v5308_v47 = vshll.u32 %v4224_v52, 16  ;;  %v20418_v52 = vld [vmem:[%s28257_s3 + $0x654] ss:$8 sps:$4 sm:$0xff]   ;;  %v5314_v30 = vor.u32 %v5313_v50, %v5312_v5  ;;  %v28387_v50 = vshll.u32 %v23199_v27, 16 }
 0x1ae   : > { %3935 = vmatprep.mubr.bf16.mxu1 %v3401_v34  ;;  %3991 = vmatpush1.bf16.msra.mxu1 %v20398_v31  ;;  %v20410_v31 = vld [vmem:[%s28257_s3 + $0x640] ss:$8 sps:$4 sm:$0xff]   ;;  %v5332_v34 = vrot.slane %v1625_v48, 6  ;;  %v28383_v48 = vshll.u32 %v23118_v59, 16  ;;  %v3411_v26 = vsel %vm3372_vm3, %v3400_v55, %v3410_v20  ;;  %v28384_v59 = vshrl.u32 %v23160_v29, 16 }
 0x1af   : > { %3992 = vmatprep.subr.bf16.mxu1 %v20406_v1  ;;  %v5307_v1 = vrot.slane %v5305_v4, 6  ;;  %v5310_v23 = vrot.slane %v5308_v47, 7  ;;  %v20433_v55 = vld [vmem:[%s28257_s3 + $0x144] ss:$8 sps:$4 sm:$0xff]   ;;  %v28385_v4 = vshll.u32 %v23160_v29, 16 }
 0x1b0   : > { %3043 = vmatpush1.bf16.msra.mxu0 %v20413_v36  ;;  %v5333_v36 = vrot.slane %v1589_v44, 7  ;;  %v20416_v44 = vld [vmem:[%s28257_s3 + $0x650] ss:$8 sps:$4 sm:$0xff]  }
 0x1b1   : > { %3044 = vmatprep.subr.bf16.mxu0 %v20421_v15  ;;  %v3399_v15 = vsel %vm3372_vm3, %v3388_v17, %v3398_v61  ;;  %v5311_v17 = vor.u32 %v5310_v23, %v5307_v1  ;;  %v5393_v1 = vrot.slane %v28387_v50, 7  ;;  %v20431_v23 = vld [vmem:[%s28257_s3 + $0x140] ss:$8 sps:$4 sm:$0xff]  }
 0x1b2   : > { %3993 = vmatpush1.bf16.msra.mxu1 %v20404_v38  ;;  %v5353_v38 = vrot.slane %v28383_v48, 7  ;;  %v5334_v19 = vor.u32 %v5333_v36, %v5332_v34  ;;  %v28390_v36 = vshrl.u32 %v23239_v63, 16  ;;  %v20434_v50 = vld [vmem:[%s28257_s3 + $0x680] ss:$8 sps:$4 sm:$0xff]  }
 0x1b3   : > { %3994 = vmatprep.subr.bf16.mxu1 %v20412_v51  ;;  %2980 = vmatmul.mubr.bf16.gmra.mrb[104].mxu0 %v23340_v2  ;;  %v20425_v2 = vld [vmem:[%s28257_s3 + $0x130] ss:$8 sps:$4 sm:$0xff]   ;;  %v5372_v51 = vrot.slane %v28384_v59, 6  ;;  %v23483_v34 = vsel %vm5255_vm2, %v5311_v17, %v5314_v30 }
 0x1b4   : > { %2989 = vmatprep.mubr.bf16.mxu0 %v23357_v14  ;;  %3045 = vmatpush1.bf16.msra.mxu0 %v20419_v56  ;;  %v5354_v5 = vor.u32 %v5353_v38, %v5352_v8  ;;  %v5373_v14 = vrot.slane %v28385_v4, 7  ;;  %v28386_v56 = vshrl.u32 %v23199_v27, 16  ;;  %28388 = vst [vmem:[#allocation31_spill] sm:$0xff] %v23483_v34  ;;  %v23486_v29 = vsel %vm5255_vm2, %v5314_v30, %v5334_v19  ;;  %v23500_v30 = vld [vmem:[#allocation2 + $0xd0] sm:$0xff] }
 0x1b5   : > { %3936 = vmatmul.mubr.bf16.gmra.mrb[72].mxu1 %v3399_v15  ;;  %3046 = vmatprep.subr.bf16.mxu0 %v20427_v0  ;;  %v20424_v0 = vld [vmem:[%s28257_s3 + $0x664] ss:$8 sps:$4 sm:$0xff]   ;;  %28389 = vst [vmem:[#allocation32_spill] sm:$0xff] %v23486_v29  ;;  %v5412_v27 = vrot.slane %v28390_v36, 6  ;;  %v28391_v15 = vshll.u32 %v23239_v63, 16  ;;  %v3420_v4 = vrot.slane %v23500_v30, 1 }
 0x1b6   : > { %v5392_v47 = vrot.slane %v28386_v56, 6  ;;  %3945 = vmatprep.mubr.bf16.mxu1 %v3411_v26  ;;  %3995 = vmatpush1.bf16.msra.mxu1 %v20410_v31  ;;  %v23493_v8 = vsel %vm5255_vm2, %v5334_v19, %v5354_v5  ;;  %v5374_v48 = vor.u32 %v5373_v14, %v5372_v51  ;;  %v23495_v26 = vld [vmem:[#allocation2 + $0xa0] sm:$0xff]  ;;  %v20430_v14 = vld [vmem:[%s28257_s3 + $0x674] ss:$8 sps:$4 sm:$0xff]  }
 0x1b7   : > { %v5413_v31 = vrot.slane %v28391_v15, 7  ;;  %3996 = vmatprep.subr.bf16.mxu1 %v20418_v52  ;;  %28392 = vst [vmem:[#allocation33_spill] sm:$0xff] %v23493_v8  ;;  %v3408_v17 = vrot.slane %v23495_v26, 1  ;;  %v20439_v52 = vld [vmem:[%s28257_s3 + $0x154] ss:$8 sps:$4 sm:$0xff]   ;;  %v3421_v56 = vsel %vm3372_vm3, %v3410_v20, %v3420_v4 }
 0x1b8   : > { %v5394_v38 = vor.u32 %v5393_v1, %v5392_v47  ;;  %3047 = vmatpush1.bf16.msra.mxu0 %v20425_v2  ;;  %v23507_v19 = vsel %vm5255_vm2, %v5354_v5, %v5374_v48  ;;  %v20422_v2 = vld [vmem:[%s28257_s3 + $0x660] ss:$8 sps:$4 sm:$0xff]   ;;  %v20445_v47 = vld [vmem:[%s28257_s3 + $0x164] ss:$8 sps:$4 sm:$0xff]   ;;  %v20451_v36 = vld [vmem:[%s28257_s3 + $0x174] ss:$8 sps:$4 sm:$0xff]  }
 0x1b9   : > { %v23498_v59 = vor.u32 %v5413_v31, %v5412_v27  ;;  %3048 = vmatprep.subr.bf16.mxu0 %v20433_v55  ;;  %28394 = vst [vmem:[#allocation35_spill] sm:$0xff] %v23507_v19  ;;  %v20437_v55 = vld [vmem:[%s28257_s3 + $0x150] ss:$8 sps:$4 sm:$0xff]   ;;  %v20443_v1 = vld [vmem:[%s28257_s3 + $0x160] ss:$8 sps:$4 sm:$0xff]  }
 0x1ba   : > { %v23510_v51 = vsel %vm5255_vm2, %v5374_v48, %v5394_v38  ;;  %3997 = vmatpush1.bf16.msra.mxu1 %v20416_v44  ;;  %v3409_v44 = vsel %vm3372_vm3, %v3398_v61, %v3408_v17  ;;  %v23542_v61 = vld [vmem:[#allocation2 + $0xc8] sm:$0xff]  ;;  %v20442_v27 = vld [vmem:[%s28257_s3 + $0x694] ss:$8 sps:$4 sm:$0xff]   ;;  %v20449_v15 = vld [vmem:[%s28257_s3 + $0x170] ss:$8 sps:$4 sm:$0xff]  }
 0x1bb   : > { %28393 = vst [vmem:[#allocation34_spill] sm:$0xff] %v23498_v59  ;;  %28395 = vst [vmem:[#allocation36_spill] sm:$0xff] %v23510_v51  ;;  %v23523_v5 = vsel %vm5255_vm2, %v5394_v38, %v23498_v59  ;;  %3998 = vmatprep.subr.bf16.mxu1 %v20424_v0  ;;  %2990 = vmatmul.mubr.bf16.gmra.mrb[108].mxu0 %v23391_v60  ;;  %v20428_v60 = vld [vmem:[%s28257_s3 + $0x670] ss:$8 sps:$4 sm:$0xff]   ;;  %v3418_v20 = vrot.slane %v23542_v61, 1 }
 0x1bc   : > { %28396 = vst [vmem:[#allocation37_spill] sm:$0xff] %v23523_v5  ;;  %2999 = vmatprep.mubr.bf16.mxu0 %v23394_v11  ;;  %3049 = vmatpush1.bf16.msra.mxu0 %v20431_v23  ;;  %v20436_v11 = vld [vmem:[%s28257_s3 + $0x684] ss:$8 sps:$4 sm:$0xff]   ;;  %v23551_v0 = vld [vmem:[#allocation2 + $0xf8] sm:$0xff] }
 0x1bd   : > { %3946 = vmatmul.mubr.bf16.gmra.mrb[76].mxu1 %v3409_v44  ;;  %3050 = vmatprep.subr.bf16.mxu0 %v20439_v52  ;;  %v3430_v23 = vrot.slane %v23551_v0, 1  ;;  %v3419_v31 = vsel %vm3372_vm3, %v3408_v17, %v3418_v20  ;;  %v20440_v48 = vld [vmem:[%s28257_s3 + $0x690] ss:$8 sps:$4 sm:$0xff]   ;;  %v20457_v38 = vld [vmem:[%s28257_s3 + $0x184] ss:$8 sps:$4 sm:$0xff]  }
 0x1be   : > { %3955 = vmatprep.mubr.bf16.mxu1 %v3421_v56  ;;  %3999 = vmatpush1.bf16.msra.mxu1 %v20422_v2  ;;  %v20455_v17 = vld [vmem:[%s28257_s3 + $0x180] ss:$8 sps:$4 sm:$0xff]   ;;  %v23582_v2 = vld [vmem:[#allocation2 + $0xf0] sm:$0xff]  ;;  %v5173_v44 = vld [vmem:[#allocation2 + $0x138] sm:$0x7f] }
 0x1bf   : > { %4000 = vmatprep.subr.bf16.mxu1 %v20430_v14  ;;  %v3431_v52 = vsel %vm3372_vm3, %v3420_v4, %v3430_v23  ;;  %v3428_v4 = vrot.slane %v23582_v2, 1  ;;  %v21825_v14 = vld [vmem:[#allocation2 + $0x120] sm:$0x1] }
 0x1c0   : > { %3051 = vmatpush1.bf16.msra.mxu0 %v20437_v55  ;;  %v3440_v55 = vrot.slane %v21825_v14, 1  ;;  %v20446_v56 = vld [vmem:[%s28257_s3 + $0x6a0] ss:$8 sps:$4 sm:$0xff]   ;;  %v20466_v14 = vld [vmem:[%s28257_s3 + $0x6d4] ss:$8 sps:$4 sm:$0xff]  }
 0x1c1   : > { %3052 = vmatprep.subr.bf16.mxu0 %v20445_v47  ;;  %v20454_v47 = vld [vmem:[%s28257_s3 + $0x6b4] ss:$8 sps:$4 sm:$0xff]  }
 0x1c2   : > { %4001 = vmatpush1.bf16.msra.mxu1 %v20428_v60  ;;  %v20461_v60 = vld [vmem:[%s28257_s3 + $0x190] ss:$8 sps:$4 sm:$0xff]  }
 0x1c3   : > { %4002 = vmatprep.subr.bf16.mxu1 %v20436_v11  ;;  %3000 = vmatmul.mubr.bf16.gmra.mrb[112].mxu0 %v23426_v22  ;;  %v20448_v22 = vld [vmem:[%s28257_s3 + $0x6a4] ss:$8 sps:$4 sm:$0xff]  }
 0x1c4   : > { %3009 = vmatprep.mubr.bf16.mxu0 %v23429_v24  ;;  %3053 = vmatpush1.bf16.msra.mxu0 %v20443_v1  ;;  %v20463_v24 = vld [vmem:[%s28257_s3 + $0x194] ss:$8 sps:$4 sm:$0xff]   ;;  %v20469_v11 = vld [vmem:[%s28257_s3 + $0x1a4] ss:$8 sps:$4 sm:$0xff]  }
 0x1c5   : > { %3956 = vmatmul.mubr.bf16.gmra.mrb[80].mxu1 %v3419_v31  ;;  %3054 = vmatprep.subr.bf16.mxu0 %v20451_v36  ;;  %v3249_v1 = vld [vmem:[#allocation2 + $0x18] sm:$0xfe]  ;;  %v28332_v36 = vrot.slane %v23239_v63, 7  ;;  %v21826_v31 = vld [vmem:[#allocation2 + $0x118] sm:$0x1] }
 0x1c6   : > { %3965 = vmatprep.mubr.bf16.mxu1 %v3431_v52  ;;  %4003 = vmatpush1.bf16.msra.mxu1 %v20434_v50  ;;  %v3429_v50 = vsel %vm3372_vm3, %v3418_v20, %v3428_v4  ;;  %v20467_v20 = vld [vmem:[%s28257_s3 + $0x1a0] ss:$8 sps:$4 sm:$0xff]   ;;  %v3382_v52 = vrot.slane %v3249_v1, 1  ;;  %v20485_v1 = vld [vmem:[%s28257_s3 + $0x1d0] ss:$8 sps:$4 sm:$0xff]  }
 0x1c7   : > { %4004 = vmatprep.subr.bf16.mxu1 %v20442_v27  ;;  %v6403_v27 = vrot.slane %v5173_v44, 7  ;;  %v20481_v44 = vld [vmem:[%s28257_s3 + $0x1c4] ss:$8 sps:$4 sm:$0xff]  }
 0x1c8   : > { %3055 = vmatpush1.bf16.msra.mxu0 %v20449_v15  ;;  %v3441_v15 = vsel %vm3372_vm3, %v3430_v23, %v3440_v55  ;;  %v20473_v55 = vld [vmem:[%s28257_s3 + $0x1b0] ss:$8 sps:$4 sm:$0xff]  }
 0x1c9   : > { %3056 = vmatprep.subr.bf16.mxu0 %v20457_v38  ;;  %v23614_v23 = vsel %vm6329_vm4, %v28332_v36, %v6403_v27  ;;  %v20458_v38 = vld [vmem:[%s28257_s3 + $0x6c0] ss:$8 sps:$4 sm:$0xff]   ;;  %v21828_v27 = vld [vmem:[#allocation2 + $0x18] sm:$0xff] }
 0x1ca   : > { %4005 = vmatpush1.bf16.msra.mxu1 %v20440_v48  ;;  %28397 = vst [vmem:[#allocation38_spill] sm:$0xff] %v23614_v23  ;;  %v3438_v48 = vrot.slane %v21826_v31, 1  ;;  %v20496_v31 = vld [vmem:[%s28257_s3 + $0x1f4] ss:$8 sps:$4 sm:$0xff]  }
 0x1cb   : > { %4006 = vmatprep.subr.bf16.mxu1 %v20448_v22  ;;  %3010 = vmatmul.mubr.bf16.gmra.mrb[116].mxu0 %v23495_v26  ;;  %v20452_v26 = vld [vmem:[%s28257_s3 + $0x6b0] ss:$8 sps:$4 sm:$0xff]   ;;  %v23619_v22 = vld [vmem:[#allocation2 + $0x40] sm:$0xff] }
 0x1cc   : > { %3019 = vmatprep.mubr.bf16.mxu0 %v23500_v30  ;;  %3057 = vmatpush1.bf16.msra.mxu0 %v20455_v17  ;;  %v20460_v30 = vld [vmem:[%s28257_s3 + $0x6c4] ss:$8 sps:$4 sm:$0xff]   ;;  %v3383_v17 = vrot.slane %v23619_v22, 1 }
 0x1cd   : > { %3966 = vmatmul.mubr.bf16.gmra.mrb[84].mxu1 %v3429_v50  ;;  %3058 = vmatprep.subr.bf16.mxu0 %v20463_v24  ;;  %v20475_v24 = vld [vmem:[%s28257_s3 + $0x1b4] ss:$8 sps:$4 sm:$0xff]  }
 0x1ce   : > { %3975 = vmatprep.mubr.bf16.mxu1 %v3441_v15  ;;  %4007 = vmatpush1.bf16.msra.mxu1 %v20446_v56  ;;  %v3439_v56 = vsel %vm3372_vm3, %v3428_v4, %v3438_v48  ;;  %v20479_v4 = vld [vmem:[%s28257_s3 + $0x1c0] ss:$8 sps:$4 sm:$0xff]   ;;  %v20478_v50 = vld [vmem:[%s28257_s3 + $0x6f4] ss:$8 sps:$4 sm:$0xff]  }
 0x1cf   : > { %4008 = vmatprep.subr.bf16.mxu1 %v20454_v47  ;;  %v3384_v47 = vsel %vm3372_vm3, %v3382_v52, %v3383_v17  ;;  %v3248_v15 = vld [vmem:[#allocation2 + $0x10] sm:$0xfe] }
 0x1d0   : > { %3059 = vmatpush1.bf16.msra.mxu0 %v20461_v60  ;;  %v20464_v60 = vld [vmem:[%s28257_s3 + $0x6d0] ss:$8 sps:$4 sm:$0xff]   ;;  %v3379_v48 = vrot.slane %v3248_v15, 1 }
 0x1d1   : > { %3060 = vmatprep.subr.bf16.mxu0 %v20469_v11  ;;  %v20470_v11 = vld [vmem:[%s28257_s3 + $0x6e0] ss:$8 sps:$4 sm:$0xff]   ;;  %v21833_v15 = vld [vmem:[#allocation2 + $0x10] sm:$0xff] }
 0x1d2   : > { %4009 = vmatpush1.bf16.msra.mxu1 %v20452_v26  ;;  %v20490_v26 = vld [vmem:[%s28257_s3 + $0x1e4] ss:$8 sps:$4 sm:$0xff]  }
 0x1d3   : > { %4010 = vmatprep.subr.bf16.mxu1 %v20460_v30  ;;  %3020 = vmatmul.mubr.bf16.gmra.mrb[120].mxu0 %v23542_v61  ;;  %v20472_v61 = vld [vmem:[%s28257_s3 + $0x6e4] ss:$8 sps:$4 sm:$0xff]   ;;  %v20476_v30 = vld [vmem:[%s28257_s3 + $0x6f0] ss:$8 sps:$4 sm:$0xff]  }
 0x1d4   : > { %3029 = vmatprep.mubr.bf16.mxu0 %v23551_v0  ;;  %3061 = vmatpush1.bf16.msra.mxu0 %v20467_v20  ;;  %v20487_v0 = vld [vmem:[%s28257_s3 + $0x1d4] ss:$8 sps:$4 sm:$0xff]   ;;  %v20488_v20 = vld [vmem:[%s28257_s3 + $0x1e0] ss:$8 sps:$4 sm:$0xff]  }
 0x1d5   : > { %3976 = vmatmul.mubr.bf16.gmra.mrb[88].mxu1 %v3439_v56  ;;  %3062 = vmatprep.subr.bf16.mxu0 %v20475_v24  ;;  %v20482_v24 = vld [vmem:[%s28257_s3 + $0x700] ss:$8 sps:$4 sm:$0xff]   ;;  %v20494_v56 = vld [vmem:[%s28257_s3 + $0x1f0] ss:$8 sps:$4 sm:$0xff]  }
 0x1d6   : > { %4011 = vmatpush1.bf16.msra.mxu1 %v20458_v38  ;;  %4018 = vmatprep.mubr.bf16.mxu1 %v3384_v47  ;;  %v21829_v38 = vld [vmem:[#allocation2 + $0x38] sm:$0xff] }
 0x1d7   : > { %4012 = vmatprep.subr.bf16.mxu1 %v20466_v14  ;;  %v3380_v52 = vrot.slane %v21829_v38, 1  ;;  %v21830_v14 = vld [vmem:[#allocation2 + $0x68] sm:$0xff] }
 0x1d8   : > { %3063 = vmatpush1.bf16.msra.mxu0 %v20473_v55  ;;  %v3394_v55 = vrot.slane %v21830_v14, 1 }
 0x1d9   : > { %3064 = vmatprep.subr.bf16.mxu0 %v20481_v44  ;;  %v20493_v44 = vld [vmem:[%s28257_s3 + $0x714] ss:$8 sps:$4 sm:$0xff]   ;;  %v3381_v47 = vsel %vm3372_vm3, %v3379_v48, %v3380_v52 }
 0x1da   : > { %4013 = vmatpush1.bf16.msra.mxu1 %v20464_v60  ;;  %v3395_v60 = vsel %vm3372_vm3, %v3383_v17, %v3394_v55  ;;  %v21832_v17 = vld [vmem:[#allocation2 + $0x90] sm:$0xff] }
 0x1db   : > { %4014 = vmatprep.subr.bf16.mxu1 %v20472_v61  ;;  %3030 = vmatmul.mubr.bf16.gmra.mrb[124].mxu0 %v23582_v2  ;;  %v20484_v2 = vld [vmem:[%s28257_s3 + $0x704] ss:$8 sps:$4 sm:$0xff]   ;;  %v20491_v61 = vld [vmem:[%s28257_s3 + $0x710] ss:$8 sps:$4 sm:$0xff]  }
 0x1dc   : > { %3065 = vmatpush1.bf16.msra.mxu0 %v20479_v4  ;;  %3072 = vmatprep.mubr.bf16.mxu0 %v21828_v27  ;;  %v20499_v4 = vld [vmem:[%s28257_s3 + $0x724] ss:$8 sps:$4 sm:$0xff]   ;;  %v20502_v27 = vld [vmem:[%s28257_s3 + $0x734] ss:$8 sps:$4 sm:$0xff]  }
 0x1dd   : > { %3066 = vmatprep.subr.bf16.mxu0 %v20487_v0  ;;  %v21831_v0 = vld [vmem:[#allocation2 + $0x60] sm:$0xff] }
 0x1de   : > { %4015 = vmatpush1.bf16.msra.mxu1 %v20470_v11  ;;  %v3392_v11 = vrot.slane %v21831_v0, 1 }
 0x1df   : > { %4016 = vmatprep.subr.bf16.mxu1 %v20478_v50  ;;  %v20497_v50 = vld [vmem:[%s28257_s3 + $0x720] ss:$8 sps:$4 sm:$0xff]  }
 0x1e0   : > { %3067 = vmatpush1.bf16.msra.mxu0 %v20485_v1  ;;  %v3404_v1 = vrot.slane %v21832_v17, 1 }
 0x1e1   : > { %3068 = vmatprep.subr.bf16.mxu0 %v20490_v26  ;;  %v3393_v26 = vsel %vm3372_vm3, %v3380_v52, %v3392_v11  ;;  %v23710_v52 = vld [vmem:[#allocation2 + $0xb8] sm:$0xff] }
 0x1e2   : > { %4017 = vmatpush1.bf16.msra.mxu1 %v20476_v30  ;;  %v3405_v30 = vsel %vm3372_vm3, %v3394_v55, %v3404_v1  ;;  %v20508_v55 = vld [vmem:[%s28257_s3 + $0x754] ss:$8 sps:$4 sm:$0xff]  }
 0x1e3   : > { %4089 = vmatprep.subr.bf16.mxu1 %v20484_v2  ;;  %v20500_v2 = vld [vmem:[%s28257_s3 + $0x730] ss:$8 sps:$4 sm:$0xff]  }
 0x1e4   : > { %3069 = vmatpush1.bf16.msra.mxu0 %v20488_v20  ;;  %v20505_v20 = vld [vmem:[%s28257_s3 + $0x744] ss:$8 sps:$4 sm:$0xff]  }
 0x1e5   : > { %4019 = vmatmul.mubr.bf16.vlgmr.msra.gmra.mrb[64].mxu1 %v3381_v47  ;;  %3070 = vmatprep.subr.bf16.mxu0 %v20496_v31  ;;  %v21834_v31 = vld [vmem:[#allocation2 + $0x88] sm:$0xff]  ;;  %v20506_v47 = vld [vmem:[%s28257_s3 + $0x750] ss:$8 sps:$4 sm:$0xff]  }
 0x1e6   : > { %4028 = vmatprep.mubr.bf16.mxu1 %v3395_v60  ;;  %4090 = vmatpush1.bf16.msra.mxu1 %v20482_v24  ;;  %v3402_v48 = vrot.slane %v21834_v31, 1  ;;  %v3414_v24 = vrot.slane %v23710_v52, 1  ;;  %v20511_v60 = vld [vmem:[%s28257_s3 + $0x764] ss:$8 sps:$4 sm:$0xff]  }
 0x1e7   : > { %4091 = vmatprep.subr.bf16.mxu1 %v20493_v44 }
 0x1e8   : > { %3071 = vmatpush1.bf16.msra.mxu0 %v20494_v56  ;;  %v3403_v44 = vsel %vm3372_vm3, %v3392_v11, %v3402_v48  ;;  %v3415_v56 = vsel %vm3372_vm3, %v3404_v1, %v3414_v24  ;;  %v23727_v11 = vld [vmem:[#allocation2 + $0xe0] sm:$0xff] }
 0x1ea   : > { %4092 = vmatpush1.bf16.msra.mxu1 %v20491_v61  ;;  %v23724_v61 = vld [vmem:[#allocation2 + $0xb0] sm:$0xff] }
 0x1eb   : > { %3073 = vmatmul.mubr.bf16.vlgmr.msra.gmra.mrb[100].mxu0 %v21833_v15  ;;  %4093 = vmatprep.subr.bf16.mxu1 %v20499_v4 }
 0x1ec   : > { %3082 = vmatprep.mubr.bf16.mxu0 %v23619_v22  ;;  %v20503_v22 = vld [vmem:[%s28257_s3 + $0x740] ss:$8 sps:$4 sm:$0xff]  }
 0x1ed   : > { %4029 = vmatmul.mubr.bf16.gmra.mrb[68].mxu1 %v3393_v26 }
 0x1ee   : > { %4038 = vmatprep.mubr.bf16.mxu1 %v3405_v30  ;;  %4094 = vmatpush1.bf16.msra.mxu1 %v20497_v50  ;;  %v3424_v50 = vrot.slane %v23727_v11, 1 }
 0x1ef   : > { %4095 = vmatprep.subr.bf16.mxu1 %v20502_v27 }
 0x1f2   : > { %4096 = vmatpush1.bf16.msra.mxu1 %v20500_v2 }
 0x1f3   : > { %3083 = vmatmul.mubr.bf16.gmra.mrb[104].mxu0 %v21829_v38  ;;  %4097 = vmatprep.subr.bf16.mxu1 %v20505_v20  ;;  %v3412_v38 = vrot.slane %v23724_v61, 1  ;;  %v20509_v20 = vld [vmem:[%s28257_s3 + $0x760] ss:$8 sps:$4 sm:$0xff]  }
 0x1f4   : > { %3092 = vmatprep.mubr.bf16.mxu0 %v21830_v14 }
 0x1f5   : > { %4039 = vmatmul.mubr.bf16.gmra.mrb[72].mxu1 %v3403_v44 }
 0x1f6   : > { %4048 = vmatprep.mubr.bf16.mxu1 %v3415_v56  ;;  %4098 = vmatpush1.bf16.msra.mxu1 %v20503_v22  ;;  %v20514_v56 = vld [vmem:[%s28257_s3 + $0x774] ss:$8 sps:$4 sm:$0xff]  }
 0x1f7   : > { %4099 = vmatprep.subr.bf16.mxu1 %v20508_v55  ;;  %v2262_v4 = vpop.f32.mrb[72].mxu0  ;;  %v2365_v14 = vpop.f32.mrb[36].mxu1 }
 0x1f8   : > { %v23730_v1 = vadd.f32 %v2365_v14, %v2262_v4  ;;  %v2264_v27 = vpop.f32.mrb[73].mxu0  ;;  %v2367_v15 = vpop.f32.mrb[37].mxu1  ;;  %v3413_v4 = vsel %vm3372_vm3, %v3402_v48, %v3412_v38 }
 0x1f9   : > { %v23732_v26 = vadd.f32 %v2367_v15, %v2264_v27  ;;  %v2266_v30 = vpop.f32.mrb[74].mxu0  ;;  %v2369_v2 = vpop.f32.mrb[38].mxu1  ;;  %v21838_v27 = vld [vmem:[#allocation2 + $0xd8] sm:$0xff] }
 0x1fa   : > { %4100 = vmatpush1.bf16.msra.mxu1 %v20506_v47  ;;  %v23737_v22 = vadd.f32 %v2369_v2, %v2266_v30  ;;  %v2268_v55 = vpop.f32.mrb[75].mxu0  ;;  %v2371_v44 = vpop.f32.mrb[39].mxu1  ;;  %v3425_v47 = vsel %vm3372_vm3, %v3414_v24, %v3424_v50  ;;  %v3422_v15 = vrot.slane %v21838_v27, 1  ;;  %v21839_v2 = vld [vmem:[#allocation2 + $0x108] sm:$0xff] }
 0x1fb   : > { %3093 = vmatmul.mubr.bf16.gmra.mrb[108].mxu0 %v21831_v0  ;;  %4101 = vmatprep.subr.bf16.mxu1 %v20511_v60  ;;  %v23743_v14 = vadd.f32 %v2371_v44, %v2268_v55  ;;  %v20512_v0 = vld [vmem:[%s28257_s3 + $0x770] ss:$8 sps:$4 sm:$0xff]   ;;  %v20517_v60 = vld [vmem:[%s28257_s3 + $0x784] ss:$8 sps:$4 sm:$0xff]  }
 0x1fc   : > { %3102 = vmatprep.mubr.bf16.mxu0 %v21832_v17  ;;  %v3434_v17 = vrot.slane %v21839_v2, 1  ;;  %v3423_v57 = vsel %vm3372_vm3, %v3412_v38, %v3422_v15 }
 0x1fd   : > { %4049 = vmatmul.mubr.bf16.gmra.mrb[76].mxu1 %v3413_v4 }
 0x1fe   : > { %4058 = vmatprep.mubr.bf16.mxu1 %v3425_v47  ;;  %4102 = vmatpush1.bf16.msra.mxu1 %v20509_v20 }
 0x1ff   : > { %4103 = vmatprep.subr.bf16.mxu1 %v20514_v56  ;;  %v2272_v48 = vpop.f32.mrb[76].mxu0  ;;  %v2375_v30 = vpop.f32.mrb[40].mxu1 }
 0x200   : > { %v23752_v55 = vadd.f32 %v2375_v30, %v2272_v48  ;;  %v2274_v24 = vpop.f32.mrb[77].mxu0  ;;  %v2377_v44 = vpop.f32.mrb[41].mxu1  ;;  %v3435_v48 = vsel %vm3372_vm3, %v3424_v50, %v3434_v17  ;;  %v21840_v30 = vld [vmem:[#allocation2 + $0x100] sm:$0xff] }
 0x201   : > { %v23754_v20 = vadd.f32 %v2377_v44, %v2274_v24  ;;  %v2276_v4 = vpop.f32.mrb[78].mxu0  ;;  %v2379_v47 = vpop.f32.mrb[42].mxu1  ;;  %v3432_v24 = vrot.slane %v21840_v30, 1 }
 0x202   : > { %4104 = vmatpush1.bf16.msra.mxu1 %v20512_v0  ;;  %v23756_v56 = vadd.f32 %v2379_v47, %v2276_v4  ;;  %v2278_v36 = vpop.f32.mrb[79].mxu0  ;;  %v2381_v58 = vpop.f32.mrb[43].mxu1  ;;  %v21841_v4 = vld [vmem:[#allocation2 + $0x130] sm:$0x1] }
 0x203   : > { %3103 = vmatmul.mubr.bf16.gmra.mrb[112].mxu0 %v21834_v31  ;;  %4832 = vmatprep.subr.bf16.mxu1 %v20517_v60  ;;  %v23759_v23 = vadd.f32 %v2381_v58, %v2278_v36  ;;  %v3444_v47 = vrot.slane %v21841_v4, 1  ;;  %v3433_v50 = vsel %vm3372_vm3, %v3422_v15, %v3432_v24 }
 0x204   : > { %3112 = vmatprep.mubr.bf16.mxu0 %v23710_v52 }
 0x205   : > { %4059 = vmatmul.mubr.bf16.gmra.mrb[80].mxu1 %v3423_v57 }
 0x206   : > { %4068 = vmatprep.mubr.bf16.mxu1 %v3435_v48 }
 0x207   : > { %v2282_v44 = vpop.f32.mrb[80].mxu0  ;;  %v2385_v0 = vpop.f32.mrb[44].mxu1 }
 0x208   : > { %v23763_v31 = vadd.f32 %v2385_v0, %v2282_v44  ;;  %v2284_v59 = vpop.f32.mrb[81].mxu0  ;;  %v2387_v60 = vpop.f32.mrb[45].mxu1  ;;  %v3445_v44 = vsel %vm3372_vm3, %v3434_v17, %v3444_v47 }
 0x209   : > { %v23765_v5 = vadd.f32 %v2387_v60, %v2284_v59  ;;  %v2286_v58 = vpop.f32.mrb[82].mxu0  ;;  %v2389_v36 = vpop.f32.mrb[46].mxu1  ;;  %v21842_v59 = vld [vmem:[#allocation2 + $0x128] sm:$0x1] }
 0x20a   : > { %v23767_v38 = vadd.f32 %v2389_v36, %v2286_v58  ;;  %v2288_v57 = vpop.f32.mrb[83].mxu0  ;;  %v2391_v52 = vpop.f32.mrb[47].mxu1  ;;  %v3442_v0 = vrot.slane %v21842_v59, 1 }
 0x20b   : > { %3113 = vmatmul.mubr.bf16.gmra.mrb[116].mxu0 %v23724_v61  ;;  %v23771_v48 = vadd.f32 %v2391_v52, %v2288_v57 }
 0x20c   : > { %3122 = vmatprep.mubr.bf16.mxu0 %v23727_v11  ;;  %v3443_v17 = vsel %vm3372_vm3, %v3432_v24, %v3442_v0 }
 0x20d   : > { %4069 = vmatmul.mubr.bf16.gmra.mrb[84].mxu1 %v3433_v50  ;;  %v3250_v50 = vld [vmem:[#allocation2 + $0x20] sm:$0xfe] }
 0x20e   : > { %4078 = vmatprep.mubr.bf16.mxu1 %v3445_v44  ;;  %v28398_v44 = vmov 0   ;;  %v3385_v59 = vrot.slane %v3250_v50, 1 }
 0x20f   : > { %v2292_v4 = vpop.f32.mrb[84].mxu0  ;;  %v2395_v60 = vpop.f32.mrb[48].mxu1 }
 0x210   : > { %v23775_v58 = vadd.f32 %v2395_v60, %v2292_v4  ;;  %v2294_v36 = vpop.f32.mrb[85].mxu0  ;;  %v2397_v61 = vpop.f32.mrb[49].mxu1  ;;  %v21843_v4 = vld [vmem:[#allocation2 + $0x48] sm:$0xff] }
 0x211   : > { %v23777_v51 = vadd.f32 %v2397_v61, %v2294_v36  ;;  %v2296_v19 = vpop.f32.mrb[86].mxu0  ;;  %v2399_v15 = vpop.f32.mrb[50].mxu1  ;;  %v3386_v60 = vrot.slane %v21843_v4, 1 }
 0x212   : > { %v23779_v57 = vadd.f32 %v2399_v15, %v2296_v19  ;;  %v2298_v11 = vpop.f32.mrb[87].mxu0  ;;  %v2401_v52 = vpop.f32.mrb[51].mxu1  ;;  %v20515_v15 = vld [vmem:[%s28257_s3 + $0x780] ss:$8 sps:$4 sm:$0xff]  }
 0x213   : > { %3123 = vmatmul.mubr.bf16.gmra.mrb[120].mxu0 %v21838_v27  ;;  %v23782_v47 = vadd.f32 %v2401_v52, %v2298_v11  ;;  %v20520_v11 = vld [vmem:[%s28257_s3 + $0x794] ss:$8 sps:$4 sm:$0xff]   ;;  %v3387_v4 = vsel %vm3372_vm3, %v3385_v59, %v3386_v60  ;;  %v20521_v59 = vld [vmem:[%s28257_s3 + $0x7a0] ss:$8 sps:$4 sm:$0xff]  }
 0x214   : > { %3132 = vmatprep.mubr.bf16.mxu0 %v21839_v2 }
 0x215   : > { %4079 = vmatmul.mubr.bf16.gmra.mrb[88].mxu1 %v3443_v17 }
 0x216   : > { %4121 = vmatprep.mubr.bf16.mxu1 %v28398_v44 }
 0x217   : > { %v2302_v36 = vpop.f32.mrb[88].mxu0  ;;  %v2405_v61 = vpop.f32.mrb[52].mxu1 }
 0x218   : > { %v23785_v8 = vadd.f32 %v2405_v61, %v2302_v36  ;;  %v2304_v19 = vpop.f32.mrb[89].mxu0  ;;  %v2407_v27 = vpop.f32.mrb[53].mxu1  ;;  %v20518_v61 = vld [vmem:[%s28257_s3 + $0x790] ss:$8 sps:$4 sm:$0xff]  }
 0x219   : > { %v23790_v24 = vadd.f32 %v2407_v27, %v2304_v19  ;;  %v2306_v0 = vpop.f32.mrb[90].mxu0  ;;  %v2409_v2 = vpop.f32.mrb[54].mxu1  ;;  %v20523_v19 = vld [vmem:[%s28257_s3 + $0x7a4] ss:$8 sps:$4 sm:$0xff]  }
 0x21a   : > { %v23795_v52 = vadd.f32 %v2409_v2, %v2306_v0  ;;  %v2308_v50 = vpop.f32.mrb[91].mxu0  ;;  %v2411_v17 = vpop.f32.mrb[55].mxu1 }
 0x21b   : > { %3133 = vmatmul.mubr.bf16.gmra.mrb[124].mxu0 %v21840_v30  ;;  %v23798_v36 = vadd.f32 %v2411_v17, %v2308_v50  ;;  %v21844_v30 = vld [vmem:[#allocation2 + $0x70] sm:$0xff] }
 0x21c   : > { %v3396_v27 = vrot.slane %v21844_v30, 1 }
 0x21d   : > { %4122 = vmatmul.mubr.bf16.vlgmr.msra.gmra.mrb[64].mxu1 %v3387_v4  ;;  %v20526_v4 = vld [vmem:[%s28257_s3 + $0x7b4] ss:$8 sps:$4 sm:$0xff]  }
 0x21e   : > { %4833 = vmatpush1.bf16.msra.mxu1 %v20515_v15  ;;  %4131 = vmatprep.mubr.bf16.mxu1 %v28398_v44  ;;  %v3397_v16 = vsel %vm3372_vm3, %v3386_v60, %v3396_v27  ;;  %v21845_v60 = vld [vmem:[#allocation2 + $0x98] sm:$0xff] }
 0x21f   : > { %4834 = vmatprep.subr.bf16.mxu1 %v20520_v11  ;;  %v2312_v0 = vpop.f32.mrb[92].mxu0  ;;  %v2415_v2 = vpop.f32.mrb[56].mxu1 }
 0x220   : > { %v23810_v15 = vadd.f32 %v2415_v2, %v2312_v0  ;;  %v2314_v50 = vpop.f32.mrb[93].mxu0  ;;  %v2417_v17 = vpop.f32.mrb[57].mxu1  ;;  %v20530_v2 = vld [vmem:[%s28257_s3 + $0x7d0] ss:$8 sps:$4 sm:$0xff]  }
 0x221   : > { %v23815_v29 = vadd.f32 %v2417_v17, %v2314_v50  ;;  %v2316_v11 = vpop.f32.mrb[94].mxu0  ;;  %v2419_v34 = vpop.f32.mrb[58].mxu1 }
 0x222   : > { %4835 = vmatpush1.bf16.msra.mxu1 %v20518_v61  ;;  %v23817_v30 = vadd.f32 %v2419_v34, %v2316_v11  ;;  %v2318_v7 = vpop.f32.mrb[95].mxu0  ;;  %v2421_v21 = vpop.f32.mrb[59].mxu1  ;;  %v20524_v61 = vld [vmem:[%s28257_s3 + $0x7b0] ss:$8 sps:$4 sm:$0xff]   ;;  %v20527_v34 = vld [vmem:[%s28257_s3 + $0x7c0] ss:$8 sps:$4 sm:$0xff]  }
 0x223   : > { %4836 = vmatprep.subr.bf16.mxu1 %v20523_v19  ;;  %v23820_v0 = vadd.f32 %v2421_v21, %v2318_v7  ;;  %v20529_v19 = vld [vmem:[%s28257_s3 + $0x7c4] ss:$8 sps:$4 sm:$0xff]   ;;  %v3406_v7 = vrot.slane %v21845_v60, 1 }
 0x225   : > { %4132 = vmatmul.mubr.bf16.gmra.mrb[68].mxu1 %v3397_v16  ;;  %v20532_v16 = vld [vmem:[%s28257_s3 + $0x7d4] ss:$8 sps:$4 sm:$0xff]   ;;  %v3407_v21 = vsel %vm3372_vm3, %v3396_v27, %v3406_v7 }
 0x226   : > { %4837 = vmatpush1.bf16.msra.mxu1 %v20521_v59  ;;  %4141 = vmatprep.mubr.bf16.mxu1 %v28398_v44  ;;  %v20535_v59 = vld [vmem:[%s28257_s3 + $0x7e4] ss:$8 sps:$4 sm:$0xff]  }
 0x227   : > { %4838 = vmatprep.subr.bf16.mxu1 %v20526_v4  ;;  %v21846_v4 = vld [vmem:[#allocation2 + $0xc0] sm:$0xff] }
 0x228   : > { %v3416_v11 = vrot.slane %v21846_v4, 1 }
 0x22a   : > { %4839 = vmatpush1.bf16.msra.mxu1 %v20524_v61  ;;  %v3417_v4 = vsel %vm3372_vm3, %v3406_v7, %v3416_v11  ;;  %v20544_v7 = vld [vmem:[%s28257_s3 + $0x814] ss:$8 sps:$4 sm:$0xff]  }
 0x22b   : > { %4840 = vmatprep.subr.bf16.mxu1 %v20529_v19 }
 0x22d   : > { %4142 = vmatmul.mubr.bf16.gmra.mrb[72].mxu1 %v3407_v21 }
 0x22e   : > { %4841 = vmatpush1.bf16.msra.mxu1 %v20527_v34  ;;  %4151 = vmatprep.mubr.bf16.mxu1 %v28398_v44  ;;  %v20533_v34 = vld [vmem:[%s28257_s3 + $0x7e0] ss:$8 sps:$4 sm:$0xff]  }
 0x22f   : > { %4842 = vmatprep.subr.bf16.mxu1 %v20532_v16  ;;  %v2322_v50 = vpop.f32.mrb[96].mxu0 }
 0x230   : > { %v2425_v17 = vpop.f32.mrb[60].mxu1  ;;  %v2324_v27 = vpop.f32.mrb[97].mxu0 }
 0x231   : > { %v23843_v61 = vadd.f32 %v2425_v17, %v2322_v50  ;;  %v2427_v19 = vpop.f32.mrb[61].mxu1  ;;  %v2326_v21 = vpop.f32.mrb[98].mxu0  ;;  %v20538_v50 = vld [vmem:[%s28257_s3 + $0x7f4] ss:$8 sps:$4 sm:$0xff]  }
 0x232   : > { %v23848_v60 = vadd.f32 %v2427_v19, %v2324_v27  ;;  %4843 = vmatpush1.bf16.msra.mxu1 %v20530_v2  ;;  %v2429_v33 = vpop.f32.mrb[62].mxu1  ;;  %v2328_v16 = vpop.f32.mrb[99].mxu0  ;;  %v20536_v2 = vld [vmem:[%s28257_s3 + $0x7f0] ss:$8 sps:$4 sm:$0xff]  }
 0x233   : > { %v23850_v18 = vadd.f32 %v2429_v33, %v2326_v21  ;;  %v2431_v12 = vpop.f32.mrb[63].mxu1  ;;  %4844 = vmatprep.subr.bf16.mxu1 %v20535_v59  ;;  %v20541_v33 = vld [vmem:[%s28257_s3 + $0x804] ss:$8 sps:$4 sm:$0xff]  }
 0x234   : > { %v23855_v17 = vadd.f32 %v2431_v12, %v2328_v16  ;;  %v20539_v12 = vld [vmem:[%s28257_s3 + $0x800] ss:$8 sps:$4 sm:$0xff]   ;;  %v20547_v21 = vld [vmem:[%s28257_s3 + $0x824] ss:$8 sps:$4 sm:$0xff]  }
 0x235   : > { %4152 = vmatmul.mubr.bf16.gmra.mrb[76].mxu1 %v3417_v4  ;;  %v21847_v59 = vld [vmem:[#allocation2 + $0xe8] sm:$0xff]  ;;  %v28399_v4 = vrot.slane %v23239_v63, 1  ;;  %v21851_v63 = vld [vmem:[#allocation2 + $0x58] sm:$0xff] }
 0x236   : > { %4845 = vmatpush1.bf16.msra.mxu1 %v20533_v34  ;;  %4161 = vmatprep.mubr.bf16.mxu1 %v28398_v44  ;;  %v3426_v27 = vrot.slane %v21847_v59, 1  ;;  %v20542_v34 = vld [vmem:[%s28257_s3 + $0x810] ss:$8 sps:$4 sm:$0xff]   ;;  %v20545_v16 = vld [vmem:[%s28257_s3 + $0x820] ss:$8 sps:$4 sm:$0xff]   ;;  %v4339_v49 = vrot.slane %v21851_v63, 6 }
 0x237   : > { %4846 = vmatprep.subr.bf16.mxu1 %v20538_v50  ;;  %v4221_v50 = vld [vmem:[#allocation2 + $0x8] sm:$0xc0]  ;;  %v20551_v59 = vld [vmem:[%s28257_s3 + $0x840] ss:$8 sps:$4 sm:$0xff]   ;;  %v23927_v63 = vld [vmem:[#allocation2 + $0xf0] sm:$0xff] }
 0x238   : > { %v3427_v19 = vsel %vm3372_vm3, %v3416_v11, %v3426_v27  ;;  %v20550_v11 = vld [vmem:[%s28257_s3 + $0x834] ss:$8 sps:$4 sm:$0xff]  }
 0x23a   : > { %4847 = vmatpush1.bf16.msra.mxu1 %v20536_v2  ;;  %v3437_v2 = vsel %vm3372_vm3, %v3426_v27, %v28399_v4  ;;  %v21850_v4 = vld [vmem:[#allocation2 + $0x28] sm:$0xff] }
 0x23b   : > { %4848 = vmatprep.subr.bf16.mxu1 %v20541_v33  ;;  %v20548_v33 = vld [vmem:[%s28257_s3 + $0x830] ss:$8 sps:$4 sm:$0xff]  }
 0x23d   : > { %4162 = vmatmul.mubr.bf16.gmra.mrb[80].mxu1 %v3427_v19  ;;  %v21848_v19 = vld [vmem:[#allocation2 + $0x30] sm:$0xff] }
 0x23e   : > { %4849 = vmatpush1.bf16.msra.mxu1 %v20539_v12  ;;  %4171 = vmatprep.mubr.bf16.mxu1 %v28398_v44  ;;  %v20553_v12 = vld [vmem:[%s28257_s3 + $0x844] ss:$8 sps:$4 sm:$0xff]   ;;  %v4326_v27 = vrot.slane %v21848_v19, 6  ;;  %v23903_v19 = vld [vmem:[#allocation2 + $0x78] sm:$0xff] }
 0x23f   : > { %4850 = vmatprep.subr.bf16.mxu1 %v20544_v7  ;;  %v4325_v7 = vrot.slane %v4221_v50, 6  ;;  %v21853_v50 = vld [vmem:[#allocation2 + $0x80] sm:$0xff] }
 0x240   : > { %v4349_v10 = vrot.slane %v21853_v50, 6  ;;  %v23921_v50 = vld [vmem:[#allocation2 + $0xc8] sm:$0xff] }
 0x242   : > { %4851 = vmatpush1.bf16.msra.mxu1 %v20542_v34  ;;  %v20556_v34 = vld [vmem:[%s28257_s3 + $0x854] ss:$8 sps:$4 sm:$0xff]  }
 0x243   : > { %4852 = vmatprep.subr.bf16.mxu1 %v20547_v21  ;;  %v21849_v21 = vld [vmem:[#allocation2] sm:$0xc0] }
 0x245   : > { %4172 = vmatmul.mubr.bf16.gmra.mrb[84].mxu1 %v3437_v2  ;;  %v4323_v2 = vrot.slane %v21850_v4, 6  ;;  %v23912_v4 = vld [vmem:[#allocation2 + $0xd0] sm:$0xff] }
 0x246   : > { %4853 = vmatpush1.bf16.msra.mxu1 %v20545_v16  ;;  %4181 = vmatprep.mubr.bf16.mxu1 %v28398_v44  ;;  %v4322_v16 = vrot.slane %v21849_v21, 6  ;;  %v4367_v21 = vrot.slane %v23921_v50, 6 }
 0x247   : > { %4854 = vmatprep.subr.bf16.mxu1 %v20550_v11  ;;  %v4327_v11 = vsel %vm4321_vm5, %v4325_v7, %v4326_v27  ;;  %v23924_v7 = vld [vmem:[#allocation2 + $0xf8] sm:$0xff] }
 0x24a   : > { %4855 = vmatpush1.bf16.msra.mxu1 %v20548_v33  ;;  %v20565_v33 = vld [vmem:[%s28257_s3 + $0x884] ss:$8 sps:$4 sm:$0xff]  }
 0x24b   : > { %4856 = vmatprep.subr.bf16.mxu1 %v20553_v12  ;;  %v23906_v12 = vld [vmem:[#allocation2 + $0xa8] sm:$0xff] }
 0x24d   : > { %4182 = vmatmul.mubr.bf16.gmra.mrb[88].mxu1 %v23355_v35  ;;  %v20554_v35 = vld [vmem:[%s28257_s3 + $0x850] ss:$8 sps:$4 sm:$0xff]  }
 0x24e   : > { %4857 = vmatpush1.bf16.msra.mxu1 %v20551_v59  ;;  %4864 = vmatprep.mubr.bf16.mxu1 %v4327_v11  ;;  %v20557_v11 = vld [vmem:[%s28257_s3 + $0x860] ss:$8 sps:$4 sm:$0xff]  }
 0x24f   : > { %4858 = vmatprep.subr.bf16.mxu1 %v20556_v34  ;;  %v20560_v34 = vld [vmem:[%s28257_s3 + $0x870] ss:$8 sps:$4 sm:$0xff]   ;;  %v20563_v59 = vld [vmem:[%s28257_s3 + $0x880] ss:$8 sps:$4 sm:$0xff]  }
 0x252   : > { %4859 = vmatpush1.bf16.msra.mxu1 %v20554_v35  ;;  %v20568_v35 = vld [vmem:[%s28257_s3 + $0x894] ss:$8 sps:$4 sm:$0xff]  }
 0x253   : > { %4860 = vmatprep.subr.bf16.mxu1 %v20559_v9  ;;  %v4324_v9 = vsel %vm4321_vm5, %v4322_v16, %v4323_v2  ;;  %v4338_v16 = vsel %vm4321_vm5, %v4323_v2, %v4337_v45  ;;  %v28400_v2 = vrot.slane %v23903_v19, 6  ;;  %v4226_v19 = vld [vmem:[#allocation2 + $0x120] sm:$0x3f] }
 0x256   : > { %4861 = vmatpush1.bf16.msra.mxu1 %v20557_v11  ;;  %v4340_v11 = vsel %vm4321_vm5, %v4326_v27, %v4339_v49  ;;  %v20574_v27 = vld [vmem:[%s28257_s3 + $0x8b4] ss:$8 sps:$4 sm:$0xff]  }
 0x257   : > { %4862 = vmatprep.subr.bf16.mxu1 %v20562_v43  ;;  %v20566_v43 = vld [vmem:[%s28257_s3 + $0x890] ss:$8 sps:$4 sm:$0xff]  }
 0x25a   : > { %4863 = vmatpush1.bf16.msra.mxu1 %v20560_v34  ;;  %v20571_v34 = vld [vmem:[%s28257_s3 + $0x8a4] ss:$8 sps:$4 sm:$0xff]  }
 0x25b   : > { %4935 = vmatprep.subr.bf16.mxu1 %v20565_v33  ;;  %v20569_v33 = vld [vmem:[%s28257_s3 + $0x8a0] ss:$8 sps:$4 sm:$0xff]  }
 0x25d   : > { %4865 = vmatmul.mubr.bf16.vlgmr.msra.gmra.mrb[64].mxu1 %v4324_v9  ;;  %v20577_v9 = vld [vmem:[%s28257_s3 + $0x8c4] ss:$8 sps:$4 sm:$0xff]  }
 0x25e   : > { %4874 = vmatprep.mubr.bf16.mxu1 %v4340_v11  ;;  %4936 = vmatpush1.bf16.msra.mxu1 %v20563_v59  ;;  %v4350_v59 = vsel %vm4321_vm5, %v4339_v49, %v4349_v10  ;;  %v20575_v11 = vld [vmem:[%s28257_s3 + $0x8c0] ss:$8 sps:$4 sm:$0xff]   ;;  %v20580_v49 = vld [vmem:[%s28257_s3 + $0x8d4] ss:$8 sps:$4 sm:$0xff]  }
 0x25f   : > { %4937 = vmatprep.subr.bf16.mxu1 %v20568_v35  ;;  %v20572_v35 = vld [vmem:[%s28257_s3 + $0x8b0] ss:$8 sps:$4 sm:$0xff]  }
 0x262   : > { %4938 = vmatpush1.bf16.msra.mxu1 %v20566_v43  ;;  %v4348_v43 = vsel %vm4321_vm5, %v4337_v45, %v28400_v2  ;;  %v20581_v45 = vld [vmem:[%s28257_s3 + $0x8e0] ss:$8 sps:$4 sm:$0xff]  }
 0x263   : > { %4939 = vmatprep.subr.bf16.mxu1 %v20571_v34  ;;  %v28401_v34 = vrot.slane %v23906_v12, 6  ;;  %v20587_v12 = vld [vmem:[%s28257_s3 + $0x900] ss:$8 sps:$4 sm:$0xff]  }
 0x265   : > { %4875 = vmatmul.mubr.bf16.gmra.mrb[68].mxu1 %v4338_v16  ;;  %v20583_v16 = vld [vmem:[%s28257_s3 + $0x8e4] ss:$8 sps:$4 sm:$0xff]  }
 0x266   : > { %4884 = vmatprep.mubr.bf16.mxu1 %v4350_v59  ;;  %4940 = vmatpush1.bf16.msra.mxu1 %v20569_v33  ;;  %v4360_v33 = vsel %vm4321_vm5, %v4349_v10, %v28401_v34  ;;  %v20586_v10 = vld [vmem:[%s28257_s3 + $0x8f4] ss:$8 sps:$4 sm:$0xff]   ;;  %v28402_v59 = vrot.slane %v23909_v40, 6  ;;  %v20595_v40 = vld [vmem:[%s28257_s3 + $0x924] ss:$8 sps:$4 sm:$0xff]  }
 0x267   : > { %4941 = vmatprep.subr.bf16.mxu1 %v20574_v27  ;;  %v20578_v27 = vld [vmem:[%s28257_s3 + $0x8d0] ss:$8 sps:$4 sm:$0xff]  }
 0x26a   : > { %4942 = vmatpush1.bf16.msra.mxu1 %v20572_v35  ;;  %v28403_v35 = vmov %v28400_v2 }
 0x26b   : > { %4943 = vmatprep.subr.bf16.mxu1 %v20577_v9  ;;  %v4358_v9 = vsel %vm4321_vm5, %v28403_v35, %v28402_v59 }
 0x26d   : > { %4885 = vmatmul.mubr.bf16.gmra.mrb[72].mxu1 %v4348_v43  ;;  %v20584_v43 = vld [vmem:[%s28257_s3 + $0x8f0] ss:$8 sps:$4 sm:$0xff]  }
 0x26e   : > { %4894 = vmatprep.mubr.bf16.mxu1 %v4360_v33  ;;  %4944 = vmatpush1.bf16.msra.mxu1 %v20575_v11  ;;  %v28404_v11 = vrot.slane %v23912_v4, 6  ;;  %v4225_v33 = vld [vmem:[#allocation2 + $0x118] sm:$0x3f]  ;;  %v20593_v4 = vld [vmem:[%s28257_s3 + $0x920] ss:$8 sps:$4 sm:$0xff]  }
 0x26f   : > { %4945 = vmatprep.subr.bf16.mxu1 %v20580_v49  ;;  %v28405_v49 = vmov %v28401_v34  ;;  %v20589_v34 = vld [vmem:[%s28257_s3 + $0x904] ss:$8 sps:$4 sm:$0xff]  }
 0x270   : > { %v4370_v2 = vsel %vm4321_vm5, %v28405_v49, %v28404_v11  ;;  %v28408_v35 = vmov %v28404_v11  ;;  %v4389_v11 = vrot.slane %v4226_v19, 6  ;;  %v4387_v49 = vrot.slane %v4225_v33, 6  ;;  %v20598_v19 = vld [vmem:[%s28257_s3 + $0x934] ss:$8 sps:$4 sm:$0xff]  }
 0x271   : > { %v28409_v33 = vrot.slane %v23927_v63, 6  ;;  %v20605_v63 = vld [vmem:[%s28257_s3 + $0x960] ss:$8 sps:$4 sm:$0xff]  }
 0x272   : > { %4946 = vmatpush1.bf16.msra.mxu1 %v20578_v27  ;;  %v4223_v27 = vld [vmem:[#allocation2 + $0x18] sm:$0xc0] }
 0x273   : > { %4947 = vmatprep.subr.bf16.mxu1 %v20583_v16  ;;  %v20592_v16 = vld [vmem:[%s28257_s3 + $0x914] ss:$8 sps:$4 sm:$0xff]   ;;  %v28411_v50 = vmov %v28409_v33 }
 0x275   : > { %4895 = vmatmul.mubr.bf16.gmra.mrb[76].mxu1 %v4358_v9 }
 0x276   : > { %4904 = vmatprep.mubr.bf16.mxu1 %v4370_v2  ;;  %4948 = vmatpush1.bf16.msra.mxu1 %v20581_v45  ;;  %v28406_v45 = vmov %v28402_v59  ;;  %v20590_v2 = vld [vmem:[%s28257_s3 + $0x910] ss:$8 sps:$4 sm:$0xff]  }
 0x277   : > { %4949 = vmatprep.subr.bf16.mxu1 %v20586_v10  ;;  %v4368_v59 = vsel %vm4321_vm5, %v28406_v45, %v4367_v21  ;;  %v28407_v10 = vrot.slane %v23924_v7, 6  ;;  %v20604_v7 = vld [vmem:[%s28257_s3 + $0x954] ss:$8 sps:$4 sm:$0xff]  }
 0x279   : > { %v4380_v9 = vsel %vm4321_vm5, %v28408_v35, %v28407_v10  ;;  %v4388_v35 = vsel %vm4321_vm5, %v28411_v50, %v4387_v49  ;;  %v20610_v49 = vld [vmem:[%s28257_s3 + $0x974] ss:$8 sps:$4 sm:$0xff]  }
 0x27a   : > { %4950 = vmatpush1.bf16.msra.mxu1 %v20584_v43  ;;  %v4331_v43 = vrot.slane %v4223_v27, 6  ;;  %v28410_v27 = vmov %v28407_v10  ;;  %v20601_v10 = vld [vmem:[%s28257_s3 + $0x944] ss:$8 sps:$4 sm:$0xff]  }
 0x27b   : > { %4951 = vmatprep.subr.bf16.mxu1 %v20589_v34  ;;  %v21861_v34 = vld [vmem:[#allocation2 + $0x40] sm:$0xff] }
 0x27c   : > { %v4332_v45 = vrot.slane %v21861_v34, 6  ;;  %v21863_v34 = vld [vmem:[#allocation2 + $0x38] sm:$0xff] }
 0x27d   : > { %4905 = vmatmul.mubr.bf16.gmra.mrb[80].mxu1 %v4368_v59  ;;  %v20596_v59 = vld [vmem:[%s28257_s3 + $0x930] ss:$8 sps:$4 sm:$0xff]  }
 0x27e   : > { %4914 = vmatprep.mubr.bf16.mxu1 %v4380_v9  ;;  %4952 = vmatpush1.bf16.msra.mxu1 %v20587_v12  ;;  %v4378_v12 = vsel %vm4321_vm5, %v4367_v21, %v28409_v33  ;;  %v20599_v21 = vld [vmem:[%s28257_s3 + $0x940] ss:$8 sps:$4 sm:$0xff]   ;;  %v4333_v9 = vsel %vm4321_vm5, %v4331_v43, %v4332_v45 }
 0x27f   : > { %4953 = vmatprep.subr.bf16.mxu1 %v20592_v16  ;;  %v4390_v16 = vsel %vm4321_vm5, %v28410_v27, %v4389_v11  ;;  %v20602_v11 = vld [vmem:[%s28257_s3 + $0x950] ss:$8 sps:$4 sm:$0xff]   ;;  %v20613_v27 = vld [vmem:[%s28257_s3 + $0x984] ss:$8 sps:$4 sm:$0xff]  }
 0x282   : > { %4954 = vmatpush1.bf16.msra.mxu1 %v20590_v2  ;;  %v20607_v2 = vld [vmem:[%s28257_s3 + $0x964] ss:$8 sps:$4 sm:$0xff]  }
 0x283   : > { %4955 = vmatprep.subr.bf16.mxu1 %v20595_v40  ;;  %v21862_v40 = vld [vmem:[#allocation2 + $0x10] sm:$0xc0] }
 0x284   : > { %v4328_v43 = vrot.slane %v21862_v40, 6 }
 0x285   : > { %4915 = vmatmul.mubr.bf16.gmra.mrb[84].mxu1 %v4378_v12  ;;  %v20608_v12 = vld [vmem:[%s28257_s3 + $0x970] ss:$8 sps:$4 sm:$0xff]  }
 0x286   : > { %4924 = vmatprep.mubr.bf16.mxu1 %v4390_v16  ;;  %4956 = vmatpush1.bf16.msra.mxu1 %v20593_v4  ;;  %v4329_v4 = vrot.slane %v21863_v34, 6  ;;  %v20611_v16 = vld [vmem:[%s28257_s3 + $0x980] ss:$8 sps:$4 sm:$0xff]  }
 0x287   : > { %4957 = vmatprep.subr.bf16.mxu1 %v20598_v19  ;;  %v21864_v19 = vld [vmem:[#allocation2 + $0x68] sm:$0xff] }
 0x288   : > { %v4343_v33 = vrot.slane %v21864_v19, 6  ;;  %v21868_v19 = vld [vmem:[#allocation2 + $0xb8] sm:$0xff] }
 0x28a   : > { %4958 = vmatpush1.bf16.msra.mxu1 %v20596_v59  ;;  %v20616_v59 = vld [vmem:[%s28257_s3 + $0x994] ss:$8 sps:$4 sm:$0xff]  }
 0x28b   : > { %4959 = vmatprep.subr.bf16.mxu1 %v20601_v10  ;;  %v4330_v10 = vsel %vm4321_vm5, %v4328_v43, %v4329_v4  ;;  %v21867_v43 = vld [vmem:[#allocation2 + $0x88] sm:$0xff] }
 0x28c   : > { %v4351_v34 = vrot.slane %v21867_v43, 6 }
 0x28d   : > { %4925 = vmatmul.mubr.bf16.gmra.mrb[88].mxu1 %v4388_v35  ;;  %v21866_v35 = vld [vmem:[#allocation2 + $0x90] sm:$0xff] }
 0x28e   : > { %4960 = vmatpush1.bf16.msra.mxu1 %v20599_v21  ;;  %4967 = vmatprep.mubr.bf16.mxu1 %v4333_v9  ;;  %v4344_v21 = vsel %vm4321_vm5, %v4332_v45, %v4343_v33  ;;  %v4353_v9 = vrot.slane %v21866_v35, 6  ;;  %v20622_v45 = vld [vmem:[%s28257_s3 + $0x9b4] ss:$8 sps:$4 sm:$0xff]   ;;  %v21870_v35 = vld [vmem:[#allocation2 + $0xe0] sm:$0xff] }
 0x28f   : > { %4961 = vmatprep.subr.bf16.mxu1 %v20604_v7  ;;  %v21865_v7 = vld [vmem:[#allocation2 + $0x60] sm:$0xff] }
 0x290   : > { %v4341_v50 = vrot.slane %v21865_v7, 6  ;;  %v4354_v40 = vsel %vm4321_vm5, %v4343_v33, %v4353_v9  ;;  %v20628_v33 = vld [vmem:[%s28257_s3 + $0x9d4] ss:$8 sps:$4 sm:$0xff]  }
 0x292   : > { %4962 = vmatpush1.bf16.msra.mxu1 %v20602_v11  ;;  %v20614_v11 = vld [vmem:[%s28257_s3 + $0x990] ss:$8 sps:$4 sm:$0xff]  }
 0x293   : > { %4963 = vmatprep.subr.bf16.mxu1 %v20607_v2  ;;  %v20619_v2 = vld [vmem:[%s28257_s3 + $0x9a4] ss:$8 sps:$4 sm:$0xff]  }
 0x296   : > { %4964 = vmatpush1.bf16.msra.mxu1 %v20605_v63  ;;  %v20617_v63 = vld [vmem:[%s28257_s3 + $0x9a0] ss:$8 sps:$4 sm:$0xff]  }
 0x297   : > { %4965 = vmatprep.subr.bf16.mxu1 %v20610_v49  ;;  %v4342_v49 = vsel %vm4321_vm5, %v4329_v4, %v4341_v50  ;;  %v20623_v4 = vld [vmem:[%s28257_s3 + $0x9c0] ss:$8 sps:$4 sm:$0xff]  }
 0x29a   : > { %4966 = vmatpush1.bf16.msra.mxu1 %v20608_v12  ;;  %v4363_v12 = vrot.slane %v21868_v19, 6  ;;  %v21872_v19 = vld [vmem:[#allocation2 + $0x108] sm:$0xff] }
 0x29b   : > { %5038 = vmatprep.subr.bf16.mxu1 %v20613_v27  ;;  %v20620_v27 = vld [vmem:[%s28257_s3 + $0x9b0] ss:$8 sps:$4 sm:$0xff]  }
 0x29d   : > { %4968 = vmatmul.mubr.bf16.vlgmr.msra.gmra.mrb[64].mxu1 %v4330_v10  ;;  %v4364_v10 = vsel %vm4321_vm5, %v4353_v9, %v4363_v12  ;;  %v20634_v9 = vld [vmem:[%s28257_s3 + $0x9f4] ss:$8 sps:$4 sm:$0xff]  }
 0x29e   : > { %4977 = vmatprep.mubr.bf16.mxu1 %v4344_v21  ;;  %5039 = vmatpush1.bf16.msra.mxu1 %v20611_v16  ;;  %v20625_v16 = vld [vmem:[%s28257_s3 + $0x9c4] ss:$8 sps:$4 sm:$0xff]   ;;  %v21869_v21 = vld [vmem:[#allocation2 + $0xb0] sm:$0xff] }
 0x29f   : > { %5040 = vmatprep.subr.bf16.mxu1 %v20616_v59  ;;  %v4352_v59 = vsel %vm4321_vm5, %v4341_v50, %v4351_v34  ;;  %v4361_v7 = vrot.slane %v21869_v21, 6  ;;  %v20629_v50 = vld [vmem:[%s28257_s3 + $0x9e0] ss:$8 sps:$4 sm:$0xff]  }
 0x2a2   : > { %5041 = vmatpush1.bf16.msra.mxu1 %v20614_v11  ;;  %v4373_v11 = vrot.slane %v21870_v35, 6  ;;  %v21873_v35 = vld [vmem:[#allocation2 + $0x100] sm:$0xff] }
 0x2a3   : > { %5042 = vmatprep.subr.bf16.mxu1 %v20619_v2  ;;  %v20626_v2 = vld [vmem:[%s28257_s3 + $0x9d0] ss:$8 sps:$4 sm:$0xff]  }
 0x2a5   : > { %4978 = vmatmul.mubr.bf16.gmra.mrb[68].mxu1 %v4342_v49  ;;  %v4374_v49 = vsel %vm4321_vm5, %v4363_v12, %v4373_v11 }
 0x2a6   : > { %4987 = vmatprep.mubr.bf16.mxu1 %v4354_v40  ;;  %5043 = vmatpush1.bf16.msra.mxu1 %v20617_v63  ;;  %v20631_v63 = vld [vmem:[%s28257_s3 + $0x9e4] ss:$8 sps:$4 sm:$0xff]   ;;  %v21871_v40 = vld [vmem:[#allocation2 + $0xd8] sm:$0xff] }
 0x2a7   : > { %5044 = vmatprep.subr.bf16.mxu1 %v20622_v45  ;;  %v4362_v45 = vsel %vm4321_vm5, %v4351_v34, %v4361_v7  ;;  %v4371_v43 = vrot.slane %v21871_v40, 6  ;;  %v4227_v40 = vld [vmem:[#allocation2 + $0x128] sm:$0x3f] }
 0x2a9   : > { %v4372_v34 = vsel %vm4321_vm5, %v4361_v7, %v4371_v43 }
 0x2aa   : > { %5045 = vmatpush1.bf16.msra.mxu1 %v20620_v27  ;;  %v4383_v27 = vrot.slane %v21872_v19, 6 }
 0x2ab   : > { %5046 = vmatprep.subr.bf16.mxu1 %v20625_v16  ;;  %v20632_v16 = vld [vmem:[%s28257_s3 + $0x9f0] ss:$8 sps:$4 sm:$0xff]  }
 0x2ac   : > { %v4384_v12 = vsel %vm4321_vm5, %v4373_v11, %v4383_v27 }
 0x2ad   : > { %4988 = vmatmul.mubr.bf16.gmra.mrb[72].mxu1 %v4352_v59  ;;  %v4228_v59 = vld [vmem:[#allocation2 + $0x130] sm:$0x3f] }
 0x2ae   : > { %4997 = vmatprep.mubr.bf16.mxu1 %v4364_v10  ;;  %5047 = vmatpush1.bf16.msra.mxu1 %v20623_v4  ;;  %v20637_v4 = vld [vmem:[%s28257_s3 + $0xa04] ss:$8 sps:$4 sm:$0xff]  }
 0x2af   : > { %5048 = vmatprep.subr.bf16.mxu1 %v20628_v33 }
 0x2b2   : > { %5049 = vmatpush1.bf16.msra.mxu1 %v20626_v2  ;;  %v4381_v2 = vrot.slane %v21873_v35, 6  ;;  %v21875_v35 = vld [vmem:[#allocation2 + $0x48] sm:$0xff] }
 0x2b3   : > { %5050 = vmatprep.subr.bf16.mxu1 %v20631_v63 }
 0x2b5   : > { %4998 = vmatmul.mubr.bf16.gmra.mrb[76].mxu1 %v4362_v45 }
 0x2b6   : > { %5007 = vmatprep.mubr.bf16.mxu1 %v4374_v49  ;;  %5051 = vmatpush1.bf16.msra.mxu1 %v20629_v50  ;;  %v4382_v49 = vsel %vm4321_vm5, %v4371_v43, %v4381_v2 }
 0x2b7   : > { %5052 = vmatprep.subr.bf16.mxu1 %v20634_v9  ;;  %v4393_v9 = vrot.slane %v4228_v59, 6 }
 0x2ba   : > { %5053 = vmatpush1.bf16.msra.mxu1 %v20632_v16 }
 0x2bb   : > { %5896 = vmatprep.subr.bf16.mxu1 %v20637_v4  ;;  %v4391_v4 = vrot.slane %v4227_v40, 6 }
 0x2bd   : > { %5008 = vmatmul.mubr.bf16.gmra.mrb[80].mxu1 %v4372_v34 }
 0x2be   : > { %5017 = vmatprep.mubr.bf16.mxu1 %v4384_v12  ;;  %v3074_v33 = vpop.f32.mrb[100].mxu0 }
 0x2bf   : > { %v24139_v10 = vadd.f32 %v3074_v33, %v23730_v1  ;;  %v3076_v21 = vpop.f32.mrb[101].mxu0  ;;  %v4394_v1 = vsel %vm4321_vm5, %v4383_v27, %v4393_v9  ;;  %v4392_v27 = vsel %vm4321_vm5, %v4381_v2, %v4391_v4 }
 0x2c0   : > { %v24142_v63 = vadd.f32 %v3076_v21, %v23732_v26  ;;  %v3078_v50 = vpop.f32.mrb[102].mxu0 }
 0x2c1   : > { %v24145_v45 = vadd.f32 %v3078_v50, %v23737_v22  ;;  %v3080_v7 = vpop.f32.mrb[103].mxu0  ;;  %v4335_v50 = vrot.slane %v21875_v35, 6 }
 0x2c2   : > { %v24148_v11 = vadd.f32 %v3080_v7, %v23743_v14  ;;  %v20635_v7 = vld [vmem:[%s28257_s3 + $0xa00] ss:$8 sps:$4 sm:$0xff]  }
 0x2c5   : > { %5018 = vmatmul.mubr.bf16.gmra.mrb[84].mxu1 %v4382_v49  ;;  %v20640_v49 = vld [vmem:[%s28257_s3 + $0xa14] ss:$8 sps:$4 sm:$0xff]  }
 0x2c6   : > { %5027 = vmatprep.mubr.bf16.mxu1 %v4394_v1  ;;  %v3084_v19 = vpop.f32.mrb[104].mxu0 }
 0x2c7   : > { %v24153_v26 = vadd.f32 %v3084_v19, %v23752_v55  ;;  %v3086_v16 = vpop.f32.mrb[105].mxu0 }
 0x2c8   : > { %v24156_v22 = vadd.f32 %v3086_v16, %v23754_v20  ;;  %v3088_v34 = vpop.f32.mrb[106].mxu0  ;;  %v21874_v20 = vld [vmem:[#allocation2 + $0x20] sm:$0xc0]  ;;  %v21876_v16 = vld [vmem:[#allocation2 + $0x70] sm:$0xff] }
 0x2c9   : > { %v24159_v14 = vadd.f32 %v3088_v34, %v23756_v56  ;;  %v3090_v12 = vpop.f32.mrb[107].mxu0  ;;  %v4334_v21 = vrot.slane %v21874_v20, 6  ;;  %v4345_v4 = vrot.slane %v21876_v16, 6 }
 0x2ca   : > { %v24162_v43 = vadd.f32 %v3090_v12, %v23759_v23 }
 0x2cb   : > { %v4336_v1 = vsel %vm4321_vm5, %v4334_v21, %v4335_v50 }
 0x2cd   : > { %5028 = vmatmul.mubr.bf16.gmra.mrb[88].mxu1 %v4392_v27 }
 0x2ce   : > { %5070 = vmatprep.mubr.bf16.mxu1 %v28398_v44  ;;  %v3094_v55 = vpop.f32.mrb[108].mxu0 }
 0x2cf   : > { %v24167_v33 = vadd.f32 %v3094_v55, %v23763_v31  ;;  %v3096_v59 = vpop.f32.mrb[109].mxu0 }
 0x2d0   : > { %v24170_v56 = vadd.f32 %v3096_v59, %v23765_v5  ;;  %v3098_v9 = vpop.f32.mrb[110].mxu0  ;;  %v20638_v5 = vld [vmem:[%s28257_s3 + $0xa10] ss:$8 sps:$4 sm:$0xff]   ;;  %v20641_v59 = vld [vmem:[%s28257_s3 + $0xa20] ss:$8 sps:$4 sm:$0xff]  }
 0x2d1   : > { %v24173_v23 = vadd.f32 %v3098_v9, %v23767_v38  ;;  %v3100_v2 = vpop.f32.mrb[111].mxu0 }
 0x2d2   : > { %v24179_v31 = vadd.f32 %v3100_v2, %v23771_v48  ;;  %v20643_v48 = vld [vmem:[%s28257_s3 + $0xa24] ss:$8 sps:$4 sm:$0xff]   ;;  %v21877_v2 = vld [vmem:[#allocation2 + $0x98] sm:$0xff] }
 0x2d5   : > { %5071 = vmatmul.mubr.bf16.vlgmr.msra.gmra.mrb[64].mxu1 %v4336_v1 }
 0x2d6   : > { %5897 = vmatpush1.bf16.msra.mxu1 %v20635_v7  ;;  %5080 = vmatprep.mubr.bf16.mxu1 %v28398_v44  ;;  %v3104_v38 = vpop.f32.mrb[112].mxu0 }
 0x2d7   : > { %5898 = vmatprep.subr.bf16.mxu1 %v20640_v49  ;;  %v24193_v40 = vadd.f32 %v3104_v38, %v23775_v58  ;;  %v3106_v19 = vpop.f32.mrb[113].mxu0  ;;  %v20646_v58 = vld [vmem:[%s28257_s3 + $0xa34] ss:$8 sps:$4 sm:$0xff]   ;;  %v20647_v38 = vld [vmem:[%s28257_s3 + $0xa40] ss:$8 sps:$4 sm:$0xff]  }
 0x2d8   : > { %v24196_v34 = vadd.f32 %v3106_v19, %v23777_v51  ;;  %v3108_v12 = vpop.f32.mrb[114].mxu0  ;;  %v4346_v51 = vsel %vm4321_vm5, %v4335_v50, %v4345_v4  ;;  %v4355_v50 = vrot.slane %v21877_v2, 6 }
 0x2d9   : > { %v24199_v27 = vadd.f32 %v3108_v12, %v23779_v57  ;;  %v3110_v55 = vpop.f32.mrb[115].mxu0  ;;  %v20644_v57 = vld [vmem:[%s28257_s3 + $0xa30] ss:$8 sps:$4 sm:$0xff]  }
 0x2da   : > { %28412 = vst [vmem:[#allocation39_spill] sm:$0xff] %v24196_v34  ;;  %5899 = vmatpush1.bf16.msra.mxu1 %v20638_v5  ;;  %v24205_v20 = vadd.f32 %v3110_v55, %v23782_v47  ;;  %v20649_v47 = vld [vmem:[%s28257_s3 + $0xa44] ss:$8 sps:$4 sm:$0xff]  }
 0x2db   : > { %28413 = vst [vmem:[#allocation40_spill] sm:$0xff] %v24199_v27  ;;  %5900 = vmatprep.subr.bf16.mxu1 %v20643_v48  ;;  %v21878_v55 = vld [vmem:[#allocation2 + $0xc0] sm:$0xff] }
 0x2dc   : > { %28414 = vst [vmem:[#allocation41_spill] sm:$0xff] %v24205_v20 }
 0x2dd   : > { %5081 = vmatmul.mubr.bf16.gmra.mrb[68].mxu1 %v4346_v51 }
 0x2de   : > { %5901 = vmatpush1.bf16.msra.mxu1 %v20641_v59  ;;  %5090 = vmatprep.mubr.bf16.mxu1 %v28398_v44  ;;  %v3114_v21 = vpop.f32.mrb[116].mxu0 }
 0x2df   : > { %5902 = vmatprep.subr.bf16.mxu1 %v20646_v58  ;;  %v24219_v35 = vadd.f32 %v3114_v21, %v23785_v8  ;;  %v3116_v9 = vpop.f32.mrb[117].mxu0  ;;  %v20652_v8 = vld [vmem:[%s28257_s3 + $0xa54] ss:$8 sps:$4 sm:$0xff]   ;;  %v20653_v21 = vld [vmem:[%s28257_s3 + $0xa60] ss:$8 sps:$4 sm:$0xff]  }
 0x2e0   : > { %v24222_v7 = vadd.f32 %v3116_v9, %v23790_v24  ;;  %v3118_v49 = vpop.f32.mrb[118].mxu0  ;;  %v4356_v24 = vsel %vm4321_vm5, %v4345_v4, %v4355_v50  ;;  %v4365_v4 = vrot.slane %v21878_v55, 6 }
 0x2e1   : > { %28415 = vst [vmem:[#allocation42_spill] sm:$0xff] %v24219_v35  ;;  %v24225_v1 = vadd.f32 %v3118_v49, %v23795_v52  ;;  %v3120_v5 = vpop.f32.mrb[119].mxu0  ;;  %v20650_v52 = vld [vmem:[%s28257_s3 + $0xa50] ss:$8 sps:$4 sm:$0xff]   ;;  %v7216_v35 = vld [vmem:[#allocation2 + $0x160] sm:$0xf] }
 0x2e2   : > { %28416 = vst [vmem:[#allocation43_spill] sm:$0xff] %v24222_v7  ;;  %5903 = vmatpush1.bf16.msra.mxu1 %v20644_v57  ;;  %v24231_v48 = vadd.f32 %v3120_v5, %v23798_v36  ;;  %v20655_v36 = vld [vmem:[%s28257_s3 + $0xa64] ss:$8 sps:$4 sm:$0xff]   ;;  %v7412_v34 = vrot.slane %v7216_v35, 4 }
 0x2e3   : > { %28417 = vst [vmem:[#allocation44_spill] sm:$0xff] %v24225_v1  ;;  %5904 = vmatprep.subr.bf16.mxu1 %v20649_v47  ;;  %v21879_v5 = vld [vmem:[#allocation2 + $0xe8] sm:$0xff] }
 0x2e4   : > { %28418 = vst [vmem:[#allocation45_spill] sm:$0xff] %v24231_v48 }
 0x2e5   : > { %5091 = vmatmul.mubr.bf16.gmra.mrb[72].mxu1 %v4356_v24 }
 0x2e6   : > { %5905 = vmatpush1.bf16.msra.mxu1 %v20647_v38  ;;  %5100 = vmatprep.mubr.bf16.mxu1 %v28398_v44  ;;  %v3124_v19 = vpop.f32.mrb[120].mxu0 }
 0x2e7   : > { %5906 = vmatprep.subr.bf16.mxu1 %v20652_v8  ;;  %v24245_v16 = vadd.f32 %v3124_v19, %v23810_v15  ;;  %v3126_v12 = vpop.f32.mrb[121].mxu0  ;;  %v20658_v15 = vld [vmem:[%s28257_s3 + $0xa74] ss:$8 sps:$4 sm:$0xff]   ;;  %v20659_v19 = vld [vmem:[%s28257_s3 + $0xa80] ss:$8 sps:$4 sm:$0xff]  }
 0x2e8   : > { %v24248_v59 = vadd.f32 %v3126_v12, %v23815_v29  ;;  %v3128_v58 = vpop.f32.mrb[122].mxu0  ;;  %v4366_v29 = vsel %vm4321_vm5, %v4355_v50, %v4365_v4  ;;  %v4375_v50 = vrot.slane %v21879_v5, 6  ;;  %v21880_v12 = vld [vmem:[#allocation2 + $0x110] sm:$0xff] }
 0x2e9   : > { %28419 = vst [vmem:[#allocation46_spill] sm:$0xff] %v24245_v16  ;;  %v24251_v51 = vadd.f32 %v3128_v58, %v23817_v30  ;;  %v3130_v57 = vpop.f32.mrb[123].mxu0  ;;  %v20656_v30 = vld [vmem:[%s28257_s3 + $0xa70] ss:$8 sps:$4 sm:$0xff]   ;;  %v4385_v55 = vrot.slane %v21880_v12, 6 }
 0x2ea   : > { %28420 = vst [vmem:[#allocation47_spill] sm:$0xff] %v24248_v59  ;;  %5907 = vmatpush1.bf16.msra.mxu1 %v20650_v52  ;;  %v24257_v47 = vadd.f32 %v3130_v57, %v23820_v0  ;;  %v20661_v0 = vld [vmem:[%s28257_s3 + $0xa84] ss:$8 sps:$4 sm:$0xff]   ;;  %v7214_v59 = vld [vmem:[#allocation2 + $0x150] sm:$0xf] }
 0x2eb   : > { %28421 = vst [vmem:[#allocation48_spill] sm:$0xff] %v24251_v51  ;;  %5908 = vmatprep.subr.bf16.mxu1 %v20655_v36  ;;  %v21881_v58 = vld [vmem:[#allocation2 + $0x8] sm:$0xc0]  ;;  %v21022_v16 = vld [vmem:[%s28257_s3 + $0x1210] ss:$8 sps:$4 sm:$0xff]  }
 0x2ec   : > { %28422 = vst [vmem:[#allocation49_spill] sm:$0xff] %v24257_v47  ;;  %v5269_v57 = vshrl.u32 %v21881_v58, 16 }
 0x2ed   : > { %5101 = vmatmul.mubr.bf16.gmra.mrb[76].mxu1 %v4366_v29  ;;  %v4386_v29 = vsel %vm4321_vm5, %v4375_v50, %v4385_v55 }
 0x2ee   : > { %5909 = vmatpush1.bf16.msra.mxu1 %v20653_v21  ;;  %5110 = vmatprep.mubr.bf16.mxu1 %v28398_v44  ;;  %v3134_v9 = vpop.f32.mrb[124].mxu0  ;;  %v5272_v21 = vshll.u32 %v21881_v58, 16 }
 0x2ef   : > { %5910 = vmatprep.subr.bf16.mxu1 %v20658_v15  ;;  %v24271_v2 = vadd.f32 %v3134_v9, %v23843_v61  ;;  %v3136_v49 = vpop.f32.mrb[125].mxu0  ;;  %v20664_v61 = vld [vmem:[%s28257_s3 + $0xa94] ss:$8 sps:$4 sm:$0xff]   ;;  %v5271_v9 = vrot.slane %v5269_v57, 6  ;;  %v20674_v57 = vld [vmem:[%s28257_s3 + $0xad0] ss:$8 sps:$4 sm:$0xff]  }
 0x2f0   : > { %v24274_v38 = vadd.f32 %v3136_v49, %v23848_v60  ;;  %v3138_v8 = vpop.f32.mrb[126].mxu0  ;;  %v4376_v60 = vsel %vm4321_vm5, %v4365_v4, %v4375_v50  ;;  %v20665_v4 = vld [vmem:[%s28257_s3 + $0xaa0] ss:$8 sps:$4 sm:$0xff]   ;;  %v20670_v15 = vld [vmem:[%s28257_s3 + $0xab4] ss:$8 sps:$4 sm:$0xff]   ;;  %v28427_v49 = vshrl.u32 %v22627_v53, 16 }
 0x2f1   : > { %28423 = vst [vmem:[#allocation50_spill] sm:$0xff] %v24271_v2  ;;  %v24277_v24 = vadd.f32 %v3138_v8, %v23850_v18  ;;  %v3140_v52 = vpop.f32.mrb[127].mxu0  ;;  %v20662_v18 = vld [vmem:[%s28257_s3 + $0xa90] ss:$8 sps:$4 sm:$0xff]   ;;  %v28428_v8 = vshll.u32 %v22627_v53, 16 }
 0x2f2   : > { %28424 = vst [vmem:[#allocation51_spill] sm:$0xff] %v24274_v38  ;;  %5911 = vmatpush1.bf16.msra.mxu1 %v20656_v30  ;;  %v24283_v36 = vadd.f32 %v3140_v52, %v23855_v17  ;;  %v20667_v17 = vld [vmem:[%s28257_s3 + $0xaa4] ss:$8 sps:$4 sm:$0xff]   ;;  %v4229_v30 = vld [vmem:[#allocation2 + $0x138] sm:$0x3f]  ;;  %v5276_v5 = vrot.slane %v28427_v49, 6 }
 0x2f3   : > { %28425 = vst [vmem:[#allocation52_spill] sm:$0xff] %v24277_v24  ;;  %5912 = vmatprep.subr.bf16.mxu1 %v20661_v0  ;;  %v5274_v0 = vrot.slane %v5272_v21, 7  ;;  %v5277_v52 = vrot.slane %v28428_v8, 7  ;;  %v20673_v50 = vld [vmem:[%s28257_s3 + $0xac4] ss:$8 sps:$4 sm:$0xff]   ;;  %v25250_v24 = vld [vmem:[#allocation2 + $0x130] sm:$0xff] }
 0x2f4   : > { %28426 = vst [vmem:[#allocation53_spill] sm:$0xff] %v24283_v36  ;;  %v20671_v53 = vld [vmem:[%s28257_s3 + $0xac0] ss:$8 sps:$4 sm:$0xff]   ;;  %v20679_v21 = vld [vmem:[%s28257_s3 + $0xae4] ss:$8 sps:$4 sm:$0xff]  }
 0x2f5   : > { %5111 = vmatmul.mubr.bf16.gmra.mrb[80].mxu1 %v4376_v60  ;;  %v5275_v60 = vor.u32 %v5274_v0, %v5271_v9  ;;  %v20680_v0 = vld [vmem:[%s28257_s3 + $0xaf0] ss:$8 sps:$4 sm:$0xff]   ;;  %v20685_v49 = vld [vmem:[%s28257_s3 + $0xb04] ss:$8 sps:$4 sm:$0xff]   ;;  %v20683_v8 = vld [vmem:[%s28257_s3 + $0xb00] ss:$8 sps:$4 sm:$0xff]  }
 0x2f6   : > { %5913 = vmatpush1.bf16.msra.mxu1 %v20659_v19  ;;  %5120 = vmatprep.mubr.bf16.mxu1 %v28398_v44  ;;  %v20668_v19 = vld [vmem:[%s28257_s3 + $0xab0] ss:$8 sps:$4 sm:$0xff]   ;;  %v25248_v36 = vld [vmem:[#allocation2 + $0x100] sm:$0xff] }
 0x2f7   : > { %5914 = vmatprep.subr.bf16.mxu1 %v20664_v61  ;;  %v4395_v61 = vrot.slane %v4229_v30, 6  ;;  %v28430_v30 = vshll.u32 %v22677_v42, 16  ;;  %v7215_v38 = vld [vmem:[#allocation2 + $0x158] sm:$0xf] }
 0x2f8   : > { %v7410_v2 = vrot.slane %v7215_v38, 4 }
 0x2f9   : > { %v4396_v12 = vsel %vm4321_vm5, %v4385_v55, %v4395_v61  ;;  %v20682_v55 = vld [vmem:[%s28257_s3 + $0xaf4] ss:$8 sps:$4 sm:$0xff]   ;;  %v5321_v9 = vrot.slane %v28430_v30, 7 }
 0x2fa   : > { %5915 = vmatpush1.bf16.msra.mxu1 %v20662_v18  ;;  %v5278_v18 = vor.u32 %v5277_v52, %v5276_v5  ;;  %v28431_v52 = vshrl.u32 %v22672_v39, 16 }
 0x2fb   : > { %5916 = vmatprep.subr.bf16.mxu1 %v20667_v17  ;;  %v20676_v17 = vld [vmem:[%s28257_s3 + $0xad4] ss:$8 sps:$4 sm:$0xff]  }
 0x2fc   : > { %v5279_v58 = vsel %vm5255_vm2, %v5275_v60, %v5278_v18 }
 0x2fd   : > { %5121 = vmatmul.mubr.bf16.gmra.mrb[84].mxu1 %v4386_v29 }
 0x2fe   : > { %5917 = vmatpush1.bf16.msra.mxu1 %v20665_v4  ;;  %5130 = vmatprep.mubr.bf16.mxu1 %v28398_v44  ;;  %v20677_v4 = vld [vmem:[%s28257_s3 + $0xae0] ss:$8 sps:$4 sm:$0xff]  }
 0x2ff   : > { %5918 = vmatprep.subr.bf16.mxu1 %v20670_v15  ;;  %v28429_v15 = vshrl.u32 %v22677_v42, 16  ;;  %v20688_v42 = vld [vmem:[%s28257_s3 + $0xb14] ss:$8 sps:$4 sm:$0xff]  }
 0x301   : > { %v5320_v29 = vrot.slane %v28429_v15, 6 }
 0x302   : > { %5919 = vmatpush1.bf16.msra.mxu1 %v20668_v19  ;;  %v5316_v19 = vrot.slane %v28431_v52, 6 }
 0x303   : > { %5920 = vmatprep.subr.bf16.mxu1 %v20673_v50  ;;  %v5322_v5 = vor.u32 %v5321_v9, %v5320_v29  ;;  %v28432_v50 = vshll.u32 %v22672_v39, 16  ;;  %v20691_v39 = vld [vmem:[%s28257_s3 + $0xb24] ss:$8 sps:$4 sm:$0xff]   ;;  %v28436_v29 = vshll.u32 %v22736_v41, 16 }
 0x305   : > { %5131 = vmatmul.mubr.bf16.gmra.mrb[88].mxu1 %v4396_v12  ;;  %v5317_v61 = vrot.slane %v28432_v50, 7  ;;  %v5323_v60 = vsel %vm5255_vm2, %v5278_v18, %v5322_v5  ;;  %v28434_v12 = vshll.u32 %v22742_v6, 16  ;;  %v20689_v18 = vld [vmem:[%s28257_s3 + $0xb20] ss:$8 sps:$4 sm:$0xff]   ;;  %v5337_v30 = vrot.slane %v28436_v29, 7 }
 0x306   : > { %5921 = vmatpush1.bf16.msra.mxu1 %v20671_v53  ;;  %5928 = vmatprep.mubr.bf16.mxu1 %v5279_v58  ;;  %v28433_v53 = vshrl.u32 %v22742_v6, 16  ;;  %v20694_v6 = vld [vmem:[%s28257_s3 + $0xb34] ss:$8 sps:$4 sm:$0xff]  }
 0x307   : > { %5922 = vmatprep.subr.bf16.mxu1 %v20676_v17  ;;  %v5341_v58 = vrot.slane %v28434_v12, 7 }
 0x308   : > { %v5340_v17 = vrot.slane %v28433_v53, 6  ;;  %v28440_v53 = vshll.u32 %v22802_v25, 16 }
 0x30a   : > { %5923 = vmatpush1.bf16.msra.mxu1 %v20674_v57  ;;  %v20686_v57 = vld [vmem:[%s28257_s3 + $0xb10] ss:$8 sps:$4 sm:$0xff]  }
 0x30b   : > { %5924 = vmatprep.subr.bf16.mxu1 %v20679_v21  ;;  %v5342_v21 = vor.u32 %v5341_v58, %v5340_v17  ;;  %v5357_v17 = vrot.slane %v28440_v53, 7  ;;  %v28441_v58 = vshrl.u32 %v22874_v3, 16  ;;  %v28447_v53 = vshrl.u32 %v22934_v46, 16 }
 0x30d   : > { %v5343_v9 = vsel %vm5255_vm2, %v5322_v5, %v5342_v21  ;;  %v20695_v5 = vld [vmem:[%s28257_s3 + $0xb40] ss:$8 sps:$4 sm:$0xff]  }
 0x30e   : > { %5925 = vmatpush1.bf16.msra.mxu1 %v20677_v4 }
 0x30f   : > { %5926 = vmatprep.subr.bf16.mxu1 %v20682_v55  ;;  %v28435_v55 = vshrl.u32 %v22736_v41, 16  ;;  %v20697_v41 = vld [vmem:[%s28257_s3 + $0xb44] ss:$8 sps:$4 sm:$0xff]  }
 0x311   : > { %v5336_v15 = vrot.slane %v28435_v55, 6 }
 0x312   : > { %5927 = vmatpush1.bf16.msra.mxu1 %v20680_v0  ;;  %v28437_v0 = vshrl.u32 %v22808_v28, 16 }
 0x313   : > { %5999 = vmatprep.subr.bf16.mxu1 %v20685_v49  ;;  %v5338_v52 = vor.u32 %v5337_v30, %v5336_v15  ;;  %v28443_v15 = vshrl.u32 %v22868_v13, 16  ;;  %v28444_v30 = vshll.u32 %v22868_v13, 16  ;;  %v20709_v13 = vld [vmem:[%s28257_s3 + $0xb84] ss:$8 sps:$4 sm:$0xff]  }
 0x314   : > { %v5360_v49 = vrot.slane %v28437_v0, 6 }
 0x315   : > { %5929 = vmatmul.mubr.bf16.vlgmr.msra.gmra.mrb[64].mxu1 %v23271_v37  ;;  %v5318_v37 = vor.u32 %v5317_v61, %v5316_v19  ;;  %v28439_v61 = vshrl.u32 %v22802_v25, 16  ;;  %v20703_v25 = vld [vmem:[%s28257_s3 + $0xb64] ss:$8 sps:$4 sm:$0xff]   ;;  %v5376_v29 = vrot.slane %v28443_v15, 6 }
 0x316   : > { %5938 = vmatprep.mubr.bf16.mxu1 %v5323_v60  ;;  %6000 = vmatpush1.bf16.msra.mxu1 %v20683_v8  ;;  %v28438_v8 = vshll.u32 %v22808_v28, 16  ;;  %v20700_v28 = vld [vmem:[%s28257_s3 + $0xb54] ss:$8 sps:$4 sm:$0xff]  }
 0x317   : > { %6001 = vmatprep.subr.bf16.mxu1 %v20688_v42  ;;  %v5319_v4 = vsel %vm5255_vm2, %v23253_v62, %v5318_v37  ;;  %v20692_v62 = vld [vmem:[%s28257_s3 + $0xb30] ss:$8 sps:$4 sm:$0xff]   ;;  %v5339_v50 = vsel %vm5255_vm2, %v5318_v37, %v5338_v52  ;;  %v5356_v60 = vrot.slane %v28439_v61, 6  ;;  %v20712_v61 = vld [vmem:[%s28257_s3 + $0xb94] ss:$8 sps:$4 sm:$0xff]  }
 0x318   : > { %v5361_v42 = vrot.slane %v28438_v8, 7  ;;  %v20698_v37 = vld [vmem:[%s28257_s3 + $0xb50] ss:$8 sps:$4 sm:$0xff]  }
 0x31a   : > { %6002 = vmatpush1.bf16.msra.mxu1 %v20686_v57  ;;  %v5362_v19 = vor.u32 %v5361_v42, %v5360_v49  ;;  %v5380_v57 = vrot.slane %v28441_v58, 6  ;;  %v28445_v49 = vshrl.u32 %v22940_v32, 16  ;;  %v28446_v42 = vshll.u32 %v22940_v32, 16 }
 0x31b   : > { %6003 = vmatprep.subr.bf16.mxu1 %v20691_v39  ;;  %v28442_v39 = vshll.u32 %v22874_v3, 16  ;;  %v20706_v3 = vld [vmem:[%s28257_s3 + $0xb74] ss:$8 sps:$4 sm:$0xff]  }
 0x31c   : > { %v5363_v12 = vsel %vm5255_vm2, %v5342_v21, %v5362_v19  ;;  %v20701_v21 = vld [vmem:[%s28257_s3 + $0xb60] ss:$8 sps:$4 sm:$0xff]   ;;  %v5400_v8 = vrot.slane %v28445_v49, 6 }
 0x31d   : > { %5939 = vmatmul.mubr.bf16.gmra.mrb[68].mxu1 %v5319_v4 }
 0x31e   : > { %5948 = vmatprep.mubr.bf16.mxu1 %v5343_v9  ;;  %6004 = vmatpush1.bf16.msra.mxu1 %v20689_v18  ;;  %v5381_v18 = vrot.slane %v28442_v39, 7  ;;  %v5377_v9 = vrot.slane %v28444_v30, 7  ;;  %v20713_v30 = vld [vmem:[%s28257_s3 + $0xba0] ss:$8 sps:$4 sm:$0xff]  }
 0x31f   : > { %6005 = vmatprep.subr.bf16.mxu1 %v20694_v6  ;;  %v5358_v6 = vor.u32 %v5357_v17, %v5356_v60  ;;  %v5396_v17 = vrot.slane %v28447_v53, 6 }
 0x320   : > { %v5382_v4 = vor.u32 %v5381_v18, %v5380_v57 }
 0x321   : > { %v5359_v55 = vsel %vm5255_vm2, %v5338_v52, %v5358_v6  ;;  %v24430_v52 = vld [vmem:[#allocation2 + $0x120] sm:$0x7f] }
 0x322   : > { %6006 = vmatpush1.bf16.msra.mxu1 %v20692_v62  ;;  %v5383_v0 = vsel %vm5255_vm2, %v5362_v19, %v5382_v4  ;;  %v5401_v62 = vrot.slane %v28446_v42, 7  ;;  %v5378_v19 = vor.u32 %v5377_v9, %v5376_v29  ;;  %v5429_v32 = vshll.u32 %v24430_v52, 16  ;;  %v20718_v9 = vld [vmem:[%s28257_s3 + $0xbb4] ss:$8 sps:$4 sm:$0xff]  }
 0x323   : > { %6007 = vmatprep.subr.bf16.mxu1 %v20697_v41  ;;  %v20704_v41 = vld [vmem:[%s28257_s3 + $0xb70] ss:$8 sps:$4 sm:$0xff]  }
 0x324   : > { %v5379_v60 = vsel %vm5255_vm2, %v5358_v6, %v5378_v19  ;;  %v5431_v18 = vrot.slane %v5429_v32, 7  ;;  %v20715_v6 = vld [vmem:[%s28257_s3 + $0xba4] ss:$8 sps:$4 sm:$0xff]   ;;  %v28450_v32 = vshll.u32 %v22629_v54, 16 }
 0x325   : > { %5949 = vmatmul.mubr.bf16.gmra.mrb[72].mxu1 %v5339_v50  ;;  %v20707_v50 = vld [vmem:[%s28257_s3 + $0xb80] ss:$8 sps:$4 sm:$0xff]  }
 0x326   : > { %5958 = vmatprep.mubr.bf16.mxu1 %v5363_v12  ;;  %6008 = vmatpush1.bf16.msra.mxu1 %v20695_v5  ;;  %v5402_v5 = vor.u32 %v5401_v62, %v5400_v8  ;;  %v28448_v12 = vshll.u32 %v22934_v46, 16 }
 0x327   : > { %6009 = vmatprep.subr.bf16.mxu1 %v20700_v28  ;;  %v5426_v28 = vshrl.u32 %v24430_v52, 16 }
 0x328   : > { %v5397_v58 = vrot.slane %v28448_v12, 7  ;;  %v5403_v57 = vsel %vm5255_vm2, %v5382_v4, %v5402_v5 }
 0x329   : > { %v5428_v39 = vrot.slane %v5426_v28, 6 }
 0x32a   : > { %6010 = vmatpush1.bf16.msra.mxu1 %v20698_v37  ;;  %v24449_v37 = vld [vmem:[#allocation2 + $0x118] sm:$0x7f]  ;;  %v5398_v46 = vor.u32 %v5397_v58, %v5396_v17 }
 0x32b   : > { %6011 = vmatprep.subr.bf16.mxu1 %v20703_v25  ;;  %v20710_v25 = vld [vmem:[%s28257_s3 + $0xb90] ss:$8 sps:$4 sm:$0xff]   ;;  %v5420_v4 = vshll.u32 %v24449_v37, 16  ;;  %v5432_v15 = vor.u32 %v5431_v18, %v5428_v39  ;;  %v20724_v17 = vld [vmem:[%s28257_s3 + $0xbd4] ss:$8 sps:$4 sm:$0xff]  }
 0x32c   : > { %v20727_v39 = vld [vmem:[%s28257_s3 + $0xbe4] ss:$8 sps:$4 sm:$0xff]   ;;  %v20725_v18 = vld [vmem:[%s28257_s3 + $0xbe0] ss:$8 sps:$4 sm:$0xff]  }
 0x32d   : > { %5959 = vmatmul.mubr.bf16.gmra.mrb[76].mxu1 %v5359_v55  ;;  %v5422_v8 = vrot.slane %v5420_v4, 7  ;;  %v5433_v62 = vsel %vm5255_vm2, %v5402_v5, %v5432_v15  ;;  %v20733_v15 = vld [vmem:[%s28257_s3 + $0xc04] ss:$8 sps:$4 sm:$0xff]  }
 0x32e   : > { %5968 = vmatprep.mubr.bf16.mxu1 %v5383_v0  ;;  %6012 = vmatpush1.bf16.msra.mxu1 %v20701_v21  ;;  %v5417_v21 = vshrl.u32 %v24449_v37, 16  ;;  %v5399_v0 = vsel %vm5255_vm2, %v5378_v19, %v5398_v46  ;;  %v20721_v19 = vld [vmem:[%s28257_s3 + $0xbc4] ss:$8 sps:$4 sm:$0xff]  }
 0x32f   : > { %6013 = vmatprep.subr.bf16.mxu1 %v20706_v3  ;;  %v21882_v3 = vld [vmem:[#allocation2 + $0x18] sm:$0xc0] }
 0x330   : > { %v5293_v55 = vshrl.u32 %v21882_v3, 16  ;;  %v5296_v29 = vshll.u32 %v21882_v3, 16  ;;  %v5419_v49 = vrot.slane %v5417_v21, 6 }
 0x332   : > { %6014 = vmatpush1.bf16.msra.mxu1 %v20704_v41  ;;  %v5295_v42 = vrot.slane %v5293_v55, 6  ;;  %v5298_v41 = vrot.slane %v5296_v29, 7  ;;  %v20728_v55 = vld [vmem:[%s28257_s3 + $0xbf0] ss:$8 sps:$4 sm:$0xff]  }
 0x333   : > { %6015 = vmatprep.subr.bf16.mxu1 %v20709_v13  ;;  %v28449_v13 = vshrl.u32 %v22629_v54, 16  ;;  %v20719_v54 = vld [vmem:[%s28257_s3 + $0xbc0] ss:$8 sps:$4 sm:$0xff]  }
 0x334   : > { %v5299_v5 = vor.u32 %v5298_v41, %v5295_v42  ;;  %v28457_v41 = vld [vmem:[#allocation30_spill] sm:$0xff] }
 0x335   : > { %5969 = vmatmul.mubr.bf16.gmra.mrb[80].mxu1 %v5379_v60  ;;  %v5300_v28 = vrot.slane %v28449_v13, 6  ;;  %v5423_v60 = vor.u32 %v5422_v8, %v5419_v49 }
 0x336   : > { %5978 = vmatprep.mubr.bf16.mxu1 %v5403_v57  ;;  %6016 = vmatpush1.bf16.msra.mxu1 %v20707_v50  ;;  %v5301_v50 = vrot.slane %v28450_v32, 7  ;;  %v20722_v57 = vld [vmem:[%s28257_s3 + $0xbd0] ss:$8 sps:$4 sm:$0xff]  }
 0x337   : > { %6017 = vmatprep.subr.bf16.mxu1 %v20712_v61  ;;  %v20716_v61 = vld [vmem:[%s28257_s3 + $0xbb0] ss:$8 sps:$4 sm:$0xff]   ;;  %v5424_v12 = vsel %vm5255_vm2, %v5398_v46, %v5423_v60 }
 0x338   : > { %v5302_v53 = vor.u32 %v5301_v50, %v5300_v28  ;;  %v28458_v28 = vld [vmem:[#allocation21_spill] sm:$0xff] }
 0x339   : > { %v28459_v32 = vshrl.u32 %v28458_v28, 16  ;;  %v20734_v60 = vld [vmem:[%s28257_s3 + $0xc10] ss:$8 sps:$4 sm:$0xff]  }
 0x33a   : > { %6018 = vmatpush1.bf16.msra.mxu1 %v20710_v25  ;;  %v5303_v58 = vsel %vm5255_vm2, %v5299_v5, %v5302_v53  ;;  %v20730_v25 = vld [vmem:[%s28257_s3 + $0xbf4] ss:$8 sps:$4 sm:$0xff]   ;;  %v20739_v5 = vld [vmem:[%s28257_s3 + $0xc24] ss:$8 sps:$4 sm:$0xff]  }
 0x33b   : > { %6019 = vmatprep.subr.bf16.mxu1 %v20715_v6  ;;  %v28451_v6 = vld [vmem:[#allocation19_spill] sm:$0xff]  ;;  %v5348_v50 = vrot.slane %v28459_v32, 6 }
 0x33c   : > { %v28452_v46 = vshrl.u32 %v28451_v6, 16  ;;  %v28453_v4 = vshll.u32 %v28451_v6, 16 }
 0x33d   : > { %5979 = vmatmul.mubr.bf16.gmra.mrb[84].mxu1 %v5399_v0  ;;  %v28454_v0 = vld [vmem:[#allocation18_spill] sm:$0xff] }
 0x33e   : > { %5988 = vmatprep.mubr.bf16.mxu1 %v5433_v62  ;;  %6020 = vmatpush1.bf16.msra.mxu1 %v20713_v30  ;;  %v5328_v21 = vrot.slane %v28452_v46, 6  ;;  %v5329_v3 = vrot.slane %v28453_v4, 7  ;;  %v20731_v30 = vld [vmem:[%s28257_s3 + $0xc00] ss:$8 sps:$4 sm:$0xff]   ;;  %v28455_v49 = vshrl.u32 %v28454_v0, 16  ;;  %v28456_v42 = vshll.u32 %v28454_v0, 16 }
 0x33f   : > { %6021 = vmatprep.subr.bf16.mxu1 %v20718_v9  ;;  %v20736_v9 = vld [vmem:[%s28257_s3 + $0xc14] ss:$8 sps:$4 sm:$0xff]   ;;  %v28465_v4 = vld [vmem:[#allocation23_spill] sm:$0xff] }
 0x340   : > { %v5330_v29 = vor.u32 %v5329_v3, %v5328_v21  ;;  %v5324_v8 = vrot.slane %v28455_v49, 6  ;;  %v5325_v62 = vrot.slane %v28456_v42, 7  ;;  %v28466_v3 = vshrl.u32 %v28465_v4, 16  ;;  %v20745_v0 = vld [vmem:[%s28257_s3 + $0xc44] ss:$8 sps:$4 sm:$0xff]  }
 0x341   : > { %v20748_v42 = vld [vmem:[%s28257_s3 + $0xc54] ss:$8 sps:$4 sm:$0xff]  }
 0x342   : > { %6022 = vmatpush1.bf16.msra.mxu1 %v20716_v61  ;;  %v5331_v13 = vsel %vm5255_vm2, %v5302_v53, %v5330_v29  ;;  %v28460_v61 = vshll.u32 %v28458_v28, 16  ;;  %v20737_v53 = vld [vmem:[%s28257_s3 + $0xc20] ss:$8 sps:$4 sm:$0xff]  }
 0x343   : > { %6023 = vmatprep.subr.bf16.mxu1 %v20721_v19 }
 0x344   : > { %v5349_v19 = vrot.slane %v28460_v61, 7 }
 0x345   : > { %5989 = vmatmul.mubr.bf16.gmra.mrb[88].mxu1 %v5424_v12  ;;  %v20742_v12 = vld [vmem:[%s28257_s3 + $0xc34] ss:$8 sps:$4 sm:$0xff]  }
 0x346   : > { %6024 = vmatpush1.bf16.msra.mxu1 %v20719_v54  ;;  %6031 = vmatprep.mubr.bf16.mxu1 %v5303_v58  ;;  %v5326_v54 = vor.u32 %v5325_v62, %v5324_v8  ;;  %v28461_v58 = vld [vmem:[#allocation29_spill] sm:$0xff] }
 0x347   : > { %6025 = vmatprep.subr.bf16.mxu1 %v20724_v17  ;;  %v5350_v17 = vor.u32 %v5349_v19, %v5348_v50  ;;  %v28471_v19 = vld [vmem:[#allocation25_spill] sm:$0xff] }
 0x349   : > { %v5351_v21 = vsel %vm5255_vm2, %v5330_v29, %v5350_v17  ;;  %v20743_v29 = vld [vmem:[%s28257_s3 + $0xc40] ss:$8 sps:$4 sm:$0xff]  }
 0x34a   : > { %6026 = vmatpush1.bf16.msra.mxu1 %v20722_v57  ;;  %v5327_v57 = vsel %vm5255_vm2, %v28461_v58, %v5326_v54  ;;  %v20751_v58 = vld [vmem:[%s28257_s3 + $0xc64] ss:$8 sps:$4 sm:$0xff]  }
 0x34b   : > { %6027 = vmatprep.subr.bf16.mxu1 %v20727_v39  ;;  %v28462_v39 = vld [vmem:[#allocation20_spill] sm:$0xff] }
 0x34c   : > { %v28464_v6 = vshll.u32 %v28462_v39, 16 }
 0x34e   : > { %6028 = vmatpush1.bf16.msra.mxu1 %v20725_v18  ;;  %v28463_v18 = vshrl.u32 %v28462_v39, 16  ;;  %v5345_v46 = vrot.slane %v28464_v6, 7  ;;  %v28474_v6 = vld [vmem:[#allocation24_spill] sm:$0xff] }
 0x34f   : > { %6029 = vmatprep.subr.bf16.mxu1 %v20730_v25 }
 0x350   : > { %v5344_v25 = vrot.slane %v28463_v18, 6  ;;  %v20754_v18 = vld [vmem:[%s28257_s3 + $0xc74] ss:$8 sps:$4 sm:$0xff]  }
 0x352   : > { %6030 = vmatpush1.bf16.msra.mxu1 %v20728_v55  ;;  %v5368_v55 = vrot.slane %v28466_v3, 6  ;;  %v5346_v49 = vor.u32 %v5345_v46, %v5344_v25  ;;  %v28475_v46 = vshrl.u32 %v28474_v6, 16 }
 0x353   : > { %6102 = vmatprep.subr.bf16.mxu1 %v20733_v15  ;;  %v28467_v15 = vshll.u32 %v28465_v4, 16  ;;  %v28476_v4 = vshll.u32 %v28474_v6, 16 }
 0x354   : > { %v5347_v62 = vsel %vm5255_vm2, %v5326_v54, %v5346_v49  ;;  %v20746_v54 = vld [vmem:[%s28257_s3 + $0xc50] ss:$8 sps:$4 sm:$0xff]  }
 0x355   : > { %6032 = vmatmul.mubr.bf16.vlgmr.msra.gmra.mrb[64].mxu1 %v28457_v41  ;;  %v28468_v41 = vld [vmem:[#allocation22_spill] sm:$0xff]  ;;  %v5385_v3 = vrot.slane %v28476_v4, 7 }
 0x356   : > { %6041 = vmatprep.mubr.bf16.mxu1 %v5331_v13  ;;  %6103 = vmatpush1.bf16.msra.mxu1 %v20731_v30  ;;  %v5369_v30 = vrot.slane %v28467_v15, 7  ;;  %v28469_v13 = vshrl.u32 %v28468_v41, 16  ;;  %v28470_v32 = vshll.u32 %v28468_v41, 16  ;;  %v28477_v15 = vld [vmem:[#allocation27_spill] sm:$0xff] }
 0x357   : > { %6104 = vmatprep.subr.bf16.mxu1 %v20736_v9  ;;  %v20740_v9 = vld [vmem:[%s28257_s3 + $0xc30] ss:$8 sps:$4 sm:$0xff]  }
 0x358   : > { %v5370_v8 = vor.u32 %v5369_v30, %v5368_v55  ;;  %v5364_v28 = vrot.slane %v28469_v13, 6  ;;  %v5365_v50 = vrot.slane %v28470_v32, 7  ;;  %v28478_v30 = vshrl.u32 %v28477_v15, 16 }
 0x35a   : > { %6105 = vmatpush1.bf16.msra.mxu1 %v20734_v60  ;;  %v5371_v61 = vsel %vm5255_vm2, %v5350_v17, %v5370_v8  ;;  %v28472_v60 = vshrl.u32 %v28471_v19, 16  ;;  %v20749_v17 = vld [vmem:[%s28257_s3 + $0xc60] ss:$8 sps:$4 sm:$0xff]  }
 0x35b   : > { %6106 = vmatprep.subr.bf16.mxu1 %v20739_v5 }
 0x35c   : > { %v5388_v5 = vrot.slane %v28472_v60, 6 }
 0x35d   : > { %6042 = vmatmul.mubr.bf16.gmra.mrb[68].mxu1 %v5327_v57  ;;  %v5366_v57 = vor.u32 %v5365_v50, %v5364_v28  ;;  %v28480_v50 = vld [vmem:[#allocation26_spill] sm:$0xff] }
 0x35e   : > { %6051 = vmatprep.mubr.bf16.mxu1 %v5351_v21  ;;  %6107 = vmatpush1.bf16.msra.mxu1 %v20737_v53  ;;  %v28473_v53 = vshll.u32 %v28471_v19, 16  ;;  %v5384_v21 = vrot.slane %v28475_v46, 6  ;;  %v28482_v60 = vshll.u32 %v28480_v50, 16 }
 0x35f   : > { %6108 = vmatprep.subr.bf16.mxu1 %v20742_v12  ;;  %v5367_v25 = vsel %vm5255_vm2, %v5346_v49, %v5366_v57  ;;  %v20752_v49 = vld [vmem:[%s28257_s3 + $0xc70] ss:$8 sps:$4 sm:$0xff]  }
 0x360   : > { %v5389_v12 = vrot.slane %v28473_v53, 7 }
 0x362   : > { %6109 = vmatpush1.bf16.msra.mxu1 %v20740_v9  ;;  %v5390_v39 = vor.u32 %v5389_v12, %v5388_v5  ;;  %v5408_v9 = vrot.slane %v28478_v30, 6  ;;  %v5405_v5 = vrot.slane %v28482_v60, 7  ;;  %v28483_v30 = vld [vmem:[#allocation31_spill] sm:$0xff]  ;;  %v20778_v60 = vld [vmem:[%s28257_s3 + $0xcf4] ss:$8 sps:$4 sm:$0xff]  }
 0x363   : > { %6110 = vmatprep.subr.bf16.mxu1 %v20745_v0  ;;  %v28479_v0 = vshll.u32 %v28477_v15, 16  ;;  %v20760_v15 = vld [vmem:[%s28257_s3 + $0xc94] ss:$8 sps:$4 sm:$0xff]  }
 0x364   : > { %v5391_v55 = vsel %vm5255_vm2, %v5370_v8, %v5390_v39  ;;  %v5386_v8 = vor.u32 %v5385_v3, %v5384_v21 }
 0x365   : > { %6052 = vmatmul.mubr.bf16.gmra.mrb[72].mxu1 %v5347_v62  ;;  %v20757_v62 = vld [vmem:[%s28257_s3 + $0xc84] ss:$8 sps:$4 sm:$0xff]  }
 0x366   : > { %6061 = vmatprep.mubr.bf16.mxu1 %v5371_v61  ;;  %6111 = vmatpush1.bf16.msra.mxu1 %v20743_v29  ;;  %v5409_v29 = vrot.slane %v28479_v0, 7  ;;  %v5387_v32 = vsel %vm5255_vm2, %v5366_v57, %v5386_v8  ;;  %v28481_v61 = vshrl.u32 %v28480_v50, 16  ;;  %v20763_v0 = vld [vmem:[%s28257_s3 + $0xca4] ss:$8 sps:$4 sm:$0xff]   ;;  %v20770_v50 = vld [vmem:[%s28257_s3 + $0xcd0] ss:$8 sps:$4 sm:$0xff]  }
 0x367   : > { %6112 = vmatprep.subr.bf16.mxu1 %v20748_v42  ;;  %v24590_v42 = vld [vmem:[#allocation2 + $0x130] sm:$0x7f] }
 0x368   : > { %v5410_v41 = vor.u32 %v5409_v29, %v5408_v9  ;;  %v5444_v13 = vshrl.u32 %v24590_v42, 16  ;;  %v5447_v28 = vshll.u32 %v24590_v42, 16  ;;  %v5404_v19 = vrot.slane %v28481_v61, 6  ;;  %v20758_v9 = vld [vmem:[%s28257_s3 + $0xc90] ss:$8 sps:$4 sm:$0xff]  }
 0x369   : > { %v20761_v29 = vld [vmem:[%s28257_s3 + $0xca0] ss:$8 sps:$4 sm:$0xff]   ;;  %v20775_v61 = vld [vmem:[%s28257_s3 + $0xce4] ss:$8 sps:$4 sm:$0xff]  }
 0x36a   : > { %6113 = vmatpush1.bf16.msra.mxu1 %v20746_v54  ;;  %v5411_v53 = vsel %vm5255_vm2, %v5390_v39, %v5410_v41  ;;  %v5446_v12 = vrot.slane %v5444_v13, 6  ;;  %v5449_v54 = vrot.slane %v5447_v28, 7  ;;  %v20767_v13 = vld [vmem:[%s28257_s3 + $0xcc0] ss:$8 sps:$4 sm:$0xff]   ;;  %v20772_v28 = vld [vmem:[%s28257_s3 + $0xcd4] ss:$8 sps:$4 sm:$0xff]  }
 0x36b   : > { %6114 = vmatprep.subr.bf16.mxu1 %v20751_v58  ;;  %v24606_v58 = vld [vmem:[#allocation2 + $0x128] sm:$0x7f] }
 0x36c   : > { %v5450_v57 = vor.u32 %v5449_v54, %v5446_v12  ;;  %v20781_v12 = vld [vmem:[%s28257_s3 + $0xd04] ss:$8 sps:$4 sm:$0xff]   ;;  %v20779_v54 = vld [vmem:[%s28257_s3 + $0xd00] ss:$8 sps:$4 sm:$0xff]  }
 0x36d   : > { %6062 = vmatmul.mubr.bf16.gmra.mrb[76].mxu1 %v5367_v25  ;;  %v5438_v25 = vshll.u32 %v24606_v58, 16 }
 0x36e   : > { %6071 = vmatprep.mubr.bf16.mxu1 %v5391_v55  ;;  %6115 = vmatpush1.bf16.msra.mxu1 %v20749_v17  ;;  %v5406_v17 = vor.u32 %v5405_v5, %v5404_v19  ;;  %v5451_v4 = vsel %vm5255_vm2, %v5410_v41, %v5450_v57  ;;  %v20755_v55 = vld [vmem:[%s28257_s3 + $0xc80] ss:$8 sps:$4 sm:$0xff]   ;;  %v20769_v41 = vld [vmem:[%s28257_s3 + $0xcc4] ss:$8 sps:$4 sm:$0xff]  }
 0x36f   : > { %6116 = vmatprep.subr.bf16.mxu1 %v20754_v18  ;;  %v5435_v18 = vshrl.u32 %v24606_v58, 16  ;;  %v5440_v21 = vrot.slane %v5438_v25, 7  ;;  %v20773_v19 = vld [vmem:[%s28257_s3 + $0xce0] ss:$8 sps:$4 sm:$0xff]   ;;  %v20782_v25 = vld [vmem:[%s28257_s3 + $0xd10] ss:$8 sps:$4 sm:$0xff]  }
 0x370   : > { %v5407_v6 = vsel %vm5255_vm2, %v5386_v8, %v5406_v17  ;;  %v20764_v8 = vld [vmem:[%s28257_s3 + $0xcb0] ss:$8 sps:$4 sm:$0xff]   ;;  %v20787_v57 = vld [vmem:[%s28257_s3 + $0xd24] ss:$8 sps:$4 sm:$0xff]  }
 0x371   : > { %v5437_v46 = vrot.slane %v5435_v18, 6  ;;  %v28486_v5 = vld [vmem:[#allocation35_spill] sm:$0xff]  ;;  %v28487_v18 = vld [vmem:[#allocation36_spill] sm:$0xff] }
 0x372   : > { %6117 = vmatpush1.bf16.msra.mxu1 %v20752_v49  ;;  %v20766_v49 = vld [vmem:[%s28257_s3 + $0xcb4] ss:$8 sps:$4 sm:$0xff]  }
 0x373   : > { %6840 = vmatprep.subr.bf16.mxu1 %v20757_v62  ;;  %v5441_v39 = vor.u32 %v5440_v21, %v5437_v46  ;;  %v28484_v62 = vld [vmem:[#allocation32_spill] sm:$0xff] }
 0x375   : > { %6072 = vmatmul.mubr.bf16.gmra.mrb[80].mxu1 %v5387_v32  ;;  %v5442_v3 = vsel %vm5255_vm2, %v5406_v17, %v5441_v39  ;;  %v28485_v32 = vld [vmem:[#allocation33_spill] sm:$0xff] }
 0x376   : > { %6081 = vmatprep.mubr.bf16.mxu1 %v5411_v53  ;;  %v20776_v53 = vld [vmem:[%s28257_s3 + $0xcf0] ss:$8 sps:$4 sm:$0xff]   ;;  %v20784_v17 = vld [vmem:[%s28257_s3 + $0xd14] ss:$8 sps:$4 sm:$0xff]  }
 0x377   : > { %v20790_v39 = vld [vmem:[%s28257_s3 + $0xd34] ss:$8 sps:$4 sm:$0xff]  }
 0x37d   : > { %6082 = vmatmul.mubr.bf16.gmra.mrb[84].mxu1 %v5407_v6  ;;  %v21883_v6 = vld [vmem:[#allocation2 + $0x138] sm:$0x7f] }
 0x37e   : > { %6091 = vmatprep.mubr.bf16.mxu1 %v5451_v4  ;;  %v5453_v46 = vshrl.u32 %v21883_v6, 16  ;;  %v5456_v21 = vshll.u32 %v21883_v6, 16  ;;  %v20785_v4 = vld [vmem:[%s28257_s3 + $0xd20] ss:$8 sps:$4 sm:$0xff]  }
 0x385   : > { %6092 = vmatmul.mubr.bf16.gmra.mrb[88].mxu1 %v5442_v3  ;;  %v5455_v3 = vrot.slane %v5453_v46, 6  ;;  %v20803_v46 = vld [vmem:[%s28257_s3 + $0xd80] ss:$8 sps:$4 sm:$0xff]  }
 0x386   : > { %6134 = vmatprep.mubr.bf16.mxu1 %v28398_v44 }
 0x38d   : > { %6135 = vmatmul.mubr.bf16.vlgmr.msra.gmra.mrb[64].mxu1 %v28483_v30  ;;  %v20788_v30 = vld [vmem:[%s28257_s3 + $0xd30] ss:$8 sps:$4 sm:$0xff]  }
 0x38e   : > { %6841 = vmatpush1.bf16.msra.mxu1 %v20755_v55  ;;  %6144 = vmatprep.mubr.bf16.mxu1 %v28398_v44  ;;  %v5458_v55 = vrot.slane %v5456_v21, 7  ;;  %v20808_v21 = vld [vmem:[%s28257_s3 + $0xd94] ss:$8 sps:$4 sm:$0xff]  }
 0x38f   : > { %6842 = vmatprep.subr.bf16.mxu1 %v20760_v15  ;;  %v28488_v15 = vld [vmem:[#allocation37_spill] sm:$0xff] }
 0x392   : > { %6843 = vmatpush1.bf16.msra.mxu1 %v20758_v9  ;;  %v6234_v9 = vld [vmem:[#allocation2 + $0x8] sm:$0x80] }
 0x393   : > { %6844 = vmatprep.subr.bf16.mxu1 %v20763_v0  ;;  %v20793_v0 = vld [vmem:[%s28257_s3 + $0xd44] ss:$8 sps:$4 sm:$0xff]  }
 0x395   : > { %6145 = vmatmul.mubr.bf16.gmra.mrb[68].mxu1 %v28484_v62  ;;  %v21884_v62 = vld [vmem:[#allocation2 + $0x30] sm:$0xff] }
 0x396   : > { %6845 = vmatpush1.bf16.msra.mxu1 %v20761_v29  ;;  %6154 = vmatprep.mubr.bf16.mxu1 %v28398_v44  ;;  %v5459_v29 = vor.u32 %v5458_v55, %v5455_v3  ;;  %v20806_v3 = vld [vmem:[%s28257_s3 + $0xd90] ss:$8 sps:$4 sm:$0xff]   ;;  %v20811_v55 = vld [vmem:[%s28257_s3 + $0xda4] ss:$8 sps:$4 sm:$0xff]  }
 0x397   : > { %6846 = vmatprep.subr.bf16.mxu1 %v20766_v49  ;;  %v6333_v49 = vrot.slane %v6234_v9, 7  ;;  %v21888_v9 = vld [vmem:[#allocation2 + $0x80] sm:$0xff] }
 0x39a   : > { %6847 = vmatpush1.bf16.msra.mxu1 %v20764_v8  ;;  %v6334_v8 = vrot.slane %v21884_v62, 7 }
 0x39b   : > { %6848 = vmatprep.subr.bf16.mxu1 %v20769_v41  ;;  %v20791_v41 = vld [vmem:[%s28257_s3 + $0xd40] ss:$8 sps:$4 sm:$0xff]  }
 0x39d   : > { %6155 = vmatmul.mubr.bf16.gmra.mrb[72].mxu1 %v28485_v32 }
 0x39e   : > { %6849 = vmatpush1.bf16.msra.mxu1 %v20767_v13  ;;  %6164 = vmatprep.mubr.bf16.mxu1 %v28398_v44  ;;  %v20796_v13 = vld [vmem:[%s28257_s3 + $0xd54] ss:$8 sps:$4 sm:$0xff]  }
 0x39f   : > { %6850 = vmatprep.subr.bf16.mxu1 %v20772_v28  ;;  %v28489_v28 = vld [vmem:[#allocation34_spill] sm:$0xff] }
 0x3a0   : > { %v5460_v32 = vsel %vm5255_vm2, %v28489_v28, %v5459_v29  ;;  %v20809_v29 = vld [vmem:[%s28257_s3 + $0xda0] ss:$8 sps:$4 sm:$0xff]   ;;  %v21889_v28 = vld [vmem:[#allocation2 + $0x78] sm:$0xff] }
 0x3a2   : > { %6851 = vmatpush1.bf16.msra.mxu1 %v20770_v50  ;;  %v6335_v50 = vsel %vm6329_vm4, %v6333_v49, %v6334_v8  ;;  %v20814_v49 = vld [vmem:[%s28257_s3 + $0xdb4] ss:$8 sps:$4 sm:$0xff]  }
 0x3a3   : > { %6852 = vmatprep.subr.bf16.mxu1 %v20775_v61  ;;  %v20794_v61 = vld [vmem:[%s28257_s3 + $0xd50] ss:$8 sps:$4 sm:$0xff]  }
 0x3a5   : > { %6165 = vmatmul.mubr.bf16.gmra.mrb[76].mxu1 %v28486_v5  ;;  %v20802_v5 = vld [vmem:[%s28257_s3 + $0xd74] ss:$8 sps:$4 sm:$0xff]  }
 0x3a6   : > { %6853 = vmatpush1.bf16.msra.mxu1 %v20773_v19  ;;  %6174 = vmatprep.mubr.bf16.mxu1 %v28398_v44  ;;  %v20799_v19 = vld [vmem:[%s28257_s3 + $0xd64] ss:$8 sps:$4 sm:$0xff]  }
 0x3a7   : > { %6854 = vmatprep.subr.bf16.mxu1 %v20778_v60  ;;  %v20797_v60 = vld [vmem:[%s28257_s3 + $0xd60] ss:$8 sps:$4 sm:$0xff]  }
 0x3aa   : > { %6855 = vmatpush1.bf16.msra.mxu1 %v20776_v53  ;;  %v6233_v53 = vld [vmem:[#allocation2] sm:$0x80] }
 0x3ab   : > { %6856 = vmatprep.subr.bf16.mxu1 %v20781_v12  ;;  %v20800_v12 = vld [vmem:[%s28257_s3 + $0xd70] ss:$8 sps:$4 sm:$0xff]  }
 0x3ad   : > { %6175 = vmatmul.mubr.bf16.gmra.mrb[80].mxu1 %v28487_v18  ;;  %v21885_v18 = vld [vmem:[#allocation2 + $0x28] sm:$0xff] }
 0x3ae   : > { %6857 = vmatpush1.bf16.msra.mxu1 %v20779_v54  ;;  %6184 = vmatprep.mubr.bf16.mxu1 %v28398_v44  ;;  %v20805_v54 = vld [vmem:[%s28257_s3 + $0xd84] ss:$8 sps:$4 sm:$0xff]  }
 0x3af   : > { %6858 = vmatprep.subr.bf16.mxu1 %v20784_v17  ;;  %v6330_v17 = vrot.slane %v6233_v53, 7 }
 0x3b2   : > { %6859 = vmatpush1.bf16.msra.mxu1 %v20782_v25  ;;  %v6331_v25 = vrot.slane %v21885_v18, 7 }
 0x3b3   : > { %6860 = vmatprep.subr.bf16.mxu1 %v20787_v57  ;;  %v21886_v57 = vld [vmem:[#allocation2 + $0x58] sm:$0xff] }
 0x3b4   : > { %v6347_v6 = vrot.slane %v21886_v57, 7 }
 0x3b5   : > { %6185 = vmatmul.mubr.bf16.gmra.mrb[84].mxu1 %v28488_v15  ;;  %v21887_v15 = vld [vmem:[#allocation2 + $0x50] sm:$0xff] }
 0x3b6   : > { %6861 = vmatpush1.bf16.msra.mxu1 %v20785_v4  ;;  %6194 = vmatprep.mubr.bf16.mxu1 %v28398_v44  ;;  %v6332_v4 = vsel %vm6329_vm4, %v6330_v17, %v6331_v25  ;;  %v21891_v17 = vld [vmem:[#allocation2 + $0xa0] sm:$0xff] }
 0x3b7   : > { %6862 = vmatprep.subr.bf16.mxu1 %v20790_v39  ;;  %v6348_v39 = vsel %vm6329_vm4, %v6334_v8, %v6347_v6  ;;  %v6365_v18 = vrot.slane %v21891_v17, 7  ;;  %v21896_v17 = vld [vmem:[#allocation2 + $0x40] sm:$0xff] }
 0x3ba   : > { %6863 = vmatpush1.bf16.msra.mxu1 %v20788_v30  ;;  %v6345_v30 = vrot.slane %v21887_v15, 7 }
 0x3bb   : > { %6864 = vmatprep.subr.bf16.mxu1 %v20793_v0  ;;  %v6357_v0 = vrot.slane %v21888_v9, 7 }
 0x3bc   : > { %v6346_v62 = vsel %vm6329_vm4, %v6331_v25, %v6345_v30  ;;  %v21892_v25 = vld [vmem:[#allocation2 + $0xd0] sm:$0xff] }
 0x3bd   : > { %6195 = vmatmul.mubr.bf16.gmra.mrb[88].mxu1 %v5460_v32  ;;  %v6358_v8 = vsel %vm6329_vm4, %v6347_v6, %v6357_v0  ;;  %v6355_v32 = vrot.slane %v21889_v28, 7  ;;  %v6377_v57 = vrot.slane %v21892_v25, 7  ;;  %v20821_v6 = vld [vmem:[%s28257_s3 + $0xde0] ss:$8 sps:$4 sm:$0xff]  }
 0x3be   : > { %6865 = vmatpush1.bf16.msra.mxu1 %v20791_v41  ;;  %6872 = vmatprep.mubr.bf16.mxu1 %v6335_v50  ;;  %v20812_v41 = vld [vmem:[%s28257_s3 + $0xdb0] ss:$8 sps:$4 sm:$0xff]   ;;  %v21890_v50 = vld [vmem:[#allocation2 + $0xa8] sm:$0xff] }
 0x3bf   : > { %6866 = vmatprep.subr.bf16.mxu1 %v20796_v13  ;;  %v20817_v13 = vld [vmem:[%s28257_s3 + $0xdc4] ss:$8 sps:$4 sm:$0xff]   ;;  %v20839_v25 = vld [vmem:[%s28257_s3 + $0xe40] ss:$8 sps:$4 sm:$0xff]  }
 0x3c2   : > { %6867 = vmatpush1.bf16.msra.mxu1 %v20794_v61  ;;  %v6367_v61 = vrot.slane %v21890_v50, 7  ;;  %v20833_v50 = vld [vmem:[%s28257_s3 + $0xe20] ss:$8 sps:$4 sm:$0xff]  }
 0x3c3   : > { %6868 = vmatprep.subr.bf16.mxu1 %v20799_v19  ;;  %v20815_v19 = vld [vmem:[%s28257_s3 + $0xdc0] ss:$8 sps:$4 sm:$0xff]  }
 0x3c4   : > { %v6368_v53 = vsel %vm6329_vm4, %v6357_v0, %v6367_v61  ;;  %v20827_v0 = vld [vmem:[%s28257_s3 + $0xe00] ss:$8 sps:$4 sm:$0xff]  }
 0x3c6   : > { %6869 = vmatpush1.bf16.msra.mxu1 %v20797_v60  ;;  %v20820_v60 = vld [vmem:[%s28257_s3 + $0xdd4] ss:$8 sps:$4 sm:$0xff]  }
 0x3c7   : > { %6870 = vmatprep.subr.bf16.mxu1 %v20802_v5  ;;  %v6356_v5 = vsel %vm6329_vm4, %v6345_v30, %v6355_v32  ;;  %v21894_v30 = vld [vmem:[#allocation2 + $0xf8] sm:$0xff] }
 0x3c8   : > { %v6387_v9 = vrot.slane %v21894_v30, 7 }
 0x3ca   : > { %6871 = vmatpush1.bf16.msra.mxu1 %v20800_v12  ;;  %v20818_v12 = vld [vmem:[%s28257_s3 + $0xdd0] ss:$8 sps:$4 sm:$0xff]  }
 0x3cb   : > { %6943 = vmatprep.subr.bf16.mxu1 %v20805_v54  ;;  %v20823_v54 = vld [vmem:[%s28257_s3 + $0xde4] ss:$8 sps:$4 sm:$0xff]  }
 0x3cd   : > { %6873 = vmatmul.mubr.bf16.vlgmr.msra.gmra.mrb[64].mxu1 %v6332_v4  ;;  %v6378_v4 = vsel %vm6329_vm4, %v6367_v61, %v6377_v57  ;;  %v20838_v61 = vld [vmem:[%s28257_s3 + $0xe34] ss:$8 sps:$4 sm:$0xff]  }
 0x3ce   : > { %6882 = vmatprep.mubr.bf16.mxu1 %v6348_v39  ;;  %6944 = vmatpush1.bf16.msra.mxu1 %v20803_v46  ;;  %v20826_v46 = vld [vmem:[%s28257_s3 + $0xdf4] ss:$8 sps:$4 sm:$0xff]   ;;  %v20824_v39 = vld [vmem:[%s28257_s3 + $0xdf0] ss:$8 sps:$4 sm:$0xff]  }
 0x3cf   : > { %6945 = vmatprep.subr.bf16.mxu1 %v20808_v21  ;;  %v6366_v21 = vsel %vm6329_vm4, %v6355_v32, %v6365_v18  ;;  %v6397_v32 = vrot.slane %v24430_v52, 7  ;;  %v20836_v52 = vld [vmem:[%s28257_s3 + $0xe30] ss:$8 sps:$4 sm:$0xff]  }
 0x3d2   : > { %6946 = vmatpush1.bf16.msra.mxu1 %v20806_v3  ;;  %v20829_v3 = vld [vmem:[%s28257_s3 + $0xe04] ss:$8 sps:$4 sm:$0xff]  }
 0x3d3   : > { %6947 = vmatprep.subr.bf16.mxu1 %v20811_v55  ;;  %v21893_v55 = vld [vmem:[#allocation2 + $0xc8] sm:$0xff] }
 0x3d4   : > { %v6375_v15 = vrot.slane %v21893_v55, 7  ;;  %v20848_v55 = vld [vmem:[%s28257_s3 + $0xe70] ss:$8 sps:$4 sm:$0xff]  }
 0x3d5   : > { %6883 = vmatmul.mubr.bf16.gmra.mrb[68].mxu1 %v6346_v62  ;;  %v6388_v62 = vsel %vm6329_vm4, %v6377_v57, %v6387_v9  ;;  %v20844_v57 = vld [vmem:[%s28257_s3 + $0xe54] ss:$8 sps:$4 sm:$0xff]  }
 0x3d6   : > { %6892 = vmatprep.mubr.bf16.mxu1 %v6358_v8  ;;  %6948 = vmatpush1.bf16.msra.mxu1 %v20809_v29  ;;  %v20832_v29 = vld [vmem:[%s28257_s3 + $0xe14] ss:$8 sps:$4 sm:$0xff]   ;;  %v20830_v8 = vld [vmem:[%s28257_s3 + $0xe10] ss:$8 sps:$4 sm:$0xff]  }
 0x3d7   : > { %6949 = vmatprep.subr.bf16.mxu1 %v20814_v49  ;;  %v6376_v49 = vsel %vm6329_vm4, %v6365_v18, %v6375_v15  ;;  %v6340_v18 = vrot.slane %v21896_v17, 7  ;;  %v20865_v17 = vld [vmem:[%s28257_s3 + $0xec4] ss:$8 sps:$4 sm:$0xff]  }
 0x3da   : > { %6950 = vmatpush1.bf16.msra.mxu1 %v20812_v41  ;;  %v20835_v41 = vld [vmem:[%s28257_s3 + $0xe24] ss:$8 sps:$4 sm:$0xff]  }
 0x3db   : > { %6951 = vmatprep.subr.bf16.mxu1 %v20817_v13  ;;  %v21895_v13 = vld [vmem:[#allocation2 + $0xf0] sm:$0xff] }
 0x3dc   : > { %v6385_v28 = vrot.slane %v21895_v13, 7 }
 0x3dd   : > { %6893 = vmatmul.mubr.bf16.gmra.mrb[72].mxu1 %v6356_v5  ;;  %v6236_v5 = vld [vmem:[#allocation2 + $0x18] sm:$0x80] }
 0x3de   : > { %6902 = vmatprep.mubr.bf16.mxu1 %v6368_v53  ;;  %6952 = vmatpush1.bf16.msra.mxu1 %v20815_v19  ;;  %v6386_v19 = vsel %vm6329_vm4, %v6375_v15, %v6385_v28  ;;  %v20841_v53 = vld [vmem:[%s28257_s3 + $0xe44] ss:$8 sps:$4 sm:$0xff]  }
 0x3df   : > { %6953 = vmatprep.subr.bf16.mxu1 %v20820_v60  ;;  %v6398_v60 = vsel %vm6329_vm4, %v6387_v9, %v6397_v32  ;;  %v20853_v15 = vld [vmem:[%s28257_s3 + $0xe84] ss:$8 sps:$4 sm:$0xff]   ;;  %v21897_v9 = vld [vmem:[#allocation2 + $0x38] sm:$0xff] }
 0x3e0   : > { %v20859_v32 = vld [vmem:[%s28257_s3 + $0xea4] ss:$8 sps:$4 sm:$0xff]  }
 0x3e2   : > { %6954 = vmatpush1.bf16.msra.mxu1 %v20818_v12  ;;  %v6395_v12 = vrot.slane %v24449_v37, 7  ;;  %v20842_v37 = vld [vmem:[%s28257_s3 + $0xe50] ss:$8 sps:$4 sm:$0xff]  }
 0x3e3   : > { %6955 = vmatprep.subr.bf16.mxu1 %v20823_v54  ;;  %v6339_v54 = vrot.slane %v6236_v5, 7  ;;  %v20862_v5 = vld [vmem:[%s28257_s3 + $0xeb4] ss:$8 sps:$4 sm:$0xff]  }
 0x3e5   : > { %6903 = vmatmul.mubr.bf16.gmra.mrb[76].mxu1 %v6366_v21  ;;  %v20847_v21 = vld [vmem:[%s28257_s3 + $0xe64] ss:$8 sps:$4 sm:$0xff]  }
 0x3e6   : > { %6912 = vmatprep.mubr.bf16.mxu1 %v6378_v4  ;;  %6956 = vmatpush1.bf16.msra.mxu1 %v20821_v6  ;;  %v6396_v6 = vsel %vm6329_vm4, %v6385_v28, %v6395_v12  ;;  %v20845_v4 = vld [vmem:[%s28257_s3 + $0xe60] ss:$8 sps:$4 sm:$0xff]   ;;  %v20854_v28 = vld [vmem:[%s28257_s3 + $0xe90] ss:$8 sps:$4 sm:$0xff]  }
 0x3e7   : > { %6957 = vmatprep.subr.bf16.mxu1 %v20826_v46  ;;  %v6341_v46 = vsel %vm6329_vm4, %v6339_v54, %v6340_v18  ;;  %v20860_v54 = vld [vmem:[%s28257_s3 + $0xeb0] ss:$8 sps:$4 sm:$0xff]  }
 0x3ea   : > { %6958 = vmatpush1.bf16.msra.mxu1 %v20824_v39  ;;  %v20850_v39 = vld [vmem:[%s28257_s3 + $0xe74] ss:$8 sps:$4 sm:$0xff]  }
 0x3eb   : > { %6959 = vmatprep.subr.bf16.mxu1 %v20829_v3  ;;  %v6235_v3 = vld [vmem:[#allocation2 + $0x10] sm:$0x80] }
 0x3ec   : > { %v6336_v30 = vrot.slane %v6235_v3, 7  ;;  %v20871_v3 = vld [vmem:[%s28257_s3 + $0xee4] ss:$8 sps:$4 sm:$0xff]  }
 0x3ed   : > { %6913 = vmatmul.mubr.bf16.gmra.mrb[80].mxu1 %v6376_v49 }
 0x3ee   : > { %6922 = vmatprep.mubr.bf16.mxu1 %v6388_v62  ;;  %6960 = vmatpush1.bf16.msra.mxu1 %v20827_v0  ;;  %v6337_v0 = vrot.slane %v21897_v9, 7  ;;  %v20851_v62 = vld [vmem:[%s28257_s3 + $0xe80] ss:$8 sps:$4 sm:$0xff]  }
 0x3ef   : > { %6961 = vmatprep.subr.bf16.mxu1 %v20832_v29  ;;  %v21898_v29 = vld [vmem:[#allocation2 + $0x68] sm:$0xff] }
 0x3f0   : > { %v6351_v49 = vrot.slane %v21898_v29, 7  ;;  %v20874_v29 = vld [vmem:[%s28257_s3 + $0xef4] ss:$8 sps:$4 sm:$0xff]  }
 0x3f2   : > { %6962 = vmatpush1.bf16.msra.mxu1 %v20830_v8  ;;  %v20856_v8 = vld [vmem:[%s28257_s3 + $0xe94] ss:$8 sps:$4 sm:$0xff]   ;;  %v6352_v13 = vsel %vm6329_vm4, %v6340_v18, %v6351_v49  ;;  %v21901_v18 = vld [vmem:[#allocation2 + $0x88] sm:$0xff] }
 0x3f3   : > { %6963 = vmatprep.subr.bf16.mxu1 %v20835_v41  ;;  %v6338_v41 = vsel %vm6329_vm4, %v6336_v30, %v6337_v0  ;;  %v21904_v30 = vld [vmem:[#allocation2 + $0xe0] sm:$0xff] }
 0x3f4   : > { %v6381_v9 = vrot.slane %v21904_v30, 7  ;;  %v20884_v30 = vld [vmem:[%s28257_s3 + $0xf30] ss:$8 sps:$4 sm:$0xff]  }
 0x3f5   : > { %6923 = vmatmul.mubr.bf16.gmra.mrb[84].mxu1 %v6386_v19  ;;  %v21900_v19 = vld [vmem:[#allocation2 + $0x90] sm:$0xff] }
 0x3f6   : > { %6932 = vmatprep.mubr.bf16.mxu1 %v6398_v60  ;;  %6964 = vmatpush1.bf16.msra.mxu1 %v20833_v50  ;;  %v21899_v50 = vld [vmem:[#allocation2 + $0x60] sm:$0xff]  ;;  %v6361_v60 = vrot.slane %v21900_v19, 7 }
 0x3f7   : > { %6965 = vmatprep.subr.bf16.mxu1 %v20838_v61  ;;  %v6349_v61 = vrot.slane %v21899_v50, 7 }
 0x3f8   : > { %v6362_v12 = vsel %vm6329_vm4, %v6351_v49, %v6361_v60 }
 0x3fa   : > { %6966 = vmatpush1.bf16.msra.mxu1 %v20836_v52  ;;  %v20857_v52 = vld [vmem:[%s28257_s3 + $0xea0] ss:$8 sps:$4 sm:$0xff]  }
 0x3fb   : > { %6967 = vmatprep.subr.bf16.mxu1 %v20841_v53  ;;  %v6350_v53 = vsel %vm6329_vm4, %v6337_v0, %v6349_v61  ;;  %v20869_v0 = vld [vmem:[%s28257_s3 + $0xee0] ss:$8 sps:$4 sm:$0xff]  }
 0x3fd   : > { %6933 = vmatmul.mubr.bf16.gmra.mrb[88].mxu1 %v6396_v6 }
 0x3fe   : > { %6968 = vmatpush1.bf16.msra.mxu1 %v20839_v25  ;;  %6975 = vmatprep.mubr.bf16.mxu1 %v6341_v46  ;;  %v6359_v25 = vrot.slane %v21901_v18, 7  ;;  %v20863_v46 = vld [vmem:[%s28257_s3 + $0xec0] ss:$8 sps:$4 sm:$0xff]   ;;  %v6237_v18 = vld [vmem:[#allocation2 + $0x20] sm:$0x80] }
 0x3ff   : > { %6969 = vmatprep.subr.bf16.mxu1 %v20844_v57  ;;  %v21902_v57 = vld [vmem:[#allocation2 + $0xb8] sm:$0xff] }
 0x400   : > { %v6371_v6 = vrot.slane %v21902_v57, 7  ;;  %v21908_v57 = vld [vmem:[#allocation2 + $0x48] sm:$0xff] }
 0x402   : > { %6970 = vmatpush1.bf16.msra.mxu1 %v20842_v37  ;;  %v20868_v37 = vld [vmem:[%s28257_s3 + $0xed4] ss:$8 sps:$4 sm:$0xff]  }
 0x403   : > { %6971 = vmatprep.subr.bf16.mxu1 %v20847_v21  ;;  %v6360_v21 = vsel %vm6329_vm4, %v6349_v61, %v6359_v25 }
 0x406   : > { %6972 = vmatpush1.bf16.msra.mxu1 %v20845_v4  ;;  %v6372_v4 = vsel %vm6329_vm4, %v6361_v60, %v6371_v6  ;;  %v21907_v60 = vld [vmem:[#allocation2 + $0x100] sm:$0xff] }
 0x407   : > { %6973 = vmatprep.subr.bf16.mxu1 %v20850_v39  ;;  %v20866_v39 = vld [vmem:[%s28257_s3 + $0xed0] ss:$8 sps:$4 sm:$0xff]  }
 0x40a   : > { %6974 = vmatpush1.bf16.msra.mxu1 %v20848_v55  ;;  %v21903_v55 = vld [vmem:[#allocation2 + $0xb0] sm:$0xff] }
 0x40b   : > { %7046 = vmatprep.subr.bf16.mxu1 %v20853_v15  ;;  %v6369_v15 = vrot.slane %v21903_v55, 7  ;;  %v20886_v55 = vld [vmem:[%s28257_s3 + $0xf34] ss:$8 sps:$4 sm:$0xff]  }
 0x40d   : > { %6976 = vmatmul.mubr.bf16.vlgmr.msra.gmra.mrb[64].mxu1 %v6338_v41  ;;  %v6370_v49 = vsel %vm6329_vm4, %v6359_v25, %v6369_v15  ;;  %v20877_v41 = vld [vmem:[%s28257_s3 + $0xf04] ss:$8 sps:$4 sm:$0xff]   ;;  %v6342_v25 = vrot.slane %v6237_v18, 7  ;;  %v20902_v18 = vld [vmem:[%s28257_s3 + $0xf90] ss:$8 sps:$4 sm:$0xff]  }
 0x40e   : > { %6985 = vmatprep.mubr.bf16.mxu1 %v6352_v13  ;;  %7047 = vmatpush1.bf16.msra.mxu1 %v20851_v62  ;;  %v6382_v62 = vsel %vm6329_vm4, %v6371_v6, %v6381_v9  ;;  %v21905_v13 = vld [vmem:[#allocation2 + $0xd8] sm:$0xff]  ;;  %v6343_v6 = vrot.slane %v21908_v57, 7  ;;  %v20905_v57 = vld [vmem:[%s28257_s3 + $0xfa0] ss:$8 sps:$4 sm:$0xff]  }
 0x40f   : > { %7048 = vmatprep.subr.bf16.mxu1 %v20856_v8  ;;  %v20872_v8 = vld [vmem:[%s28257_s3 + $0xef0] ss:$8 sps:$4 sm:$0xff]  }
 0x412   : > { %7049 = vmatpush1.bf16.msra.mxu1 %v20854_v28  ;;  %v6379_v28 = vrot.slane %v21905_v13, 7  ;;  %v20895_v13 = vld [vmem:[%s28257_s3 + $0xf64] ss:$8 sps:$4 sm:$0xff]  }
 0x413   : > { %7050 = vmatprep.subr.bf16.mxu1 %v20859_v32  ;;  %v21906_v32 = vld [vmem:[#allocation2 + $0x108] sm:$0xff] }
 0x414   : > { %v6391_v50 = vrot.slane %v21906_v32, 7  ;;  %v6380_v61 = vsel %vm6329_vm4, %v6369_v15, %v6379_v28 }
 0x415   : > { %6986 = vmatmul.mubr.bf16.gmra.mrb[68].mxu1 %v6350_v53 }
 0x416   : > { %6995 = vmatprep.mubr.bf16.mxu1 %v6362_v12  ;;  %7051 = vmatpush1.bf16.msra.mxu1 %v20857_v52  ;;  %v6392_v19 = vsel %vm6329_vm4, %v6381_v9, %v6391_v50  ;;  %v6389_v52 = vrot.slane %v21907_v60, 7  ;;  %v20889_v9 = vld [vmem:[%s28257_s3 + $0xf44] ss:$8 sps:$4 sm:$0xff]   ;;  %v20896_v60 = vld [vmem:[%s28257_s3 + $0xf70] ss:$8 sps:$4 sm:$0xff]  }
 0x417   : > { %7052 = vmatprep.subr.bf16.mxu1 %v20862_v5  ;;  %v6401_v5 = vrot.slane %v24590_v42, 7  ;;  %v20875_v42 = vld [vmem:[%s28257_s3 + $0xf00] ss:$8 sps:$4 sm:$0xff]  }
 0x418   : > { %v6390_v53 = vsel %vm6329_vm4, %v6379_v28, %v6389_v52  ;;  %v21911_v28 = vld [vmem:[#allocation2 + $0xc0] sm:$0xff] }
 0x419   : > { %v6402_v12 = vsel %vm6329_vm4, %v6391_v50, %v6401_v5  ;;  %v6373_v32 = vrot.slane %v21911_v28, 7  ;;  %v20893_v50 = vld [vmem:[%s28257_s3 + $0xf60] ss:$8 sps:$4 sm:$0xff]  }
 0x41a   : > { %7053 = vmatpush1.bf16.msra.mxu1 %v20860_v54  ;;  %v6399_v54 = vrot.slane %v24606_v58, 7  ;;  %v20878_v58 = vld [vmem:[%s28257_s3 + $0xf10] ss:$8 sps:$4 sm:$0xff]   ;;  %v21912_v5 = vld [vmem:[#allocation2 + $0xe8] sm:$0xff]  ;;  %v25018_v28 = vld [vmem:[#allocation2 + $0x80] sm:$0xff] }
 0x41b   : > { %7054 = vmatprep.subr.bf16.mxu1 %v20865_v17 }
 0x41c   : > { %v6400_v17 = vsel %vm6329_vm4, %v6389_v52, %v6399_v54  ;;  %v20901_v52 = vld [vmem:[%s28257_s3 + $0xf84] ss:$8 sps:$4 sm:$0xff]   ;;  %v20904_v54 = vld [vmem:[%s28257_s3 + $0xf94] ss:$8 sps:$4 sm:$0xff]  }
 0x41d   : > { %6996 = vmatmul.mubr.bf16.gmra.mrb[72].mxu1 %v6360_v21  ;;  %v20883_v21 = vld [vmem:[%s28257_s3 + $0xf24] ss:$8 sps:$4 sm:$0xff]  }
 0x41e   : > { %7005 = vmatprep.mubr.bf16.mxu1 %v6372_v4  ;;  %7055 = vmatpush1.bf16.msra.mxu1 %v20863_v46  ;;  %v20880_v46 = vld [vmem:[%s28257_s3 + $0xf14] ss:$8 sps:$4 sm:$0xff]  }
 0x41f   : > { %7056 = vmatprep.subr.bf16.mxu1 %v20868_v37  ;;  %v6344_v37 = vsel %vm6329_vm4, %v6342_v25, %v6343_v6  ;;  %v21909_v4 = vld [vmem:[#allocation2 + $0x70] sm:$0xff]  ;;  %v20907_v25 = vld [vmem:[%s28257_s3 + $0xfa4] ss:$8 sps:$4 sm:$0xff]  }
 0x422   : > { %7057 = vmatpush1.bf16.msra.mxu1 %v20866_v39  ;;  %v6353_v39 = vrot.slane %v21909_v4, 7  ;;  %v20913_v4 = vld [vmem:[%s28257_s3 + $0xfc4] ss:$8 sps:$4 sm:$0xff]  }
 0x423   : > { %7058 = vmatprep.subr.bf16.mxu1 %v20871_v3  ;;  %v20881_v3 = vld [vmem:[%s28257_s3 + $0xf20] ss:$8 sps:$4 sm:$0xff]  }
 0x424   : > { %v6354_v15 = vsel %vm6329_vm4, %v6343_v6, %v6353_v39  ;;  %v20910_v6 = vld [vmem:[%s28257_s3 + $0xfb4] ss:$8 sps:$4 sm:$0xff]  }
 0x425   : > { %7006 = vmatmul.mubr.bf16.gmra.mrb[76].mxu1 %v6370_v49  ;;  %v20887_v49 = vld [vmem:[%s28257_s3 + $0xf40] ss:$8 sps:$4 sm:$0xff]  }
 0x426   : > { %7015 = vmatprep.mubr.bf16.mxu1 %v6382_v62  ;;  %7059 = vmatpush1.bf16.msra.mxu1 %v20869_v0  ;;  %v21910_v0 = vld [vmem:[#allocation2 + $0x98] sm:$0xff] }
 0x427   : > { %7060 = vmatprep.subr.bf16.mxu1 %v20874_v29  ;;  %v6363_v29 = vrot.slane %v21910_v0, 7  ;;  %v20892_v62 = vld [vmem:[%s28257_s3 + $0xf54] ss:$8 sps:$4 sm:$0xff]  }
 0x42a   : > { %7061 = vmatpush1.bf16.msra.mxu1 %v20872_v8  ;;  %v6364_v8 = vsel %vm6329_vm4, %v6353_v39, %v6363_v29  ;;  %v24989_v39 = vld [vmem:[#allocation2 + $0x30] sm:$0xf0] }
 0x42b   : > { %7849 = vmatprep.subr.bf16.mxu1 %v20877_v41  ;;  %v20890_v41 = vld [vmem:[%s28257_s3 + $0xf50] ss:$8 sps:$4 sm:$0xff]   ;;  %v8294_v1 = vshll.u32 %v24989_v39, 16 }
 0x42d   : > { %7016 = vmatmul.mubr.bf16.gmra.mrb[80].mxu1 %v6380_v61  ;;  %v20898_v61 = vld [vmem:[%s28257_s3 + $0xf74] ss:$8 sps:$4 sm:$0xff]  }
 0x42e   : > { %7025 = vmatprep.mubr.bf16.mxu1 %v6392_v19  ;;  %v6374_v19 = vsel %vm6329_vm4, %v6363_v29, %v6373_v32  ;;  %v20914_v29 = vld [vmem:[%s28257_s3 + $0xfd0] ss:$8 sps:$4 sm:$0xff]  }
 0x435   : > { %7026 = vmatmul.mubr.bf16.gmra.mrb[84].mxu1 %v6390_v53  ;;  %v6383_v53 = vrot.slane %v21912_v5, 7  ;;  %v20928_v5 = vld [vmem:[%s28257_s3 + $0x1014] ss:$8 sps:$4 sm:$0xff]  }
 0x436   : > { %7035 = vmatprep.mubr.bf16.mxu1 %v6402_v12  ;;  %v20899_v12 = vld [vmem:[%s28257_s3 + $0xf80] ss:$8 sps:$4 sm:$0xff]  }
 0x43d   : > { %7036 = vmatmul.mubr.bf16.gmra.mrb[88].mxu1 %v6400_v17  ;;  %v6384_v17 = vsel %vm6329_vm4, %v6373_v32, %v6383_v53  ;;  %v25020_v32 = vld [vmem:[#allocation2 + $0x28] sm:$0xf0] }
 0x43e   : > { %7078 = vmatprep.mubr.bf16.mxu1 %v28398_v44 }
 0x445   : > { %7079 = vmatmul.mubr.bf16.vlgmr.msra.gmra.mrb[64].mxu1 %v6344_v37 }
 0x446   : > { %7850 = vmatpush1.bf16.msra.mxu1 %v20875_v42  ;;  %7088 = vmatprep.mubr.bf16.mxu1 %v28398_v44  ;;  %v28490_v42 = vld [vmem:[#allocation28_spill] sm:$0xff] }
 0x447   : > { %7851 = vmatprep.subr.bf16.mxu1 %v20880_v46  ;;  %v28491_v46 = vrot.slane %v28490_v42, 7  ;;  %v20929_v42 = vld [vmem:[%s28257_s3 + $0x1020] ss:$8 sps:$4 sm:$0xff]  }
 0x449   : > { %v6394_v37 = vsel %vm6329_vm4, %v6383_v53, %v28491_v46  ;;  %v20934_v46 = vld [vmem:[%s28257_s3 + $0x1034] ss:$8 sps:$4 sm:$0xff]  }
 0x44a   : > { %7852 = vmatpush1.bf16.msra.mxu1 %v20878_v58  ;;  %v20908_v58 = vld [vmem:[%s28257_s3 + $0xfb0] ss:$8 sps:$4 sm:$0xff]  }
 0x44b   : > { %7853 = vmatprep.subr.bf16.mxu1 %v20883_v21  ;;  %v24984_v21 = vld [vmem:[#allocation2 + $0x58] sm:$0xff] }
 0x44c   : > { %v8299_v48 = vshrl.u32 %v24984_v21, 16 }
 0x44d   : > { %7089 = vmatmul.mubr.bf16.gmra.mrb[68].mxu1 %v6354_v15  ;;  %v7342_v15 = vrot.slane %v24989_v39, 4 }
 0x44e   : > { %7854 = vmatpush1.bf16.msra.mxu1 %v20881_v3  ;;  %7098 = vmatprep.mubr.bf16.mxu1 %v28398_v44  ;;  %v7343_v3 = vrot.slane %v24984_v21, 4  ;;  %v8301_v20 = vrot.slane %v8299_v48, 4 }
 0x44f   : > { %7855 = vmatprep.subr.bf16.mxu1 %v20886_v55  ;;  %v20911_v55 = vld [vmem:[%s28257_s3 + $0xfc0] ss:$8 sps:$4 sm:$0xff]  }
 0x450   : > { %v7344_v0 = vsel %vm7338_vm6, %v7342_v15, %v7343_v3  ;;  %v20937_v15 = vld [vmem:[%s28257_s3 + $0x1044] ss:$8 sps:$4 sm:$0xff]  }
 0x452   : > { %7856 = vmatpush1.bf16.msra.mxu1 %v20884_v30  ;;  %v20916_v30 = vld [vmem:[%s28257_s3 + $0xfd4] ss:$8 sps:$4 sm:$0xff]  }
 0x453   : > { %7857 = vmatprep.subr.bf16.mxu1 %v20889_v9  ;;  %v28492_v9 = vld [vmem:[#allocation38_spill] sm:$0xff] }
 0x455   : > { %7099 = vmatmul.mubr.bf16.gmra.mrb[72].mxu1 %v6364_v8  ;;  %v20922_v8 = vld [vmem:[%s28257_s3 + $0xff4] ss:$8 sps:$4 sm:$0xff]  }
 0x456   : > { %7858 = vmatpush1.bf16.msra.mxu1 %v20887_v49  ;;  %7108 = vmatprep.mubr.bf16.mxu1 %v28398_v44  ;;  %v20919_v49 = vld [vmem:[%s28257_s3 + $0xfe4] ss:$8 sps:$4 sm:$0xff]  }
 0x457   : > { %7859 = vmatprep.subr.bf16.mxu1 %v20892_v62  ;;  %v20917_v62 = vld [vmem:[%s28257_s3 + $0xfe0] ss:$8 sps:$4 sm:$0xff]  }
 0x45a   : > { %7860 = vmatpush1.bf16.msra.mxu1 %v20890_v41  ;;  %v25013_v41 = vld [vmem:[#allocation2 + $0x50] sm:$0xff] }
 0x45b   : > { %7861 = vmatprep.subr.bf16.mxu1 %v20895_v13  ;;  %v20920_v13 = vld [vmem:[%s28257_s3 + $0xff0] ss:$8 sps:$4 sm:$0xff]   ;;  %v8282_v35 = vshrl.u32 %v25013_v41, 16 }
 0x45d   : > { %7109 = vmatmul.mubr.bf16.gmra.mrb[76].mxu1 %v6374_v19  ;;  %v7356_v19 = vrot.slane %v25018_v28, 4 }
 0x45e   : > { %7862 = vmatpush1.bf16.msra.mxu1 %v20893_v50  ;;  %7118 = vmatprep.mubr.bf16.mxu1 %v28398_v44  ;;  %v20925_v50 = vld [vmem:[%s28257_s3 + $0x1004] ss:$8 sps:$4 sm:$0xff]  }
 0x45f   : > { %7863 = vmatprep.subr.bf16.mxu1 %v20898_v61  ;;  %v7340_v61 = vrot.slane %v25013_v41, 4 }
 0x462   : > { %7864 = vmatpush1.bf16.msra.mxu1 %v20896_v60  ;;  %v7339_v60 = vrot.slane %v25020_v32, 4 }
 0x463   : > { %7865 = vmatprep.subr.bf16.mxu1 %v20901_v52  ;;  %v20923_v52 = vld [vmem:[%s28257_s3 + $0x1000] ss:$8 sps:$4 sm:$0xff]  }
 0x464   : > { %v7341_v53 = vsel %vm7338_vm6, %v7339_v60, %v7340_v61 }
 0x465   : > { %7119 = vmatmul.mubr.bf16.gmra.mrb[80].mxu1 %v6384_v17  ;;  %v20926_v17 = vld [vmem:[%s28257_s3 + $0x1010] ss:$8 sps:$4 sm:$0xff]  }
 0x466   : > { %7866 = vmatpush1.bf16.msra.mxu1 %v20899_v12  ;;  %7128 = vmatprep.mubr.bf16.mxu1 %v28398_v44  ;;  %v7357_v12 = vsel %vm7338_vm6, %v7343_v3, %v7356_v19  ;;  %v20932_v3 = vld [vmem:[%s28257_s3 + $0x1030] ss:$8 sps:$4 sm:$0xff]  }
 0x467   : > { %7867 = vmatprep.subr.bf16.mxu1 %v20904_v54  ;;  %v25036_v54 = vld [vmem:[#allocation2 + $0x78] sm:$0xff] }
 0x46a   : > { %7868 = vmatpush1.bf16.msra.mxu1 %v20902_v18  ;;  %v25041_v18 = vld [vmem:[#allocation2 + $0xa8] sm:$0xff] }
 0x46b   : > { %7869 = vmatprep.subr.bf16.mxu1 %v20907_v25  ;;  %v20931_v25 = vld [vmem:[%s28257_s3 + $0x1024] ss:$8 sps:$4 sm:$0xff]  }
 0x46d   : > { %7129 = vmatmul.mubr.bf16.gmra.mrb[84].mxu1 %v6394_v37 }
 0x46e   : > { %7870 = vmatpush1.bf16.msra.mxu1 %v20905_v57  ;;  %7138 = vmatprep.mubr.bf16.mxu1 %v28398_v44  ;;  %v7354_v57 = vrot.slane %v25036_v54, 4 }
 0x46f   : > { %7871 = vmatprep.subr.bf16.mxu1 %v20910_v6  ;;  %v7366_v6 = vrot.slane %v25041_v18, 4 }
 0x470   : > { %v7355_v37 = vsel %vm7338_vm6, %v7340_v61, %v7354_v57  ;;  %v20943_v61 = vld [vmem:[%s28257_s3 + $0x1064] ss:$8 sps:$4 sm:$0xff]  }
 0x472   : > { %7872 = vmatpush1.bf16.msra.mxu1 %v20908_v58  ;;  %v7367_v58 = vsel %vm7338_vm6, %v7356_v19, %v7366_v6 }
 0x473   : > { %7873 = vmatprep.subr.bf16.mxu1 %v20913_v4  ;;  %v25056_v4 = vld [vmem:[#allocation2 + $0xa0] sm:$0xff] }
 0x475   : > { %7139 = vmatmul.mubr.bf16.gmra.mrb[88].mxu1 %v28492_v9 }
 0x476   : > { %7874 = vmatpush1.bf16.msra.mxu1 %v20911_v55  ;;  %7881 = vmatprep.mubr.bf16.mxu1 %v7344_v0  ;;  %v25061_v55 = vld [vmem:[#allocation2 + $0xd0] sm:$0xff]  ;;  %v20935_v0 = vld [vmem:[%s28257_s3 + $0x1040] ss:$8 sps:$4 sm:$0xff]  }
 0x477   : > { %7875 = vmatprep.subr.bf16.mxu1 %v20916_v30  ;;  %v7364_v30 = vrot.slane %v25056_v4, 4  ;;  %v7376_v9 = vrot.slane %v25061_v55, 4 }
 0x47a   : > { %7876 = vmatpush1.bf16.msra.mxu1 %v20914_v29  ;;  %v20940_v29 = vld [vmem:[%s28257_s3 + $0x1054] ss:$8 sps:$4 sm:$0xff]  }
 0x47b   : > { %7877 = vmatprep.subr.bf16.mxu1 %v20919_v49  ;;  %v7365_v49 = vsel %vm7338_vm6, %v7354_v57, %v7364_v30  ;;  %v25101_v57 = vld [vmem:[#allocation2 + $0x120] sm:$0xff] }
 0x47e   : > { %7878 = vmatpush1.bf16.msra.mxu1 %v20917_v62  ;;  %v7377_v62 = vsel %vm7338_vm6, %v7366_v6, %v7376_v9  ;;  %v20949_v6 = vld [vmem:[%s28257_s3 + $0x1084] ss:$8 sps:$4 sm:$0xff]  }
 0x47f   : > { %7879 = vmatprep.subr.bf16.mxu1 %v20922_v8  ;;  %v25076_v8 = vld [vmem:[#allocation2 + $0xc8] sm:$0xff] }
 0x480   : > { %v7374_v19 = vrot.slane %v25076_v8, 4 }
 0x482   : > { %7880 = vmatpush1.bf16.msra.mxu1 %v20920_v13  ;;  %v20938_v13 = vld [vmem:[%s28257_s3 + $0x1050] ss:$8 sps:$4 sm:$0xff]  }
 0x483   : > { %7952 = vmatprep.subr.bf16.mxu1 %v20925_v50  ;;  %v25081_v50 = vld [vmem:[#allocation2 + $0xf8] sm:$0xff] }
 0x484   : > { %v7386_v60 = vrot.slane %v25081_v50, 4 }
 0x485   : > { %7882 = vmatmul.mubr.bf16.vlgmr.msra.gmra.mrb[64].mxu1 %v7341_v53  ;;  %v7375_v53 = vsel %vm7338_vm6, %v7364_v30, %v7374_v19  ;;  %v25116_v30 = vld [vmem:[#allocation2 + $0x118] sm:$0xff] }
 0x486   : > { %7891 = vmatprep.mubr.bf16.mxu1 %v7357_v12  ;;  %7953 = vmatpush1.bf16.msra.mxu1 %v20923_v52  ;;  %v20941_v52 = vld [vmem:[%s28257_s3 + $0x1060] ss:$8 sps:$4 sm:$0xff]   ;;  %v7387_v12 = vsel %vm7338_vm6, %v7376_v9, %v7386_v60  ;;  %v20950_v9 = vld [vmem:[%s28257_s3 + $0x1090] ss:$8 sps:$4 sm:$0xff]  }
 0x487   : > { %7954 = vmatprep.subr.bf16.mxu1 %v20928_v5  ;;  %v20946_v5 = vld [vmem:[%s28257_s3 + $0x1074] ss:$8 sps:$4 sm:$0xff]  }
 0x48a   : > { %7955 = vmatpush1.bf16.msra.mxu1 %v20926_v17  ;;  %v25096_v17 = vld [vmem:[#allocation2 + $0xf0] sm:$0xff] }
 0x48b   : > { %7956 = vmatprep.subr.bf16.mxu1 %v20931_v25  ;;  %v20944_v25 = vld [vmem:[%s28257_s3 + $0x1070] ss:$8 sps:$4 sm:$0xff]  }
 0x48d   : > { %7892 = vmatmul.mubr.bf16.gmra.mrb[68].mxu1 %v7355_v37  ;;  %v20947_v37 = vld [vmem:[%s28257_s3 + $0x1080] ss:$8 sps:$4 sm:$0xff]  }
 0x48e   : > { %7901 = vmatprep.mubr.bf16.mxu1 %v7367_v58  ;;  %7957 = vmatpush1.bf16.msra.mxu1 %v20929_v42  ;;  %v7384_v42 = vrot.slane %v25096_v17, 4  ;;  %v20952_v58 = vld [vmem:[%s28257_s3 + $0x1094] ss:$8 sps:$4 sm:$0xff]  }
 0x48f   : > { %7958 = vmatprep.subr.bf16.mxu1 %v20934_v46  ;;  %v7396_v46 = vrot.slane %v25101_v57, 4 }
 0x492   : > { %7959 = vmatpush1.bf16.msra.mxu1 %v20932_v3  ;;  %v7385_v3 = vsel %vm7338_vm6, %v7374_v19, %v7384_v42 }
 0x493   : > { %7960 = vmatprep.subr.bf16.mxu1 %v20937_v15  ;;  %v7397_v15 = vsel %vm7338_vm6, %v7386_v60, %v7396_v46 }
 0x495   : > { %7902 = vmatmul.mubr.bf16.gmra.mrb[72].mxu1 %v7365_v49  ;;  %v7394_v49 = vrot.slane %v25116_v30, 4 }
 0x496   : > { %7911 = vmatprep.mubr.bf16.mxu1 %v7377_v62  ;;  %7961 = vmatpush1.bf16.msra.mxu1 %v20935_v0  ;;  %v7213_v0 = vld [vmem:[#allocation2 + $0x148] sm:$0xf] }
 0x497   : > { %7962 = vmatprep.subr.bf16.mxu1 %v20940_v29  ;;  %v20955_v29 = vld [vmem:[%s28257_s3 + $0x10a4] ss:$8 sps:$4 sm:$0xff]   ;;  %v7406_v62 = vrot.slane %v7213_v0, 4  ;;  %v7395_v19 = vsel %vm7338_vm6, %v7384_v42, %v7394_v49 }
 0x498   : > { %v20967_v0 = vld [vmem:[%s28257_s3 + $0x10e4] ss:$8 sps:$4 sm:$0xff]  }
 0x499   : > { %v7407_v60 = vsel %vm7338_vm6, %v7396_v46, %v7406_v62  ;;  %v20959_v46 = vld [vmem:[%s28257_s3 + $0x10c0] ss:$8 sps:$4 sm:$0xff]  }
 0x49a   : > { %7963 = vmatpush1.bf16.msra.mxu1 %v20938_v13  ;;  %v20953_v13 = vld [vmem:[%s28257_s3 + $0x10a0] ss:$8 sps:$4 sm:$0xff]  }
 0x49b   : > { %7964 = vmatprep.subr.bf16.mxu1 %v20943_v61  ;;  %v20958_v61 = vld [vmem:[%s28257_s3 + $0x10b4] ss:$8 sps:$4 sm:$0xff]   ;;  %v25165_v62 = vld [vmem:[#allocation2 + $0x60] sm:$0xff] }
 0x49d   : > { %7912 = vmatmul.mubr.bf16.gmra.mrb[76].mxu1 %v7375_v53  ;;  %v25136_v53 = vld [vmem:[#allocation2 + $0x68] sm:$0xff] }
 0x49e   : > { %7921 = vmatprep.mubr.bf16.mxu1 %v7387_v12  ;;  %7965 = vmatpush1.bf16.msra.mxu1 %v20941_v52  ;;  %v7212_v52 = vld [vmem:[#allocation2 + $0x140] sm:$0xf]  ;;  %v20961_v12 = vld [vmem:[%s28257_s3 + $0x10c4] ss:$8 sps:$4 sm:$0xff]   ;;  %v7349_v42 = vrot.slane %v25136_v53, 4 }
 0x49f   : > { %7966 = vmatprep.subr.bf16.mxu1 %v20946_v5  ;;  %v20956_v5 = vld [vmem:[%s28257_s3 + $0x10b0] ss:$8 sps:$4 sm:$0xff]  }
 0x4a2   : > { %7967 = vmatpush1.bf16.msra.mxu1 %v20944_v25  ;;  %v7404_v25 = vrot.slane %v7212_v52, 4  ;;  %v7346_v52 = vrot.slane %v25165_v62, 4 }
 0x4a3   : > { %7968 = vmatprep.subr.bf16.mxu1 %v20949_v6  ;;  %v25141_v6 = vld [vmem:[#allocation2 + $0x40] sm:$0xf0] }
 0x4a5   : > { %7922 = vmatmul.mubr.bf16.gmra.mrb[80].mxu1 %v7385_v3  ;;  %v7405_v3 = vsel %vm7338_vm6, %v7394_v49, %v7404_v25  ;;  %v20970_v49 = vld [vmem:[%s28257_s3 + $0x10f4] ss:$8 sps:$4 sm:$0xff]   ;;  %v20971_v25 = vld [vmem:[%s28257_s3 + $0x1100] ss:$8 sps:$4 sm:$0xff]  }
 0x4a6   : > { %7931 = vmatprep.mubr.bf16.mxu1 %v7397_v15  ;;  %7969 = vmatpush1.bf16.msra.mxu1 %v20947_v37  ;;  %v7348_v37 = vrot.slane %v25141_v6, 4 }
 0x4a7   : > { %7970 = vmatprep.subr.bf16.mxu1 %v20952_v58  ;;  %v20964_v58 = vld [vmem:[%s28257_s3 + $0x10d4] ss:$8 sps:$4 sm:$0xff]  }
 0x4a8   : > { %v7350_v15 = vsel %vm7338_vm6, %v7348_v37, %v7349_v42 }
 0x4aa   : > { %7971 = vmatpush1.bf16.msra.mxu1 %v20950_v9  ;;  %v20962_v9 = vld [vmem:[%s28257_s3 + $0x10d0] ss:$8 sps:$4 sm:$0xff]  }
 0x4ab   : > { %7972 = vmatprep.subr.bf16.mxu1 %v20955_v29  ;;  %v20965_v29 = vld [vmem:[%s28257_s3 + $0x10e0] ss:$8 sps:$4 sm:$0xff]  }
 0x4ad   : > { %7932 = vmatmul.mubr.bf16.gmra.mrb[84].mxu1 %v7395_v19  ;;  %v25172_v19 = vld [vmem:[#allocation2 + $0x38] sm:$0xf0] }
 0x4ae   : > { %7941 = vmatprep.mubr.bf16.mxu1 %v7407_v60  ;;  %7973 = vmatpush1.bf16.msra.mxu1 %v20953_v13  ;;  %v20968_v13 = vld [vmem:[%s28257_s3 + $0x10f0] ss:$8 sps:$4 sm:$0xff]   ;;  %v20973_v60 = vld [vmem:[%s28257_s3 + $0x1104] ss:$8 sps:$4 sm:$0xff]  }
 0x4af   : > { %7974 = vmatprep.subr.bf16.mxu1 %v20958_v61  ;;  %v25170_v61 = vld [vmem:[#allocation2 + $0x90] sm:$0xff] }
 0x4b2   : > { %7975 = vmatpush1.bf16.msra.mxu1 %v20956_v5  ;;  %v7360_v5 = vrot.slane %v25170_v61, 4 }
 0x4b3   : > { %7976 = vmatprep.subr.bf16.mxu1 %v20961_v12  ;;  %v7345_v12 = vrot.slane %v25172_v19, 4 }
 0x4b5   : > { %7942 = vmatmul.mubr.bf16.gmra.mrb[88].mxu1 %v7405_v3  ;;  %v7347_v37 = vsel %vm7338_vm6, %v7345_v12, %v7346_v52  ;;  %v25188_v3 = vld [vmem:[#allocation2 + $0x88] sm:$0xff] }
 0x4b6   : > { %7977 = vmatpush1.bf16.msra.mxu1 %v20959_v46  ;;  %7984 = vmatprep.mubr.bf16.mxu1 %v7350_v15  ;;  %v20976_v46 = vld [vmem:[%s28257_s3 + $0x1114] ss:$8 sps:$4 sm:$0xff]   ;;  %v20974_v15 = vld [vmem:[%s28257_s3 + $0x1110] ss:$8 sps:$4 sm:$0xff]  }
 0x4b7   : > { %7978 = vmatprep.subr.bf16.mxu1 %v20964_v58  ;;  %v7361_v58 = vsel %vm7338_vm6, %v7349_v42, %v7360_v5  ;;  %v20977_v42 = vld [vmem:[%s28257_s3 + $0x1120] ss:$8 sps:$4 sm:$0xff]  }
 0x4ba   : > { %7979 = vmatpush1.bf16.msra.mxu1 %v20962_v9  ;;  %v25193_v9 = vld [vmem:[#allocation2 + $0xb8] sm:$0xff] }
 0x4bb   : > { %7980 = vmatprep.subr.bf16.mxu1 %v20967_v0  ;;  %v20979_v0 = vld [vmem:[%s28257_s3 + $0x1124] ss:$8 sps:$4 sm:$0xff]  }
 0x4be   : > { %7981 = vmatpush1.bf16.msra.mxu1 %v20965_v29  ;;  %v7358_v29 = vrot.slane %v25188_v3, 4 }
 0x4bf   : > { %7982 = vmatprep.subr.bf16.mxu1 %v20970_v49  ;;  %v7370_v49 = vrot.slane %v25193_v9, 4 }
 0x4c1   : > { %v7371_v12 = vsel %vm7338_vm6, %v7360_v5, %v7370_v49  ;;  %v20983_v5 = vld [vmem:[%s28257_s3 + $0x1140] ss:$8 sps:$4 sm:$0xff]  }
 0x4c2   : > { %7983 = vmatpush1.bf16.msra.mxu1 %v20968_v13  ;;  %v20982_v13 = vld [vmem:[%s28257_s3 + $0x1134] ss:$8 sps:$4 sm:$0xff]  }
 0x4c3   : > { %8055 = vmatprep.subr.bf16.mxu1 %v20973_v60  ;;  %v7359_v60 = vsel %vm7338_vm6, %v7346_v52, %v7358_v29 }
 0x4c5   : > { %7985 = vmatmul.mubr.bf16.vlgmr.msra.gmra.mrb[64].mxu1 %v7347_v37  ;;  %v20980_v37 = vld [vmem:[%s28257_s3 + $0x1130] ss:$8 sps:$4 sm:$0xff]  }
 0x4c6   : > { %7994 = vmatprep.mubr.bf16.mxu1 %v7361_v58  ;;  %8056 = vmatpush1.bf16.msra.mxu1 %v20971_v25  ;;  %v25208_v25 = vld [vmem:[#allocation2 + $0xb0] sm:$0xff]  ;;  %v20985_v58 = vld [vmem:[%s28257_s3 + $0x1144] ss:$8 sps:$4 sm:$0xff]  }
 0x4c7   : > { %8057 = vmatprep.subr.bf16.mxu1 %v20976_v46  ;;  %v25210_v46 = vld [vmem:[#allocation2 + $0xe0] sm:$0xff]  ;;  %v7368_v52 = vrot.slane %v25208_v25, 4 }
 0x4ca   : > { %8058 = vmatpush1.bf16.msra.mxu1 %v20974_v15  ;;  %v7380_v15 = vrot.slane %v25210_v46, 4 }
 0x4cb   : > { %8059 = vmatprep.subr.bf16.mxu1 %v20979_v0  ;;  %v20988_v0 = vld [vmem:[%s28257_s3 + $0x1154] ss:$8 sps:$4 sm:$0xff]  }
 0x4cd   : > { %7995 = vmatmul.mubr.bf16.gmra.mrb[68].mxu1 %v7359_v60  ;;  %v25228_v60 = vld [vmem:[#allocation2 + $0xd8] sm:$0xff] }
 0x4ce   : > { %8004 = vmatprep.mubr.bf16.mxu1 %v7371_v12  ;;  %8060 = vmatpush1.bf16.msra.mxu1 %v20977_v42  ;;  %v7369_v42 = vsel %vm7338_vm6, %v7358_v29, %v7368_v52  ;;  %v25230_v12 = vld [vmem:[#allocation2 + $0x108] sm:$0xff]  ;;  %v7378_v29 = vrot.slane %v25228_v60, 4 }
 0x4cf   : > { %8061 = vmatprep.subr.bf16.mxu1 %v20982_v13  ;;  %v7381_v13 = vsel %vm7338_vm6, %v7370_v49, %v7380_v15  ;;  %v20989_v49 = vld [vmem:[%s28257_s3 + $0x1160] ss:$8 sps:$4 sm:$0xff]  }
 0x4d2   : > { %8062 = vmatpush1.bf16.msra.mxu1 %v20980_v37  ;;  %v20986_v37 = vld [vmem:[%s28257_s3 + $0x1150] ss:$8 sps:$4 sm:$0xff]  }
 0x4d3   : > { %8063 = vmatprep.subr.bf16.mxu1 %v20985_v58  ;;  %v20991_v58 = vld [vmem:[%s28257_s3 + $0x1164] ss:$8 sps:$4 sm:$0xff]  }
 0x4d5   : > { %8005 = vmatmul.mubr.bf16.gmra.mrb[72].mxu1 %v7369_v42  ;;  %v7390_v42 = vrot.slane %v25230_v12, 4 }
 0x4d6   : > { %8014 = vmatprep.mubr.bf16.mxu1 %v7381_v13  ;;  %8064 = vmatpush1.bf16.msra.mxu1 %v20983_v5  ;;  %v20994_v5 = vld [vmem:[%s28257_s3 + $0x1174] ss:$8 sps:$4 sm:$0xff]  }
 0x4d7   : > { %8065 = vmatprep.subr.bf16.mxu1 %v20988_v0  ;;  %v7379_v0 = vsel %vm7338_vm6, %v7368_v52, %v7378_v29  ;;  %v7391_v13 = vsel %vm7338_vm6, %v7380_v15, %v7390_v42  ;;  %v7388_v52 = vrot.slane %v25248_v36, 4 }
 0x4d9   : > { %v7389_v15 = vsel %vm7338_vm6, %v7378_v29, %v7388_v52 }
 0x4da   : > { %8066 = vmatpush1.bf16.msra.mxu1 %v20986_v37  ;;  %v20992_v37 = vld [vmem:[%s28257_s3 + $0x1170] ss:$8 sps:$4 sm:$0xff]  }
 0x4db   : > { %8067 = vmatprep.subr.bf16.mxu1 %v20991_v58  ;;  %v20997_v58 = vld [vmem:[%s28257_s3 + $0x1184] ss:$8 sps:$4 sm:$0xff]  }
 0x4dd   : > { %8015 = vmatmul.mubr.bf16.gmra.mrb[76].mxu1 %v7379_v0  ;;  %v7400_v0 = vrot.slane %v25250_v24, 4 }
 0x4de   : > { %8024 = vmatprep.mubr.bf16.mxu1 %v7391_v13  ;;  %8068 = vmatpush1.bf16.msra.mxu1 %v20989_v49  ;;  %v25262_v13 = vld [vmem:[#allocation2 + $0x128] sm:$0xff] }
 0x4df   : > { %8069 = vmatprep.subr.bf16.mxu1 %v20994_v5  ;;  %v7401_v49 = vsel %vm7338_vm6, %v7390_v42, %v7400_v0  ;;  %v7398_v5 = vrot.slane %v25262_v13, 4  ;;  %v7411_v51 = vsel %vm7338_vm6, %v7400_v0, %v7410_v2  ;;  %v25270_v42 = vld [vmem:[#allocation2 + $0x70] sm:$0xff]  ;;  %v25282_v2 = vld [vmem:[#allocation2 + $0x98] sm:$0xff]  ;;  %v21003_v0 = vld [vmem:[%s28257_s3 + $0x11a4] ss:$8 sps:$4 sm:$0xff]  }
 0x4e0   : > { %v7352_v38 = vrot.slane %v25270_v42, 4 }
 0x4e1   : > { %v7399_v47 = vsel %vm7338_vm6, %v7388_v52, %v7398_v5  ;;  %v20998_v52 = vld [vmem:[%s28257_s3 + $0x1190] ss:$8 sps:$4 sm:$0xff]  }
 0x4e2   : > { %8070 = vmatpush1.bf16.msra.mxu1 %v20992_v37  ;;  %v7408_v37 = vrot.slane %v7214_v59, 4  ;;  %v21000_v59 = vld [vmem:[%s28257_s3 + $0x1194] ss:$8 sps:$4 sm:$0xff]  }
 0x4e3   : > { %9063 = vmatprep.subr.bf16.mxu1 %v20997_v58  ;;  %v25268_v58 = vld [vmem:[#allocation2 + $0x48] sm:$0xf0] }
 0x4e4   : > { %v7409_v29 = vsel %vm7338_vm6, %v7398_v5, %v7408_v37  ;;  %v21001_v5 = vld [vmem:[%s28257_s3 + $0x11a0] ss:$8 sps:$4 sm:$0xff]   ;;  %v21006_v37 = vld [vmem:[%s28257_s3 + $0x11b4] ss:$8 sps:$4 sm:$0xff]  }
 0x4e5   : > { %8025 = vmatmul.mubr.bf16.gmra.mrb[80].mxu1 %v7389_v15  ;;  %v7351_v15 = vrot.slane %v25268_v58, 4 }
 0x4e6   : > { %8034 = vmatprep.mubr.bf16.mxu1 %v7401_v49  ;;  %v7362_v49 = vrot.slane %v25282_v2, 4 }
 0x4ed   : > { %8035 = vmatmul.mubr.bf16.gmra.mrb[84].mxu1 %v7399_v47  ;;  %v20995_v47 = vld [vmem:[%s28257_s3 + $0x1180] ss:$8 sps:$4 sm:$0xff]  }
 0x4ee   : > { %8044 = vmatprep.mubr.bf16.mxu1 %v7411_v51  ;;  %v7353_v51 = vsel %vm7338_vm6, %v7351_v15, %v7352_v38  ;;  %v25299_v15 = vld [vmem:[#allocation2 + $0xc0] sm:$0xff] }
 0x4f5   : > { %8045 = vmatmul.mubr.bf16.gmra.mrb[88].mxu1 %v7409_v29  ;;  %v7363_v29 = vsel %vm7338_vm6, %v7352_v38, %v7362_v49  ;;  %v21007_v38 = vld [vmem:[%s28257_s3 + $0x11c0] ss:$8 sps:$4 sm:$0xff]  }
 0x4f6   : > { %8087 = vmatprep.mubr.bf16.mxu1 %v28398_v44 }
 0x4fd   : > { %8088 = vmatmul.mubr.bf16.vlgmr.msra.gmra.mrb[64].mxu1 %v7353_v51  ;;  %v7372_v51 = vrot.slane %v25299_v15, 4 }
 0x4fe   : > { %9064 = vmatpush1.bf16.msra.mxu1 %v20995_v47  ;;  %8097 = vmatprep.mubr.bf16.mxu1 %v28398_v44  ;;  %v21004_v47 = vld [vmem:[%s28257_s3 + $0x11b0] ss:$8 sps:$4 sm:$0xff]  }
 0x4ff   : > { %9065 = vmatprep.subr.bf16.mxu1 %v21000_v59  ;;  %v21009_v59 = vld [vmem:[%s28257_s3 + $0x11c4] ss:$8 sps:$4 sm:$0xff]  }
 0x502   : > { %9066 = vmatpush1.bf16.msra.mxu1 %v20998_v52  ;;  %v21012_v52 = vld [vmem:[%s28257_s3 + $0x11d4] ss:$8 sps:$4 sm:$0xff]  }
 0x503   : > { %9067 = vmatprep.subr.bf16.mxu1 %v21003_v0  ;;  %v7373_v0 = vsel %vm7338_vm6, %v7362_v49, %v7372_v51  ;;  %v21013_v49 = vld [vmem:[%s28257_s3 + $0x11e0] ss:$8 sps:$4 sm:$0xff]  }
 0x505   : > { %8098 = vmatmul.mubr.bf16.gmra.mrb[68].mxu1 %v7363_v29  ;;  %v21015_v29 = vld [vmem:[%s28257_s3 + $0x11e4] ss:$8 sps:$4 sm:$0xff]  }
 0x506   : > { %9068 = vmatpush1.bf16.msra.mxu1 %v21001_v5  ;;  %8107 = vmatprep.mubr.bf16.mxu1 %v28398_v44  ;;  %v25316_v5 = vld [vmem:[#allocation2 + $0xe8] sm:$0xff] }
 0x507   : > { %9069 = vmatprep.subr.bf16.mxu1 %v21006_v37  ;;  %v21010_v37 = vld [vmem:[%s28257_s3 + $0x11d0] ss:$8 sps:$4 sm:$0xff]  }
 0x50a   : > { %9070 = vmatpush1.bf16.msra.mxu1 %v21004_v47  ;;  %v7382_v47 = vrot.slane %v25316_v5, 4 }
 0x50b   : > { %9071 = vmatprep.subr.bf16.mxu1 %v21009_v59  ;;  %v21018_v59 = vld [vmem:[%s28257_s3 + $0x11f4] ss:$8 sps:$4 sm:$0xff]  }
 0x50d   : > { %8108 = vmatmul.mubr.bf16.gmra.mrb[72].mxu1 %v7373_v0  ;;  %v21016_v0 = vld [vmem:[%s28257_s3 + $0x11f0] ss:$8 sps:$4 sm:$0xff]  }
 0x50e   : > { %9072 = vmatpush1.bf16.msra.mxu1 %v21007_v38  ;;  %8117 = vmatprep.mubr.bf16.mxu1 %v28398_v44  ;;  %v7383_v38 = vsel %vm7338_vm6, %v7372_v51, %v7382_v47  ;;  %v21019_v51 = vld [vmem:[%s28257_s3 + $0x1200] ss:$8 sps:$4 sm:$0xff]  }
 0x50f   : > { %9073 = vmatprep.subr.bf16.mxu1 %v21012_v52  ;;  %v25333_v52 = vld [vmem:[#allocation2 + $0x110] sm:$0xff] }
 0x512   : > { %9074 = vmatpush1.bf16.msra.mxu1 %v21010_v37  ;;  %v21021_v37 = vld [vmem:[%s28257_s3 + $0x1204] ss:$8 sps:$4 sm:$0xff]  }
 0x513   : > { %9075 = vmatprep.subr.bf16.mxu1 %v21015_v29  ;;  %v7392_v29 = vrot.slane %v25333_v52, 4 }
 0x515   : > { %8118 = vmatmul.mubr.bf16.gmra.mrb[76].mxu1 %v7383_v38  ;;  %v7393_v38 = vsel %vm7338_vm6, %v7382_v47, %v7392_v29  ;;  %v8302_v47 = vshll.u32 %v24984_v21, 16 }
 0x516   : > { %9076 = vmatpush1.bf16.msra.mxu1 %v21013_v49  ;;  %8127 = vmatprep.mubr.bf16.mxu1 %v28398_v44  ;;  %v21024_v49 = vld [vmem:[%s28257_s3 + $0x1214] ss:$8 sps:$4 sm:$0xff]  }
 0x517   : > { %9077 = vmatprep.subr.bf16.mxu1 %v21018_v59  ;;  %v25350_v59 = vld [vmem:[#allocation2 + $0x138] sm:$0xff]  ;;  %v8304_v21 = vrot.slane %v8302_v47, 5 }
 0x518   : > { %v21036_v47 = vld [vmem:[%s28257_s3 + $0x1254] ss:$8 sps:$4 sm:$0xff]  }
 0x51a   : > { %9078 = vmatpush1.bf16.msra.mxu1 %v21016_v0  ;;  %v21027_v0 = vld [vmem:[%s28257_s3 + $0x1224] ss:$8 sps:$4 sm:$0xff]  }
 0x51b   : > { %9079 = vmatprep.subr.bf16.mxu1 %v21021_v37  ;;  %v7402_v37 = vrot.slane %v25350_v59, 4 }
 0x51d   : > { %8128 = vmatmul.mubr.bf16.gmra.mrb[80].mxu1 %v7393_v38  ;;  %v8291_v38 = vshrl.u32 %v24989_v39, 16  ;;  %v7403_v7 = vsel %vm7338_vm6, %v7392_v29, %v7402_v37  ;;  %v8296_v39 = vrot.slane %v8294_v1, 5  ;;  %v8305_v29 = vor.u32 %v8304_v21, %v8301_v20  ;;  %v21034_v20 = vld [vmem:[%s28257_s3 + $0x1250] ss:$8 sps:$4 sm:$0xff]  }
 0x51e   : > { %9080 = vmatpush1.bf16.msra.mxu1 %v21019_v51  ;;  %8137 = vmatprep.mubr.bf16.mxu1 %v28398_v44  ;;  %v21025_v51 = vld [vmem:[%s28257_s3 + $0x1220] ss:$8 sps:$4 sm:$0xff]   ;;  %v8285_v1 = vshll.u32 %v25013_v41, 16  ;;  %v8274_v21 = vshrl.u32 %v25020_v32, 16 }
 0x51f   : > { %9081 = vmatprep.subr.bf16.mxu1 %v21024_v49  ;;  %v21030_v49 = vld [vmem:[%s28257_s3 + $0x1234] ss:$8 sps:$4 sm:$0xff]   ;;  %v8293_v27 = vrot.slane %v8291_v38, 4  ;;  %v21037_v38 = vld [vmem:[%s28257_s3 + $0x1260] ss:$8 sps:$4 sm:$0xff]  }
 0x520   : > { %v8287_v41 = vrot.slane %v8285_v1, 5  ;;  %v8413_v1 = vshrl.u32 %v25041_v18, 16 }
 0x521   : > { %v8297_v48 = vor.u32 %v8296_v39, %v8293_v27  ;;  %v21039_v27 = vld [vmem:[%s28257_s3 + $0x1264] ss:$8 sps:$4 sm:$0xff]   ;;  %v8284_v39 = vrot.slane %v8282_v35, 4 }
 0x522   : > { %9082 = vmatpush1.bf16.msra.mxu1 %v21022_v16  ;;  %v21028_v16 = vld [vmem:[%s28257_s3 + $0x1230] ss:$8 sps:$4 sm:$0xff]  }
 0x523   : > { %9083 = vmatprep.subr.bf16.mxu1 %v21027_v0  ;;  %v21033_v0 = vld [vmem:[%s28257_s3 + $0x1244] ss:$8 sps:$4 sm:$0xff]  }
 0x525   : > { %8138 = vmatmul.mubr.bf16.gmra.mrb[84].mxu1 %v7403_v7  ;;  %v21031_v7 = vld [vmem:[%s28257_s3 + $0x1240] ss:$8 sps:$4 sm:$0xff]  }
 0x526   : > { %9084 = vmatpush1.bf16.msra.mxu1 %v21025_v51  ;;  %8147 = vmatprep.mubr.bf16.mxu1 %v28398_v44  ;;  %v7413_v51 = vsel %vm7338_vm6, %v7402_v37, %v7412_v34  ;;  %v8368_v34 = vshrl.u32 %v25018_v28, 16  ;;  %v8371_v37 = vshll.u32 %v25018_v28, 16  ;;  %v21040_v28 = vld [vmem:[%s28257_s3 + $0x1270] ss:$8 sps:$4 sm:$0xff]  }
 0x527   : > { %9085 = vmatprep.subr.bf16.mxu1 %v21030_v49  ;;  %v8306_v49 = vsel %vm8272_vm7, %v8297_v48, %v8305_v29 }
 0x528   : > { %v8373_v48 = vrot.slane %v8371_v37, 5 }
 0x52a   : > { %9086 = vmatpush1.bf16.msra.mxu1 %v21028_v16  ;;  %v8277_v16 = vshll.u32 %v25020_v32, 16  ;;  %v21045_v32 = vld [vmem:[%s28257_s3 + $0x1284] ss:$8 sps:$4 sm:$0xff]  }
 0x52b   : > { %9087 = vmatprep.subr.bf16.mxu1 %v21033_v0  ;;  %v21042_v0 = vld [vmem:[%s28257_s3 + $0x1274] ss:$8 sps:$4 sm:$0xff]  }
 0x52d   : > { %8148 = vmatmul.mubr.bf16.gmra.mrb[88].mxu1 %v7413_v51  ;;  %v8279_v51 = vrot.slane %v8277_v16, 5 }
 0x52e   : > { %9088 = vmatpush1.bf16.msra.mxu1 %v21031_v7  ;;  %9095 = vmatprep.mubr.bf16.mxu1 %v8306_v49  ;;  %v8370_v7 = vrot.slane %v8368_v34, 4  ;;  %v8288_v49 = vor.u32 %v8287_v41, %v8284_v39  ;;  %v8416_v34 = vshll.u32 %v25041_v18, 16  ;;  %v8415_v41 = vrot.slane %v8413_v1, 4  ;;  %v21054_v1 = vld [vmem:[%s28257_s3 + $0x12b4] ss:$8 sps:$4 sm:$0xff]  }
 0x52f   : > { %9089 = vmatprep.subr.bf16.mxu1 %v21036_v47  ;;  %v8276_v47 = vrot.slane %v8274_v21, 4  ;;  %v21048_v21 = vld [vmem:[%s28257_s3 + $0x1294] ss:$8 sps:$4 sm:$0xff]  }
 0x530   : > { %v8374_v35 = vor.u32 %v8373_v48, %v8370_v7  ;;  %v8418_v18 = vrot.slane %v8416_v34, 5  ;;  %v21046_v7 = vld [vmem:[%s28257_s3 + $0x1290] ss:$8 sps:$4 sm:$0xff]   ;;  %v21051_v48 = vld [vmem:[%s28257_s3 + $0x12a4] ss:$8 sps:$4 sm:$0xff]  }
 0x531   : > { %v8280_v37 = vor.u32 %v8279_v51, %v8276_v47  ;;  %v8404_v47 = vshrl.u32 %v25056_v4, 16  ;;  %v8407_v51 = vshll.u32 %v25056_v4, 16 }
 0x532   : > { %9090 = vmatpush1.bf16.msra.mxu1 %v21034_v20  ;;  %v8359_v20 = vshrl.u32 %v25036_v54, 16  ;;  %v8375_v39 = vsel %vm8272_vm7, %v8305_v29, %v8374_v35  ;;  %v8458_v29 = vshrl.u32 %v25061_v55, 16 }
 0x533   : > { %9091 = vmatprep.subr.bf16.mxu1 %v21039_v27  ;;  %v8362_v27 = vshll.u32 %v25036_v54, 16  ;;  %v8289_v16 = vsel %vm8272_vm7, %v8280_v37, %v8288_v49  ;;  %v8406_v37 = vrot.slane %v8404_v47, 4 }
 0x535   : > { %v8364_v54 = vrot.slane %v8362_v27, 5  ;;  %v21049_v27 = vld [vmem:[%s28257_s3 + $0x12a0] ss:$8 sps:$4 sm:$0xff]  }
 0x536   : > { %9092 = vmatpush1.bf16.msra.mxu1 %v21037_v38  ;;  %v21043_v38 = vld [vmem:[%s28257_s3 + $0x1280] ss:$8 sps:$4 sm:$0xff]  }
 0x537   : > { %9093 = vmatprep.subr.bf16.mxu1 %v21042_v0  ;;  %v8361_v0 = vrot.slane %v8359_v20, 4  ;;  %v8461_v20 = vshll.u32 %v25061_v55, 16  ;;  %v21052_v55 = vld [vmem:[%s28257_s3 + $0x12b0] ss:$8 sps:$4 sm:$0xff]  }
 0x53a   : > { %9094 = vmatpush1.bf16.msra.mxu1 %v21040_v28  ;;  %v8365_v28 = vor.u32 %v8364_v54, %v8361_v0  ;;  %v21057_v0 = vld [vmem:[%s28257_s3 + $0x12c4] ss:$8 sps:$4 sm:$0xff]  }
 0x53b   : > { %9166 = vmatprep.subr.bf16.mxu1 %v21045_v32  ;;  %v8419_v32 = vor.u32 %v8418_v18, %v8415_v41  ;;  %v8506_v18 = vshll.u32 %v25081_v50, 16 }
 0x53c   : > { %v8366_v34 = vsel %vm8272_vm7, %v8288_v49, %v8365_v28  ;;  %v8449_v49 = vshrl.u32 %v25076_v8, 16 }
 0x53d   : > { %9096 = vmatmul.mubr.bf16.vlgmr.msra.gmra.mrb[64].mxu1 %v8289_v16  ;;  %v8420_v4 = vsel %vm8272_vm7, %v8374_v35, %v8419_v32  ;;  %v8463_v16 = vrot.slane %v8461_v20, 5  ;;  %v8503_v35 = vshrl.u32 %v25081_v50, 16  ;;  %v21058_v50 = vld [vmem:[%s28257_s3 + $0x12d0] ss:$8 sps:$4 sm:$0xff]  }
 0x53e   : > { %9105 = vmatprep.mubr.bf16.mxu1 %v8375_v39  ;;  %9167 = vmatpush1.bf16.msra.mxu1 %v21043_v38  ;;  %v8409_v38 = vrot.slane %v8407_v51, 5  ;;  %v8452_v39 = vshll.u32 %v25076_v8, 16  ;;  %v8451_v51 = vrot.slane %v8449_v49, 4 }
 0x53f   : > { %9168 = vmatprep.subr.bf16.mxu1 %v21048_v21  ;;  %v8460_v21 = vrot.slane %v8458_v29, 4  ;;  %v8505_v20 = vrot.slane %v8503_v35, 4 }
 0x540   : > { %v8410_v54 = vor.u32 %v8409_v38, %v8406_v37  ;;  %v8454_v29 = vrot.slane %v8452_v39, 5  ;;  %v8497_v37 = vshll.u32 %v25096_v17, 16 }
 0x541   : > { %v8464_v41 = vor.u32 %v8463_v16, %v8460_v21  ;;  %v21061_v21 = vld [vmem:[%s28257_s3 + $0x12e0] ss:$8 sps:$4 sm:$0xff]   ;;  %v21066_v16 = vld [vmem:[%s28257_s3 + $0x12f4] ss:$8 sps:$4 sm:$0xff]  }
 0x542   : > { %9169 = vmatpush1.bf16.msra.mxu1 %v21046_v7  ;;  %v21055_v7 = vld [vmem:[%s28257_s3 + $0x12c0] ss:$8 sps:$4 sm:$0xff]   ;;  %v8411_v47 = vsel %vm8272_vm7, %v8365_v28, %v8410_v54  ;;  %v8494_v28 = vshrl.u32 %v25096_v17, 16  ;;  %v8499_v49 = vrot.slane %v8497_v37, 5 }
 0x543   : > { %9170 = vmatprep.subr.bf16.mxu1 %v21051_v48  ;;  %v21060_v48 = vld [vmem:[%s28257_s3 + $0x12d4] ss:$8 sps:$4 sm:$0xff]   ;;  %v8465_v8 = vsel %vm8272_vm7, %v8419_v32, %v8464_v41  ;;  %v8548_v32 = vshrl.u32 %v25101_v57, 16 }
 0x545   : > { %9106 = vmatmul.mubr.bf16.gmra.mrb[68].mxu1 %v8366_v34  ;;  %v8455_v34 = vor.u32 %v8454_v29, %v8451_v51  ;;  %v8550_v39 = vrot.slane %v8548_v32, 4  ;;  %v25496_v32 = vld [vmem:[#allocation2 + $0x140] sm:$0x1f] }
 0x546   : > { %9115 = vmatprep.mubr.bf16.mxu1 %v8420_v4  ;;  %9171 = vmatpush1.bf16.msra.mxu1 %v21049_v27  ;;  %v8508_v27 = vrot.slane %v8506_v18, 5  ;;  %v8551_v4 = vshll.u32 %v25101_v57, 16  ;;  %v21064_v57 = vld [vmem:[%s28257_s3 + $0x12f0] ss:$8 sps:$4 sm:$0xff]   ;;  %v25479_v18 = vld [vmem:[#allocation2 + $0x148] sm:$0x1f] }
 0x547   : > { %9172 = vmatprep.subr.bf16.mxu1 %v21054_v1  ;;  %v21063_v1 = vld [vmem:[%s28257_s3 + $0x12e4] ss:$8 sps:$4 sm:$0xff]   ;;  %v8593_v51 = vshrl.u32 %v25479_v18, 16  ;;  %v8596_v29 = vshll.u32 %v25479_v18, 16 }
 0x548   : > { %v8509_v38 = vor.u32 %v8508_v27, %v8505_v20  ;;  %v8553_v35 = vrot.slane %v8551_v4, 5  ;;  %v21072_v20 = vld [vmem:[%s28257_s3 + $0x1314] ss:$8 sps:$4 sm:$0xff]   ;;  %v21070_v4 = vld [vmem:[%s28257_s3 + $0x1310] ss:$8 sps:$4 sm:$0xff]  }
 0x549   : > { %v8598_v37 = vrot.slane %v8596_v29, 5 }
 0x54a   : > { %9173 = vmatpush1.bf16.msra.mxu1 %v21052_v55  ;;  %v8456_v55 = vsel %vm8272_vm7, %v8410_v54, %v8455_v34  ;;  %v8510_v17 = vsel %vm8272_vm7, %v8464_v41, %v8509_v38  ;;  %v21069_v54 = vld [vmem:[%s28257_s3 + $0x1304] ss:$8 sps:$4 sm:$0xff]   ;;  %v8542_v41 = vshll.u32 %v25116_v30, 16 }
 0x54b   : > { %9174 = vmatprep.subr.bf16.mxu1 %v21057_v0  ;;  %v8496_v0 = vrot.slane %v8494_v28, 4  ;;  %v8595_v28 = vrot.slane %v8593_v51, 4 }
 0x54d   : > { %9116 = vmatmul.mubr.bf16.gmra.mrb[72].mxu1 %v8411_v47  ;;  %v8554_v47 = vor.u32 %v8553_v35, %v8550_v39  ;;  %v21078_v39 = vld [vmem:[%s28257_s3 + $0x1334] ss:$8 sps:$4 sm:$0xff]   ;;  %v8325_v35 = vshrl.u32 %v25141_v6, 16 }
 0x54e   : > { %9125 = vmatprep.mubr.bf16.mxu1 %v8465_v8  ;;  %9175 = vmatpush1.bf16.msra.mxu1 %v21055_v7  ;;  %v8500_v7 = vor.u32 %v8499_v49, %v8496_v0  ;;  %v21067_v8 = vld [vmem:[%s28257_s3 + $0x1300] ss:$8 sps:$4 sm:$0xff]   ;;  %v8333_v0 = vshrl.u32 %v25136_v53, 16  ;;  %v8336_v49 = vshll.u32 %v25136_v53, 16 }
 0x54f   : > { %9176 = vmatprep.subr.bf16.mxu1 %v21060_v48  ;;  %v8539_v48 = vshrl.u32 %v25116_v30, 16  ;;  %v8555_v30 = vsel %vm8272_vm7, %v8509_v38, %v8554_v47  ;;  %v8587_v38 = vshll.u32 %v25496_v32, 16 }
 0x550   : > { %v8501_v27 = vsel %vm8272_vm7, %v8455_v34, %v8500_v7  ;;  %v21075_v34 = vld [vmem:[%s28257_s3 + $0x1324] ss:$8 sps:$4 sm:$0xff]   ;;  %v8335_v51 = vrot.slane %v8333_v0, 4  ;;  %v8338_v29 = vrot.slane %v8336_v49, 5  ;;  %v21085_v0 = vld [vmem:[%s28257_s3 + $0x1360] ss:$8 sps:$4 sm:$0xff]  }
 0x551   : > { %v8308_v49 = vshrl.u32 %v25172_v19, 16 }
 0x552   : > { %9177 = vmatpush1.bf16.msra.mxu1 %v21058_v50  ;;  %v8541_v50 = vrot.slane %v8539_v48, 4 }
 0x553   : > { %9178 = vmatprep.subr.bf16.mxu1 %v21063_v1  ;;  %v8544_v1 = vrot.slane %v8542_v41, 5  ;;  %v8589_v41 = vrot.slane %v8587_v38, 5  ;;  %v8319_v38 = vshll.u32 %v25165_v62, 16 }
 0x555   : > { %9126 = vmatmul.mubr.bf16.gmra.mrb[76].mxu1 %v8456_v55  ;;  %v8599_v55 = vor.u32 %v8598_v37, %v8595_v28 }
 0x556   : > { %9135 = vmatprep.mubr.bf16.mxu1 %v8510_v17  ;;  %9179 = vmatpush1.bf16.msra.mxu1 %v21061_v21  ;;  %v8545_v21 = vor.u32 %v8544_v1, %v8541_v50  ;;  %v21073_v17 = vld [vmem:[%s28257_s3 + $0x1320] ss:$8 sps:$4 sm:$0xff]   ;;  %v8339_v50 = vor.u32 %v8338_v29, %v8335_v51  ;;  %v8377_v51 = vshrl.u32 %v25188_v3, 16  ;;  %v8380_v29 = vshll.u32 %v25188_v3, 16 }
 0x557   : > { %9180 = vmatprep.subr.bf16.mxu1 %v21066_v16  ;;  %v8584_v16 = vshrl.u32 %v25496_v32, 16  ;;  %v8600_v53 = vsel %vm8272_vm7, %v8554_v47, %v8599_v55  ;;  %v21079_v47 = vld [vmem:[%s28257_s3 + $0x1340] ss:$8 sps:$4 sm:$0xff]   ;;  %v8389_v55 = vshll.u32 %v25170_v61, 16 }
 0x558   : > { %v8382_v3 = vrot.slane %v8380_v29, 5  ;;  %v8524_v29 = vshll.u32 %v25230_v12, 16 }
 0x559   : > { %v8586_v48 = vrot.slane %v8584_v16, 4  ;;  %v8316_v16 = vshrl.u32 %v25165_v62, 16  ;;  %v8321_v62 = vrot.slane %v8319_v38, 5  ;;  %v8422_v38 = vshrl.u32 %v25208_v25, 16 }
 0x55a   : > { %9181 = vmatpush1.bf16.msra.mxu1 %v21064_v57  ;;  %v8328_v57 = vshll.u32 %v25141_v6, 16  ;;  %v21081_v6 = vld [vmem:[%s28257_s3 + $0x1344] ss:$8 sps:$4 sm:$0xff]  }
 0x55b   : > { %9182 = vmatprep.subr.bf16.mxu1 %v21069_v54  ;;  %v8546_v54 = vsel %vm8272_vm7, %v8500_v7, %v8545_v21 }
 0x55c   : > { %v8330_v7 = vrot.slane %v8328_v57, 5 }
 0x55d   : > { %9136 = vmatmul.mubr.bf16.gmra.mrb[80].mxu1 %v8501_v27  ;;  %v8590_v27 = vor.u32 %v8589_v41, %v8586_v48  ;;  %v8310_v48 = vrot.slane %v8308_v49, 4  ;;  %v21097_v49 = vld [vmem:[%s28257_s3 + $0x13a0] ss:$8 sps:$4 sm:$0xff]  }
 0x55e   : > { %9145 = vmatprep.mubr.bf16.mxu1 %v8555_v30  ;;  %9183 = vmatpush1.bf16.msra.mxu1 %v21067_v8  ;;  %v21076_v8 = vld [vmem:[%s28257_s3 + $0x1330] ss:$8 sps:$4 sm:$0xff]   ;;  %v21084_v30 = vld [vmem:[%s28257_s3 + $0x1354] ss:$8 sps:$4 sm:$0xff]  }
 0x55f   : > { %9184 = vmatprep.subr.bf16.mxu1 %v21072_v20  ;;  %v8327_v20 = vrot.slane %v8325_v35, 4  ;;  %v8591_v28 = vsel %vm8272_vm7, %v8545_v21, %v8590_v27  ;;  %v8386_v21 = vshrl.u32 %v25170_v61, 16  ;;  %v8318_v35 = vrot.slane %v8316_v16, 4  ;;  %v21088_v61 = vld [vmem:[%s28257_s3 + $0x1370] ss:$8 sps:$4 sm:$0xff]  }
 0x560   : > { %v21091_v27 = vld [vmem:[%s28257_s3 + $0x1380] ss:$8 sps:$4 sm:$0xff]  }
 0x561   : > { %v8331_v1 = vor.u32 %v8330_v7, %v8327_v20  ;;  %v8388_v57 = vrot.slane %v8386_v21, 4  ;;  %v8434_v20 = vshll.u32 %v25193_v9, 16  ;;  %v8425_v21 = vshll.u32 %v25208_v25, 16 }
 0x562   : > { %9185 = vmatpush1.bf16.msra.mxu1 %v21070_v4  ;;  %v21082_v4 = vld [vmem:[%s28257_s3 + $0x1350] ss:$8 sps:$4 sm:$0xff]  }
 0x563   : > { %9186 = vmatprep.subr.bf16.mxu1 %v21075_v34  ;;  %v8340_v37 = vsel %vm8272_vm7, %v8331_v1, %v8339_v50  ;;  %v21087_v34 = vld [vmem:[%s28257_s3 + $0x1364] ss:$8 sps:$4 sm:$0xff]  }
 0x565   : > { %9146 = vmatmul.mubr.bf16.gmra.mrb[84].mxu1 %v8546_v54  ;;  %v8391_v54 = vrot.slane %v8389_v55, 5 }
 0x566   : > { %9155 = vmatprep.mubr.bf16.mxu1 %v8600_v53  ;;  %9187 = vmatpush1.bf16.msra.mxu1 %v21073_v17  ;;  %v8311_v17 = vshll.u32 %v25172_v19, 16  ;;  %v21093_v19 = vld [vmem:[%s28257_s3 + $0x1384] ss:$8 sps:$4 sm:$0xff]   ;;  %v8322_v53 = vor.u32 %v8321_v62, %v8318_v35  ;;  %v8424_v35 = vrot.slane %v8422_v38, 4  ;;  %v8427_v62 = vrot.slane %v8425_v21, 5 }
 0x567   : > { %9188 = vmatprep.subr.bf16.mxu1 %v21078_v39  ;;  %v21090_v39 = vld [vmem:[%s28257_s3 + $0x1374] ss:$8 sps:$4 sm:$0xff]  }
 0x568   : > { %v8313_v41 = vrot.slane %v8311_v17, 5  ;;  %v21102_v17 = vld [vmem:[%s28257_s3 + $0x13b4] ss:$8 sps:$4 sm:$0xff]  }
 0x569   : > { %v21114_v38 = vld [vmem:[%s28257_s3 + $0x13f4] ss:$8 sps:$4 sm:$0xff]  }
 0x56a   : > { %9189 = vmatpush1.bf16.msra.mxu1 %v21076_v8  ;;  %v8392_v8 = vor.u32 %v8391_v54, %v8388_v57  ;;  %v8314_v7 = vor.u32 %v8313_v41, %v8310_v48  ;;  %v8428_v48 = vor.u32 %v8427_v62, %v8424_v35  ;;  %v8467_v41 = vshrl.u32 %v25228_v60, 16 }
 0x56b   : > { %9190 = vmatprep.subr.bf16.mxu1 %v21081_v6  ;;  %v8431_v6 = vshrl.u32 %v25193_v9, 16  ;;  %v8436_v9 = vrot.slane %v8434_v20, 5  ;;  %v8557_v62 = vshrl.u32 %v25262_v13, 16 }
 0x56c   : > { %v8323_v1 = vsel %vm8272_vm7, %v8314_v7, %v8322_v53  ;;  %v8469_v7 = vrot.slane %v8467_v41, 4 }
 0x56d   : > { %9156 = vmatmul.mubr.bf16.gmra.mrb[88].mxu1 %v8591_v28  ;;  %v8393_v28 = vsel %vm8272_vm7, %v8339_v50, %v8392_v8  ;;  %v8476_v50 = vshrl.u32 %v25210_v46, 16 }
 0x56e   : > { %9191 = vmatpush1.bf16.msra.mxu1 %v21079_v47  ;;  %9198 = vmatprep.mubr.bf16.mxu1 %v8340_v37  ;;  %v21096_v47 = vld [vmem:[%s28257_s3 + $0x1394] ss:$8 sps:$4 sm:$0xff]   ;;  %v8433_v37 = vrot.slane %v8431_v6, 4 }
 0x56f   : > { %9192 = vmatprep.subr.bf16.mxu1 %v21084_v30  ;;  %v8379_v30 = vrot.slane %v8377_v51, 4  ;;  %v8478_v57 = vrot.slane %v8476_v50, 4  ;;  %v8521_v51 = vshrl.u32 %v25230_v12, 16  ;;  %v21108_v6 = vld [vmem:[%s28257_s3 + $0x13d4] ss:$8 sps:$4 sm:$0xff]  }
 0x570   : > { %v8437_v55 = vor.u32 %v8436_v9, %v8433_v37  ;;  %v21106_v12 = vld [vmem:[%s28257_s3 + $0x13d0] ss:$8 sps:$4 sm:$0xff]   ;;  %v8515_v37 = vshll.u32 %v25248_v36, 16 }
 0x571   : > { %v8383_v16 = vor.u32 %v8382_v3, %v8379_v30  ;;  %v21111_v30 = vld [vmem:[%s28257_s3 + $0x13e4] ss:$8 sps:$4 sm:$0xff]  }
 0x572   : > { %9193 = vmatpush1.bf16.msra.mxu1 %v21082_v4  ;;  %v21094_v4 = vld [vmem:[%s28257_s3 + $0x1390] ss:$8 sps:$4 sm:$0xff]   ;;  %v8438_v25 = vsel %vm8272_vm7, %v8392_v8, %v8437_v55  ;;  %v21103_v8 = vld [vmem:[%s28257_s3 + $0x13c0] ss:$8 sps:$4 sm:$0xff]   ;;  %v8517_v50 = vrot.slane %v8515_v37, 5 }
 0x573   : > { %9194 = vmatprep.subr.bf16.mxu1 %v21087_v34  ;;  %v21099_v34 = vld [vmem:[%s28257_s3 + $0x13a4] ss:$8 sps:$4 sm:$0xff]   ;;  %v8429_v20 = vsel %vm8272_vm7, %v8383_v16, %v8428_v48 }
 0x576   : > { %9195 = vmatpush1.bf16.msra.mxu1 %v21085_v0  ;;  %v8479_v0 = vshll.u32 %v25210_v46, 16  ;;  %v21100_v46 = vld [vmem:[%s28257_s3 + $0x13b0] ss:$8 sps:$4 sm:$0xff]  }
 0x577   : > { %9196 = vmatprep.subr.bf16.mxu1 %v21090_v39  ;;  %v8384_v39 = vsel %vm8272_vm7, %v8322_v53, %v8383_v16  ;;  %v21109_v16 = vld [vmem:[%s28257_s3 + $0x13e0] ss:$8 sps:$4 sm:$0xff]  }
 0x578   : > { %v8481_v54 = vrot.slane %v8479_v0, 5 }
 0x57a   : > { %9197 = vmatpush1.bf16.msra.mxu1 %v21088_v61  ;;  %v21105_v61 = vld [vmem:[%s28257_s3 + $0x13c4] ss:$8 sps:$4 sm:$0xff]   ;;  %v8482_v53 = vor.u32 %v8481_v54, %v8478_v57 }
 0x57b   : > { %9269 = vmatprep.subr.bf16.mxu1 %v21093_v19  ;;  %v8470_v19 = vshll.u32 %v25228_v60, 16 }
 0x57c   : > { %v8483_v60 = vsel %vm8272_vm7, %v8437_v55, %v8482_v53 }
 0x57d   : > { %9199 = vmatmul.mubr.bf16.vlgmr.msra.gmra.mrb[64].mxu1 %v8323_v1  ;;  %v8526_v1 = vrot.slane %v8524_v29, 5  ;;  %v25636_v29 = vld [vmem:[#allocation2 + $0x150] sm:$0x1f] }
 0x57e   : > { %9208 = vmatprep.mubr.bf16.mxu1 %v8393_v28  ;;  %9270 = vmatpush1.bf16.msra.mxu1 %v21091_v27  ;;  %v8472_v27 = vrot.slane %v8470_v19, 5  ;;  %v8512_v28 = vshrl.u32 %v25248_v36, 16 }
 0x57f   : > { %9271 = vmatprep.subr.bf16.mxu1 %v21096_v47  ;;  %v8523_v47 = vrot.slane %v8521_v51, 4 }
 0x580   : > { %v8473_v3 = vor.u32 %v8472_v27, %v8469_v7  ;;  %v8514_v55 = vrot.slane %v8512_v28, 4  ;;  %v8353_v28 = vshll.u32 %v25270_v42, 16 }
 0x581   : > { %v8527_v9 = vor.u32 %v8526_v1, %v8523_v47  ;;  %v8342_v1 = vshrl.u32 %v25268_v58, 16 }
 0x582   : > { %9272 = vmatpush1.bf16.msra.mxu1 %v21094_v4  ;;  %v8566_v4 = vshrl.u32 %v25250_v24, 16  ;;  %v8474_v21 = vsel %vm8272_vm7, %v8428_v48, %v8473_v3  ;;  %v8518_v35 = vor.u32 %v8517_v50, %v8514_v55  ;;  %v8559_v48 = vrot.slane %v8557_v62, 4 }
 0x583   : > { %9273 = vmatprep.subr.bf16.mxu1 %v21099_v34  ;;  %v8569_v34 = vshll.u32 %v25250_v24, 16  ;;  %v8528_v36 = vsel %vm8272_vm7, %v8482_v53, %v8527_v9  ;;  %v25622_v24 = vld [vmem:[#allocation2 + $0x158] sm:$0x1f]  ;;  %v8344_v37 = vrot.slane %v8342_v1, 4  ;;  %v8395_v55 = vshrl.u32 %v25282_v2, 16 }
 0x584   : > { %v8568_v0 = vrot.slane %v8566_v4, 4  ;;  %v8611_v54 = vshrl.u32 %v25622_v24, 16  ;;  %v8398_v50 = vshll.u32 %v25282_v2, 16  ;;  %v21123_v2 = vld [vmem:[%s28257_s3 + $0x1424] ss:$8 sps:$4 sm:$0xff]   ;;  %v8443_v62 = vshll.u32 %v25299_v15, 16 }
 0x585   : > { %9209 = vmatmul.mubr.bf16.gmra.mrb[68].mxu1 %v8384_v39  ;;  %v21117_v39 = vld [vmem:[%s28257_s3 + $0x1404] ss:$8 sps:$4 sm:$0xff]   ;;  %v21133_v1 = vld [vmem:[%s28257_s3 + $0x1460] ss:$8 sps:$4 sm:$0xff]  }
 0x586   : > { %9218 = vmatprep.mubr.bf16.mxu1 %v8438_v25  ;;  %9274 = vmatpush1.bf16.msra.mxu1 %v21097_v49  ;;  %v8571_v49 = vrot.slane %v8569_v34, 5  ;;  %v8560_v25 = vshll.u32 %v25262_v13, 16  ;;  %v8613_v53 = vrot.slane %v8611_v54, 4 }
 0x587   : > { %9275 = vmatprep.subr.bf16.mxu1 %v21102_v17  ;;  %v21112_v17 = vld [vmem:[%s28257_s3 + $0x13f0] ss:$8 sps:$4 sm:$0xff]  }
 0x588   : > { %v8572_v57 = vor.u32 %v8571_v49, %v8568_v0  ;;  %v8562_v41 = vrot.slane %v8560_v25, 5  ;;  %v8397_v0 = vrot.slane %v8395_v55, 4  ;;  %v8400_v49 = vrot.slane %v8398_v50, 5  ;;  %v21121_v25 = vld [vmem:[%s28257_s3 + $0x1420] ss:$8 sps:$4 sm:$0xff]  }
 0x58a   : > { %9276 = vmatpush1.bf16.msra.mxu1 %v21100_v46  ;;  %v8614_v46 = vshll.u32 %v25622_v24, 16  ;;  %v8573_v19 = vsel %vm8272_vm7, %v8527_v9, %v8572_v57  ;;  %v8563_v13 = vor.u32 %v8562_v41, %v8559_v48  ;;  %v21129_v48 = vld [vmem:[%s28257_s3 + $0x1444] ss:$8 sps:$4 sm:$0xff]  }
 0x58b   : > { %9277 = vmatprep.subr.bf16.mxu1 %v21105_v61  ;;  %v8519_v61 = vsel %vm8272_vm7, %v8473_v3, %v8518_v35  ;;  %v8350_v3 = vshrl.u32 %v25270_v42, 16  ;;  %v21120_v42 = vld [vmem:[%s28257_s3 + $0x1414] ss:$8 sps:$4 sm:$0xff]  }
 0x58c   : > { %v8616_v51 = vrot.slane %v8614_v46, 5  ;;  %v8564_v7 = vsel %vm8272_vm7, %v8518_v35, %v8563_v13  ;;  %v8440_v35 = vshrl.u32 %v25299_v15, 16  ;;  %v21124_v15 = vld [vmem:[%s28257_s3 + $0x1430] ss:$8 sps:$4 sm:$0xff]  }
 0x58d   : > { %9219 = vmatmul.mubr.bf16.gmra.mrb[72].mxu1 %v8429_v20  ;;  %v8352_v34 = vrot.slane %v8350_v3, 4 }
 0x58e   : > { %9228 = vmatprep.mubr.bf16.mxu1 %v8483_v60  ;;  %9278 = vmatpush1.bf16.msra.mxu1 %v21103_v8  ;;  %v8602_v8 = vshrl.u32 %v25636_v29, 16  ;;  %v8617_v20 = vor.u32 %v8616_v51, %v8613_v53  ;;  %v8442_v46 = vrot.slane %v8440_v35, 4  ;;  %v8488_v53 = vshll.u32 %v25316_v5, 16  ;;  %v21127_v51 = vld [vmem:[%s28257_s3 + $0x1440] ss:$8 sps:$4 sm:$0xff]  }
 0x58f   : > { %9279 = vmatprep.subr.bf16.mxu1 %v21108_v6  ;;  %v8605_v6 = vshll.u32 %v25636_v29, 16 }
 0x590   : > { %v8604_v27 = vrot.slane %v8602_v8, 4  ;;  %v8618_v47 = vsel %vm8272_vm7, %v8572_v57, %v8617_v20  ;;  %v21126_v57 = vld [vmem:[%s28257_s3 + $0x1434] ss:$8 sps:$4 sm:$0xff]   ;;  %v8490_v20 = vrot.slane %v8488_v53, 5 }
 0x591   : > { %v8607_v60 = vrot.slane %v8605_v6, 5 }
 0x592   : > { %9280 = vmatpush1.bf16.msra.mxu1 %v21106_v12 }
 0x593   : > { %9281 = vmatprep.subr.bf16.mxu1 %v21111_v30  ;;  %v8608_v12 = vor.u32 %v8607_v60, %v8604_v27  ;;  %v8345_v30 = vshll.u32 %v25268_v58, 16  ;;  %v21115_v58 = vld [vmem:[%s28257_s3 + $0x1400] ss:$8 sps:$4 sm:$0xff]   ;;  %v8530_v60 = vshrl.u32 %v25333_v52, 16 }
 0x595   : > { %9229 = vmatmul.mubr.bf16.gmra.mrb[76].mxu1 %v8474_v21  ;;  %v8609_v9 = vsel %vm8272_vm7, %v8563_v13, %v8608_v12  ;;  %v8347_v4 = vrot.slane %v8345_v30, 5  ;;  %v21132_v13 = vld [vmem:[%s28257_s3 + $0x1454] ss:$8 sps:$4 sm:$0xff]   ;;  %v8532_v3 = vrot.slane %v8530_v60, 4 }
 0x596   : > { %9238 = vmatprep.mubr.bf16.mxu1 %v8528_v36  ;;  %9282 = vmatpush1.bf16.msra.mxu1 %v21109_v16  ;;  %v8355_v16 = vrot.slane %v8353_v28, 5  ;;  %v21138_v12 = vld [vmem:[%s28257_s3 + $0x1474] ss:$8 sps:$4 sm:$0xff]  }
 0x597   : > { %9283 = vmatprep.subr.bf16.mxu1 %v21114_v38  ;;  %v8348_v38 = vor.u32 %v8347_v4, %v8344_v37  ;;  %v21141_v37 = vld [vmem:[%s28257_s3 + $0x1484] ss:$8 sps:$4 sm:$0xff]   ;;  %v8575_v4 = vshrl.u32 %v25350_v59, 16  ;;  %v21914_v60 = vld [vmem:[#allocation2 + $0x50] sm:$0xff] }
 0x598   : > { %v8356_v21 = vor.u32 %v8355_v16, %v8352_v34  ;;  %v8578_v34 = vshll.u32 %v25350_v59, 16  ;;  %v21139_v16 = vld [vmem:[%s28257_s3 + $0x1480] ss:$8 sps:$4 sm:$0xff]   ;;  %v21142_v59 = vld [vmem:[%s28257_s3 + $0x1490] ss:$8 sps:$4 sm:$0xff]  }
 0x599   : > { %v8577_v55 = vrot.slane %v8575_v4, 4  ;;  %v21171_v4 = vld [vmem:[%s28257_s3 + $0x1524] ss:$8 sps:$4 sm:$0xff]  }
 0x59a   : > { %9284 = vmatpush1.bf16.msra.mxu1 %v21112_v17  ;;  %v8357_v36 = vsel %vm8272_vm7, %v8348_v38, %v8356_v21  ;;  %v21118_v17 = vld [vmem:[%s28257_s3 + $0x1410] ss:$8 sps:$4 sm:$0xff]   ;;  %v21144_v38 = vld [vmem:[%s28257_s3 + $0x1494] ss:$8 sps:$4 sm:$0xff]   ;;  %v8580_v50 = vrot.slane %v8578_v34, 5 }
 0x59b   : > { %10007 = vmatprep.subr.bf16.mxu1 %v21117_v39  ;;  %v8401_v39 = vor.u32 %v8400_v49, %v8397_v0  ;;  %v21916_v34 = vld [vmem:[#allocation2 + $0x78] sm:$0xff] }
 0x59d   : > { %9239 = vmatmul.mubr.bf16.gmra.mrb[80].mxu1 %v8519_v61  ;;  %v8402_v54 = vsel %vm8272_vm7, %v8356_v21, %v8401_v39  ;;  %v8445_v61 = vrot.slane %v8443_v62, 5 }
 0x59e   : > { %9248 = vmatprep.mubr.bf16.mxu1 %v8573_v19  ;;  %v8485_v19 = vshrl.u32 %v25316_v5, 16  ;;  %v21130_v5 = vld [vmem:[%s28257_s3 + $0x1450] ss:$8 sps:$4 sm:$0xff]  }
 0x59f   : > { %v8446_v41 = vor.u32 %v8445_v61, %v8442_v46  ;;  %v9401_v46 = vld [vmem:[#allocation2 + $0x30] sm:$0xe0]  ;;  %v21913_v61 = vld [vmem:[#allocation2 + $0x58] sm:$0xff] }
 0x5a0   : > { %v8487_v6 = vrot.slane %v8485_v19, 4  ;;  %v21156_v19 = vld [vmem:[%s28257_s3 + $0x14d4] ss:$8 sps:$4 sm:$0xff]  }
 0x5a1   : > { %v8447_v8 = vsel %vm8272_vm7, %v8401_v39, %v8446_v41 }
 0x5a2   : > { %v8491_v27 = vor.u32 %v8490_v20, %v8487_v6  ;;  %v21157_v6 = vld [vmem:[%s28257_s3 + $0x14e0] ss:$8 sps:$4 sm:$0xff]   ;;  %v21162_v20 = vld [vmem:[%s28257_s3 + $0x14f4] ss:$8 sps:$4 sm:$0xff]  }
 0x5a4   : > { %v8492_v30 = vsel %vm8272_vm7, %v8446_v41, %v8491_v27  ;;  %v9500_v41 = vrot.slane %v9401_v46, 5  ;;  %v21183_v46 = vld [vmem:[%s28257_s3 + $0x1564] ss:$8 sps:$4 sm:$0xff]  }
 0x5a5   : > { %9249 = vmatmul.mubr.bf16.gmra.mrb[84].mxu1 %v8564_v7  ;;  %v21135_v7 = vld [vmem:[%s28257_s3 + $0x1464] ss:$8 sps:$4 sm:$0xff]  }
 0x5a6   : > { %9258 = vmatprep.mubr.bf16.mxu1 %v8618_v47  ;;  %v8533_v47 = vshll.u32 %v25333_v52, 16  ;;  %v21136_v52 = vld [vmem:[%s28257_s3 + $0x1470] ss:$8 sps:$4 sm:$0xff]  }
 0x5a8   : > { %v8535_v28 = vrot.slane %v8533_v47, 5  ;;  %v9498_v47 = vrot.slane %v21914_v60, 5  ;;  %v21187_v60 = vld [vmem:[%s28257_s3 + $0x1580] ss:$8 sps:$4 sm:$0xff]  }
 0x5ad   : > { %9259 = vmatmul.mubr.bf16.gmra.mrb[88].mxu1 %v8609_v9  ;;  %v8536_v9 = vor.u32 %v8535_v28, %v8532_v3  ;;  %v21163_v3 = vld [vmem:[%s28257_s3 + $0x1500] ss:$8 sps:$4 sm:$0xff]   ;;  %v21168_v28 = vld [vmem:[%s28257_s3 + $0x1514] ss:$8 sps:$4 sm:$0xff]  }
 0x5ae   : > { %9301 = vmatprep.mubr.bf16.mxu1 %v28398_v44 }
 0x5af   : > { %v8537_v21 = vsel %vm8272_vm7, %v8491_v27, %v8536_v9  ;;  %v21165_v27 = vld [vmem:[%s28257_s3 + $0x1504] ss:$8 sps:$4 sm:$0xff]  }
 0x5b5   : > { %9302 = vmatmul.mubr.bf16.vlgmr.msra.gmra.mrb[64].mxu1 %v8357_v36  ;;  %v8581_v36 = vor.u32 %v8580_v50, %v8577_v55  ;;  %v21169_v55 = vld [vmem:[%s28257_s3 + $0x1520] ss:$8 sps:$4 sm:$0xff]   ;;  %v21174_v50 = vld [vmem:[%s28257_s3 + $0x1534] ss:$8 sps:$4 sm:$0xff]  }
 0x5b6   : > { %10008 = vmatpush1.bf16.msra.mxu1 %v21115_v58  ;;  %9311 = vmatprep.mubr.bf16.mxu1 %v28398_v44  ;;  %v25721_v58 = vld [vmem:[#allocation2 + $0x160] sm:$0x1f] }
 0x5b7   : > { %10009 = vmatprep.subr.bf16.mxu1 %v21120_v42  ;;  %v21147_v42 = vld [vmem:[%s28257_s3 + $0x14a4] ss:$8 sps:$4 sm:$0xff]   ;;  %v8620_v0 = vshrl.u32 %v25721_v58, 16  ;;  %v8623_v49 = vshll.u32 %v25721_v58, 16  ;;  %v8582_v39 = vsel %vm8272_vm7, %v8536_v9, %v8581_v36  ;;  %v21166_v9 = vld [vmem:[%s28257_s3 + $0x1510] ss:$8 sps:$4 sm:$0xff]  }
 0x5b9   : > { %v8622_v35 = vrot.slane %v8620_v0, 4  ;;  %v8625_v62 = vrot.slane %v8623_v49, 5  ;;  %v21177_v0 = vld [vmem:[%s28257_s3 + $0x1544] ss:$8 sps:$4 sm:$0xff]  }
 0x5ba   : > { %10010 = vmatpush1.bf16.msra.mxu1 %v21118_v17  ;;  %v21145_v17 = vld [vmem:[%s28257_s3 + $0x14a0] ss:$8 sps:$4 sm:$0xff]  }
 0x5bb   : > { %10011 = vmatprep.subr.bf16.mxu1 %v21123_v2  ;;  %v21150_v2 = vld [vmem:[%s28257_s3 + $0x14b4] ss:$8 sps:$4 sm:$0xff]   ;;  %v21918_v49 = vld [vmem:[#allocation2 + $0xa0] sm:$0xff] }
 0x5bd   : > { %9312 = vmatmul.mubr.bf16.gmra.mrb[68].mxu1 %v8402_v54  ;;  %v8626_v54 = vor.u32 %v8625_v62, %v8622_v35  ;;  %v21175_v35 = vld [vmem:[%s28257_s3 + $0x1540] ss:$8 sps:$4 sm:$0xff]   ;;  %v21180_v62 = vld [vmem:[%s28257_s3 + $0x1554] ss:$8 sps:$4 sm:$0xff]  }
 0x5be   : > { %10012 = vmatpush1.bf16.msra.mxu1 %v21121_v25  ;;  %9321 = vmatprep.mubr.bf16.mxu1 %v28398_v44  ;;  %v21148_v25 = vld [vmem:[%s28257_s3 + $0x14b0] ss:$8 sps:$4 sm:$0xff]  }
 0x5bf   : > { %10013 = vmatprep.subr.bf16.mxu1 %v21126_v57  ;;  %v21153_v57 = vld [vmem:[%s28257_s3 + $0x14c4] ss:$8 sps:$4 sm:$0xff]   ;;  %v8627_v53 = vsel %vm8272_vm7, %v8581_v36, %v8626_v54  ;;  %v21172_v36 = vld [vmem:[%s28257_s3 + $0x1530] ss:$8 sps:$4 sm:$0xff]  }
 0x5c0   : > { %v21178_v54 = vld [vmem:[%s28257_s3 + $0x1550] ss:$8 sps:$4 sm:$0xff]  }
 0x5c2   : > { %10014 = vmatpush1.bf16.msra.mxu1 %v21124_v15  ;;  %v9501_v15 = vrot.slane %v21913_v61, 5  ;;  %v21920_v61 = vld [vmem:[#allocation2 + $0xc8] sm:$0xff] }
 0x5c3   : > { %10015 = vmatprep.subr.bf16.mxu1 %v21129_v48  ;;  %v21151_v48 = vld [vmem:[%s28257_s3 + $0x14c0] ss:$8 sps:$4 sm:$0xff]  }
 0x5c5   : > { %9322 = vmatmul.mubr.bf16.gmra.mrb[72].mxu1 %v8447_v8  ;;  %v21159_v8 = vld [vmem:[%s28257_s3 + $0x14e4] ss:$8 sps:$4 sm:$0xff]  }
 0x5c6   : > { %10016 = vmatpush1.bf16.msra.mxu1 %v21127_v51  ;;  %9331 = vmatprep.mubr.bf16.mxu1 %v28398_v44  ;;  %v9502_v51 = vsel %vm9496_vm8, %v9500_v41, %v9501_v15 }
 0x5c7   : > { %10017 = vmatprep.subr.bf16.mxu1 %v21132_v13  ;;  %v21154_v13 = vld [vmem:[%s28257_s3 + $0x14d0] ss:$8 sps:$4 sm:$0xff]  }
 0x5ca   : > { %10018 = vmatpush1.bf16.msra.mxu1 %v21130_v5  ;;  %v21160_v5 = vld [vmem:[%s28257_s3 + $0x14f0] ss:$8 sps:$4 sm:$0xff]  }
 0x5cb   : > { %10019 = vmatprep.subr.bf16.mxu1 %v21135_v7  ;;  %v9400_v7 = vld [vmem:[#allocation2 + $0x28] sm:$0xe0] }
 0x5cd   : > { %9332 = vmatmul.mubr.bf16.gmra.mrb[76].mxu1 %v8492_v30  ;;  %v9497_v30 = vrot.slane %v9400_v7, 5  ;;  %v21923_v7 = vld [vmem:[#allocation2 + $0x120] sm:$0xff] }
 0x5ce   : > { %10020 = vmatpush1.bf16.msra.mxu1 %v21133_v1  ;;  %9341 = vmatprep.mubr.bf16.mxu1 %v28398_v44  ;;  %v21915_v1 = vld [vmem:[#allocation2 + $0x80] sm:$0xff] }
 0x5cf   : > { %10021 = vmatprep.subr.bf16.mxu1 %v21138_v12  ;;  %v9514_v12 = vrot.slane %v21915_v1, 5 }
 0x5d2   : > { %10022 = vmatpush1.bf16.msra.mxu1 %v21136_v52  ;;  %v9499_v52 = vsel %vm9496_vm8, %v9497_v30, %v9498_v47  ;;  %v21190_v30 = vld [vmem:[%s28257_s3 + $0x1590] ss:$8 sps:$4 sm:$0xff]  }
 0x5d3   : > { %10023 = vmatprep.subr.bf16.mxu1 %v21141_v37  ;;  %v9515_v37 = vsel %vm9496_vm8, %v9501_v15, %v9514_v12  ;;  %v9532_v15 = vrot.slane %v21920_v61, 5  ;;  %v21244_v61 = vld [vmem:[%s28259_s5 + $0x130] ss:$8 sps:$4 sm:$0xff]  }
 0x5d5   : > { %9342 = vmatmul.mubr.bf16.gmra.mrb[80].mxu1 %v8537_v21 }
 0x5d6   : > { %10024 = vmatpush1.bf16.msra.mxu1 %v21139_v16  ;;  %9351 = vmatprep.mubr.bf16.mxu1 %v28398_v44  ;;  %v9512_v16 = vrot.slane %v21916_v34, 5 }
 0x5d7   : > { %10025 = vmatprep.subr.bf16.mxu1 %v21144_v38  ;;  %v21917_v38 = vld [vmem:[#allocation2 + $0xa8] sm:$0xff] }
 0x5d8   : > { %v9524_v21 = vrot.slane %v21917_v38, 5  ;;  %v21235_v38 = vld [vmem:[%s28259_s5 + $0x100] ss:$8 sps:$4 sm:$0xff]  }
 0x5da   : > { %10026 = vmatpush1.bf16.msra.mxu1 %v21142_v59  ;;  %v9513_v59 = vsel %vm9496_vm8, %v9498_v47, %v9512_v16  ;;  %v21192_v47 = vld [vmem:[%s28257_s3 + $0x1594] ss:$8 sps:$4 sm:$0xff]  }
 0x5db   : > { %10027 = vmatprep.subr.bf16.mxu1 %v21147_v42  ;;  %v9525_v42 = vsel %vm9496_vm8, %v9514_v12, %v9524_v21 }
 0x5dd   : > { %9352 = vmatmul.mubr.bf16.gmra.mrb[84].mxu1 %v8582_v39 }
 0x5de   : > { %10028 = vmatpush1.bf16.msra.mxu1 %v21145_v17  ;;  %9361 = vmatprep.mubr.bf16.mxu1 %v28398_v44  ;;  %v9522_v17 = vrot.slane %v21918_v49, 5 }
 0x5df   : > { %10029 = vmatprep.subr.bf16.mxu1 %v21150_v2  ;;  %v21919_v2 = vld [vmem:[#allocation2 + $0xd0] sm:$0xff] }
 0x5e0   : > { %v9534_v39 = vrot.slane %v21919_v2, 5  ;;  %v21199_v2 = vld [vmem:[%s28257_s3 + $0x15c0] ss:$8 sps:$4 sm:$0xff]  }
 0x5e2   : > { %10030 = vmatpush1.bf16.msra.mxu1 %v21148_v25  ;;  %v9523_v25 = vsel %vm9496_vm8, %v9512_v16, %v9522_v17 }
 0x5e3   : > { %10031 = vmatprep.subr.bf16.mxu1 %v21153_v57  ;;  %v9535_v57 = vsel %vm9496_vm8, %v9524_v21, %v9534_v39  ;;  %v21196_v21 = vld [vmem:[%s28257_s3 + $0x15b0] ss:$8 sps:$4 sm:$0xff]  }
 0x5e5   : > { %9362 = vmatmul.mubr.bf16.gmra.mrb[88].mxu1 %v8627_v53  ;;  %v21186_v53 = vld [vmem:[%s28257_s3 + $0x1574] ss:$8 sps:$4 sm:$0xff]  }
 0x5e6   : > { %10032 = vmatpush1.bf16.msra.mxu1 %v21151_v48  ;;  %10039 = vmatprep.mubr.bf16.mxu1 %v9502_v51  ;;  %v21921_v48 = vld [vmem:[#allocation2 + $0xf8] sm:$0xff]  ;;  %v9533_v51 = vsel %vm9496_vm8, %v9522_v17, %v9532_v15  ;;  %v21243_v17 = vld [vmem:[%s28259_s5 + $0x124] ss:$8 sps:$4 sm:$0xff]  }
 0x5e7   : > { %10033 = vmatprep.subr.bf16.mxu1 %v21156_v19  ;;  %v9544_v41 = vrot.slane %v21921_v48, 5  ;;  %v21181_v19 = vld [vmem:[%s28257_s3 + $0x1560] ss:$8 sps:$4 sm:$0xff]  }
 0x5e8   : > { %v21205_v48 = vld [vmem:[%s28257_s3 + $0x15e0] ss:$8 sps:$4 sm:$0xff]  }
 0x5ea   : > { %10034 = vmatpush1.bf16.msra.mxu1 %v21154_v13  ;;  %v9545_v13 = vsel %vm9496_vm8, %v9534_v39, %v9544_v41  ;;  %v21204_v39 = vld [vmem:[%s28257_s3 + $0x15d4] ss:$8 sps:$4 sm:$0xff]  }
 0x5eb   : > { %10035 = vmatprep.subr.bf16.mxu1 %v21159_v8  ;;  %v21184_v8 = vld [vmem:[%s28257_s3 + $0x1570] ss:$8 sps:$4 sm:$0xff]  }
 0x5ee   : > { %10036 = vmatpush1.bf16.msra.mxu1 %v21157_v6  ;;  %v21189_v6 = vld [vmem:[%s28257_s3 + $0x1584] ss:$8 sps:$4 sm:$0xff]  }
 0x5ef   : > { %10037 = vmatprep.subr.bf16.mxu1 %v21162_v20  ;;  %v21922_v20 = vld [vmem:[#allocation2 + $0xf0] sm:$0xff] }
 0x5f2   : > { %10038 = vmatpush1.bf16.msra.mxu1 %v21160_v5  ;;  %v9542_v5 = vrot.slane %v21922_v20, 5 }
 0x5f3   : > { %10110 = vmatprep.subr.bf16.mxu1 %v21165_v27  ;;  %v9554_v27 = vrot.slane %v21923_v7, 5  ;;  %v21927_v7 = vld [vmem:[#allocation2 + $0x90] sm:$0xff] }
 0x5f4   : > { %v9543_v1 = vsel %vm9496_vm8, %v9532_v15, %v9542_v5  ;;  %v21249_v15 = vld [vmem:[%s28259_s5 + $0x144] ss:$8 sps:$4 sm:$0xff]  }
 0x5f5   : > { %10040 = vmatmul.mubr.bf16.vlgmr.msra.gmra.mrb[64].mxu1 %v9499_v52  ;;  %v9555_v12 = vsel %vm9496_vm8, %v9544_v41, %v9554_v27  ;;  %v21210_v41 = vld [vmem:[%s28257_s3 + $0x15f4] ss:$8 sps:$4 sm:$0xff]  }
 0x5f6   : > { %10049 = vmatprep.mubr.bf16.mxu1 %v9515_v37  ;;  %10111 = vmatpush1.bf16.msra.mxu1 %v21163_v3  ;;  %v21195_v3 = vld [vmem:[%s28257_s3 + $0x15a4] ss:$8 sps:$4 sm:$0xff]   ;;  %v9564_v37 = vrot.slane %v25479_v18, 5 }
 0x5f7   : > { %10112 = vmatprep.subr.bf16.mxu1 %v21168_v28  ;;  %v21924_v28 = vld [vmem:[#allocation2 + $0x118] sm:$0xff]  ;;  %v21237_v18 = vld [vmem:[%s28259_s5 + $0x104] ss:$8 sps:$4 sm:$0xff]  }
 0x5f8   : > { %v9552_v52 = vrot.slane %v21924_v28, 5  ;;  %v9565_v16 = vsel %vm9496_vm8, %v9554_v27, %v9564_v37  ;;  %10747 = vmatprep.subr.bf16.mxu0 %v21237_v18  ;;  %v9518_v27 = vrot.slane %v21927_v7, 5  ;;  %v21214_v37 = vld [vmem:[%s28257_s3 + $0x1610] ss:$8 sps:$4 sm:$0xff]  }
 0x5f9   : > { %10748 = vmatpush1.bf16.msra.mxu0 %v21235_v38  ;;  %v21929_v38 = vld [vmem:[#allocation2 + $0xb8] sm:$0xff] }
 0x5fa   : > { %10113 = vmatpush1.bf16.msra.mxu1 %v21166_v9  ;;  %v21193_v9 = vld [vmem:[%s28257_s3 + $0x15a0] ss:$8 sps:$4 sm:$0xff]   ;;  %v9553_v34 = vsel %vm9496_vm8, %v9542_v5, %v9552_v52  ;;  %v21250_v5 = vld [vmem:[%s28259_s5 + $0x150] ss:$8 sps:$4 sm:$0xff]   ;;  %v9528_v18 = vrot.slane %v21929_v38, 5 }
 0x5fb   : > { %10114 = vmatprep.subr.bf16.mxu1 %v21171_v4  ;;  %v21198_v4 = vld [vmem:[%s28257_s3 + $0x15b4] ss:$8 sps:$4 sm:$0xff]  }
 0x5fd   : > { %10050 = vmatmul.mubr.bf16.gmra.mrb[68].mxu1 %v9513_v59  ;;  %v9562_v59 = vrot.slane %v25496_v32, 5 }
 0x5fe   : > { %10059 = vmatprep.mubr.bf16.mxu1 %v9525_v42  ;;  %10115 = vmatpush1.bf16.msra.mxu1 %v21169_v55  ;;  %v21240_v55 = vld [vmem:[%s28259_s5 + $0x114] ss:$8 sps:$4 sm:$0xff]   ;;  %v9403_v42 = vld [vmem:[#allocation2 + $0x40] sm:$0xe0] }
 0x5ff   : > { %10116 = vmatprep.subr.bf16.mxu1 %v21174_v50  ;;  %v21201_v50 = vld [vmem:[%s28257_s3 + $0x15c4] ss:$8 sps:$4 sm:$0xff]   ;;  %10749 = vmatprep.subr.bf16.mxu0 %v21240_v55  ;;  %v9506_v32 = vrot.slane %v9403_v42, 5  ;;  %v21217_v55 = vld [vmem:[%s28257_s3 + $0x1620] ss:$8 sps:$4 sm:$0xff]  }
 0x600   : > { %v21259_v42 = vld [vmem:[%s28259_s5 + $0x180] ss:$8 sps:$4 sm:$0xff]  }
 0x602   : > { %10117 = vmatpush1.bf16.msra.mxu1 %v21172_v36  ;;  %v21238_v36 = vld [vmem:[%s28259_s5 + $0x110] ss:$8 sps:$4 sm:$0xff]  }
 0x603   : > { %10118 = vmatprep.subr.bf16.mxu1 %v21177_v0  ;;  %v21925_v0 = vld [vmem:[#allocation2 + $0x68] sm:$0xff]  ;;  %10750 = vmatpush1.bf16.msra.mxu0 %v21238_v36  ;;  %v9529_v36 = vsel %vm9496_vm8, %v9518_v27, %v9528_v18 }
 0x604   : > { %v9507_v49 = vrot.slane %v21925_v0, 5  ;;  %10751 = vmatprep.subr.bf16.mxu0 %v21243_v17  ;;  %v21220_v0 = vld [vmem:[%s28257_s3 + $0x1630] ss:$8 sps:$4 sm:$0xff]  }
 0x605   : > { %10060 = vmatmul.mubr.bf16.gmra.mrb[72].mxu1 %v9523_v25  ;;  %v21930_v17 = vld [vmem:[#allocation2 + $0xb0] sm:$0xff] }
 0x606   : > { %10069 = vmatprep.mubr.bf16.mxu1 %v9535_v57  ;;  %10119 = vmatpush1.bf16.msra.mxu1 %v21175_v35  ;;  %v9563_v35 = vsel %vm9496_vm8, %v9552_v52, %v9562_v59  ;;  %v9508_v25 = vsel %vm9496_vm8, %v9506_v32, %v9507_v49  ;;  %v21246_v57 = vld [vmem:[%s28259_s5 + $0x134] ss:$8 sps:$4 sm:$0xff]   ;;  %v9519_v28 = vsel %vm9496_vm8, %v9507_v49, %v9518_v27  ;;  %v21225_v49 = vld [vmem:[%s28257_s3 + $0x1644] ss:$8 sps:$4 sm:$0xff]   ;;  %v28493_v27 = vmov 0.0  }
 0x607   : > { %10120 = vmatprep.subr.bf16.mxu1 %v21180_v62  ;;  %v21241_v62 = vld [vmem:[%s28259_s5 + $0x120] ss:$8 sps:$4 sm:$0xff]   ;;  %v21258_v52 = vld [vmem:[%s28259_s5 + $0x174] ss:$8 sps:$4 sm:$0xff]  }
 0x608   : > { %10752 = vmatpush1.bf16.msra.mxu0 %v21241_v62  ;;  %v21931_v32 = vld [vmem:[#allocation2 + $0xe0] sm:$0xff]  ;;  %v21228_v62 = vld [vmem:[%s28257_s3 + $0x1654] ss:$8 sps:$4 sm:$0xff]  }
 0x609   : > { %10753 = vmatprep.subr.bf16.mxu0 %v21246_v57 }
 0x60a   : > { %10121 = vmatpush1.bf16.msra.mxu1 %v21178_v54  ;;  %v21202_v54 = vld [vmem:[%s28257_s3 + $0x15d0] ss:$8 sps:$4 sm:$0xff]  }
 0x60b   : > { %10122 = vmatprep.subr.bf16.mxu1 %v21183_v46  ;;  %v21207_v46 = vld [vmem:[%s28257_s3 + $0x15e4] ss:$8 sps:$4 sm:$0xff]  }
 0x60c   : > { %10754 = vmatpush1.bf16.msra.mxu0 %v21244_v61  ;;  %v21932_v61 = vld [vmem:[#allocation2 + $0xd8] sm:$0xff] }
 0x60d   : > { %10070 = vmatmul.mubr.bf16.gmra.mrb[76].mxu1 %v9533_v51  ;;  %10755 = vmatprep.subr.bf16.mxu0 %v21249_v15  ;;  %v21208_v51 = vld [vmem:[%s28257_s3 + $0x15f0] ss:$8 sps:$4 sm:$0xff]   ;;  %v9536_v15 = vrot.slane %v21932_v61, 5  ;;  %v21270_v61 = vld [vmem:[%s28259_s5 + $0x1b4] ss:$8 sps:$4 sm:$0xff]  }
 0x60e   : > { %10079 = vmatprep.mubr.bf16.mxu1 %v9545_v13  ;;  %10123 = vmatpush1.bf16.msra.mxu1 %v21181_v19  ;;  %v21247_v19 = vld [vmem:[%s28259_s5 + $0x140] ss:$8 sps:$4 sm:$0xff]   ;;  %v9402_v13 = vld [vmem:[#allocation2 + $0x38] sm:$0xe0] }
 0x60f   : > { %10124 = vmatprep.subr.bf16.mxu1 %v21186_v53  ;;  %v21252_v53 = vld [vmem:[%s28259_s5 + $0x154] ss:$8 sps:$4 sm:$0xff]  }
 0x610   : > { %10756 = vmatpush1.bf16.msra.mxu0 %v21247_v19  ;;  %v21229_v19 = vld [vmem:[%s28257_s3 + $0x1660] ss:$8 sps:$4 sm:$0xff]  }
 0x611   : > { %10757 = vmatprep.subr.bf16.mxu0 %v21252_v53  ;;  %v21234_v53 = vld [vmem:[%s28257_s3 + $0x1674] ss:$8 sps:$4 sm:$0xff]  }
 0x612   : > { %10125 = vmatpush1.bf16.msra.mxu1 %v21184_v8  ;;  %v21213_v8 = vld [vmem:[%s28257_s3 + $0x1604] ss:$8 sps:$4 sm:$0xff]  }
 0x613   : > { %10126 = vmatprep.subr.bf16.mxu1 %v21189_v6  ;;  %v21926_v6 = vld [vmem:[#allocation2 + $0x60] sm:$0xff] }
 0x614   : > { %v9504_v20 = vrot.slane %v21926_v6, 5  ;;  %10758 = vmatpush1.bf16.msra.mxu0 %v21250_v5  ;;  %v21934_v6 = vld [vmem:[#allocation2 + $0x100] sm:$0xff]  ;;  %v21935_v5 = vld [vmem:[#allocation2 + $0x130] sm:$0xff] }
 0x615   : > { %10080 = vmatmul.mubr.bf16.gmra.mrb[80].mxu1 %v9543_v1  ;;  %v21211_v1 = vld [vmem:[%s28257_s3 + $0x1600] ss:$8 sps:$4 sm:$0xff]   ;;  %v9558_v7 = vrot.slane %v21935_v5, 5 }
 0x616   : > { %10089 = vmatprep.mubr.bf16.mxu1 %v9555_v12  ;;  %10127 = vmatpush1.bf16.msra.mxu1 %v21187_v60  ;;  %v21255_v60 = vld [vmem:[%s28259_s5 + $0x164] ss:$8 sps:$4 sm:$0xff]   ;;  %v21216_v12 = vld [vmem:[%s28257_s3 + $0x1614] ss:$8 sps:$4 sm:$0xff]  }
 0x617   : > { %10128 = vmatprep.subr.bf16.mxu1 %v21192_v47  ;;  %v9503_v47 = vrot.slane %v9402_v13, 5  ;;  %10759 = vmatprep.subr.bf16.mxu0 %v21255_v60 }
 0x61a   : > { %10129 = vmatpush1.bf16.msra.mxu1 %v21190_v30  ;;  %v9505_v30 = vsel %vm9496_vm8, %v9503_v47, %v9504_v20 }
 0x61b   : > { %10130 = vmatprep.subr.bf16.mxu1 %v21195_v3  ;;  %v21253_v3 = vld [vmem:[%s28259_s5 + $0x160] ss:$8 sps:$4 sm:$0xff]  }
 0x61c   : > { %10760 = vmatpush1.bf16.msra.mxu0 %v21253_v3 }
 0x61d   : > { %10090 = vmatmul.mubr.bf16.gmra.mrb[84].mxu1 %v9553_v34  ;;  %10761 = vmatprep.subr.bf16.mxu0 %v21258_v52  ;;  %v9566_v52 = vrot.slane %v25636_v29, 5  ;;  %v21939_v29 = vld [vmem:[#allocation2 + $0xc0] sm:$0xff] }
 0x61e   : > { %10099 = vmatprep.mubr.bf16.mxu1 %v9565_v16  ;;  %10131 = vmatpush1.bf16.msra.mxu1 %v21193_v9  ;;  %v21219_v9 = vld [vmem:[%s28257_s3 + $0x1624] ss:$8 sps:$4 sm:$0xff]   ;;  %v21256_v16 = vld [vmem:[%s28259_s5 + $0x170] ss:$8 sps:$4 sm:$0xff]  }
 0x61f   : > { %10132 = vmatprep.subr.bf16.mxu1 %v21198_v4  ;;  %v21928_v4 = vld [vmem:[#allocation2 + $0x88] sm:$0xff] }
 0x620   : > { %v9516_v34 = vrot.slane %v21928_v4, 5  ;;  %10762 = vmatpush1.bf16.msra.mxu0 %v21256_v16 }
 0x622   : > { %10133 = vmatpush1.bf16.msra.mxu1 %v21196_v21  ;;  %v21261_v21 = vld [vmem:[%s28259_s5 + $0x184] ss:$8 sps:$4 sm:$0xff]   ;;  %v9517_v59 = vsel %vm9496_vm8, %v9504_v20, %v9516_v34  ;;  %v9546_v20 = vrot.slane %v21934_v6, 5 }
 0x623   : > { %10134 = vmatprep.subr.bf16.mxu1 %v21201_v50  ;;  %v21222_v50 = vld [vmem:[%s28257_s3 + $0x1634] ss:$8 sps:$4 sm:$0xff]   ;;  %10763 = vmatprep.subr.bf16.mxu0 %v21261_v21  ;;  %v21285_v6 = vld [vmem:[%s28259_s5 + $0x4] ss:$8 sps:$4 sm:$0xff]  }
 0x624   : > { %10764 = vmatpush1.bf16.msra.mxu0 %v21259_v42  ;;  %v9547_v60 = vsel %vm9496_vm8, %v9536_v15, %v9546_v20 }
 0x625   : > { %10100 = vmatmul.mubr.bf16.gmra.mrb[88].mxu1 %v9563_v35  ;;  %v21223_v35 = vld [vmem:[%s28257_s3 + $0x1640] ss:$8 sps:$4 sm:$0xff]  }
 0x626   : > { %10135 = vmatpush1.bf16.msra.mxu1 %v21199_v2  ;;  %10142 = vmatprep.mubr.bf16.mxu1 %v9508_v25  ;;  %v9526_v2 = vrot.slane %v21930_v17, 5 }
 0x627   : > { %10136 = vmatprep.subr.bf16.mxu1 %v21204_v39  ;;  %v9538_v39 = vrot.slane %v21931_v32, 5 }
 0x628   : > { %v9527_v25 = vsel %vm9496_vm8, %v9516_v34, %v9526_v2  ;;  %v21937_v34 = vld [vmem:[#allocation2 + $0x70] sm:$0xff] }
 0x629   : > { %v9539_v57 = vsel %vm9496_vm8, %v9528_v18, %v9538_v39  ;;  %v9510_v16 = vrot.slane %v21937_v34, 5 }
 0x62a   : > { %10137 = vmatpush1.bf16.msra.mxu1 %v21202_v54  ;;  %v21226_v54 = vld [vmem:[%s28257_s3 + $0x1650] ss:$8 sps:$4 sm:$0xff]  }
 0x62b   : > { %10138 = vmatprep.subr.bf16.mxu1 %v21207_v46  ;;  %v21231_v46 = vld [vmem:[%s28257_s3 + $0x1664] ss:$8 sps:$4 sm:$0xff]  }
 0x62e   : > { %10139 = vmatpush1.bf16.msra.mxu1 %v21205_v48  ;;  %v21933_v48 = vld [vmem:[#allocation2 + $0x108] sm:$0xff] }
 0x62f   : > { %10140 = vmatprep.subr.bf16.mxu1 %v21210_v41  ;;  %v9548_v41 = vrot.slane %v21933_v48, 5  ;;  %v21271_v48 = vld [vmem:[%s28259_s5 + $0x1c0] ss:$8 sps:$4 sm:$0xff]  }
 0x631   : > { %v9549_v13 = vsel %vm9496_vm8, %v9538_v39, %v9548_v41  ;;  %v9559_v47 = vsel %vm9496_vm8, %v9548_v41, %v9558_v7  ;;  %v21274_v41 = vld [vmem:[%s28259_s5 + $0x1d0] ss:$8 sps:$4 sm:$0xff]  }
 0x632   : > { %10141 = vmatpush1.bf16.msra.mxu1 %v21208_v51  ;;  %v9537_v51 = vsel %vm9496_vm8, %v9526_v2, %v9536_v15  ;;  %v21942_v2 = vld [vmem:[#allocation2 + $0x138] sm:$0xff]  ;;  %v21273_v15 = vld [vmem:[%s28259_s5 + $0x1c4] ss:$8 sps:$4 sm:$0xff]  }
 0x633   : > { %10213 = vmatprep.subr.bf16.mxu1 %v21213_v8  ;;  %v21232_v8 = vld [vmem:[%s28257_s3 + $0x1670] ss:$8 sps:$4 sm:$0xff]   ;;  %v9560_v32 = vrot.slane %v21942_v2, 5 }
 0x635   : > { %10143 = vmatmul.mubr.bf16.vlgmr.msra.gmra.mrb[64].mxu1 %v9505_v30  ;;  %v9568_v30 = vrot.slane %v25622_v24, 5  ;;  %v21938_v24 = vld [vmem:[#allocation2 + $0x98] sm:$0xff] }
 0x636   : > { %10152 = vmatprep.mubr.bf16.mxu1 %v9519_v28  ;;  %10214 = vmatpush1.bf16.msra.mxu1 %v21211_v1  ;;  %v21936_v1 = vld [vmem:[#allocation2 + $0x128] sm:$0xff]  ;;  %v9520_v18 = vrot.slane %v21938_v24, 5 }
 0x637   : > { %10215 = vmatprep.subr.bf16.mxu1 %v21216_v12  ;;  %v9556_v12 = vrot.slane %v21936_v1, 5  ;;  %v9569_v28 = vsel %vm9496_vm8, %v9558_v7, %v9568_v30  ;;  %v28495_v30 = vld [vmem:[#allocation17_spill] sm:$0xff] }
 0x638   : > { %v9521_v21 = vsel %vm9496_vm8, %v9510_v16, %v9520_v18 }
 0x639   : > { %v9557_v3 = vsel %vm9496_vm8, %v9546_v20, %v9556_v12  ;;  %v10344_v20 = vld [vmem:[%s28258_s4] sm:$0x3] }
 0x63a   : > { %10216 = vmatpush1.bf16.msra.mxu1 %v21214_v37  ;;  %v9567_v37 = vsel %vm9496_vm8, %v9556_v12, %v9566_v52 }
 0x63b   : > { %10217 = vmatprep.subr.bf16.mxu1 %v21219_v9  ;;  %v9404_v9 = vld [vmem:[#allocation2 + $0x48] sm:$0xe0] }
 0x63c   : > { %v9509_v4 = vrot.slane %v9404_v9, 5 }
 0x63d   : > { %10153 = vmatmul.mubr.bf16.gmra.mrb[68].mxu1 %v9517_v59  ;;  %v21940_v59 = vld [vmem:[#allocation2 + $0xe8] sm:$0xff] }
 0x63e   : > { %10162 = vmatprep.mubr.bf16.mxu1 %v9529_v36  ;;  %10218 = vmatpush1.bf16.msra.mxu1 %v21217_v55  ;;  %v9511_v38 = vsel %vm9496_vm8, %v9509_v4, %v9510_v16  ;;  %v9530_v55 = vrot.slane %v21939_v29, 5  ;;  %v9540_v42 = vrot.slane %v21940_v59, 5 }
 0x63f   : > { %10219 = vmatprep.subr.bf16.mxu1 %v21222_v50 }
 0x640   : > { %v9531_v50 = vsel %vm9496_vm8, %v9520_v18, %v9530_v55  ;;  %v9541_v36 = vsel %vm9496_vm8, %v9530_v55, %v9540_v42 }
 0x642   : > { %10220 = vmatpush1.bf16.msra.mxu1 %v21220_v0  ;;  %v21941_v0 = vld [vmem:[#allocation2 + $0x110] sm:$0xff] }
 0x643   : > { %10221 = vmatprep.subr.bf16.mxu1 %v21225_v49  ;;  %v9550_v49 = vrot.slane %v21941_v0, 5 }
 0x645   : > { %10163 = vmatmul.mubr.bf16.gmra.mrb[72].mxu1 %v9527_v25  ;;  %v9551_v17 = vsel %vm9496_vm8, %v9540_v42, %v9550_v49  ;;  %v9561_v39 = vsel %vm9496_vm8, %v9550_v49, %v9560_v32  ;;  %v21262_v25 = vld [vmem:[%s28259_s5 + $0x190] ss:$8 sps:$4 sm:$0xff]  }
 0x646   : > { %10172 = vmatprep.mubr.bf16.mxu1 %v9539_v57  ;;  %10222 = vmatpush1.bf16.msra.mxu1 %v21223_v35  ;;  %v9570_v35 = vrot.slane %v25721_v58, 5  ;;  %v21264_v57 = vld [vmem:[%s28259_s5 + $0x194] ss:$8 sps:$4 sm:$0xff]   ;;  %v21265_v58 = vld [vmem:[%s28259_s5 + $0x1a0] ss:$8 sps:$4 sm:$0xff]  }
 0x647   : > { %10223 = vmatprep.subr.bf16.mxu1 %v21228_v62  ;;  %10765 = vmatprep.subr.bf16.mxu0 %v21264_v57 }
 0x648   : > { %v9571_v62 = vsel %vm9496_vm8, %v9560_v32, %v9570_v35  ;;  %10766 = vmatpush1.bf16.msra.mxu0 %v21262_v25 }
 0x64a   : > { %10224 = vmatpush1.bf16.msra.mxu1 %v21226_v54  ;;  %v21267_v54 = vld [vmem:[%s28259_s5 + $0x1a4] ss:$8 sps:$4 sm:$0xff]  }
 0x64b   : > { %10225 = vmatprep.subr.bf16.mxu1 %v21231_v46  ;;  %10767 = vmatprep.subr.bf16.mxu0 %v21267_v54  ;;  %v21268_v46 = vld [vmem:[%s28259_s5 + $0x1b0] ss:$8 sps:$4 sm:$0xff]  }
 0x64c   : > { %10768 = vmatpush1.bf16.msra.mxu0 %v21265_v58 }
 0x64d   : > { %10173 = vmatmul.mubr.bf16.gmra.mrb[76].mxu1 %v9537_v51  ;;  %10769 = vmatprep.subr.bf16.mxu0 %v21270_v61  ;;  %v21277_v51 = vld [vmem:[%s28259_s5 + $0x1e0] ss:$8 sps:$4 sm:$0xff]  }
 0x64e   : > { %10182 = vmatprep.mubr.bf16.mxu1 %v9549_v13  ;;  %10226 = vmatpush1.bf16.msra.mxu1 %v21229_v19  ;;  %v21276_v19 = vld [vmem:[%s28259_s5 + $0x1d4] ss:$8 sps:$4 sm:$0xff]   ;;  %v21280_v13 = vld [vmem:[%s28259_s5 + $0x1f0] ss:$8 sps:$4 sm:$0xff]  }
 0x64f   : > { %10227 = vmatprep.subr.bf16.mxu1 %v21234_v53  ;;  %v21279_v53 = vld [vmem:[%s28259_s5 + $0x1e4] ss:$8 sps:$4 sm:$0xff]  }
 0x650   : > { %10770 = vmatpush1.bf16.msra.mxu0 %v21268_v46 }
 0x651   : > { %10771 = vmatprep.subr.bf16.mxu0 %v21273_v15 }
 0x652   : > { %10228 = vmatpush1.bf16.msra.mxu1 %v21232_v8  ;;  %v21282_v8 = vld [vmem:[%s28259_s5 + $0x1f4] ss:$8 sps:$4 sm:$0xff]  }
 0x653   : > { %19022 = vmatprep.subr.bf16.mxu1 %v28493_v27 }
 0x654   : > { %10772 = vmatpush1.bf16.msra.mxu0 %v21271_v48 }
 0x655   : > { %10183 = vmatmul.mubr.bf16.gmra.mrb[80].mxu1 %v9547_v60  ;;  %10773 = vmatprep.subr.bf16.mxu0 %v21276_v19  ;;  %v28494_v60 = vld [vmem:[#allocation16_spill] sm:$0xff] }
 0x656   : > { %10192 = vmatprep.mubr.bf16.mxu1 %v9559_v47  ;;  %v26066_v47 = vrot.slane %v10344_v20, %v28494_v60 }
 0x658   : > { %10774 = vmatpush1.bf16.msra.mxu0 %v21274_v41 }
 0x659   : > { %10775 = vmatprep.subr.bf16.mxu0 %v21279_v53 }
 0x65c   : > { %10776 = vmatpush1.bf16.msra.mxu0 %v21277_v51 }
 0x65d   : > { %10193 = vmatmul.mubr.bf16.gmra.mrb[84].mxu1 %v9557_v3  ;;  %10777 = vmatprep.subr.bf16.mxu0 %v21282_v8  ;;  %v26070_v3 = vrot.slane %v10344_v20, %v28495_v30 }
 0x65e   : > { %10202 = vmatprep.mubr.bf16.mxu1 %v9569_v28 }
 0x660   : > { %10778 = vmatpush1.bf16.msra.mxu0 %v21280_v13 }
 0x661   : > { %10990 = vmatprep.subr.bf16.mxu0 %v21285_v6 }
 0x665   : > { %10203 = vmatmul.mubr.bf16.gmra.mrb[88].mxu1 %v9567_v37 }
 0x666   : > { %10245 = vmatprep.mubr.bf16.mxu1 %v28398_v44 }
 0x66d   : > { %10246 = vmatmul.mubr.bf16.vlgmr.msra.gmra.mrb[64].mxu1 %v9511_v38 }
 0x66e   : > { %10255 = vmatprep.mubr.bf16.mxu1 %v28398_v44 }
 0x675   : > { %10256 = vmatmul.mubr.bf16.gmra.mrb[68].mxu1 %v9521_v21 }
 0x676   : > { %10265 = vmatprep.mubr.bf16.mxu1 %v28398_v44 }
 0x67d   : > { %10266 = vmatmul.mubr.bf16.gmra.mrb[72].mxu1 %v9531_v50 }
 0x67e   : > { %10275 = vmatprep.mubr.bf16.mxu1 %v28398_v44 }
 0x685   : > { %10276 = vmatmul.mubr.bf16.gmra.mrb[76].mxu1 %v9541_v36 }
 0x686   : > { %10285 = vmatprep.mubr.bf16.mxu1 %v28398_v44 }
 0x68d   : > { %10286 = vmatmul.mubr.bf16.gmra.mrb[80].mxu1 %v9551_v17 }
 0x68e   : > { %10295 = vmatprep.mubr.bf16.mxu1 %v28398_v44 }
 0x695   : > { %10296 = vmatmul.mubr.bf16.gmra.mrb[84].mxu1 %v9561_v39 }
 0x696   : > { %10305 = vmatprep.mubr.bf16.mxu1 %v28398_v44 }
 0x69d   : > { %10306 = vmatmul.mubr.bf16.gmra.mrb[88].mxu1 %v9571_v62 }
 0x69e   : > { %19030 = vmatprep.mubr.msk.bf16.mxu1 %vm22024_vm0, %v28493_v27 }
 0x740   : > { %v10247_v5 = vpop.f32.mrb[64].mxu1 }
 0x741   : > { %v19160_v7 = vadd.f32 %v24139_v10, %v10247_v5  ;;  %v10249_v1 = vpop.f32.mrb[65].mxu1 }
 0x742   : > { %v19163_v12 = vadd.f32 %v24142_v63, %v10249_v1  ;;  %v10251_v28 = vpop.f32.mrb[66].mxu1 }
 0x743   : > { %v19166_v52 = vadd.f32 %v24145_v45, %v10251_v28  ;;  %v10253_v37 = vpop.f32.mrb[67].mxu1  ;;  %v10356_v4 = vadd.f32 %v19160_v7, %v26066_v47  ;;  %v21286_v28 = vld [vmem:[%s28259_s5 + $0x10] ss:$8 sps:$4 sm:$0xff]  }
 0x744   : > { %v19169_v9 = vadd.f32 %v24148_v11, %v10253_v37  ;;  %v10357_v10 = vadd.f32 %v19163_v12, %v26070_v3  ;;  %v28496_v37 = vld [vmem:[#allocation39_spill] sm:$0xff] }
 0x745   : > { %v10358_v34 = vadd.f32 %v19166_v52, %v26066_v47 }
 0x746   : > { %v10359_v16 = vadd.f32 %v19169_v9, %v26070_v3 }
 0x747   : > { %v26078_v38 = vpack.c.bf16 %v10358_v34, %v10356_v4 }
 0x748   : > { %v26080_v63 = vpack.c.bf16 %v10359_v16, %v10357_v10  ;;  %v10257_v24 = vpop.f32.mrb[68].mxu1  ;;  %v28497_v16 = vld [vmem:[#allocation40_spill] sm:$0xff] }
 0x749   : > { %10398 = vst [vmem:[#allocation3] sm:$0xff] %v26078_v38  ;;  %v19172_v45 = vadd.f32 %v24153_v26, %v10257_v24  ;;  %v10259_v18 = vpop.f32.mrb[69].mxu1  ;;  %v10492_v0 = vshll.u32 %v26078_v38, 16  ;;  %v10490_v61 = vshrl.u32 %v26078_v38, 16 }
 0x74a   : > { %10399 = vst [vmem:[#allocation3 + $0x8] sm:$0xff] %v26080_v63  ;;  %v19175_v11 = vadd.f32 %v24156_v22, %v10259_v18  ;;  %v10261_v21 = vpop.f32.mrb[70].mxu1  ;;  %v10504_v59 = vshll.u32 %v26080_v63, 16  ;;  %v10502_v57 = vshrl.u32 %v26080_v63, 16 }
 0x74b   : > { %v19178_v29 = vadd.f32 %v24159_v14, %v10261_v21  ;;  %v10263_v55 = vpop.f32.mrb[71].mxu1  ;;  %v10360_v42 = vadd.f32 %v19172_v45, %v26066_v47  ;;  %v10494_v39 = vrot.slane %v10492_v0, 1  ;;  %v28498_v21 = vld [vmem:[#allocation41_spill] sm:$0xff] }
 0x74c   : > { %v19181_v50 = vadd.f32 %v24162_v43, %v10263_v55  ;;  %v10361_v26 = vadd.f32 %v19175_v11, %v26070_v3  ;;  %v10506_v2 = vrot.slane %v10504_v59, 1 }
 0x74d   : > { %v10362_v36 = vadd.f32 %v19178_v29, %v26066_v47  ;;  %v10495_v53 = vor.u32 %v10494_v39, %v10490_v61 }
 0x74e   : > { %v10363_v49 = vadd.f32 %v19181_v50, %v26070_v3  ;;  %v10507_v48 = vor.u32 %v10506_v2, %v10502_v57  ;;  %v21294_v2 = vld [vmem:[%s28259_s5 + $0x34] ss:$8 sps:$4 sm:$0xff]  }
 0x74f   : > { %v26094_v17 = vpack.c.bf16 %v10362_v36, %v10360_v42  ;;  %v21289_v36 = vld [vmem:[%s28259_s5 + $0x20] ss:$8 sps:$4 sm:$0xff]  }
 0x750   : > { %v26096_v22 = vpack.c.bf16 %v10363_v49, %v10361_v26  ;;  %v10267_v14 = vpop.f32.mrb[72].mxu1 }
 0x751   : > { %10400 = vst [vmem:[#allocation3 + $0x10] sm:$0xff] %v26094_v17  ;;  %v19184_v43 = vadd.f32 %v24167_v33, %v10267_v14  ;;  %v10269_v32 = vpop.f32.mrb[73].mxu1  ;;  %v10497_v35 = vshll.u32 %v26094_v17, 16  ;;  %v10513_v18 = vshrl.u32 %v26094_v17, 16 }
 0x752   : > { %10401 = vst [vmem:[#allocation3 + $0x18] sm:$0xff] %v26096_v22  ;;  %v19187_v62 = vadd.f32 %v24170_v56, %v10269_v32  ;;  %v10271_v25 = vpop.f32.mrb[74].mxu1  ;;  %v10509_v54 = vshll.u32 %v26096_v22, 16  ;;  %v10521_v34 = vshrl.u32 %v26096_v22, 16 }
 0x753   : > { %v19190_v58 = vadd.f32 %v24173_v23, %v10271_v25  ;;  %v10273_v46 = vpop.f32.mrb[75].mxu1  ;;  %v10499_v33 = vrot.slane %v10497_v35, 1  ;;  %v10364_v56 = vadd.f32 %v19184_v43, %v26066_v47  ;;  %v21283_v23 = vld [vmem:[%s28259_s5] ss:$8 sps:$4 sm:$0xff]  }
 0x754   : > { %v19193_v15 = vadd.f32 %v24179_v31, %v10273_v46  ;;  %v10511_v41 = vrot.slane %v10509_v54, 1  ;;  %v10365_v51 = vadd.f32 %v19187_v62, %v26070_v3  ;;  %v21288_v31 = vld [vmem:[%s28259_s5 + $0x14] ss:$8 sps:$4 sm:$0xff]   ;;  %v28499_v25 = vld [vmem:[#allocation42_spill] sm:$0xff]  ;;  %v21292_v46 = vld [vmem:[%s28259_s5 + $0x30] ss:$8 sps:$4 sm:$0xff]  }
 0x755   : > { %v10366_v19 = vadd.f32 %v19190_v58, %v26066_v47  ;;  %v10500_v20 = vsel %vm1492_vm1, %v10495_v53, %v10499_v33  ;;  %v10515_v0 = vor.u32 %v10513_v18, %v10499_v33  ;;  %v28500_v33 = vld [vmem:[#allocation43_spill] sm:$0xff] }
 0x756   : > { %v10367_v13 = vadd.f32 %v19193_v15, %v26070_v3  ;;  %v10512_v8 = vsel %vm1492_vm1, %v10507_v48, %v10511_v41  ;;  %v10523_v55 = vor.u32 %v10521_v34, %v10511_v41 }
 0x757   : > { %v26123_v6 = vpack.c.bf16 %v10366_v19, %v10364_v56  ;;  %10779 = vmatprep.mubr.bf16.mxu0 %v10512_v8  ;;  %v21297_v19 = vld [vmem:[%s28259_s5 + $0x44] ss:$8 sps:$4 sm:$0xff]  }
 0x758   : > { %v26126_v5 = vpack.c.bf16 %v10367_v13, %v10365_v51  ;;  %v10277_v7 = vpop.f32.mrb[76].mxu1  ;;  %10780 = vmatmul.mubr.bf16.vlgmr.msra.gmra.mrb[128].mxu0 %v10500_v20 }
 0x759   : > { %10402 = vst [vmem:[#allocation3 + $0x20] sm:$0xff] %v26123_v6  ;;  %v19196_v1 = vadd.f32 %v24193_v40, %v10277_v7  ;;  %v10279_v12 = vpop.f32.mrb[77].mxu1  ;;  %10991 = vmatpush1.bf16.msra.mxu0 %v21283_v23  ;;  %v10517_v52 = vshll.u32 %v26123_v6, 16  ;;  %v21291_v40 = vld [vmem:[%s28259_s5 + $0x24] ss:$8 sps:$4 sm:$0xff]   ;;  %v28501_v23 = vld [vmem:[#allocation44_spill] sm:$0xff] }
 0x75a   : > { %10403 = vst [vmem:[#allocation3 + $0x28] sm:$0xff] %v26126_v5  ;;  %v19199_v9 = vadd.f32 %v28496_v37, %v10279_v12  ;;  %v10281_v4 = vpop.f32.mrb[78].mxu1  ;;  %10992 = vmatprep.subr.bf16.mxu0 %v21288_v31  ;;  %v10525_v10 = vshll.u32 %v26126_v5, 16  ;;  %v10537_v41 = vshrl.u32 %v26126_v5, 16  ;;  %v10529_v13 = vshrl.u32 %v26123_v6, 16  ;;  %v28502_v31 = vld [vmem:[#allocation45_spill] sm:$0xff] }
 0x75b   : > { %v19202_v24 = vadd.f32 %v28497_v16, %v10281_v4  ;;  %v10283_v45 = vpop.f32.mrb[79].mxu1  ;;  %v10519_v11 = vrot.slane %v10517_v52, 1  ;;  %v10368_v59 = vadd.f32 %v19196_v1, %v26066_v47  ;;  %v21295_v37 = vld [vmem:[%s28259_s5 + $0x40] ss:$8 sps:$4 sm:$0xff]  }
 0x75c   : > { %v19205_v29 = vadd.f32 %v28498_v21, %v10283_v45  ;;  %v10527_v50 = vrot.slane %v10525_v10, 1  ;;  %v10369_v26 = vadd.f32 %v19199_v9, %v26070_v3 }
 0x75d   : > { %v10370_v42 = vadd.f32 %v19202_v24, %v26066_v47  ;;  %10993 = vmatpush1.bf16.msra.mxu0 %v21286_v28  ;;  %v10520_v32 = vsel %vm1492_vm1, %v10515_v0, %v10519_v11  ;;  %v10531_v9 = vor.u32 %v10529_v13, %v10519_v11  ;;  %v21300_v24 = vld [vmem:[%s28259_s5 + $0x54] ss:$8 sps:$4 sm:$0xff]   ;;  %v28503_v11 = vld [vmem:[#allocation46_spill] sm:$0xff]  ;;  %v28504_v0 = vld [vmem:[#allocation47_spill] sm:$0xff] }
 0x75e   : > { %v10371_v49 = vadd.f32 %v19205_v29, %v26070_v3  ;;  %v10528_v14 = vsel %vm1492_vm1, %v10523_v55, %v10527_v50  ;;  %10994 = vmatprep.subr.bf16.mxu0 %v21291_v40  ;;  %v10539_v7 = vor.u32 %v10537_v41, %v10527_v50 }
 0x75f   : > { %v26163_v43 = vpack.c.bf16 %v10370_v42, %v10368_v59  ;;  %10789 = vmatprep.mubr.bf16.mxu0 %v10528_v14  ;;  %v21298_v42 = vld [vmem:[%s28259_s5 + $0x50] ss:$8 sps:$4 sm:$0xff]  }
 0x760   : > { %v26166_v39 = vpack.c.bf16 %v10371_v49, %v10369_v26  ;;  %v10287_v62 = vpop.f32.mrb[80].mxu1  ;;  %10790 = vmatmul.mubr.bf16.gmra.mrb[132].mxu0 %v10520_v32  ;;  %v21303_v32 = vld [vmem:[%s28259_s5 + $0x64] ss:$8 sps:$4 sm:$0xff]  }
 0x761   : > { %10404 = vst [vmem:[#allocation3 + $0x30] sm:$0xff] %v26163_v43  ;;  %v19208_v57 = vadd.f32 %v28499_v25, %v10287_v62  ;;  %v10289_v58 = vpop.f32.mrb[81].mxu1  ;;  %10995 = vmatpush1.bf16.msra.mxu0 %v21289_v36  ;;  %v10533_v61 = vshll.u32 %v26163_v43, 16  ;;  %v28505_v62 = vld [vmem:[#allocation48_spill] sm:$0xff] }
 0x762   : > { %10405 = vst [vmem:[#allocation3 + $0x38] sm:$0xff] %v26166_v39  ;;  %v19211_v15 = vadd.f32 %v28500_v33, %v10289_v58  ;;  %v10291_v48 = vpop.f32.mrb[82].mxu1  ;;  %10996 = vmatprep.subr.bf16.mxu0 %v21294_v2  ;;  %v10541_v56 = vshll.u32 %v26166_v39, 16  ;;  %v10553_v14 = vshrl.u32 %v26166_v39, 16  ;;  %v10545_v58 = vshrl.u32 %v26163_v43, 16  ;;  %v28506_v33 = vld [vmem:[#allocation49_spill] sm:$0xff] }
 0x763   : > { %v19214_v53 = vadd.f32 %v28501_v23, %v10291_v48  ;;  %v10293_v51 = vpop.f32.mrb[83].mxu1  ;;  %v10535_v8 = vrot.slane %v10533_v61, 1  ;;  %v10372_v12 = vadd.f32 %v19208_v57, %v26066_v47 }
 0x764   : > { %v19217_v20 = vadd.f32 %v28502_v31, %v10293_v51  ;;  %v10543_v1 = vrot.slane %v10541_v56, 1  ;;  %v10373_v4 = vadd.f32 %v19211_v15, %v26070_v3  ;;  %v21301_v51 = vld [vmem:[%s28259_s5 + $0x60] ss:$8 sps:$4 sm:$0xff]  }
 0x765   : > { %v10374_v28 = vadd.f32 %v19214_v53, %v26066_v47  ;;  %10997 = vmatpush1.bf16.msra.mxu0 %v21292_v46  ;;  %v10536_v21 = vsel %vm1492_vm1, %v10531_v9, %v10535_v8  ;;  %v10547_v31 = vor.u32 %v10545_v58, %v10535_v8  ;;  %v28507_v8 = vld [vmem:[#allocation50_spill] sm:$0xff] }
 0x766   : > { %v10375_v40 = vadd.f32 %v19217_v20, %v26070_v3  ;;  %v10544_v16 = vsel %vm1492_vm1, %v10539_v7, %v10543_v1  ;;  %10998 = vmatprep.subr.bf16.mxu0 %v21297_v19  ;;  %v10555_v48 = vor.u32 %v10553_v14, %v10543_v1 }
 0x767   : > { %v26203_v45 = vpack.c.bf16 %v10374_v28, %v10372_v12  ;;  %10799 = vmatprep.mubr.bf16.mxu0 %v10544_v16  ;;  %v21306_v12 = vld [vmem:[%s28259_s5 + $0x74] ss:$8 sps:$4 sm:$0xff]  }
 0x768   : > { %v26206_v29 = vpack.c.bf16 %v10375_v40, %v10373_v4  ;;  %v10297_v55 = vpop.f32.mrb[84].mxu1  ;;  %10800 = vmatmul.mubr.bf16.gmra.mrb[136].mxu0 %v10536_v21  ;;  %v28508_v21 = vld [vmem:[#allocation51_spill] sm:$0xff] }
 0x769   : > { %10406 = vst [vmem:[#allocation3 + $0x40] sm:$0xff] %v26203_v45  ;;  %v19220_v50 = vadd.f32 %v28503_v11, %v10297_v55  ;;  %v10299_v59 = vpop.f32.mrb[85].mxu1  ;;  %10999 = vmatpush1.bf16.msra.mxu0 %v21295_v37  ;;  %v10549_v36 = vshll.u32 %v26203_v45, 16 }
 0x76a   : > { %10407 = vst [vmem:[#allocation3 + $0x48] sm:$0xff] %v26206_v29  ;;  %v19223_v26 = vadd.f32 %v28504_v0, %v10299_v59  ;;  %v10301_v49 = vpop.f32.mrb[86].mxu1  ;;  %11000 = vmatprep.subr.bf16.mxu0 %v21300_v24  ;;  %v10557_v2 = vshll.u32 %v26206_v29, 16  ;;  %v21304_v24 = vld [vmem:[%s28259_s5 + $0x70] ss:$8 sps:$4 sm:$0xff]  }
 0x76b   : > { %v19226_v25 = vadd.f32 %v28505_v62, %v10301_v49  ;;  %v10303_v57 = vpop.f32.mrb[87].mxu1  ;;  %v10551_v46 = vrot.slane %v10549_v36, 1  ;;  %v10376_v23 = vadd.f32 %v19220_v50, %v26066_v47  ;;  %v21309_v50 = vld [vmem:[%s28259_s5 + $0x84] ss:$8 sps:$4 sm:$0xff]   ;;  %v28509_v59 = vld [vmem:[#allocation52_spill] sm:$0xff] }
 0x76c   : > { %v19229_v15 = vadd.f32 %v28506_v33, %v10303_v57  ;;  %v10559_v19 = vrot.slane %v10557_v2, 1  ;;  %v10377_v20 = vadd.f32 %v19223_v26, %v26070_v3  ;;  %v28510_v26 = vld [vmem:[#allocation53_spill] sm:$0xff] }
 0x76d   : > { %v10378_v53 = vadd.f32 %v19226_v25, %v26066_v47  ;;  %11001 = vmatpush1.bf16.msra.mxu0 %v21298_v42  ;;  %v10552_v37 = vsel %vm1492_vm1, %v10547_v31, %v10551_v46  ;;  %v21307_v25 = vld [vmem:[%s28259_s5 + $0x80] ss:$8 sps:$4 sm:$0xff]   ;;  %v21310_v31 = vld [vmem:[%s28259_s5 + $0x90] ss:$8 sps:$4 sm:$0xff]  }
 0x76e   : > { %v10379_v7 = vadd.f32 %v19229_v15, %v26070_v3  ;;  %v10560_v1 = vsel %vm1492_vm1, %v10555_v48, %v10559_v19  ;;  %11002 = vmatprep.subr.bf16.mxu0 %v21303_v32  ;;  %v21312_v15 = vld [vmem:[%s28259_s5 + $0x94] ss:$8 sps:$4 sm:$0xff]  }
 0x76f   : > { %v10394_v28 = vpack.c.bf16 %v10378_v53, %v10376_v23  ;;  %10809 = vmatprep.mubr.bf16.mxu0 %v10560_v1  ;;  %v10561_v1 = vshrl.u32 %v26203_v45, 16 }
 0x770   : > { %v10395_v9 = vpack.c.bf16 %v10379_v7, %v10377_v20  ;;  %v10307_v4 = vpop.f32.mrb[88].mxu1  ;;  %10810 = vmatmul.mubr.bf16.gmra.mrb[140].mxu0 %v10552_v37  ;;  %v21315_v7 = vld [vmem:[%s28259_s5 + $0xa4] ss:$8 sps:$4 sm:$0xff]  }
 0x771   : > { %10408 = vst [vmem:[#allocation3 + $0x50] sm:$0xff] %v10394_v28  ;;  %v19232_v40 = vadd.f32 %v28507_v8, %v10307_v4  ;;  %v10309_v16 = vpop.f32.mrb[89].mxu1  ;;  %11003 = vmatpush1.bf16.msra.mxu0 %v21301_v51  ;;  %v21313_v4 = vld [vmem:[%s28259_s5 + $0xa0] ss:$8 sps:$4 sm:$0xff]  }
 0x772   : > { %10409 = vst [vmem:[#allocation3 + $0x58] sm:$0xff] %v10395_v9  ;;  %v19235_v55 = vadd.f32 %v28508_v21, %v10309_v16  ;;  %v10311_v11 = vpop.f32.mrb[90].mxu1  ;;  %11004 = vmatprep.subr.bf16.mxu0 %v21306_v12  ;;  %v10563_v9 = vor.u32 %v10561_v1, %v10551_v46  ;;  %v21316_v46 = vld [vmem:[%s28259_s5 + $0xb0] ss:$8 sps:$4 sm:$0xff]  }
 0x773   : > { %v19238_v42 = vadd.f32 %v28509_v59, %v10311_v11  ;;  %v10313_v0 = vpop.f32.mrb[91].mxu1  ;;  %v10380_v32 = vadd.f32 %v19232_v40, %v26066_v47  ;;  %v21318_v40 = vld [vmem:[%s28259_s5 + $0xb4] ss:$8 sps:$4 sm:$0xff]   ;;  %v21322_v21 = vld [vmem:[%s28259_s5 + $0xd0] ss:$8 sps:$4 sm:$0xff]  }
 0x774   : > { %v19241_v49 = vadd.f32 %v28510_v26, %v10313_v0  ;;  %v10381_v57 = vadd.f32 %v19235_v55, %v26070_v3  ;;  %v21327_v55 = vld [vmem:[%s28259_s5 + $0xe4] ss:$8 sps:$4 sm:$0xff]   ;;  %v21325_v11 = vld [vmem:[%s28259_s5 + $0xe0] ss:$8 sps:$4 sm:$0xff]   ;;  %v21328_v59 = vld [vmem:[%s28259_s5 + $0xf0] ss:$8 sps:$4 sm:$0xff]  }
 0x775   : > { %v10382_v62 = vadd.f32 %v19238_v42, %v26066_v47  ;;  %11005 = vmatpush1.bf16.msra.mxu0 %v21304_v24  ;;  %v21319_v24 = vld [vmem:[%s28259_s5 + $0xc0] ss:$8 sps:$4 sm:$0xff]   ;;  %v21333_v42 = vld [vmem:[%s28259_s5 + $0x204] ss:$8 sps:$4 sm:$0xff]   ;;  %v21336_v26 = vld [vmem:[%s28259_s5 + $0x214] ss:$8 sps:$4 sm:$0xff]  }
 0x776   : > { %v10383_v33 = vadd.f32 %v19241_v49, %v26070_v3  ;;  %11006 = vmatprep.subr.bf16.mxu0 %v21309_v50  ;;  %v10569_v3 = vshrl.u32 %v26206_v29, 16  ;;  %v21330_v50 = vld [vmem:[%s28259_s5 + $0xf4] ss:$8 sps:$4 sm:$0xff]   ;;  %v21331_v0 = vld [vmem:[%s28259_s5 + $0x200] ss:$8 sps:$4 sm:$0xff]  }
 0x777   : > { %v10396_v48 = vpack.c.bf16 %v10382_v62, %v10380_v32  ;;  %v21334_v49 = vld [vmem:[%s28259_s5 + $0x210] ss:$8 sps:$4 sm:$0xff]   ;;  %v21339_v32 = vld [vmem:[%s28259_s5 + $0x224] ss:$8 sps:$4 sm:$0xff]   ;;  %v21337_v62 = vld [vmem:[%s28259_s5 + $0x220] ss:$8 sps:$4 sm:$0xff]  }
 0x778   : > { %v10397_v23 = vpack.c.bf16 %v10383_v33, %v10381_v57  ;;  %v26264_v53 = vld [vmem:[#allocation3 + $0x50] sm:$0x1]  ;;  %v10571_v28 = vor.u32 %v10569_v3, %v10559_v19  ;;  %v21321_v19 = vld [vmem:[%s28259_s5 + $0xc4] ss:$8 sps:$4 sm:$0xff]   ;;  %v21343_v33 = vld [vmem:[%s28259_s5 + $0x240] ss:$8 sps:$4 sm:$0xff]  }
 0x779   : > { %10410 = vst [vmem:[#allocation3 + $0x60] sm:$0xff] %v10396_v48  ;;  %v26266_v47 = vld [vmem:[#allocation3 + $0x58] sm:$0x1]  ;;  %v10565_v51 = vshll.u32 %v26264_v53, 16  ;;  %11007 = vmatpush1.bf16.msra.mxu0 %v21307_v25  ;;  %v21340_v25 = vld [vmem:[%s28259_s5 + $0x230] ss:$8 sps:$4 sm:$0xff]  }
 0x77a   : > { %10411 = vst [vmem:[#allocation3 + $0x68] sm:$0xff] %v10397_v23  ;;  %v10573_v20 = vshll.u32 %v26266_v47, 16  ;;  %11008 = vmatprep.subr.bf16.mxu0 %v21312_v15  ;;  %v21345_v57 = vld [vmem:[%s28259_s5 + $0x244] ss:$8 sps:$4 sm:$0xff]   ;;  %v21348_v15 = vld [vmem:[%s28259_s5 + $0x254] ss:$8 sps:$4 sm:$0xff]  }
 0x77b   : > { %v10567_v12 = vrot.slane %v10565_v51, 1  ;;  %v21346_v48 = vld [vmem:[%s28259_s5 + $0x250] ss:$8 sps:$4 sm:$0xff]   ;;  %v21351_v23 = vld [vmem:[%s28259_s5 + $0x264] ss:$8 sps:$4 sm:$0xff]  }
 0x77c   : > { %v10575_v37 = vrot.slane %v10573_v20, 1  ;;  %v21349_v51 = vld [vmem:[%s28259_s5 + $0x260] ss:$8 sps:$4 sm:$0xff]   ;;  %v21352_v20 = vld [vmem:[%s28259_s5 + $0x270] ss:$8 sps:$4 sm:$0xff]  }
 0x77d   : > { %11009 = vmatpush1.bf16.msra.mxu0 %v21310_v31  ;;  %v10568_v16 = vsel %vm1492_vm1, %v10563_v9, %v10567_v12  ;;  %v21354_v31 = vld [vmem:[%s28259_s5 + $0x274] ss:$8 sps:$4 sm:$0xff]   ;;  %v21357_v12 = vld [vmem:[%s28259_s5 + $0x284] ss:$8 sps:$4 sm:$0xff]   ;;  %v21355_v9 = vld [vmem:[%s28259_s5 + $0x280] ss:$8 sps:$4 sm:$0xff]  }
 0x77e   : > { %v10576_v8 = vsel %vm1492_vm1, %v10571_v28, %v10575_v37  ;;  %11010 = vmatprep.subr.bf16.mxu0 %v21315_v7  ;;  %v11074_v7 = vld [vmem:[#allocation3 + $0x8] sm:$0xfe]  ;;  %v11124_v37 = vrot.slane %v26096_v22, 1 }
 0x77f   : > { %10819 = vmatprep.mubr.bf16.mxu0 %v10576_v8  ;;  %v11123_v28 = vrot.slane %v11074_v7, 1  ;;  %v21390_v7 = vld [vmem:[%s28259_s5 + $0x334] ss:$8 sps:$4 sm:$0xff]  }
 0x780   : > { %10820 = vmatmul.mubr.bf16.gmra.mrb[144].mxu0 %v10568_v16  ;;  %v21363_v16 = vld [vmem:[%s28259_s5 + $0x2a4] ss:$8 sps:$4 sm:$0xff]  }
 0x781   : > { %11022 = vmatprep.mubr.bf16.mxu0 %v26080_v63  ;;  %11011 = vmatpush1.bf16.msra.mxu0 %v21313_v4  ;;  %v21324_v63 = vld [vmem:[%s28259_s5 + $0xd4] ss:$8 sps:$4 sm:$0xff]   ;;  %v11125_v8 = vsel %vm3372_vm3, %v11123_v28, %v11124_v37 }
 0x782   : > { %11012 = vmatprep.subr.bf16.mxu0 %v21318_v40  ;;  %v21360_v4 = vld [vmem:[%s28259_s5 + $0x294] ss:$8 sps:$4 sm:$0xff]   ;;  %v21358_v40 = vld [vmem:[%s28259_s5 + $0x290] ss:$8 sps:$4 sm:$0xff]  }
 0x785   : > { %11013 = vmatpush1.bf16.msra.mxu0 %v21316_v46  ;;  %v21361_v46 = vld [vmem:[%s28259_s5 + $0x2a0] ss:$8 sps:$4 sm:$0xff]  }
 0x786   : > { %11014 = vmatprep.subr.bf16.mxu0 %v21321_v19  ;;  %v21366_v19 = vld [vmem:[%s28259_s5 + $0x2b4] ss:$8 sps:$4 sm:$0xff]  }
 0x789   : > { %11015 = vmatpush1.bf16.msra.mxu0 %v21319_v24  ;;  %v21364_v24 = vld [vmem:[%s28259_s5 + $0x2b0] ss:$8 sps:$4 sm:$0xff]  }
 0x78a   : > { %11016 = vmatprep.subr.bf16.mxu0 %v21324_v63  ;;  %v21369_v63 = vld [vmem:[%s28259_s5 + $0x2c4] ss:$8 sps:$4 sm:$0xff]  }
 0x78d   : > { %11017 = vmatpush1.bf16.msra.mxu0 %v21322_v21  ;;  %v21367_v21 = vld [vmem:[%s28259_s5 + $0x2c0] ss:$8 sps:$4 sm:$0xff]  }
 0x78e   : > { %11018 = vmatprep.subr.bf16.mxu0 %v21327_v55  ;;  %v21372_v55 = vld [vmem:[%s28259_s5 + $0x2d4] ss:$8 sps:$4 sm:$0xff]  }
 0x791   : > { %11019 = vmatpush1.bf16.msra.mxu0 %v21325_v11  ;;  %v21370_v11 = vld [vmem:[%s28259_s5 + $0x2d0] ss:$8 sps:$4 sm:$0xff]  }
 0x792   : > { %11020 = vmatprep.subr.bf16.mxu0 %v21330_v50  ;;  %v21375_v50 = vld [vmem:[%s28259_s5 + $0x2e4] ss:$8 sps:$4 sm:$0xff]  }
 0x795   : > { %11021 = vmatpush1.bf16.msra.mxu0 %v21328_v59  ;;  %v21373_v59 = vld [vmem:[%s28259_s5 + $0x2e0] ss:$8 sps:$4 sm:$0xff]  }
 0x796   : > { %11312 = vmatprep.subr.bf16.mxu0 %v21333_v42  ;;  %v21378_v42 = vld [vmem:[%s28259_s5 + $0x2f4] ss:$8 sps:$4 sm:$0xff]  }
 0x798   : > { %11023 = vmatmul.mubr.bf16.vlgmr.msra.gmra.mrb[128].mxu0 %v26078_v38  ;;  %v21342_v38 = vld [vmem:[%s28259_s5 + $0x234] ss:$8 sps:$4 sm:$0xff]  }
 0x799   : > { %11032 = vmatprep.mubr.bf16.mxu0 %v26096_v22  ;;  %11313 = vmatpush1.bf16.msra.mxu0 %v21331_v0  ;;  %v11073_v0 = vld [vmem:[#allocation3] sm:$0xfe] }
 0x79a   : > { %11314 = vmatprep.subr.bf16.mxu0 %v21336_v26  ;;  %v21376_v26 = vld [vmem:[%s28259_s5 + $0x2f0] ss:$8 sps:$4 sm:$0xff]  }
 0x79d   : > { %11315 = vmatpush1.bf16.msra.mxu0 %v21334_v49  ;;  %v21381_v49 = vld [vmem:[%s28259_s5 + $0x304] ss:$8 sps:$4 sm:$0xff]  }
 0x79e   : > { %11316 = vmatprep.subr.bf16.mxu0 %v21339_v32  ;;  %v11120_v32 = vrot.slane %v11073_v0, 1  ;;  %v21397_v0 = vld [vmem:[%s28259_s5 + $0x360] ss:$8 sps:$4 sm:$0xff]  }
 0x7a0   : > { %11033 = vmatmul.mubr.bf16.gmra.mrb[132].mxu0 %v26094_v17 }
 0x7a1   : > { %11042 = vmatprep.mubr.bf16.mxu0 %v26126_v5  ;;  %11317 = vmatpush1.bf16.msra.mxu0 %v21337_v62  ;;  %v11121_v62 = vrot.slane %v26094_v17, 1 }
 0x7a2   : > { %11318 = vmatprep.subr.bf16.mxu0 %v21342_v38  ;;  %v11128_v38 = vrot.slane %v26126_v5, 1 }
 0x7a5   : > { %11319 = vmatpush1.bf16.msra.mxu0 %v21340_v25  ;;  %v21379_v25 = vld [vmem:[%s28259_s5 + $0x300] ss:$8 sps:$4 sm:$0xff]  }
 0x7a6   : > { %11320 = vmatprep.subr.bf16.mxu0 %v21345_v57  ;;  %v21384_v57 = vld [vmem:[%s28259_s5 + $0x314] ss:$8 sps:$4 sm:$0xff]  }
 0x7a8   : > { %11043 = vmatmul.mubr.bf16.gmra.mrb[136].mxu0 %v26123_v6 }
 0x7a9   : > { %11052 = vmatprep.mubr.bf16.mxu0 %v26166_v39  ;;  %11321 = vmatpush1.bf16.msra.mxu0 %v21343_v33  ;;  %v11122_v33 = vsel %vm3372_vm3, %v11120_v32, %v11121_v62 }
 0x7aa   : > { %11322 = vmatprep.subr.bf16.mxu0 %v21348_v15  ;;  %v11129_v15 = vsel %vm3372_vm3, %v11124_v37, %v11128_v38  ;;  %v21388_v37 = vld [vmem:[%s28259_s5 + $0x330] ss:$8 sps:$4 sm:$0xff]  }
 0x7ad   : > { %11323 = vmatpush1.bf16.msra.mxu0 %v21346_v48  ;;  %v21382_v48 = vld [vmem:[%s28259_s5 + $0x310] ss:$8 sps:$4 sm:$0xff]  }
 0x7ae   : > { %11324 = vmatprep.subr.bf16.mxu0 %v21351_v23  ;;  %v21387_v23 = vld [vmem:[%s28259_s5 + $0x324] ss:$8 sps:$4 sm:$0xff]  }
 0x7b0   : > { %11053 = vmatmul.mubr.bf16.gmra.mrb[140].mxu0 %v26163_v43 }
 0x7b1   : > { %11062 = vmatprep.mubr.bf16.mxu0 %v26206_v29  ;;  %11325 = vmatpush1.bf16.msra.mxu0 %v21349_v51  ;;  %v11126_v51 = vrot.slane %v26123_v6, 1 }
 0x7b2   : > { %11326 = vmatprep.subr.bf16.mxu0 %v21354_v31  ;;  %v11132_v31 = vrot.slane %v26166_v39, 1 }
 0x7b4   : > { %v11133_v28 = vsel %vm3372_vm3, %v11128_v38, %v11132_v31 }
 0x7b5   : > { %11327 = vmatpush1.bf16.msra.mxu0 %v21352_v20  ;;  %v21385_v20 = vld [vmem:[%s28259_s5 + $0x320] ss:$8 sps:$4 sm:$0xff]  }
 0x7b6   : > { %11328 = vmatprep.subr.bf16.mxu0 %v21357_v12  ;;  %v11127_v12 = vsel %vm3372_vm3, %v11121_v62, %v11126_v51 }
 0x7b8   : > { %11063 = vmatmul.mubr.bf16.gmra.mrb[144].mxu0 %v26203_v45 }
 0x7b9   : > { %11329 = vmatpush1.bf16.msra.mxu0 %v21355_v9  ;;  %11344 = vmatprep.mubr.bf16.mxu0 %v11125_v8  ;;  %v21393_v9 = vld [vmem:[%s28259_s5 + $0x344] ss:$8 sps:$4 sm:$0xff]   ;;  %v11136_v8 = vrot.slane %v26206_v29, 1 }
 0x7ba   : > { %11330 = vmatprep.subr.bf16.mxu0 %v21360_v4  ;;  %v11130_v4 = vrot.slane %v26163_v43, 1 }
 0x7bd   : > { %11331 = vmatpush1.bf16.msra.mxu0 %v21358_v40  ;;  %v21391_v40 = vld [vmem:[%s28259_s5 + $0x340] ss:$8 sps:$4 sm:$0xff]  }
 0x7be   : > { %11332 = vmatprep.subr.bf16.mxu0 %v21363_v16  ;;  %v21396_v16 = vld [vmem:[%s28259_s5 + $0x354] ss:$8 sps:$4 sm:$0xff]  }
 0x7c1   : > { %11333 = vmatpush1.bf16.msra.mxu0 %v21361_v46  ;;  %v11131_v46 = vsel %vm3372_vm3, %v11126_v51, %v11130_v4  ;;  %v26516_v51 = vld [vmem:[#allocation3 + $0x48] sm:$0xff] }
 0x7c2   : > { %11334 = vmatprep.subr.bf16.mxu0 %v21366_v19  ;;  %v11137_v19 = vsel %vm3372_vm3, %v11132_v31, %v11136_v8  ;;  %v11138_v31 = vrot.slane %v26264_v53, 1 }
 0x7c5   : > { %11335 = vmatpush1.bf16.msra.mxu0 %v21364_v24  ;;  %v21394_v24 = vld [vmem:[%s28259_s5 + $0x350] ss:$8 sps:$4 sm:$0xff]  }
 0x7c6   : > { %11336 = vmatprep.subr.bf16.mxu0 %v21369_v63  ;;  %v21399_v63 = vld [vmem:[%s28259_s5 + $0x364] ss:$8 sps:$4 sm:$0xff]  }
 0x7c9   : > { %11337 = vmatpush1.bf16.msra.mxu0 %v21367_v21  ;;  %v26476_v21 = vld [vmem:[#allocation3 + $0x20] sm:$0xff] }
 0x7ca   : > { %11338 = vmatprep.subr.bf16.mxu0 %v21372_v55  ;;  %v11134_v55 = vrot.slane %v26203_v45, 1  ;;  %v13265_v32 = vrot.slane %v26476_v21, 5 }
 0x7cc   : > { %v11139_v53 = vsel %vm3372_vm3, %v11134_v55, %v11138_v31 }
 0x7cd   : > { %11339 = vmatpush1.bf16.msra.mxu0 %v21370_v11  ;;  %v26479_v11 = vld [vmem:[#allocation3 + $0x28] sm:$0xff] }
 0x7ce   : > { %11340 = vmatprep.subr.bf16.mxu0 %v21375_v50  ;;  %v26481_v50 = vld [vmem:[#allocation3 + $0x38] sm:$0xff] }
 0x7cf   : > { %v13272_v62 = vrot.slane %v26481_v50, 5 }
 0x7d1   : > { %11341 = vmatpush1.bf16.msra.mxu0 %v21373_v59  ;;  %v26483_v59 = vld [vmem:[#allocation3 + $0x30] sm:$0xff] }
 0x7d2   : > { %11342 = vmatprep.subr.bf16.mxu0 %v21378_v42  ;;  %v11140_v42 = vrot.slane %v26266_v47, 1  ;;  %v13270_v38 = vrot.slane %v26483_v59, 5  ;;  %v11135_v47 = vsel %vm3372_vm3, %v11130_v4, %v11134_v55  ;;  %v21409_v55 = vld [vmem:[%s28259_s5 + $0x3a0] ss:$8 sps:$4 sm:$0xff]  }
 0x7d5   : > { %11343 = vmatpush1.bf16.msra.mxu0 %v21376_v26  ;;  %v21402_v26 = vld [vmem:[%s28259_s5 + $0x374] ss:$8 sps:$4 sm:$0xff]  }
 0x7d6   : > { %11648 = vmatprep.subr.bf16.mxu0 %v21381_v49  ;;  %v13268_v49 = vrot.slane %v26479_v11, 5 }
 0x7d8   : > { %11345 = vmatmul.mubr.bf16.vlgmr.msra.gmra.mrb[128].mxu0 %v11122_v33  ;;  %v26506_v33 = vsel %vm9496_vm8, %v13265_v32, %v13270_v38 }
 0x7d9   : > { %11354 = vmatprep.mubr.bf16.mxu0 %v11129_v15  ;;  %11649 = vmatpush1.bf16.msra.mxu0 %v21379_v25  ;;  %v11141_v25 = vsel %vm3372_vm3, %v11136_v8, %v11140_v42  ;;  %v21400_v15 = vld [vmem:[%s28259_s5 + $0x370] ss:$8 sps:$4 sm:$0xff]   ;;  %v21414_v42 = vld [vmem:[%s28259_s5 + $0x3b4] ss:$8 sps:$4 sm:$0xff]  }
 0x7da   : > { %11650 = vmatprep.subr.bf16.mxu0 %v21384_v57  ;;  %v26501_v57 = vsel %vm9496_vm8, %v13268_v49, %v13272_v62 }
 0x7dd   : > { %11651 = vmatpush1.bf16.msra.mxu0 %v21382_v48  ;;  %v26511_v48 = vld [vmem:[#allocation3 + $0x8] sm:$0xc0] }
 0x7de   : > { %11652 = vmatprep.subr.bf16.mxu0 %v21387_v23  ;;  %v21405_v23 = vld [vmem:[%s28259_s5 + $0x384] ss:$8 sps:$4 sm:$0xff]  }
 0x7e0   : > { %11355 = vmatmul.mubr.bf16.gmra.mrb[132].mxu0 %v11127_v12  ;;  %v21403_v12 = vld [vmem:[%s28259_s5 + $0x380] ss:$8 sps:$4 sm:$0xff]  }
 0x7e1   : > { %11364 = vmatprep.mubr.bf16.mxu0 %v11133_v28  ;;  %11653 = vmatpush1.bf16.msra.mxu0 %v21385_v20  ;;  %v11459_v20 = vrot.slane %v26511_v48, 6  ;;  %v26524_v28 = vld [vmem:[#allocation3 + $0x40] sm:$0xff] }
 0x7e2   : > { %11654 = vmatprep.subr.bf16.mxu0 %v21390_v7  ;;  %v11460_v7 = vrot.slane %v26096_v22, 6  ;;  %v21451_v22 = vld [vmem:[%s28259_s5 + $0x480] ss:$8 sps:$4 sm:$0xff]  }
 0x7e4   : > { %v11461_v4 = vsel %vm4321_vm5, %v11459_v20, %v11460_v7 }
 0x7e5   : > { %11655 = vmatpush1.bf16.msra.mxu0 %v21388_v37  ;;  %v13276_v37 = vrot.slane %v26516_v51, 5 }
 0x7e6   : > { %11656 = vmatprep.subr.bf16.mxu0 %v21393_v9  ;;  %v21408_v9 = vld [vmem:[%s28259_s5 + $0x394] ss:$8 sps:$4 sm:$0xff]  }
 0x7e7   : > { %v26535_v8 = vsel %vm9496_vm8, %v13272_v62, %v13276_v37  ;;  %v12812_v62 = vld [vmem:[#allocation3 + $0x68] sm:$0x1f] }
 0x7e8   : > { %11365 = vmatmul.mubr.bf16.gmra.mrb[136].mxu0 %v11131_v46  ;;  %v21411_v46 = vld [vmem:[%s28259_s5 + $0x3a4] ss:$8 sps:$4 sm:$0xff]   ;;  %v13284_v31 = vrot.slane %v12812_v62, 5  ;;  %v11457_v62 = vrot.slane %v26094_v17, 6 }
 0x7e9   : > { %11374 = vmatprep.mubr.bf16.mxu0 %v11137_v19  ;;  %11657 = vmatpush1.bf16.msra.mxu0 %v21391_v40  ;;  %v13274_v40 = vrot.slane %v26524_v28, 5  ;;  %v26544_v19 = vld [vmem:[#allocation3 + $0x58] sm:$0xff] }
 0x7ea   : > { %11658 = vmatprep.subr.bf16.mxu0 %v21396_v16  ;;  %v21406_v16 = vld [vmem:[%s28259_s5 + $0x390] ss:$8 sps:$4 sm:$0xff]  }
 0x7ed   : > { %11659 = vmatpush1.bf16.msra.mxu0 %v21394_v24  ;;  %v26546_v24 = vld [vmem:[#allocation3 + $0x50] sm:$0xff] }
 0x7ee   : > { %11660 = vmatprep.subr.bf16.mxu0 %v21399_v63  ;;  %v26549_v63 = vsel %vm9496_vm8, %v13270_v38, %v13274_v40  ;;  %v21412_v38 = vld [vmem:[%s28259_s5 + $0x3b0] ss:$8 sps:$4 sm:$0xff]  }
 0x7f0   : > { %11375 = vmatmul.mubr.bf16.gmra.mrb[140].mxu0 %v11135_v47  ;;  %v12811_v47 = vld [vmem:[#allocation3 + $0x60] sm:$0x1f] }
 0x7f1   : > { %11384 = vmatprep.mubr.bf16.mxu0 %v11141_v25  ;;  %11661 = vmatpush1.bf16.msra.mxu0 %v21397_v0  ;;  %v13280_v0 = vrot.slane %v26544_v19, 5  ;;  %v21417_v25 = vld [vmem:[%s28259_s5 + $0x3c4] ss:$8 sps:$4 sm:$0xff]   ;;  %v13282_v20 = vrot.slane %v12811_v47, 5  ;;  %v11464_v47 = vrot.slane %v26126_v5, 6 }
 0x7f2   : > { %11662 = vmatprep.subr.bf16.mxu0 %v21402_v26  ;;  %v13278_v26 = vrot.slane %v26546_v24, 5  ;;  %v21480_v5 = vld [vmem:[%s28259_s5 + $0x514] ss:$8 sps:$4 sm:$0xff]  }
 0x7f5   : > { %11663 = vmatpush1.bf16.msra.mxu0 %v21400_v15  ;;  %v26566_v15 = vsel %vm9496_vm8, %v13276_v37, %v13280_v0  ;;  %v21420_v37 = vld [vmem:[%s28259_s5 + $0x3d4] ss:$8 sps:$4 sm:$0xff]  }
 0x7f6   : > { %11664 = vmatprep.subr.bf16.mxu0 %v21405_v23  ;;  %v26569_v23 = vsel %vm9496_vm8, %v13274_v40, %v13278_v26  ;;  %v21423_v40 = vld [vmem:[%s28259_s5 + $0x3e4] ss:$8 sps:$4 sm:$0xff]  }
 0x7f8   : > { %11385 = vmatmul.mubr.bf16.gmra.mrb[144].mxu0 %v11139_v53  ;;  %v26578_v53 = vsel %vm9496_vm8, %v13278_v26, %v13282_v20  ;;  %v11465_v20 = vsel %vm4321_vm5, %v11460_v7, %v11464_v47  ;;  %v21433_v7 = vld [vmem:[%s28259_s5 + $0x420] ss:$8 sps:$4 sm:$0xff]  }
 0x7f9   : > { %11665 = vmatpush1.bf16.msra.mxu0 %v21403_v12  ;;  %11680 = vmatprep.mubr.bf16.mxu0 %v11461_v4  ;;  %v21415_v12 = vld [vmem:[%s28259_s5 + $0x3c0] ss:$8 sps:$4 sm:$0xff]   ;;  %v21418_v4 = vld [vmem:[%s28259_s5 + $0x3d0] ss:$8 sps:$4 sm:$0xff]  }
 0x7fa   : > { %11666 = vmatprep.subr.bf16.mxu0 %v21408_v9  ;;  %v26575_v9 = vsel %vm9496_vm8, %v13280_v0, %v13284_v31  ;;  %v21429_v0 = vld [vmem:[%s28259_s5 + $0x404] ss:$8 sps:$4 sm:$0xff]  }
 0x7fd   : > { %11667 = vmatpush1.bf16.msra.mxu0 %v21406_v16  ;;  %v21421_v16 = vld [vmem:[%s28259_s5 + $0x3e0] ss:$8 sps:$4 sm:$0xff]  }
 0x7fe   : > { %11668 = vmatprep.subr.bf16.mxu0 %v21411_v46  ;;  %v21426_v46 = vld [vmem:[%s28259_s5 + $0x3f4] ss:$8 sps:$4 sm:$0xff]  }
 0x801   : > { %11669 = vmatpush1.bf16.msra.mxu0 %v21409_v55  ;;  %v26595_v55 = vld [vmem:[#allocation3] sm:$0xc0] }
 0x802   : > { %11670 = vmatprep.subr.bf16.mxu0 %v21414_v42  ;;  %v21424_v42 = vld [vmem:[%s28259_s5 + $0x3f0] ss:$8 sps:$4 sm:$0xff]   ;;  %v11456_v26 = vrot.slane %v26595_v55, 6 }
 0x804   : > { %v11458_v31 = vsel %vm4321_vm5, %v11456_v26, %v11457_v62  ;;  %v21441_v26 = vld [vmem:[%s28259_s5 + $0x444] ss:$8 sps:$4 sm:$0xff]  }
 0x805   : > { %11671 = vmatpush1.bf16.msra.mxu0 %v21412_v38  ;;  %v21427_v38 = vld [vmem:[%s28259_s5 + $0x400] ss:$8 sps:$4 sm:$0xff]  }
 0x806   : > { %11672 = vmatprep.subr.bf16.mxu0 %v21417_v25  ;;  %v21432_v25 = vld [vmem:[%s28259_s5 + $0x414] ss:$8 sps:$4 sm:$0xff]  }
 0x809   : > { %11673 = vmatpush1.bf16.msra.mxu0 %v21415_v12  ;;  %v21430_v12 = vld [vmem:[%s28259_s5 + $0x410] ss:$8 sps:$4 sm:$0xff]  }
 0x80a   : > { %11674 = vmatprep.subr.bf16.mxu0 %v21420_v37  ;;  %v21435_v37 = vld [vmem:[%s28259_s5 + $0x424] ss:$8 sps:$4 sm:$0xff]  }
 0x80d   : > { %11675 = vmatpush1.bf16.msra.mxu0 %v21418_v4  ;;  %v11462_v4 = vrot.slane %v26123_v6, 6  ;;  %v21483_v6 = vld [vmem:[%s28259_s5 + $0x524] ss:$8 sps:$4 sm:$0xff]  }
 0x80e   : > { %11676 = vmatprep.subr.bf16.mxu0 %v21423_v40  ;;  %v11468_v40 = vrot.slane %v26166_v39, 6  ;;  %v21486_v39 = vld [vmem:[%s28259_s5 + $0x534] ss:$8 sps:$4 sm:$0xff]  }
 0x811   : > { %11677 = vmatpush1.bf16.msra.mxu0 %v21421_v16  ;;  %v21438_v16 = vld [vmem:[%s28259_s5 + $0x434] ss:$8 sps:$4 sm:$0xff]  }
 0x812   : > { %11678 = vmatprep.subr.bf16.mxu0 %v21426_v46  ;;  %v11463_v46 = vsel %vm4321_vm5, %v11457_v62, %v11462_v4  ;;  %v21439_v62 = vld [vmem:[%s28259_s5 + $0x440] ss:$8 sps:$4 sm:$0xff]  }
 0x815   : > { %11679 = vmatpush1.bf16.msra.mxu0 %v21424_v42  ;;  %v11469_v42 = vsel %vm4321_vm5, %v11464_v47, %v11468_v40  ;;  %v21444_v47 = vld [vmem:[%s28259_s5 + $0x454] ss:$8 sps:$4 sm:$0xff]  }
 0x816   : > { %12022 = vmatprep.subr.bf16.mxu0 %v21429_v0  ;;  %v21436_v0 = vld [vmem:[%s28259_s5 + $0x430] ss:$8 sps:$4 sm:$0xff]  }
 0x818   : > { %11681 = vmatmul.mubr.bf16.vlgmr.msra.gmra.mrb[128].mxu0 %v11458_v31 }
 0x819   : > { %11690 = vmatprep.mubr.bf16.mxu0 %v11465_v20  ;;  %12023 = vmatpush1.bf16.msra.mxu0 %v21427_v38  ;;  %v11466_v38 = vrot.slane %v26163_v43, 6  ;;  %v21489_v43 = vld [vmem:[%s28259_s5 + $0x544] ss:$8 sps:$4 sm:$0xff]  }
 0x81a   : > { %12024 = vmatprep.subr.bf16.mxu0 %v21432_v25  ;;  %v11472_v25 = vrot.slane %v26206_v29, 6 }
 0x81b   : > { %v11467_v31 = vsel %vm4321_vm5, %v11462_v4, %v11466_v38  ;;  %v11799_v4 = vshrl.u32 %v26511_v48, 16 }
 0x81c   : > { %v11473_v20 = vsel %vm4321_vm5, %v11468_v40, %v11472_v25  ;;  %v21445_v40 = vld [vmem:[%s28259_s5 + $0x460] ss:$8 sps:$4 sm:$0xff]  }
 0x81d   : > { %12025 = vmatpush1.bf16.msra.mxu0 %v21430_v12  ;;  %v11418_v12 = vld [vmem:[#allocation3 + $0x58] sm:$0x3f] }
 0x81e   : > { %12026 = vmatprep.subr.bf16.mxu0 %v21435_v37  ;;  %v21442_v37 = vld [vmem:[%s28259_s5 + $0x450] ss:$8 sps:$4 sm:$0xff]  }
 0x820   : > { %11691 = vmatmul.mubr.bf16.gmra.mrb[132].mxu0 %v11463_v46  ;;  %v11476_v46 = vrot.slane %v11418_v12, 6  ;;  %v11807_v12 = vrot.slane %v10509_v54, 7  ;;  %v21456_v54 = vld [vmem:[%s28259_s5 + $0x494] ss:$8 sps:$4 sm:$0xff]  }
 0x821   : > { %11700 = vmatprep.mubr.bf16.mxu0 %v11469_v42  ;;  %12027 = vmatpush1.bf16.msra.mxu0 %v21433_v7  ;;  %v21447_v7 = vld [vmem:[%s28259_s5 + $0x464] ss:$8 sps:$4 sm:$0xff]   ;;  %v11802_v42 = vshll.u32 %v26511_v48, 16  ;;  %v11806_v48 = vrot.slane %v10521_v34, 6 }
 0x822   : > { %12028 = vmatprep.subr.bf16.mxu0 %v21438_v16  ;;  %v11470_v16 = vrot.slane %v26203_v45, 6 }
 0x825   : > { %12029 = vmatpush1.bf16.msra.mxu0 %v21436_v0  ;;  %v21450_v0 = vld [vmem:[%s28259_s5 + $0x474] ss:$8 sps:$4 sm:$0xff]  }
 0x826   : > { %12030 = vmatprep.subr.bf16.mxu0 %v21441_v26  ;;  %v11471_v26 = vsel %vm4321_vm5, %v11466_v38, %v11470_v16  ;;  %v21453_v38 = vld [vmem:[%s28259_s5 + $0x484] ss:$8 sps:$4 sm:$0xff]  }
 0x828   : > { %11701 = vmatmul.mubr.bf16.gmra.mrb[136].mxu0 %v11467_v31  ;;  %v11801_v31 = vrot.slane %v11799_v4, 6 }
 0x829   : > { %11710 = vmatprep.mubr.bf16.mxu0 %v11473_v20  ;;  %12031 = vmatpush1.bf16.msra.mxu0 %v21439_v62  ;;  %v11477_v62 = vsel %vm4321_vm5, %v11472_v25, %v11476_v46  ;;  %v11804_v20 = vrot.slane %v11802_v42, 7  ;;  %v11808_v46 = vor.u32 %v11807_v12, %v11806_v48  ;;  %v21454_v42 = vld [vmem:[%s28259_s5 + $0x490] ss:$8 sps:$4 sm:$0xff]   ;;  %v21471_v48 = vld [vmem:[%s28259_s5 + $0x4e4] ss:$8 sps:$4 sm:$0xff]   ;;  %v11787_v12 = vshrl.u32 %v26595_v55, 16 }
 0x82a   : > { %12032 = vmatprep.subr.bf16.mxu0 %v21444_v47  ;;  %v11417_v47 = vld [vmem:[#allocation3 + $0x50] sm:$0x3f] }
 0x82b   : > { %v11474_v25 = vrot.slane %v11417_v47, 6  ;;  %v21463_v47 = vld [vmem:[%s28259_s5 + $0x4c0] ss:$8 sps:$4 sm:$0xff]  }
 0x82d   : > { %12033 = vmatpush1.bf16.msra.mxu0 %v21442_v37  ;;  %v21448_v37 = vld [vmem:[%s28259_s5 + $0x470] ss:$8 sps:$4 sm:$0xff]   ;;  %v11475_v34 = vsel %vm4321_vm5, %v11470_v16, %v11474_v25  ;;  %v21462_v16 = vld [vmem:[%s28259_s5 + $0x4b4] ss:$8 sps:$4 sm:$0xff]  }
 0x82e   : > { %12034 = vmatprep.subr.bf16.mxu0 %v21447_v7  ;;  %v11805_v7 = vor.u32 %v11804_v20, %v11801_v31  ;;  %v21468_v31 = vld [vmem:[%s28259_s5 + $0x4d4] ss:$8 sps:$4 sm:$0xff]   ;;  %v21466_v20 = vld [vmem:[%s28259_s5 + $0x4d0] ss:$8 sps:$4 sm:$0xff]  }
 0x82f   : > { %v21474_v25 = vld [vmem:[%s28259_s5 + $0x4f4] ss:$8 sps:$4 sm:$0xff]  }
 0x830   : > { %11711 = vmatmul.mubr.bf16.gmra.mrb[140].mxu0 %v11471_v26  ;;  %v11809_v4 = vsel %vm5255_vm2, %v11805_v7, %v11808_v46  ;;  %v21460_v26 = vld [vmem:[%s28259_s5 + $0x4b0] ss:$8 sps:$4 sm:$0xff]   ;;  %v11794_v7 = vrot.slane %v10513_v18, 6  ;;  %v21477_v18 = vld [vmem:[%s28259_s5 + $0x504] ss:$8 sps:$4 sm:$0xff]  }
 0x831   : > { %11720 = vmatprep.mubr.bf16.mxu0 %v11477_v62  ;;  %12035 = vmatpush1.bf16.msra.mxu0 %v21445_v40  ;;  %v21459_v40 = vld [vmem:[%s28259_s5 + $0x4a4] ss:$8 sps:$4 sm:$0xff]  }
 0x832   : > { %12036 = vmatprep.subr.bf16.mxu0 %v21450_v0  ;;  %v21457_v0 = vld [vmem:[%s28259_s5 + $0x4a0] ss:$8 sps:$4 sm:$0xff]   ;;  %v21465_v62 = vld [vmem:[%s28259_s5 + $0x4c4] ss:$8 sps:$4 sm:$0xff]  }
 0x835   : > { %12037 = vmatpush1.bf16.msra.mxu0 %v21448_v37  ;;  %v11790_v37 = vshll.u32 %v26595_v55, 16  ;;  %v11814_v55 = vrot.slane %v10537_v41, 6  ;;  %v11810_v41 = vrot.slane %v10529_v13, 6 }
 0x836   : > { %12038 = vmatprep.subr.bf16.mxu0 %v21453_v38  ;;  %v21469_v38 = vld [vmem:[%s28259_s5 + $0x4e0] ss:$8 sps:$4 sm:$0xff]  }
 0x838   : > { %11721 = vmatmul.mubr.bf16.gmra.mrb[144].mxu0 %v11475_v34  ;;  %v11795_v34 = vrot.slane %v10497_v35, 7  ;;  %v21475_v35 = vld [vmem:[%s28259_s5 + $0x500] ss:$8 sps:$4 sm:$0xff]  }
 0x839   : > { %12039 = vmatpush1.bf16.msra.mxu0 %v21451_v22  ;;  %12054 = vmatprep.mubr.bf16.mxu0 %v11809_v4  ;;  %v11789_v22 = vrot.slane %v11787_v12, 6  ;;  %v11815_v4 = vrot.slane %v10525_v10, 7  ;;  %v11830_v12 = vrot.slane %v10569_v3, 6 }
 0x83a   : > { %12040 = vmatprep.subr.bf16.mxu0 %v21456_v54  ;;  %v11792_v54 = vrot.slane %v11790_v37, 7  ;;  %v11831_v37 = vrot.slane %v10557_v2, 7  ;;  %v21487_v2 = vld [vmem:[%s28259_s5 + $0x540] ss:$8 sps:$4 sm:$0xff]  }
 0x83b   : > { %v11816_v17 = vor.u32 %v11815_v4, %v11814_v55 }
 0x83d   : > { %12041 = vmatpush1.bf16.msra.mxu0 %v21454_v42  ;;  %v21472_v42 = vld [vmem:[%s28259_s5 + $0x4f0] ss:$8 sps:$4 sm:$0xff]  }
 0x83e   : > { %12042 = vmatprep.subr.bf16.mxu0 %v21459_v40  ;;  %v11793_v40 = vor.u32 %v11792_v54, %v11789_v22  ;;  %v11826_v54 = vrot.slane %v10561_v1, 6  ;;  %v21495_v1 = vld [vmem:[%s28259_s5 + $0x564] ss:$8 sps:$4 sm:$0xff]  }
 0x841   : > { %12043 = vmatpush1.bf16.msra.mxu0 %v21457_v0  ;;  %v11796_v0 = vor.u32 %v11795_v34, %v11794_v7  ;;  %v21492_v7 = vld [vmem:[%s28259_s5 + $0x554] ss:$8 sps:$4 sm:$0xff]   ;;  %v11827_v34 = vrot.slane %v10549_v36, 7 }
 0x842   : > { %12044 = vmatprep.subr.bf16.mxu0 %v21462_v16  ;;  %v11811_v16 = vrot.slane %v10517_v52, 7 }
 0x843   : > { %v11797_v10 = vsel %vm5255_vm2, %v11793_v40, %v11796_v0  ;;  %v21490_v40 = vld [vmem:[%s28259_s5 + $0x550] ss:$8 sps:$4 sm:$0xff]   ;;  %v11828_v45 = vor.u32 %v11827_v34, %v11826_v54  ;;  %v12125_v54 = vld [vmem:[#allocation3] sm:$0x80] }
 0x844   : > { %v11812_v52 = vor.u32 %v11811_v16, %v11810_v41  ;;  %v21520_v34 = vld [vmem:[%s28259_s5 + $0x5f0] ss:$8 sps:$4 sm:$0xff]  }
 0x845   : > { %12045 = vmatpush1.bf16.msra.mxu0 %v21460_v26  ;;  %v11817_v26 = vsel %vm5255_vm2, %v11808_v46, %v11816_v17  ;;  %v11818_v46 = vrot.slane %v10545_v58, 6  ;;  %v11832_v58 = vor.u32 %v11831_v37, %v11830_v12  ;;  %v21507_v12 = vld [vmem:[%s28259_s5 + $0x5a4] ss:$8 sps:$4 sm:$0xff]   ;;  %v21505_v37 = vld [vmem:[%s28259_s5 + $0x5a0] ss:$8 sps:$4 sm:$0xff]  }
 0x846   : > { %12046 = vmatprep.subr.bf16.mxu0 %v21465_v62  ;;  %v11822_v62 = vrot.slane %v10553_v14, 6  ;;  %v21481_v14 = vld [vmem:[%s28259_s5 + $0x520] ss:$8 sps:$4 sm:$0xff]  }
 0x849   : > { %12047 = vmatpush1.bf16.msra.mxu0 %v21463_v47  ;;  %v11823_v47 = vrot.slane %v10541_v56, 7  ;;  %v11813_v56 = vsel %vm5255_vm2, %v11796_v0, %v11812_v52 }
 0x84a   : > { %12048 = vmatprep.subr.bf16.mxu0 %v21468_v31  ;;  %v21478_v31 = vld [vmem:[%s28259_s5 + $0x510] ss:$8 sps:$4 sm:$0xff]  }
 0x84b   : > { %v11824_v13 = vor.u32 %v11823_v47, %v11822_v62  ;;  %v21496_v62 = vld [vmem:[%s28259_s5 + $0x570] ss:$8 sps:$4 sm:$0xff]   ;;  %v12126_v47 = vld [vmem:[#allocation3 + $0x8] sm:$0x80] }
 0x84d   : > { %12049 = vmatpush1.bf16.msra.mxu0 %v21466_v20  ;;  %v11819_v20 = vrot.slane %v10533_v61, 7  ;;  %v11833_v55 = vsel %vm5255_vm2, %v11824_v13, %v11832_v58 }
 0x84e   : > { %12050 = vmatprep.subr.bf16.mxu0 %v21471_v48  ;;  %v11825_v48 = vsel %vm5255_vm2, %v11816_v17, %v11824_v13  ;;  %v21943_v13 = vld [vmem:[#allocation3 + $0x18] sm:$0xff] }
 0x84f   : > { %v11820_v61 = vor.u32 %v11819_v20, %v11818_v46 }
 0x851   : > { %12051 = vmatpush1.bf16.msra.mxu0 %v21469_v38  ;;  %v21484_v38 = vld [vmem:[%s28259_s5 + $0x530] ss:$8 sps:$4 sm:$0xff]   ;;  %v11821_v22 = vsel %vm5255_vm2, %v11812_v52, %v11820_v61  ;;  %v12167_v52 = vrot.slane %v12126_v47, 7  ;;  %v21529_v47 = vld [vmem:[%s28259_s5 + $0x620] ss:$8 sps:$4 sm:$0xff]  }
 0x852   : > { %12052 = vmatprep.subr.bf16.mxu0 %v21474_v25  ;;  %v26776_v25 = vld [vmem:[#allocation3 + $0x58] sm:$0x7f] }
 0x853   : > { %v11844_v3 = vshrl.u32 %v26776_v25, 16  ;;  %v11847_v29 = vshll.u32 %v26776_v25, 16 }
 0x855   : > { %12053 = vmatpush1.bf16.msra.mxu0 %v21472_v42  ;;  %v11846_v4 = vrot.slane %v11844_v3, 6  ;;  %v11849_v42 = vrot.slane %v11847_v29, 7  ;;  %v21516_v3 = vld [vmem:[%s28259_s5 + $0x5d4] ss:$8 sps:$4 sm:$0xff]   ;;  %v21514_v29 = vld [vmem:[%s28259_s5 + $0x5d0] ss:$8 sps:$4 sm:$0xff]  }
 0x856   : > { %12356 = vmatprep.subr.bf16.mxu0 %v21477_v18  ;;  %v26795_v18 = vld [vmem:[#allocation3 + $0x50] sm:$0x7f] }
 0x857   : > { %v11835_v36 = vshrl.u32 %v26795_v18, 16  ;;  %v11838_v0 = vshll.u32 %v26795_v18, 16  ;;  %v11850_v17 = vor.u32 %v11849_v42, %v11846_v4  ;;  %v12164_v4 = vrot.slane %v12125_v54, 7  ;;  %v21944_v42 = vld [vmem:[#allocation3 + $0x10] sm:$0xff] }
 0x858   : > { %12055 = vmatmul.mubr.bf16.vlgmr.msra.gmra.mrb[128].mxu0 %v11797_v10  ;;  %v11829_v10 = vsel %vm5255_vm2, %v11820_v61, %v11828_v45  ;;  %v21513_v61 = vld [vmem:[%s28259_s5 + $0x5c4] ss:$8 sps:$4 sm:$0xff]  }
 0x859   : > { %12064 = vmatprep.mubr.bf16.mxu0 %v11817_v26  ;;  %12357 = vmatpush1.bf16.msra.mxu0 %v21475_v35  ;;  %v21493_v35 = vld [vmem:[%s28259_s5 + $0x560] ss:$8 sps:$4 sm:$0xff]   ;;  %v11837_v41 = vrot.slane %v11835_v36, 6  ;;  %v11840_v16 = vrot.slane %v11838_v0, 7  ;;  %v11851_v26 = vsel %vm5255_vm2, %v11832_v58, %v11850_v17  ;;  %v21528_v0 = vld [vmem:[%s28259_s5 + $0x614] ss:$8 sps:$4 sm:$0xff]  }
 0x85a   : > { %12358 = vmatprep.subr.bf16.mxu0 %v21480_v5  ;;  %v21498_v5 = vld [vmem:[%s28259_s5 + $0x574] ss:$8 sps:$4 sm:$0xff]   ;;  %v21511_v58 = vld [vmem:[%s28259_s5 + $0x5c0] ss:$8 sps:$4 sm:$0xff]  }
 0x85b   : > { %v21523_v36 = vld [vmem:[%s28259_s5 + $0x600] ss:$8 sps:$4 sm:$0xff]  }
 0x85d   : > { %12359 = vmatpush1.bf16.msra.mxu0 %v21478_v31  ;;  %v21501_v31 = vld [vmem:[%s28259_s5 + $0x584] ss:$8 sps:$4 sm:$0xff]  }
 0x85e   : > { %12360 = vmatprep.subr.bf16.mxu0 %v21483_v6  ;;  %v11841_v6 = vor.u32 %v11840_v16, %v11837_v41  ;;  %v21946_v41 = vld [vmem:[#allocation3 + $0x20] sm:$0xff] }
 0x85f   : > { %v12170_v16 = vrot.slane %v21946_v41, 7  ;;  %v21561_v41 = vld [vmem:[%s28259_s5 + $0x6c4] ss:$8 sps:$4 sm:$0xff]  }
 0x860   : > { %12065 = vmatmul.mubr.bf16.gmra.mrb[132].mxu0 %v11813_v56  ;;  %v21504_v56 = vld [vmem:[%s28259_s5 + $0x594] ss:$8 sps:$4 sm:$0xff]   ;;  %v11842_v46 = vsel %vm5255_vm2, %v11828_v45, %v11841_v6 }
 0x861   : > { %12074 = vmatprep.mubr.bf16.mxu0 %v11825_v48  ;;  %12361 = vmatpush1.bf16.msra.mxu0 %v21481_v14  ;;  %v12168_v14 = vrot.slane %v21943_v13, 7  ;;  %v21502_v48 = vld [vmem:[%s28259_s5 + $0x590] ss:$8 sps:$4 sm:$0xff]  }
 0x862   : > { %12362 = vmatprep.subr.bf16.mxu0 %v21486_v39  ;;  %v21499_v39 = vld [vmem:[%s28259_s5 + $0x580] ss:$8 sps:$4 sm:$0xff]   ;;  %v21532_v13 = vld [vmem:[%s28259_s5 + $0x630] ss:$8 sps:$4 sm:$0xff]  }
 0x863   : > { %v12169_v20 = vsel %vm6329_vm4, %v12167_v52, %v12168_v14 }
 0x865   : > { %12363 = vmatpush1.bf16.msra.mxu0 %v21484_v38  ;;  %v21510_v38 = vld [vmem:[%s28259_s5 + $0x5b4] ss:$8 sps:$4 sm:$0xff]  }
 0x866   : > { %12364 = vmatprep.subr.bf16.mxu0 %v21489_v43  ;;  %v21508_v43 = vld [vmem:[%s28259_s5 + $0x5b0] ss:$8 sps:$4 sm:$0xff]  }
 0x868   : > { %12075 = vmatmul.mubr.bf16.gmra.mrb[136].mxu0 %v11821_v22  ;;  %v21522_v22 = vld [vmem:[%s28259_s5 + $0x5f4] ss:$8 sps:$4 sm:$0xff]  }
 0x869   : > { %12084 = vmatprep.mubr.bf16.mxu0 %v11833_v55  ;;  %12365 = vmatpush1.bf16.msra.mxu0 %v21487_v2  ;;  %v21519_v2 = vld [vmem:[%s28259_s5 + $0x5e4] ss:$8 sps:$4 sm:$0xff]  }
 0x86a   : > { %12366 = vmatprep.subr.bf16.mxu0 %v21492_v7  ;;  %v21517_v7 = vld [vmem:[%s28259_s5 + $0x5e0] ss:$8 sps:$4 sm:$0xff]   ;;  %v21525_v55 = vld [vmem:[%s28259_s5 + $0x604] ss:$8 sps:$4 sm:$0xff]  }
 0x86d   : > { %12367 = vmatpush1.bf16.msra.mxu0 %v21490_v40  ;;  %v12165_v40 = vrot.slane %v21944_v42, 7  ;;  %v12520_v42 = vrot.slane %v26479_v11, 4 }
 0x86e   : > { %12368 = vmatprep.subr.bf16.mxu0 %v21495_v1  ;;  %v21945_v1 = vld [vmem:[#allocation3 + $0x28] sm:$0xff] }
 0x86f   : > { %v12172_v45 = vrot.slane %v21945_v1, 7  ;;  %v12166_v17 = vsel %vm6329_vm4, %v12164_v4, %v12165_v40  ;;  %v12171_v6 = vsel %vm6329_vm4, %v12165_v40, %v12170_v16  ;;  %v26927_v4 = vld [vmem:[#allocation3 + $0x18] sm:$0xf0]  ;;  %v21547_v40 = vld [vmem:[%s28259_s5 + $0x680] ss:$8 sps:$4 sm:$0xff]  }
 0x870   : > { %12085 = vmatmul.mubr.bf16.gmra.mrb[140].mxu0 %v11829_v10  ;;  %v21531_v10 = vld [vmem:[%s28259_s5 + $0x624] ss:$8 sps:$4 sm:$0xff]   ;;  %v12519_v1 = vrot.slane %v26927_v4, 4 }
 0x871   : > { %12094 = vmatprep.mubr.bf16.mxu0 %v11851_v26  ;;  %12369 = vmatpush1.bf16.msra.mxu0 %v21493_v35  ;;  %v12173_v35 = vsel %vm6329_vm4, %v12168_v14, %v12172_v45  ;;  %v21947_v26 = vld [vmem:[#allocation3 + $0x38] sm:$0xff] }
 0x872   : > { %12370 = vmatprep.subr.bf16.mxu0 %v21498_v5  ;;  %v21526_v5 = vld [vmem:[%s28259_s5 + $0x610] ss:$8 sps:$4 sm:$0xff]   ;;  %v21537_v14 = vld [vmem:[%s28259_s5 + $0x644] ss:$8 sps:$4 sm:$0xff]  }
 0x875   : > { %12371 = vmatpush1.bf16.msra.mxu0 %v21496_v62  ;;  %v12176_v62 = vrot.slane %v21947_v26, 7  ;;  %v21564_v26 = vld [vmem:[%s28259_s5 + $0x6d4] ss:$8 sps:$4 sm:$0xff]  }
 0x876   : > { %12372 = vmatprep.subr.bf16.mxu0 %v21501_v31  ;;  %v21534_v31 = vld [vmem:[%s28259_s5 + $0x634] ss:$8 sps:$4 sm:$0xff]  }
 0x877   : > { %v12177_v52 = vsel %vm6329_vm4, %v12172_v45, %v12176_v62  ;;  %v21552_v45 = vld [vmem:[%s28259_s5 + $0x694] ss:$8 sps:$4 sm:$0xff]  }
 0x878   : > { %12095 = vmatmul.mubr.bf16.gmra.mrb[144].mxu0 %v11842_v46  ;;  %v21949_v46 = vld [vmem:[#allocation3 + $0x48] sm:$0xff] }
 0x879   : > { %12373 = vmatpush1.bf16.msra.mxu0 %v21499_v39  ;;  %12388 = vmatprep.mubr.bf16.mxu0 %v12169_v20  ;;  %v21948_v39 = vld [vmem:[#allocation3 + $0x30] sm:$0xff]  ;;  %v12180_v20 = vrot.slane %v21949_v46, 7 }
 0x87a   : > { %12374 = vmatprep.subr.bf16.mxu0 %v21504_v56  ;;  %v12174_v56 = vrot.slane %v21948_v39, 7  ;;  %v12517_v39 = vrot.slane %v26476_v21, 4 }
 0x87d   : > { %12375 = vmatpush1.bf16.msra.mxu0 %v21502_v48  ;;  %v21535_v48 = vld [vmem:[%s28259_s5 + $0x640] ss:$8 sps:$4 sm:$0xff]  }
 0x87e   : > { %12376 = vmatprep.subr.bf16.mxu0 %v21507_v12  ;;  %v21540_v12 = vld [vmem:[%s28259_s5 + $0x654] ss:$8 sps:$4 sm:$0xff]  }
 0x881   : > { %12377 = vmatpush1.bf16.msra.mxu0 %v21505_v37  ;;  %v12175_v37 = vsel %vm6329_vm4, %v12170_v16, %v12174_v56  ;;  %v21559_v16 = vld [vmem:[%s28259_s5 + $0x6c0] ss:$8 sps:$4 sm:$0xff]  }
 0x882   : > { %12378 = vmatprep.subr.bf16.mxu0 %v21510_v38  ;;  %v12181_v38 = vsel %vm6329_vm4, %v12176_v62, %v12180_v20  ;;  %v21562_v62 = vld [vmem:[%s28259_s5 + $0x6d0] ss:$8 sps:$4 sm:$0xff]  }
 0x885   : > { %12379 = vmatpush1.bf16.msra.mxu0 %v21508_v43  ;;  %v21538_v43 = vld [vmem:[%s28259_s5 + $0x650] ss:$8 sps:$4 sm:$0xff]  }
 0x886   : > { %12380 = vmatprep.subr.bf16.mxu0 %v21513_v61  ;;  %v21543_v61 = vld [vmem:[%s28259_s5 + $0x664] ss:$8 sps:$4 sm:$0xff]  }
 0x889   : > { %12381 = vmatpush1.bf16.msra.mxu0 %v21511_v58  ;;  %v21950_v58 = vld [vmem:[#allocation3 + $0x40] sm:$0xff] }
 0x88a   : > { %12382 = vmatprep.subr.bf16.mxu0 %v21516_v3  ;;  %v12178_v3 = vrot.slane %v21950_v58, 7  ;;  %v12528_v58 = vrot.slane %v26516_v51, 4 }
 0x88d   : > { %12383 = vmatpush1.bf16.msra.mxu0 %v21514_v29  ;;  %v12184_v29 = vrot.slane %v26776_v25, 7  ;;  %v21544_v25 = vld [vmem:[%s28259_s5 + $0x670] ss:$8 sps:$4 sm:$0xff]  }
 0x88e   : > { %12384 = vmatprep.subr.bf16.mxu0 %v21519_v2  ;;  %v21541_v2 = vld [vmem:[%s28259_s5 + $0x660] ss:$8 sps:$4 sm:$0xff]  }
 0x88f   : > { %v12185_v54 = vsel %vm6329_vm4, %v12180_v20, %v12184_v29  ;;  %v21571_v20 = vld [vmem:[%s28259_s5 + $0x700] ss:$8 sps:$4 sm:$0xff]   ;;  %v21582_v29 = vld [vmem:[%s28259_s5 + $0x734] ss:$8 sps:$4 sm:$0xff]  }
 0x891   : > { %12385 = vmatpush1.bf16.msra.mxu0 %v21517_v7  ;;  %v21546_v7 = vld [vmem:[%s28259_s5 + $0x674] ss:$8 sps:$4 sm:$0xff]  }
 0x892   : > { %12386 = vmatprep.subr.bf16.mxu0 %v21522_v22  ;;  %v12179_v22 = vsel %vm6329_vm4, %v12174_v56, %v12178_v3  ;;  %v12524_v56 = vrot.slane %v26481_v50, 4 }
 0x895   : > { %12387 = vmatpush1.bf16.msra.mxu0 %v21520_v34  ;;  %v21549_v34 = vld [vmem:[%s28259_s5 + $0x684] ss:$8 sps:$4 sm:$0xff]  }
 0x896   : > { %12708 = vmatprep.subr.bf16.mxu0 %v21525_v55  ;;  %v12182_v55 = vrot.slane %v26795_v18, 7  ;;  %v12521_v18 = vsel %vm7338_vm6, %v12519_v1, %v12520_v42  ;;  %v12470_v1 = vld [vmem:[#allocation3 + $0x68] sm:$0xf] }
 0x898   : > { %12389 = vmatmul.mubr.bf16.vlgmr.msra.gmra.mrb[128].mxu0 %v12166_v17  ;;  %v21555_v17 = vld [vmem:[%s28259_s5 + $0x6a4] ss:$8 sps:$4 sm:$0xff]  }
 0x899   : > { %12398 = vmatprep.mubr.bf16.mxu0 %v12173_v35  ;;  %12709 = vmatpush1.bf16.msra.mxu0 %v21523_v36  ;;  %v12183_v36 = vsel %vm6329_vm4, %v12178_v3, %v12182_v55  ;;  %v21553_v35 = vld [vmem:[%s28259_s5 + $0x6a0] ss:$8 sps:$4 sm:$0xff]   ;;  %v21588_v55 = vld [vmem:[%s28259_s5 + $0x754] ss:$8 sps:$4 sm:$0xff]  }
 0x89a   : > { %12710 = vmatprep.subr.bf16.mxu0 %v21528_v0  ;;  %v21550_v0 = vld [vmem:[%s28259_s5 + $0x690] ss:$8 sps:$4 sm:$0xff]   ;;  %v21577_v3 = vld [vmem:[%s28259_s5 + $0x720] ss:$8 sps:$4 sm:$0xff]  }
 0x89d   : > { %12711 = vmatpush1.bf16.msra.mxu0 %v21526_v5  ;;  %v21558_v5 = vld [vmem:[%s28259_s5 + $0x6b4] ss:$8 sps:$4 sm:$0xff]  }
 0x89e   : > { %12712 = vmatprep.subr.bf16.mxu0 %v21531_v10  ;;  %v21556_v10 = vld [vmem:[%s28259_s5 + $0x6b0] ss:$8 sps:$4 sm:$0xff]  }
 0x8a0   : > { %12399 = vmatmul.mubr.bf16.gmra.mrb[132].mxu0 %v12171_v6  ;;  %v21570_v6 = vld [vmem:[%s28259_s5 + $0x6f4] ss:$8 sps:$4 sm:$0xff]  }
 0x8a1   : > { %12408 = vmatprep.mubr.bf16.mxu0 %v12177_v52  ;;  %12713 = vmatpush1.bf16.msra.mxu0 %v21529_v47  ;;  %v21567_v47 = vld [vmem:[%s28259_s5 + $0x6e4] ss:$8 sps:$4 sm:$0xff]   ;;  %v21568_v52 = vld [vmem:[%s28259_s5 + $0x6f0] ss:$8 sps:$4 sm:$0xff]  }
 0x8a2   : > { %12714 = vmatprep.subr.bf16.mxu0 %v21534_v31  ;;  %v21565_v31 = vld [vmem:[%s28259_s5 + $0x6e0] ss:$8 sps:$4 sm:$0xff]  }
 0x8a5   : > { %12715 = vmatpush1.bf16.msra.mxu0 %v21532_v13  ;;  %v26978_v13 = vld [vmem:[#allocation3 + $0x10] sm:$0xf0] }
 0x8a6   : > { %12716 = vmatprep.subr.bf16.mxu0 %v21537_v14  ;;  %v21573_v14 = vld [vmem:[%s28259_s5 + $0x704] ss:$8 sps:$4 sm:$0xff]   ;;  %v12516_v46 = vrot.slane %v26978_v13, 4 }
 0x8a8   : > { %12409 = vmatmul.mubr.bf16.gmra.mrb[136].mxu0 %v12175_v37  ;;  %v12525_v37 = vsel %vm7338_vm6, %v12520_v42, %v12524_v56 }
 0x8a9   : > { %12418 = vmatprep.mubr.bf16.mxu0 %v12181_v38  ;;  %12717 = vmatpush1.bf16.msra.mxu0 %v21535_v48  ;;  %v21576_v48 = vld [vmem:[%s28259_s5 + $0x714] ss:$8 sps:$4 sm:$0xff]   ;;  %v21574_v38 = vld [vmem:[%s28259_s5 + $0x710] ss:$8 sps:$4 sm:$0xff]  }
 0x8aa   : > { %12718 = vmatprep.subr.bf16.mxu0 %v21540_v12  ;;  %v12518_v12 = vsel %vm7338_vm6, %v12516_v46, %v12517_v39 }
 0x8ad   : > { %12719 = vmatpush1.bf16.msra.mxu0 %v21538_v43  ;;  %v21579_v43 = vld [vmem:[%s28259_s5 + $0x724] ss:$8 sps:$4 sm:$0xff]  }
 0x8ae   : > { %12720 = vmatprep.subr.bf16.mxu0 %v21543_v61  ;;  %v12522_v61 = vrot.slane %v26483_v59, 4  ;;  %v21580_v59 = vld [vmem:[%s28259_s5 + $0x730] ss:$8 sps:$4 sm:$0xff]  }
 0x8b0   : > { %12419 = vmatmul.mubr.bf16.gmra.mrb[140].mxu0 %v12179_v22  ;;  %v21585_v22 = vld [vmem:[%s28259_s5 + $0x744] ss:$8 sps:$4 sm:$0xff]  }
 0x8b1   : > { %12428 = vmatprep.mubr.bf16.mxu0 %v12185_v54  ;;  %12721 = vmatpush1.bf16.msra.mxu0 %v21541_v2  ;;  %v12523_v2 = vsel %vm7338_vm6, %v12517_v39, %v12522_v61  ;;  %v12526_v54 = vrot.slane %v26524_v28, 4  ;;  %v21586_v28 = vld [vmem:[%s28259_s5 + $0x750] ss:$8 sps:$4 sm:$0xff]  }
 0x8b2   : > { %12722 = vmatprep.subr.bf16.mxu0 %v21546_v7  ;;  %v12529_v7 = vsel %vm7338_vm6, %v12524_v56, %v12528_v58  ;;  %v21595_v56 = vld [vmem:[%s28259_s5 + $0x780] ss:$8 sps:$4 sm:$0xff]  }
 0x8b3   : > { %v12527_v42 = vsel %vm7338_vm6, %v12522_v61, %v12526_v54  ;;  %v21606_v61 = vld [vmem:[%s28259_s5 + $0x7b4] ss:$8 sps:$4 sm:$0xff]  }
 0x8b5   : > { %12723 = vmatpush1.bf16.msra.mxu0 %v21544_v25  ;;  %v12532_v25 = vrot.slane %v26544_v19, 4 }
 0x8b6   : > { %12724 = vmatprep.subr.bf16.mxu0 %v21549_v34  ;;  %v21583_v34 = vld [vmem:[%s28259_s5 + $0x740] ss:$8 sps:$4 sm:$0xff]  }
 0x8b8   : > { %12429 = vmatmul.mubr.bf16.gmra.mrb[144].mxu0 %v12183_v36  ;;  %v12530_v36 = vrot.slane %v26546_v24, 4 }
 0x8b9   : > { %12725 = vmatpush1.bf16.msra.mxu0 %v21547_v40  ;;  %12740 = vmatprep.mubr.bf16.mxu0 %v12521_v18  ;;  %v12533_v40 = vsel %vm7338_vm6, %v12528_v58, %v12532_v25  ;;  %v12536_v18 = vrot.slane %v12470_v1, 4  ;;  %v21604_v58 = vld [vmem:[%s28259_s5 + $0x7b0] ss:$8 sps:$4 sm:$0xff]  }
 0x8ba   : > { %12726 = vmatprep.subr.bf16.mxu0 %v21552_v45  ;;  %v21591_v45 = vld [vmem:[%s28259_s5 + $0x764] ss:$8 sps:$4 sm:$0xff]   ;;  %v12531_v24 = vsel %vm7338_vm6, %v12526_v54, %v12530_v36  ;;  %v12858_v54 = vshll.u32 %v26476_v21, 16 }
 0x8bd   : > { %12727 = vmatpush1.bf16.msra.mxu0 %v21550_v0  ;;  %v12872_v0 = vshrl.u32 %v26479_v11, 16 }
 0x8be   : > { %12728 = vmatprep.subr.bf16.mxu0 %v21555_v17  ;;  %v12875_v17 = vshll.u32 %v26479_v11, 16  ;;  %v21654_v11 = vld [vmem:[%s28259_s5 + $0x8b4] ss:$8 sps:$4 sm:$0xff]  }
 0x8c1   : > { %12729 = vmatpush1.bf16.msra.mxu0 %v21553_v35  ;;  %v21589_v35 = vld [vmem:[%s28259_s5 + $0x760] ss:$8 sps:$4 sm:$0xff]  }
 0x8c2   : > { %12730 = vmatprep.subr.bf16.mxu0 %v21558_v5  ;;  %v21594_v5 = vld [vmem:[%s28259_s5 + $0x774] ss:$8 sps:$4 sm:$0xff]  }
 0x8c5   : > { %12731 = vmatpush1.bf16.msra.mxu0 %v21556_v10  ;;  %v12864_v10 = vshrl.u32 %v26927_v4, 16 }
 0x8c6   : > { %12732 = vmatprep.subr.bf16.mxu0 %v21561_v41  ;;  %v12867_v41 = vshll.u32 %v26927_v4, 16 }
 0x8c7   : > { %v12866_v4 = vrot.slane %v12864_v10, 4 }
 0x8c9   : > { %12733 = vmatpush1.bf16.msra.mxu0 %v21559_v16  ;;  %v12537_v16 = vsel %vm7338_vm6, %v12532_v25, %v12536_v18  ;;  %v12890_v25 = vshrl.u32 %v26481_v50, 16 }
 0x8ca   : > { %12734 = vmatprep.subr.bf16.mxu0 %v21564_v26  ;;  %v12469_v26 = vld [vmem:[#allocation3 + $0x60] sm:$0xf] }
 0x8cd   : > { %12735 = vmatpush1.bf16.msra.mxu0 %v21562_v62  ;;  %v12874_v62 = vrot.slane %v12872_v0, 4 }
 0x8ce   : > { %12736 = vmatprep.subr.bf16.mxu0 %v21567_v47  ;;  %v12877_v47 = vrot.slane %v12875_v17, 5 }
 0x8d0   : > { %v27051_v39 = vor.u32 %v12877_v47, %v12874_v62  ;;  %v21619_v47 = vld [vmem:[%s28259_s5 + $0x800] ss:$8 sps:$4 sm:$0xff]  }
 0x8d1   : > { %12737 = vmatpush1.bf16.msra.mxu0 %v21565_v31  ;;  %v21592_v31 = vld [vmem:[%s28259_s5 + $0x770] ss:$8 sps:$4 sm:$0xff]  }
 0x8d2   : > { %12738 = vmatprep.subr.bf16.mxu0 %v21570_v6  ;;  %v21597_v6 = vld [vmem:[%s28259_s5 + $0x784] ss:$8 sps:$4 sm:$0xff]  }
 0x8d5   : > { %12739 = vmatpush1.bf16.msra.mxu0 %v21568_v52  ;;  %v12869_v52 = vrot.slane %v12867_v41, 5 }
 0x8d6   : > { %13122 = vmatprep.subr.bf16.mxu0 %v21573_v14  ;;  %v12534_v14 = vrot.slane %v12469_v26, 4  ;;  %v12911_v26 = vshll.u32 %v26516_v51, 16 }
 0x8d7   : > { %v12870_v46 = vor.u32 %v12869_v52, %v12866_v4 }
 0x8d8   : > { %12741 = vmatmul.mubr.bf16.vlgmr.msra.gmra.mrb[128].mxu0 %v12518_v12 }
 0x8d9   : > { %12750 = vmatprep.mubr.bf16.mxu0 %v12525_v37  ;;  %13123 = vmatpush1.bf16.msra.mxu0 %v21571_v20  ;;  %v21600_v20 = vld [vmem:[%s28259_s5 + $0x794] ss:$8 sps:$4 sm:$0xff]   ;;  %v12879_v12 = vsel %vm8272_vm7, %v12870_v46, %v27051_v39  ;;  %v21598_v37 = vld [vmem:[%s28259_s5 + $0x790] ss:$8 sps:$4 sm:$0xff]  }
 0x8da   : > { %13124 = vmatprep.subr.bf16.mxu0 %v21576_v48  ;;  %v12535_v48 = vsel %vm7338_vm6, %v12530_v36, %v12534_v14  ;;  %v12892_v36 = vrot.slane %v12890_v25, 4  ;;  %v21622_v46 = vld [vmem:[%s28259_s5 + $0x810] ss:$8 sps:$4 sm:$0xff]  }
 0x8db   : > { %v21628_v25 = vld [vmem:[%s28259_s5 + $0x830] ss:$8 sps:$4 sm:$0xff]  }
 0x8dd   : > { %13125 = vmatpush1.bf16.msra.mxu0 %v21574_v38  ;;  %v21603_v38 = vld [vmem:[%s28259_s5 + $0x7a4] ss:$8 sps:$4 sm:$0xff]  }
 0x8de   : > { %13126 = vmatprep.subr.bf16.mxu0 %v21579_v43  ;;  %v21601_v43 = vld [vmem:[%s28259_s5 + $0x7a0] ss:$8 sps:$4 sm:$0xff]  }
 0x8e0   : > { %12751 = vmatmul.mubr.bf16.gmra.mrb[132].mxu0 %v12523_v2  ;;  %v21612_v2 = vld [vmem:[%s28259_s5 + $0x7d4] ss:$8 sps:$4 sm:$0xff]  }
 0x8e1   : > { %12760 = vmatprep.mubr.bf16.mxu0 %v12529_v7  ;;  %13127 = vmatpush1.bf16.msra.mxu0 %v21577_v3  ;;  %v21609_v3 = vld [vmem:[%s28259_s5 + $0x7c4] ss:$8 sps:$4 sm:$0xff]   ;;  %v21610_v7 = vld [vmem:[%s28259_s5 + $0x7d0] ss:$8 sps:$4 sm:$0xff]  }
 0x8e2   : > { %13128 = vmatprep.subr.bf16.mxu0 %v21582_v29  ;;  %v21607_v29 = vld [vmem:[%s28259_s5 + $0x7c0] ss:$8 sps:$4 sm:$0xff]  }
 0x8e5   : > { %13129 = vmatpush1.bf16.msra.mxu0 %v21580_v59  ;;  %v21615_v59 = vld [vmem:[%s28259_s5 + $0x7e4] ss:$8 sps:$4 sm:$0xff]  }
 0x8e6   : > { %13130 = vmatprep.subr.bf16.mxu0 %v21585_v22  ;;  %v12855_v22 = vshrl.u32 %v26476_v21, 16  ;;  %v21670_v21 = vld [vmem:[%s28261_s7 + $0x78] sm:$0xff]  }
 0x8e8   : > { %12761 = vmatmul.mubr.bf16.gmra.mrb[136].mxu0 %v12527_v42  ;;  %v12847_v42 = vshrl.u32 %v26978_v13, 16  ;;  %v12857_v1 = vrot.slane %v12855_v22, 4 }
 0x8e9   : > { %12770 = vmatprep.mubr.bf16.mxu0 %v12533_v40  ;;  %13131 = vmatpush1.bf16.msra.mxu0 %v21583_v34  ;;  %v12893_v34 = vshll.u32 %v26481_v50, 16  ;;  %v12850_v40 = vshll.u32 %v26978_v13, 16  ;;  %v21616_v50 = vld [vmem:[%s28259_s5 + $0x7f0] ss:$8 sps:$4 sm:$0xff]   ;;  %v21621_v13 = vld [vmem:[%s28259_s5 + $0x804] ss:$8 sps:$4 sm:$0xff]  }
 0x8ea   : > { %13132 = vmatprep.subr.bf16.mxu0 %v21588_v55  ;;  %v21613_v55 = vld [vmem:[%s28259_s5 + $0x7e0] ss:$8 sps:$4 sm:$0xff]   ;;  %v12849_v0 = vrot.slane %v12847_v42, 4  ;;  %v21954_v42 = vld [vmem:[#allocation3 + $0x50] sm:$0xff] }
 0x8eb   : > { %v12895_v18 = vrot.slane %v12893_v34, 5  ;;  %v12852_v17 = vrot.slane %v12850_v40, 5  ;;  %v21633_v34 = vld [vmem:[%s28259_s5 + $0x844] ss:$8 sps:$4 sm:$0xff]   ;;  %v12917_v40 = vshrl.u32 %v21954_v42, 16 }
 0x8ed   : > { %13133 = vmatpush1.bf16.msra.mxu0 %v21586_v28  ;;  %v21618_v28 = vld [vmem:[%s28259_s5 + $0x7f4] ss:$8 sps:$4 sm:$0xff]   ;;  %v12853_v62 = vor.u32 %v12852_v17, %v12849_v0 }
 0x8ee   : > { %13134 = vmatprep.subr.bf16.mxu0 %v21591_v45  ;;  %v12860_v45 = vrot.slane %v12858_v54, 5  ;;  %v21636_v0 = vld [vmem:[%s28259_s5 + $0x854] ss:$8 sps:$4 sm:$0xff]  }
 0x8f0   : > { %12771 = vmatmul.mubr.bf16.gmra.mrb[140].mxu0 %v12531_v24  ;;  %v12896_v24 = vor.u32 %v12895_v18, %v12892_v36 }
 0x8f1   : > { %12780 = vmatprep.mubr.bf16.mxu0 %v12537_v16  ;;  %13135 = vmatpush1.bf16.msra.mxu0 %v21589_v35  ;;  %v12861_v35 = vor.u32 %v12860_v45, %v12857_v1  ;;  %v12908_v16 = vshrl.u32 %v26516_v51, 16  ;;  %v21955_v45 = vld [vmem:[#allocation3 + $0x68] sm:$0x1f] }
 0x8f2   : > { %13136 = vmatprep.subr.bf16.mxu0 %v21594_v5  ;;  %v21951_v5 = vld [vmem:[#allocation3 + $0x30] sm:$0xff]  ;;  %v12897_v14 = vsel %vm8272_vm7, %v27051_v39, %v12896_v24  ;;  %v12926_v39 = vshrl.u32 %v26544_v19, 16  ;;  %v12944_v36 = vshrl.u32 %v21955_v45, 16  ;;  %v12947_v18 = vshll.u32 %v21955_v45, 16  ;;  %v21668_v45 = vld [vmem:[%s28261_s7 + $0x68] sm:$0xff]  }
 0x8f3   : > { %v12881_v10 = vshrl.u32 %v21951_v5, 16  ;;  %v12884_v41 = vshll.u32 %v21951_v5, 16  ;;  %v12910_v51 = vrot.slane %v12908_v16, 4  ;;  %v21639_v16 = vld [vmem:[%s28259_s5 + $0x864] ss:$8 sps:$4 sm:$0xff]  }
 0x8f4   : > { %v12928_v19 = vrot.slane %v12926_v39, 4  ;;  %v21648_v39 = vld [vmem:[%s28259_s5 + $0x894] ss:$8 sps:$4 sm:$0xff]  }
 0x8f5   : > { %13137 = vmatpush1.bf16.msra.mxu0 %v21592_v31  ;;  %v21624_v31 = vld [vmem:[%s28259_s5 + $0x814] ss:$8 sps:$4 sm:$0xff]   ;;  %v12883_v4 = vrot.slane %v12881_v10, 4  ;;  %v12886_v52 = vrot.slane %v12884_v41, 5  ;;  %v12946_v10 = vrot.slane %v12944_v36, 4  ;;  %v12949_v41 = vrot.slane %v12947_v18, 5 }
 0x8f6   : > { %13138 = vmatprep.subr.bf16.mxu0 %v21597_v6  ;;  %v12862_v6 = vsel %vm8272_vm7, %v12853_v62, %v12861_v35  ;;  %v21956_v62 = vld [vmem:[#allocation3 + $0x60] sm:$0x1f]  ;;  %v21669_v36 = vld [vmem:[%s28261_s7 + $0x70] sm:$0xff]  }
 0x8f8   : > { %12781 = vmatmul.mubr.bf16.gmra.mrb[144].mxu0 %v12535_v48  ;;  %v12887_v48 = vor.u32 %v12886_v52, %v12883_v4  ;;  %v21637_v4 = vld [vmem:[%s28259_s5 + $0x860] ss:$8 sps:$4 sm:$0xff]   ;;  %v21642_v52 = vld [vmem:[%s28259_s5 + $0x874] ss:$8 sps:$4 sm:$0xff]  }
 0x8f9   : > { %13139 = vmatpush1.bf16.msra.mxu0 %v21595_v56  ;;  %13154 = vmatprep.mubr.bf16.mxu0 %v12879_v12  ;;  %v12913_v56 = vrot.slane %v12911_v26, 5  ;;  %v21952_v12 = vld [vmem:[#allocation3 + $0x40] sm:$0xff] }
 0x8fa   : > { %13140 = vmatprep.subr.bf16.mxu0 %v21600_v20  ;;  %v21627_v20 = vld [vmem:[%s28259_s5 + $0x824] ss:$8 sps:$4 sm:$0xff]  }
 0x8fd   : > { %13141 = vmatpush1.bf16.msra.mxu0 %v21598_v37  ;;  %v12899_v37 = vshrl.u32 %v21952_v12, 16 }
 0x8fe   : > { %13142 = vmatprep.subr.bf16.mxu0 %v21603_v38  ;;  %v12902_v38 = vshll.u32 %v21952_v12, 16 }
 0x901   : > { %13143 = vmatpush1.bf16.msra.mxu0 %v21601_v43  ;;  %v12914_v43 = vor.u32 %v12913_v56, %v12910_v51 }
 0x902   : > { %13144 = vmatprep.subr.bf16.mxu0 %v21606_v61  ;;  %v21953_v61 = vld [vmem:[#allocation3 + $0x58] sm:$0xff] }
 0x903   : > { %v12915_v22 = vsel %vm8272_vm7, %v12896_v24, %v12914_v43  ;;  %v21634_v24 = vld [vmem:[%s28259_s5 + $0x850] ss:$8 sps:$4 sm:$0xff]  }
 0x905   : > { %13145 = vmatpush1.bf16.msra.mxu0 %v21604_v58  ;;  %v12929_v58 = vshll.u32 %v21953_v61, 16 }
 0x906   : > { %13146 = vmatprep.subr.bf16.mxu0 %v21609_v3  ;;  %v21625_v3 = vld [vmem:[%s28259_s5 + $0x820] ss:$8 sps:$4 sm:$0xff]  }
 0x907   : > { %v12931_v54 = vrot.slane %v12929_v58, 5 }
 0x909   : > { %13147 = vmatpush1.bf16.msra.mxu0 %v21607_v29  ;;  %v21630_v29 = vld [vmem:[%s28259_s5 + $0x834] ss:$8 sps:$4 sm:$0xff]   ;;  %v12932_v1 = vor.u32 %v12931_v54, %v12928_v19  ;;  %v21658_v19 = vld [vmem:[%s28259_s5 + $0x8d0] ss:$8 sps:$4 sm:$0xff]   ;;  %v21663_v54 = vld [vmem:[%s28259_s5 + $0x8e4] ss:$8 sps:$4 sm:$0xff]  }
 0x90a   : > { %13148 = vmatprep.subr.bf16.mxu0 %v21612_v2  ;;  %v12888_v2 = vsel %vm8272_vm7, %v12861_v35, %v12887_v48 }
 0x90b   : > { %v12933_v5 = vsel %vm8272_vm7, %v12914_v43, %v12932_v1 }
 0x90d   : > { %13149 = vmatpush1.bf16.msra.mxu0 %v21610_v7  ;;  %v12901_v7 = vrot.slane %v12899_v37, 4  ;;  %v13226_v37 = vld [vmem:[#allocation3 + $0x18] sm:$0xe0] }
 0x90e   : > { %13150 = vmatprep.subr.bf16.mxu0 %v21615_v59  ;;  %v12904_v59 = vrot.slane %v12902_v38, 5  ;;  %v21643_v38 = vld [vmem:[%s28259_s5 + $0x880] ss:$8 sps:$4 sm:$0xff]   ;;  %v13267_v43 = vrot.slane %v13226_v37, 5 }
 0x910   : > { %v13269_v58 = vsel %vm9496_vm8, %v13267_v43, %v13268_v49  ;;  %v21652_v49 = vld [vmem:[%s28259_s5 + $0x8b0] ss:$8 sps:$4 sm:$0xff]  }
 0x911   : > { %13151 = vmatpush1.bf16.msra.mxu0 %v21613_v55  ;;  %v12905_v55 = vor.u32 %v12904_v59, %v12901_v7  ;;  %v21657_v7 = vld [vmem:[%s28259_s5 + $0x8c4] ss:$8 sps:$4 sm:$0xff]   ;;  %v21655_v59 = vld [vmem:[%s28259_s5 + $0x8c0] ss:$8 sps:$4 sm:$0xff]  }
 0x912   : > { %13152 = vmatprep.subr.bf16.mxu0 %v21618_v28  ;;  %v12920_v28 = vshll.u32 %v21954_v42, 16  ;;  %v13225_v42 = vld [vmem:[#allocation3 + $0x10] sm:$0xe0] }
 0x913   : > { %v12906_v17 = vsel %vm8272_vm7, %v12887_v48, %v12905_v55  ;;  %v21645_v48 = vld [vmem:[%s28259_s5 + $0x884] ss:$8 sps:$4 sm:$0xff]  }
 0x914   : > { %v12922_v35 = vrot.slane %v12920_v28, 5  ;;  %v21667_v28 = vld [vmem:[%s28261_s7 + $0x60] sm:$0xff]  }
 0x915   : > { %13153 = vmatpush1.bf16.msra.mxu0 %v21616_v50  ;;  %v21631_v50 = vld [vmem:[%s28259_s5 + $0x840] ss:$8 sps:$4 sm:$0xff]  }
 0x916   : > { %13456 = vmatprep.subr.bf16.mxu0 %v21621_v13  ;;  %v12919_v13 = vrot.slane %v12917_v40, 4  ;;  %v13264_v40 = vrot.slane %v13225_v42, 5 }
 0x918   : > { %13155 = vmatmul.mubr.bf16.vlgmr.msra.gmra.mrb[128].mxu0 %v12862_v6  ;;  %v12923_v26 = vor.u32 %v12922_v35, %v12919_v13  ;;  %v12950_v6 = vor.u32 %v12949_v41, %v12946_v10 }
 0x919   : > { %13164 = vmatprep.mubr.bf16.mxu0 %v12897_v14  ;;  %13457 = vmatpush1.bf16.msra.mxu0 %v21619_v47  ;;  %v12935_v47 = vshrl.u32 %v21956_v62, 16 }
 0x91a   : > { %13458 = vmatprep.subr.bf16.mxu0 %v21624_v31  ;;  %v12938_v31 = vshll.u32 %v21956_v62, 16  ;;  %v12924_v14 = vsel %vm8272_vm7, %v12905_v55, %v12923_v26  ;;  %v21664_v55 = vld [vmem:[%s28259_s5 + $0x8f0] ss:$8 sps:$4 sm:$0xff]  }
 0x91b   : > { %v12937_v51 = vrot.slane %v12935_v47, 4 }
 0x91c   : > { %v12940_v56 = vrot.slane %v12938_v31, 5 }
 0x91d   : > { %13459 = vmatpush1.bf16.msra.mxu0 %v21622_v46  ;;  %v12951_v46 = vsel %vm8272_vm7, %v12932_v1, %v12950_v6  ;;  %v13266_v1 = vsel %vm9496_vm8, %v13264_v40, %v13265_v32  ;;  %v21671_v32 = vld [vmem:[%s28261_s7 + $0x80] sm:$0xff]  }
 0x91e   : > { %13460 = vmatprep.subr.bf16.mxu0 %v21627_v20  ;;  %v21640_v20 = vld [vmem:[%s28259_s5 + $0x870] ss:$8 sps:$4 sm:$0xff]   ;;  %v12941_v12 = vor.u32 %v12940_v56, %v12937_v51 }
 0x920   : > { %13165 = vmatmul.mubr.bf16.gmra.mrb[132].mxu0 %v12888_v2  ;;  %v12942_v61 = vsel %vm8272_vm7, %v12923_v26, %v12941_v12  ;;  %v21649_v2 = vld [vmem:[%s28259_s5 + $0x8a0] ss:$8 sps:$4 sm:$0xff]  }
 0x921   : > { %13174 = vmatprep.mubr.bf16.mxu0 %v12915_v22  ;;  %13461 = vmatpush1.bf16.msra.mxu0 %v21625_v3  ;;  %v21646_v3 = vld [vmem:[%s28259_s5 + $0x890] ss:$8 sps:$4 sm:$0xff]   ;;  %v21660_v22 = vld [vmem:[%s28259_s5 + $0x8d4] ss:$8 sps:$4 sm:$0xff]  }
 0x922   : > { %13462 = vmatprep.subr.bf16.mxu0 %v21630_v29  ;;  %v21651_v29 = vld [vmem:[%s28259_s5 + $0x8a4] ss:$8 sps:$4 sm:$0xff]  }
 0x925   : > { %13463 = vmatpush1.bf16.msra.mxu0 %v21628_v25  ;;  %v21661_v25 = vld [vmem:[%s28259_s5 + $0x8e0] ss:$8 sps:$4 sm:$0xff]  }
 0x926   : > { %13464 = vmatprep.subr.bf16.mxu0 %v21633_v34  ;;  %v21666_v34 = vld [vmem:[%s28259_s5 + $0x8f4] ss:$8 sps:$4 sm:$0xff]  }
 0x928   : > { %13175 = vmatmul.mubr.bf16.gmra.mrb[136].mxu0 %v12906_v17 }
 0x929   : > { %13184 = vmatprep.mubr.bf16.mxu0 %v12933_v5  ;;  %13465 = vmatpush1.bf16.msra.mxu0 %v21631_v50 }
 0x92a   : > { %13466 = vmatprep.subr.bf16.mxu0 %v21636_v0 }
 0x92d   : > { %13467 = vmatpush1.bf16.msra.mxu0 %v21634_v24 }
 0x92e   : > { %13468 = vmatprep.subr.bf16.mxu0 %v21639_v16 }
 0x930   : > { %13185 = vmatmul.mubr.bf16.gmra.mrb[140].mxu0 %v12924_v14 }
 0x931   : > { %13194 = vmatprep.mubr.bf16.mxu0 %v12951_v46  ;;  %13469 = vmatpush1.bf16.msra.mxu0 %v21637_v4 }
 0x932   : > { %13470 = vmatprep.subr.bf16.mxu0 %v21642_v52 }
 0x935   : > { %13471 = vmatpush1.bf16.msra.mxu0 %v21640_v20 }
 0x936   : > { %13472 = vmatprep.subr.bf16.mxu0 %v21645_v48 }
 0x938   : > { %13195 = vmatmul.mubr.bf16.gmra.mrb[144].mxu0 %v12942_v61 }
 0x939   : > { %13473 = vmatpush1.bf16.msra.mxu0 %v21643_v38  ;;  %13488 = vmatprep.mubr.bf16.mxu0 %v13269_v58 }
 0x93a   : > { %13474 = vmatprep.subr.bf16.mxu0 %v21648_v39 }
 0x93d   : > { %13475 = vmatpush1.bf16.msra.mxu0 %v21646_v3 }
 0x93e   : > { %13476 = vmatprep.subr.bf16.mxu0 %v21651_v29 }
 0x941   : > { %13477 = vmatpush1.bf16.msra.mxu0 %v21649_v2 }
 0x942   : > { %13478 = vmatprep.subr.bf16.mxu0 %v21654_v11 }
 0x945   : > { %13479 = vmatpush1.bf16.msra.mxu0 %v21652_v49 }
 0x946   : > { %13480 = vmatprep.subr.bf16.mxu0 %v21657_v7 }
 0x949   : > { %13481 = vmatpush1.bf16.msra.mxu0 %v21655_v59 }
 0x94a   : > { %13482 = vmatprep.subr.bf16.mxu0 %v21660_v22 }
 0x94d   : > { %13483 = vmatpush1.bf16.msra.mxu0 %v21658_v19 }
 0x94e   : > { %13484 = vmatprep.subr.bf16.mxu0 %v21663_v54 }
 0x951   : > { %13485 = vmatpush1.bf16.msra.mxu0 %v21661_v25 }
 0x952   : > { %13486 = vmatprep.subr.bf16.mxu0 %v21666_v34 }
 0x955   : > { %13487 = vmatpush1.bf16.msra.mxu0 %v21664_v55 }
 0x956   : > { %13809 = vmatprep.subr.bf16.mxu0 %v28398_v44 }
 0x958   : > { %13489 = vmatmul.mubr.bf16.vlgmr.msra.gmra.mrb[128].mxu0 %v13266_v1 }
 0x959   : > { %13498 = vmatprep.mubr.bf16.mxu0 %v26501_v57  ;;  %13810 = vmatpush1.bf16.msra.mxu0 %v21667_v28  ;;  %v21672_v57 = vld [vmem:[%s28261_s7 + $0x88] sm:$0xff]  }
 0x95a   : > { %13811 = vmatprep.subr.bf16.mxu0 %v28398_v44 }
 0x95d   : > { %13812 = vmatpush1.bf16.msra.mxu0 %v21668_v45 }
 0x95e   : > { %13813 = vmatprep.subr.bf16.mxu0 %v28398_v44 }
 0x960   : > { %13499 = vmatmul.mubr.bf16.gmra.mrb[132].mxu0 %v26506_v33  ;;  %v21673_v33 = vld [vmem:[%s28261_s7 + $0x90] sm:$0xff]  }
 0x961   : > { %13508 = vmatprep.mubr.bf16.mxu0 %v26535_v8  ;;  %13814 = vmatpush1.bf16.msra.mxu0 %v21669_v36  ;;  %v21674_v8 = vld [vmem:[%s28261_s7 + $0x98] sm:$0xff]  }
 0x962   : > { %13815 = vmatprep.subr.bf16.mxu0 %v28398_v44 }
 0x965   : > { %13816 = vmatpush1.bf16.msra.mxu0 %v21670_v21  ;;  %v21679_v21 = vld [vmem:[%s28261_s7] sm:$0xff]  }
 0x966   : > { %13817 = vmatprep.subr.bf16.mxu0 %v28398_v44 }
 0x968   : > { %13509 = vmatmul.mubr.bf16.gmra.mrb[136].mxu0 %v26549_v63  ;;  %v21675_v63 = vld [vmem:[%s28261_s7 + $0xa0] sm:$0xff]  }
 0x969   : > { %13518 = vmatprep.mubr.bf16.mxu0 %v26566_v15  ;;  %13818 = vmatpush1.bf16.msra.mxu0 %v21671_v32  ;;  %v21676_v15 = vld [vmem:[%s28261_s7 + $0xa8] sm:$0xff]  }
 0x96a   : > { %13819 = vmatprep.subr.bf16.mxu0 %v28398_v44 }
 0x96d   : > { %13820 = vmatpush1.bf16.msra.mxu0 %v21672_v57 }
 0x96e   : > { %13821 = vmatprep.subr.bf16.mxu0 %v28398_v44 }
 0x970   : > { %13519 = vmatmul.mubr.bf16.gmra.mrb[140].mxu0 %v26569_v23  ;;  %v21677_v23 = vld [vmem:[%s28261_s7 + $0xb0] sm:$0xff]  }
 0x971   : > { %13528 = vmatprep.mubr.bf16.mxu0 %v26575_v9  ;;  %13822 = vmatpush1.bf16.msra.mxu0 %v21673_v33  ;;  %v21678_v9 = vld [vmem:[%s28261_s7 + $0xb8] sm:$0xff]  }
 0x972   : > { %13823 = vmatprep.subr.bf16.mxu0 %v28398_v44 }
 0x975   : > { %13824 = vmatpush1.bf16.msra.mxu0 %v21674_v8 }
 0x976   : > { %13825 = vmatprep.subr.bf16.mxu0 %v28398_v44 }
 0x978   : > { %13529 = vmatmul.mubr.bf16.gmra.mrb[144].mxu0 %v26578_v53  ;;  %v13559_v53 = vld [vmem:[%s28260_s6] sm:$0x3] }
 0x979   : > { %13826 = vmatpush1.bf16.msra.mxu0 %v21675_v63  ;;  %v27283_v18 = vrot.slane %v13559_v53, %v28494_v60  ;;  %v27286_v0 = vrot.slane %v13559_v53, %v28495_v30 }
 0x97a   : > { %13827 = vmatprep.subr.bf16.mxu0 %v28398_v44 }
 0x97d   : > { %13828 = vmatpush1.bf16.msra.mxu0 %v21676_v15 }
 0x97e   : > { %13829 = vmatprep.subr.bf16.mxu0 %v28398_v44 }
 0x981   : > { %13830 = vmatpush1.bf16.msra.mxu0 %v21677_v23 }
 0x982   : > { %13831 = vmatprep.subr.bf16.mxu0 %v28398_v44 }
 0x985   : > { %13832 = vmatpush1.bf16.msra.mxu0 %v21678_v9  ;;  %v21680_v9 = vld [vmem:[%s28261_s7 + $0x8] sm:$0xff]  }
 0x986   : > { %13944 = vmatprep.subr.bf16.mxu0 %v28398_v44 }
 0xa2b   : > { %v13490_v50 = vpop.f32.mrb[128].mxu0 }
 0xa2c   : > { %v13492_v17 = vpop.f32.mrb[129].mxu0  ;;  %v13571_v35 = vadd.f32 %v27283_v18, %v13490_v50 }
 0xa2d   : > { %v13494_v13 = vpop.f32.mrb[130].mxu0  ;;  %v13572_v41 = vadd.f32 %v27286_v0, %v13492_v17 }
 0xa2e   : > { %v13573_v5 = vadd.f32 %v27283_v18, %v13494_v13  ;;  %v13496_v10 = vpop.f32.mrb[131].mxu0 }
 0xa2f   : > { %v13574_v24 = vadd.f32 %v27286_v0, %v13496_v10 }
 0xa30   : > { %v27292_v16 = vpack.c.bf16 %v13573_v5, %v13571_v35 }
 0xa31   : > { %v13592_v60 = vpack.c.bf16 %v13574_v24, %v13572_v41 }
 0xa32   : > { %13601 = vst [vmem:[#allocation4] sm:$0xff] %v27292_v16  ;;  %v13672_v39 = vshll.u32 %v27292_v16, 16  ;;  %v13670_v25 = vshrl.u32 %v27292_v16, 16 }
 0xa33   : > { %13603 = vst.msk [vmem:[#allocation4 + $0x8] sm:$0xff] %vm13602_vm9, %v13592_v60  ;;  %v13500_v30 = vpop.f32.mrb[132].mxu0 }
 0xa34   : > { %v13502_v26 = vpop.f32.mrb[133].mxu0  ;;  %v13575_v47 = vadd.f32 %v27283_v18, %v13500_v30  ;;  %v13674_v7 = vrot.slane %v13672_v39, 1 }
 0xa35   : > { %v13504_v62 = vpop.f32.mrb[134].mxu0  ;;  %v13576_v4 = vadd.f32 %v27286_v0, %v13502_v26 }
 0xa36   : > { %v13577_v31 = vadd.f32 %v27283_v18, %v13504_v62  ;;  %v13506_v6 = vpop.f32.mrb[135].mxu0  ;;  %v13675_v36 = vor.u32 %v13674_v7, %v13670_v25  ;;  %v21686_v25 = vld [vmem:[%s28261_s7 + $0x38] sm:$0xff]  }
 0xa37   : > { %v13578_v52 = vadd.f32 %v27286_v0, %v13506_v6 }
 0xa38   : > { %v27300_v14 = vpack.c.bf16 %v13577_v31, %v13575_v47  ;;  %v21681_v31 = vld [vmem:[%s28261_s7 + $0x10] sm:$0xff]  }
 0xa39   : > { %v13594_v51 = vpack.c.bf16 %v13578_v52, %v13576_v4 }
 0xa3a   : > { %13604 = vst [vmem:[#allocation4 + $0x10] sm:$0xff] %v27300_v14  ;;  %v27303_v56 = vld [vmem:[#allocation4 + $0x8] sm:$0xff]  ;;  %v13677_v29 = vshll.u32 %v27300_v14, 16  ;;  %v13693_v5 = vshrl.u32 %v27300_v14, 16 }
 0xa3b   : > { %13605 = vst.msk [vmem:[#allocation4 + $0x18] sm:$0xff] %vm13602_vm9, %v13594_v51  ;;  %v13510_v46 = vpop.f32.mrb[136].mxu0  ;;  %v13684_v12 = vshll.u32 %v27303_v56, 16  ;;  %v13682_v22 = vshrl.u32 %v27303_v56, 16 }
 0xa3c   : > { %v13512_v20 = vpop.f32.mrb[137].mxu0  ;;  %v13579_v37 = vadd.f32 %v27283_v18, %v13510_v46  ;;  %v13679_v34 = vrot.slane %v13677_v29, 1 }
 0xa3d   : > { %v13514_v48 = vpop.f32.mrb[138].mxu0  ;;  %v13580_v61 = vadd.f32 %v27286_v0, %v13512_v20  ;;  %v13686_v11 = vrot.slane %v13684_v12, 1 }
 0xa3e   : > { %v13581_v38 = vadd.f32 %v27283_v18, %v13514_v48  ;;  %v13516_v43 = vpop.f32.mrb[139].mxu0  ;;  %v13680_v63 = vsel %vm1492_vm1, %v13675_v36, %v13679_v34  ;;  %v13695_v47 = vor.u32 %v13693_v5, %v13679_v34  ;;  %v21682_v48 = vld [vmem:[%s28261_s7 + $0x18] sm:$0xff]   ;;  %v21688_v34 = vld [vmem:[%s28261_s7 + $0x48] sm:$0xff]   ;;  %v21693_v36 = vld [vmem:[%s28261_s7 + $0xd0] sm:$0xff]  }
 0xa3f   : > { %v13582_v58 = vadd.f32 %v27286_v0, %v13516_v43  ;;  %v13687_v42 = vor.u32 %v13686_v11, %v13682_v22  ;;  %v21683_v11 = vld [vmem:[%s28261_s7 + $0x20] sm:$0xff]   ;;  %v21684_v22 = vld [vmem:[%s28261_s7 + $0x28] sm:$0xff]  }
 0xa40   : > { %v27312_v3 = vpack.c.bf16 %v13581_v38, %v13579_v37 }
 0xa41   : > { %v13596_v2 = vpack.c.bf16 %v13582_v58, %v13580_v61 }
 0xa42   : > { %13606 = vst [vmem:[#allocation4 + $0x20] sm:$0xff] %v27312_v3  ;;  %v27316_v49 = vld [vmem:[#allocation4 + $0x18] sm:$0xff]  ;;  %v13697_v15 = vshll.u32 %v27312_v3, 16  ;;  %v13709_v43 = vshrl.u32 %v27312_v3, 16 }
 0xa43   : > { %13607 = vst.msk [vmem:[#allocation4 + $0x28] sm:$0xff] %vm13602_vm9, %v13596_v2  ;;  %v13520_v59 = vpop.f32.mrb[140].mxu0  ;;  %v13689_v19 = vshll.u32 %v27316_v49, 16  ;;  %v13701_v17 = vshrl.u32 %v27316_v49, 16 }
 0xa44   : > { %v13522_v54 = vpop.f32.mrb[141].mxu0  ;;  %v13583_v28 = vadd.f32 %v27283_v18, %v13520_v59  ;;  %v13699_v10 = vrot.slane %v13697_v15, 1 }
 0xa45   : > { %v13524_v55 = vpop.f32.mrb[142].mxu0  ;;  %v13691_v40 = vrot.slane %v13689_v19, 1  ;;  %v13584_v32 = vadd.f32 %v27286_v0, %v13522_v54  ;;  %v21685_v54 = vld [vmem:[%s28261_s7 + $0x30] sm:$0xff]  }
 0xa46   : > { %v13585_v1 = vadd.f32 %v27283_v18, %v13524_v55  ;;  %v13526_v45 = vpop.f32.mrb[143].mxu0  ;;  %v13711_v2 = vor.u32 %v13709_v43, %v13699_v10  ;;  %v14438_v55 = vrot.slane %v13701_v17, 6 }
 0xa47   : > { %v13586_v57 = vadd.f32 %v27286_v0, %v13526_v45  ;;  %v13692_v33 = vsel %vm1492_vm1, %v13687_v42, %v13691_v40  ;;  %v13703_v24 = vor.u32 %v13701_v17, %v13691_v40  ;;  %v14439_v42 = vrot.slane %v13689_v19, 7  ;;  %v21691_v19 = vld [vmem:[%s28261_s7 + $0xc0] sm:$0xff]   ;;  %v21692_v45 = vld [vmem:[%s28261_s7 + $0xc8] sm:$0xff]  }
 0xa48   : > { %v13597_v8 = vpack.c.bf16 %v13585_v1, %v13583_v28  ;;  %18492 = vmatprep.mubr.msk.bf16.mxu0 %vm13602_vm9, %v13692_v33  ;;  %v21689_v28 = vld [vmem:[%s28261_s7 + $0x50] sm:$0xff]   ;;  %v21690_v1 = vld [vmem:[%s28261_s7 + $0x58] sm:$0xff]  }
 0xa49   : > { %v13598_v23 = vpack.c.bf16 %v13586_v57, %v13584_v32  ;;  %13842 = vmatmul.mubr.bf16.vlgmr.msra.gmra.mrb[148].mxu0 %v13680_v63  ;;  %v27414_v40 = vor.u32 %v14439_v42, %v14438_v55  ;;  %v14040_v32 = vrot.slane %v27316_v49, 1  ;;  %v21695_v57 = vld [vmem:[%s28261_s7 + $0xe0] sm:$0xff]   ;;  %v27552_v55 = vld [vmem:[#allocation4 + $0x20] sm:$0xff] }
 0xa4a   : > { %13608 = vst [vmem:[#allocation4 + $0x30] sm:$0xff] %v13597_v8  ;;  %13945 = vmatpush1.bf16.msra.mxu0 %v21679_v21  ;;  %v27340_v53 = vld [vmem:[#allocation4 + $0x28] sm:$0xff] }
 0xa4b   : > { %13609 = vst.msk [vmem:[#allocation4 + $0x38] sm:$0xff] %vm13602_vm9, %v13598_v23  ;;  %v13530_v50 = vpop.f32.mrb[144].mxu0  ;;  %13946 = vmatprep.subr.bf16.mxu0 %v28398_v44  ;;  %v27346_v13 = vshll.u32 %v27340_v53, 16  ;;  %v27376_v37 = vshrl.u32 %v27340_v53, 16  ;;  %v14002_v21 = vld [vmem:[#allocation4 + $0x8] sm:$0xfe] }
 0xa4c   : > { %v13532_v35 = vpop.f32.mrb[145].mxu0  ;;  %v13587_v30 = vadd.f32 %v27283_v18, %v13530_v50  ;;  %v14039_v33 = vrot.slane %v14002_v21, 1  ;;  %v14231_v21 = vrot.slane %v27300_v14, 6 }
 0xa4d   : > { %v13534_v41 = vpop.f32.mrb[146].mxu0  ;;  %v13707_v60 = vrot.slane %v27346_v13, 1  ;;  %v13588_v6 = vadd.f32 %v27286_v0, %v13532_v35  ;;  %v14446_v63 = vrot.slane %v27376_v37, 6  ;;  %v14447_v23 = vrot.slane %v27346_v13, 7  ;;  %v21697_v35 = vld [vmem:[%s28261_s7 + $0xf0] sm:$0xff]  }
 0xa4e   : > { %v13589_v26 = vadd.f32 %v27283_v18, %v13534_v41  ;;  %13947 = vmatpush1.bf16.msra.mxu0 %v21680_v9  ;;  %v13536_v62 = vpop.f32.mrb[147].mxu0  ;;  %v13700_v18 = vsel %vm1492_vm1, %v13695_v47, %v13699_v10  ;;  %v14041_v8 = vsel %vm3372_vm3, %v14039_v33, %v14040_v32  ;;  %v21696_v9 = vld [vmem:[%s28261_s7 + $0xe8] sm:$0xff]   ;;  %v21698_v10 = vld [vmem:[%s28261_s7 + $0xf8] sm:$0xff]   ;;  %v21699_v41 = vld [vmem:[%s28261_s7 + $0x100] sm:$0xff]   ;;  %v14037_v47 = vrot.slane %v27300_v14, 1 }
 0xa4f   : > { %v13590_v4 = vadd.f32 %v27286_v0, %v13536_v62  ;;  %v13708_v52 = vsel %vm1492_vm1, %v13703_v24, %v13707_v60  ;;  %13948 = vmatprep.subr.bf16.mxu0 %v28398_v44  ;;  %v13719_v61 = vor.u32 %v27376_v37, %v13707_v60  ;;  %v27460_v50 = vor.u32 %v14447_v23, %v14446_v63  ;;  %v21700_v24 = vld [vmem:[%s28261_s7 + $0x108] sm:$0xff]   ;;  %v21701_v60 = vld [vmem:[%s28261_s7 + $0x110] sm:$0xff]  }
 0xa50   : > { %v13599_v51 = vpack.c.bf16 %v13589_v26, %v13587_v30  ;;  %18493 = vmatprep.mubr.msk.bf16.mxu0 %vm13602_vm9, %v13708_v52  ;;  %v14001_v30 = vld [vmem:[#allocation4] sm:$0xfe]  ;;  %v21716_v63 = vld [vmem:[%s28261_s7 + $0x188] sm:$0xff]  }
 0xa51   : > { %v13600_v46 = vpack.c.bf16 %v13590_v4, %v13588_v6  ;;  %13850 = vmatmul.mubr.bf16.gmra.mrb[152].mxu0 %v13700_v18  ;;  %v27365_v20 = vld [vmem:[#allocation4 + $0x30] sm:$0x1]  ;;  %v27465_v17 = vsel %vm5255_vm2, %v27414_v40, %v27460_v50  ;;  %v21702_v26 = vld [vmem:[%s28261_s7 + $0x118] sm:$0xff]   ;;  %v14036_v62 = vrot.slane %v14001_v30, 1  ;;  %v21703_v6 = vld [vmem:[%s28261_s7 + $0x120] sm:$0xff]   ;;  %v14042_v18 = vrot.slane %v27312_v3, 1 }
 0xa52   : > { %13610 = vst [vmem:[#allocation4 + $0x40] sm:$0xff] %v13599_v51  ;;  %13949 = vmatpush1.bf16.msra.mxu0 %v21681_v31  ;;  %v27370_v0 = vld [vmem:[#allocation4 + $0x38] sm:$0x1]  ;;  %v13713_v12 = vshll.u32 %v27365_v20, 16  ;;  %v14044_v31 = vrot.slane %v27340_v53, 1  ;;  %v21704_v51 = vld [vmem:[%s28261_s7 + $0x128] sm:$0xff]  }
 0xa53   : > { %13611 = vst.msk [vmem:[#allocation4 + $0x48] sm:$0xff] %vm13602_vm9, %v13600_v46  ;;  %13950 = vmatprep.subr.bf16.mxu0 %v28398_v44  ;;  %v13721_v38 = vshll.u32 %v27370_v0, 16  ;;  %v14038_v4 = vsel %vm3372_vm3, %v14036_v62, %v14037_v47  ;;  %v14048_v46 = vrot.slane %v27370_v0, 1  ;;  %v14046_v0 = vrot.slane %v27365_v20, 1  ;;  %v21708_v20 = vld [vmem:[%s28261_s7 + $0x148] sm:$0xff]   ;;  %v21718_v62 = vld [vmem:[%s28261_s7 + $0x198] sm:$0xff]  }
 0xa54   : > { %v13715_v39 = vrot.slane %v13713_v12, 1  ;;  %v14045_v52 = vsel %vm3372_vm3, %v14040_v32, %v14044_v31  ;;  %v14043_v12 = vsel %vm3372_vm3, %v14037_v47, %v14042_v18  ;;  %v27554_v42 = vld [vmem:[#allocation4 + $0x30] sm:$0xff]  ;;  %v14238_v32 = vrot.slane %v27340_v53, 6  ;;  %v14200_v23 = vld [vmem:[#allocation4 + $0x38] sm:$0x3f] }
 0xa55   : > { %v13723_v58 = vrot.slane %v13721_v38, 1  ;;  %v14049_v38 = vsel %vm3372_vm3, %v14044_v31, %v14048_v46  ;;  %v21720_v46 = vld [vmem:[%s28261_s7 + $0x1a8] sm:$0xff]  }
 0xa56   : > { %13951 = vmatpush1.bf16.msra.mxu0 %v21682_v48  ;;  %v13716_v59 = vsel %vm1492_vm1, %v13711_v2, %v13715_v39  ;;  %v21705_v48 = vld [vmem:[%s28261_s7 + $0x130] sm:$0xff]   ;;  %v21706_v39 = vld [vmem:[%s28261_s7 + $0x138] sm:$0xff]   ;;  %v21707_v2 = vld [vmem:[%s28261_s7 + $0x140] sm:$0xff]  }
 0xa57   : > { %v13724_v7 = vsel %vm1492_vm1, %v13719_v61, %v13723_v58  ;;  %13952 = vmatprep.subr.bf16.mxu0 %v28398_v44  ;;  %v27518_v61 = vld [vmem:[#allocation4 + $0x8] sm:$0xc0]  ;;  %v14234_v58 = vrot.slane %v27316_v49, 6 }
 0xa58   : > { %18494 = vmatprep.mubr.msk.bf16.mxu0 %vm13602_vm9, %v13724_v7  ;;  %v14047_v7 = vsel %vm3372_vm3, %v14042_v18, %v14046_v0 }
 0xa59   : > { %13858 = vmatmul.mubr.bf16.gmra.mrb[156].mxu0 %v13716_v59 }
 0xa5a   : > { %13953 = vmatpush1.bf16.msra.mxu0 %v21683_v11  ;;  %18507 = vmatprep.mubr.msk.bf16.mxu0 %vm13602_vm9, %v27303_v56  ;;  %v21687_v56 = vld [vmem:[%s28261_s7 + $0x40] sm:$0xff]   ;;  %v14233_v11 = vrot.slane %v27518_v61, 6 }
 0xa5b   : > { %13954 = vmatprep.subr.bf16.mxu0 %v28398_v44 }
 0xa5c   : > { %v14235_v59 = vsel %vm4321_vm5, %v14233_v11, %v14234_v58 }
 0xa5e   : > { %13955 = vmatpush1.bf16.msra.mxu0 %v21684_v22  ;;  %v21709_v22 = vld [vmem:[%s28261_s7 + $0x150] sm:$0xff]  }
 0xa5f   : > { %13956 = vmatprep.subr.bf16.mxu0 %v28398_v44 }
 0xa62   : > { %13957 = vmatpush1.bf16.msra.mxu0 %v21685_v54  ;;  %v21710_v54 = vld [vmem:[%s28261_s7 + $0x158] sm:$0xff]  }
 0xa63   : > { %13958 = vmatprep.subr.bf16.mxu0 %v28398_v44 }
 0xa66   : > { %13959 = vmatpush1.bf16.msra.mxu0 %v21686_v25  ;;  %v21711_v25 = vld [vmem:[%s28261_s7 + $0x160] sm:$0xff]  }
 0xa67   : > { %13960 = vmatprep.subr.bf16.mxu0 %v28398_v44 }
 0xa6a   : > { %13961 = vmatpush1.bf16.msra.mxu0 %v21687_v56  ;;  %v21712_v56 = vld [vmem:[%s28261_s7 + $0x168] sm:$0xff]  }
 0xa6b   : > { %13962 = vmatprep.subr.bf16.mxu0 %v28398_v44 }
 0xa6e   : > { %13963 = vmatpush1.bf16.msra.mxu0 %v21688_v34  ;;  %v21713_v34 = vld [vmem:[%s28261_s7 + $0x170] sm:$0xff]  }
 0xa6f   : > { %13964 = vmatprep.subr.bf16.mxu0 %v28398_v44 }
 0xa72   : > { %13965 = vmatpush1.bf16.msra.mxu0 %v21689_v28  ;;  %v27557_v28 = vld [vmem:[#allocation4] sm:$0xc0] }
 0xa73   : > { %13966 = vmatprep.subr.bf16.mxu0 %v28398_v44  ;;  %v14422_v0 = vshll.u32 %v27557_v28, 16 }
 0xa75   : > { %v14424_v11 = vrot.slane %v14422_v0, 7 }
 0xa76   : > { %13967 = vmatpush1.bf16.msra.mxu0 %v21690_v1  ;;  %v15285_v1 = vrot.slane %v27552_v55, 5 }
 0xa77   : > { %14134 = vmatprep.subr.bf16.mxu0 %v28398_v44 }
 0xa79   : > { %13977 = vmatmul.mubr.bf16.vlgmr.msra.gmra.mrb[160].mxu0 %v27292_v16  ;;  %v21694_v16 = vld [vmem:[%s28261_s7 + $0xd8] sm:$0xff]  }
 0xa7a   : > { %18508 = vmatprep.mubr.msk.bf16.mxu0 %vm13602_vm9, %v27316_v49  ;;  %14135 = vmatpush1.bf16.msra.mxu0 %v21691_v19  ;;  %v15290_v19 = vrot.slane %v27554_v42, 5 }
 0xa7b   : > { %14136 = vmatprep.subr.bf16.mxu0 %v28398_v44 }
 0xa7e   : > { %14137 = vmatpush1.bf16.msra.mxu0 %v21692_v45  ;;  %v21714_v45 = vld [vmem:[%s28261_s7 + $0x178] sm:$0xff]  }
 0xa7f   : > { %14138 = vmatprep.subr.bf16.mxu0 %v28398_v44 }
 0xa81   : > { %13985 = vmatmul.mubr.bf16.gmra.mrb[164].mxu0 %v27300_v14 }
 0xa82   : > { %18509 = vmatprep.mubr.msk.bf16.mxu0 %vm13602_vm9, %v27340_v53  ;;  %14139 = vmatpush1.bf16.msra.mxu0 %v21693_v36  ;;  %v27570_v36 = vsel %vm9496_vm8, %v15285_v1, %v15290_v19 }
 0xa83   : > { %14140 = vmatprep.subr.bf16.mxu0 %v28398_v44 }
 0xa86   : > { %14141 = vmatpush1.bf16.msra.mxu0 %v21694_v16  ;;  %v14230_v16 = vrot.slane %v27557_v28, 6 }
 0xa87   : > { %14142 = vmatprep.subr.bf16.mxu0 %v28398_v44 }
 0xa88   : > { %v14232_v33 = vsel %vm4321_vm5, %v14230_v16, %v14231_v21 }
 0xa89   : > { %13993 = vmatmul.mubr.bf16.gmra.mrb[168].mxu0 %v27312_v3 }
 0xa8a   : > { %14143 = vmatpush1.bf16.msra.mxu0 %v21695_v57  ;;  %18546 = vmatprep.mubr.msk.bf16.mxu0 %vm13602_vm9, %v14041_v8  ;;  %v21715_v57 = vld [vmem:[%s28261_s7 + $0x180] sm:$0xff]   ;;  %v14239_v8 = vsel %vm4321_vm5, %v14234_v58, %v14238_v32  ;;  %v14426_v58 = vrot.slane %v13693_v5, 6 }
 0xa8b   : > { %14144 = vmatprep.subr.bf16.mxu0 %v28398_v44 }
 0xa8e   : > { %14145 = vmatpush1.bf16.msra.mxu0 %v21696_v9  ;;  %v14236_v9 = vrot.slane %v27312_v3, 6 }
 0xa8f   : > { %14146 = vmatprep.subr.bf16.mxu0 %v28398_v44 }
 0xa92   : > { %14147 = vmatpush1.bf16.msra.mxu0 %v21697_v35  ;;  %v14242_v35 = vrot.slane %v14200_v23, 6 }
 0xa93   : > { %14148 = vmatprep.subr.bf16.mxu0 %v28398_v44 }
 0xa94   : > { %v14243_v30 = vsel %vm4321_vm5, %v14238_v32, %v14242_v35  ;;  %v21728_v32 = vld [vmem:[%s28261_s7 + $0x1e8] sm:$0xff]   ;;  %v21730_v35 = vld [vmem:[%s28261_s7 + $0x1f8] sm:$0xff]  }
 0xa96   : > { %14149 = vmatpush1.bf16.msra.mxu0 %v21698_v10  ;;  %v21717_v10 = vld [vmem:[%s28261_s7 + $0x190] sm:$0xff]  }
 0xa97   : > { %14150 = vmatprep.subr.bf16.mxu0 %v28398_v44 }
 0xa9a   : > { %14151 = vmatpush1.bf16.msra.mxu0 %v21699_v41  ;;  %v14431_v41 = vshrl.u32 %v27518_v61, 16 }
 0xa9b   : > { %14152 = vmatprep.subr.bf16.mxu0 %v28398_v44 }
 0xa9c   : > { %v14433_v47 = vrot.slane %v14431_v41, 6  ;;  %v14616_v41 = vld [vmem:[#allocation4 + $0x8] sm:$0x80] }
 0xa9e   : > { %14153 = vmatpush1.bf16.msra.mxu0 %v21700_v24  ;;  %v14434_v24 = vshll.u32 %v27518_v61, 16  ;;  %v21725_v61 = vld [vmem:[%s28261_s7 + $0x1d0] sm:$0xff]  }
 0xa9f   : > { %14154 = vmatprep.subr.bf16.mxu0 %v28398_v44 }
 0xaa0   : > { %v14436_v31 = vrot.slane %v14434_v24, 7  ;;  %v14650_v24 = vrot.slane %v27316_v49, 7  ;;  %v21732_v49 = vld [vmem:[%s28261_s7 + $0x208] sm:$0xff]  }
 0xaa2   : > { %14155 = vmatpush1.bf16.msra.mxu0 %v21701_v60  ;;  %v14237_v60 = vsel %vm4321_vm5, %v14231_v21, %v14236_v9  ;;  %v27655_v21 = vld [vmem:[#allocation4 + $0x30] sm:$0x7f] }
 0xaa3   : > { %14156 = vmatprep.subr.bf16.mxu0 %v28398_v44 }
 0xaa6   : > { %14157 = vmatpush1.bf16.msra.mxu0 %v21702_v26  ;;  %v14199_v26 = vld [vmem:[#allocation4 + $0x30] sm:$0x3f] }
 0xaa7   : > { %14328 = vmatprep.subr.bf16.mxu0 %v28398_v44 }
 0xaa9   : > { %14167 = vmatmul.mubr.bf16.vlgmr.msra.gmra.mrb[172].mxu0 %v14038_v4  ;;  %v21719_v4 = vld [vmem:[%s28261_s7 + $0x1a0] sm:$0xff]  }
 0xaaa   : > { %18547 = vmatprep.mubr.msk.bf16.mxu0 %vm13602_vm9, %v14045_v52  ;;  %14329 = vmatpush1.bf16.msra.mxu0 %v21703_v6  ;;  %v14240_v6 = vrot.slane %v14199_v26, 6  ;;  %v14437_v52 = vor.u32 %v14436_v31, %v14433_v47 }
 0xaab   : > { %14330 = vmatprep.subr.bf16.mxu0 %v28398_v44 }
 0xaac   : > { %v14441_v18 = vsel %vm5255_vm2, %v14437_v52, %v27414_v40  ;;  %v21722_v40 = vld [vmem:[%s28261_s7 + $0x1b8] sm:$0xff]  }
 0xaad   : > { %v21734_v52 = vld [vmem:[%s28261_s7 + $0x218] sm:$0xff]  }
 0xaae   : > { %14331 = vmatpush1.bf16.msra.mxu0 %v21704_v51  ;;  %v14241_v51 = vsel %vm4321_vm5, %v14236_v9, %v14240_v6  ;;  %v21733_v6 = vld [vmem:[%s28261_s7 + $0x210] sm:$0xff]  }
 0xaaf   : > { %14332 = vmatprep.subr.bf16.mxu0 %v28398_v44 }
 0xab1   : > { %14175 = vmatmul.mubr.bf16.gmra.mrb[176].mxu0 %v14043_v12  ;;  %v21723_v12 = vld [vmem:[%s28261_s7 + $0x1c0] sm:$0xff]  }
 0xab2   : > { %18548 = vmatprep.mubr.msk.bf16.mxu0 %vm13602_vm9, %v14049_v38  ;;  %14333 = vmatpush1.bf16.msra.mxu0 %v21705_v48  ;;  %v21721_v48 = vld [vmem:[%s28261_s7 + $0x1b0] sm:$0xff]   ;;  %v21724_v38 = vld [vmem:[%s28261_s7 + $0x1c8] sm:$0xff]  }
 0xab3   : > { %14334 = vmatprep.subr.bf16.mxu0 %v28398_v44 }
 0xab6   : > { %14335 = vmatpush1.bf16.msra.mxu0 %v21706_v39  ;;  %v14419_v39 = vshrl.u32 %v27557_v28, 16  ;;  %v14443_v28 = vrot.slane %v13697_v15, 7  ;;  %v14454_v15 = vshll.u32 %v27655_v21, 16 }
 0xab7   : > { %14336 = vmatprep.subr.bf16.mxu0 %v28398_v44 }
 0xab8   : > { %v14456_v23 = vrot.slane %v14454_v15, 7 }
 0xab9   : > { %14183 = vmatmul.mubr.bf16.gmra.mrb[180].mxu0 %v14047_v7  ;;  %v14427_v7 = vrot.slane %v13677_v29, 7  ;;  %v21727_v29 = vld [vmem:[%s28261_s7 + $0x1e0] sm:$0xff]  }
 0xaba   : > { %14337 = vmatpush1.bf16.msra.mxu0 %v21707_v2  ;;  %18585 = vmatprep.mubr.msk.bf16.mxu0 %vm13602_vm9, %v14235_v59  ;;  %v14421_v2 = vrot.slane %v14419_v39, 6  ;;  %v21726_v59 = vld [vmem:[%s28261_s7 + $0x1d8] sm:$0xff]  }
 0xabb   : > { %14338 = vmatprep.subr.bf16.mxu0 %v28398_v44 }
 0xabe   : > { %14339 = vmatpush1.bf16.msra.mxu0 %v21708_v20  ;;  %v27641_v20 = vld [vmem:[#allocation4 + $0x38] sm:$0x7f] }
 0xabf   : > { %14340 = vmatprep.subr.bf16.mxu0 %v28398_v44  ;;  %v14463_v5 = vshll.u32 %v27641_v20, 16 }
 0xac1   : > { %v14465_v16 = vrot.slane %v14463_v5, 7 }
 0xac2   : > { %14341 = vmatpush1.bf16.msra.mxu0 %v21709_v22  ;;  %v14425_v22 = vor.u32 %v14424_v11, %v14421_v2  ;;  %v14615_v2 = vld [vmem:[#allocation4] sm:$0x80] }
 0xac3   : > { %14342 = vmatprep.subr.bf16.mxu0 %v28398_v44  ;;  %v21738_v11 = vld [vmem:[%s28261_s7 + $0x238] sm:$0xff]  }
 0xac6   : > { %14343 = vmatpush1.bf16.msra.mxu0 %v21710_v54  ;;  %v14428_v54 = vor.u32 %v14427_v7, %v14426_v58  ;;  %v14646_v7 = vrot.slane %v14615_v2, 7  ;;  %v21752_v2 = vld [vmem:[%s28261_s7 + $0x2a8] sm:$0xff]  }
 0xac7   : > { %14344 = vmatprep.subr.bf16.mxu0 %v28398_v44 }
 0xaca   : > { %14345 = vmatpush1.bf16.msra.mxu0 %v21711_v25  ;;  %v14460_v25 = vshrl.u32 %v27641_v20, 16 }
 0xacb   : > { %14346 = vmatprep.subr.bf16.mxu0 %v28398_v44 }
 0xace   : > { %14347 = vmatpush1.bf16.msra.mxu0 %v21712_v56  ;;  %v14429_v56 = vsel %vm5255_vm2, %v14425_v22, %v14428_v54  ;;  %v14654_v22 = vrot.slane %v27340_v53, 7 }
 0xacf   : > { %14348 = vmatprep.subr.bf16.mxu0 %v28398_v44 }
 0xad0   : > { %v14655_v5 = vsel %vm6329_vm4, %v14650_v24, %v14654_v22 }
 0xad2   : > { %14349 = vmatpush1.bf16.msra.mxu0 %v21713_v34  ;;  %v14442_v34 = vrot.slane %v13709_v43, 6  ;;  %v14451_v43 = vshrl.u32 %v27655_v21, 16 }
 0xad3   : > { %14350 = vmatprep.subr.bf16.mxu0 %v28398_v44 }
 0xad6   : > { %14351 = vmatpush1.bf16.msra.mxu0 %v21714_v45  ;;  %v14462_v45 = vrot.slane %v14460_v25, 6 }
 0xad7   : > { %14552 = vmatprep.subr.bf16.mxu0 %v28398_v44 }
 0xad9   : > { %14361 = vmatmul.mubr.bf16.vlgmr.msra.gmra.mrb[184].mxu0 %v14232_v33  ;;  %v14466_v33 = vor.u32 %v14465_v16, %v14462_v45  ;;  %v27752_v16 = vld [vmem:[#allocation4 + $0x18] sm:$0xf0] }
 0xada   : > { %18586 = vmatprep.mubr.msk.bf16.mxu0 %vm13602_vm9, %v14239_v8  ;;  %14553 = vmatpush1.bf16.msra.mxu0 %v21715_v57  ;;  %v14444_v57 = vor.u32 %v14443_v28, %v14442_v34  ;;  %v21729_v8 = vld [vmem:[%s28261_s7 + $0x1f0] sm:$0xff]  }
 0xadb   : > { %14554 = vmatprep.subr.bf16.mxu0 %v28398_v44  ;;  %v14467_v9 = vsel %vm5255_vm2, %v27460_v50, %v14466_v33  ;;  %v14649_v50 = vrot.slane %v14616_v41, 7  ;;  %v21741_v34 = vld [vmem:[%s28261_s7 + $0x250] sm:$0xff]  }
 0xadd   : > { %v14651_v26 = vsel %vm6329_vm4, %v14649_v50, %v14650_v24 }
 0xade   : > { %14555 = vmatpush1.bf16.msra.mxu0 %v21716_v63  ;;  %v14453_v63 = vrot.slane %v14451_v43, 6  ;;  %v14851_v43 = vrot.slane %v27752_v16, 4 }
 0xadf   : > { %14556 = vmatprep.subr.bf16.mxu0 %v28398_v44 }
 0xae1   : > { %14369 = vmatmul.mubr.bf16.gmra.mrb[188].mxu0 %v14237_v60  ;;  %v21731_v60 = vld [vmem:[%s28261_s7 + $0x200] sm:$0xff]  }
 0xae2   : > { %18587 = vmatprep.mubr.msk.bf16.mxu0 %vm13602_vm9, %v14243_v30  ;;  %14557 = vmatpush1.bf16.msra.mxu0 %v21717_v10  ;;  %v14457_v10 = vor.u32 %v14456_v23, %v14453_v63  ;;  %v21745_v23 = vld [vmem:[%s28261_s7 + $0x270] sm:$0xff]  }
 0xae3   : > { %14558 = vmatprep.subr.bf16.mxu0 %v28398_v44 }
 0xae4   : > { %v14458_v30 = vsel %vm5255_vm2, %v14444_v57, %v14457_v10  ;;  %v21746_v10 = vld [vmem:[%s28261_s7 + $0x278] sm:$0xff]  }
 0xae6   : > { %14559 = vmatpush1.bf16.msra.mxu0 %v21718_v62 }
 0xae7   : > { %14560 = vmatprep.subr.bf16.mxu0 %v28398_v44 }
 0xae9   : > { %14377 = vmatmul.mubr.bf16.gmra.mrb[192].mxu0 %v14241_v51 }
 0xaea   : > { %14561 = vmatpush1.bf16.msra.mxu0 %v21719_v4  ;;  %18624 = vmatprep.mubr.msk.bf16.mxu0 %vm13602_vm9, %v14441_v18 }
 0xaeb   : > { %14562 = vmatprep.subr.bf16.mxu0 %v28398_v44 }
 0xaee   : > { %14563 = vmatpush1.bf16.msra.mxu0 %v21720_v46 }
 0xaef   : > { %14564 = vmatprep.subr.bf16.mxu0 %v28398_v44 }
 0xaf2   : > { %14565 = vmatpush1.bf16.msra.mxu0 %v21721_v48  ;;  %v21735_v48 = vld [vmem:[%s28261_s7 + $0x220] sm:$0xff]  }
 0xaf3   : > { %14566 = vmatprep.subr.bf16.mxu0 %v28398_v44 }
 0xaf6   : > { %14567 = vmatpush1.bf16.msra.mxu0 %v21722_v40 }
 0xaf7   : > { %14568 = vmatprep.subr.bf16.mxu0 %v28398_v44 }
 0xafa   : > { %14569 = vmatpush1.bf16.msra.mxu0 %v21723_v12  ;;  %v21736_v12 = vld [vmem:[%s28261_s7 + $0x228] sm:$0xff]  }
 0xafb   : > { %14570 = vmatprep.subr.bf16.mxu0 %v28398_v44 }
 0xafe   : > { %14571 = vmatpush1.bf16.msra.mxu0 %v21724_v38 }
 0xaff   : > { %14572 = vmatprep.subr.bf16.mxu0 %v28398_v44 }
 0xb02   : > { %14573 = vmatpush1.bf16.msra.mxu0 %v21725_v61  ;;  %v21737_v61 = vld [vmem:[%s28261_s7 + $0x230] sm:$0xff]  }
 0xb03   : > { %14574 = vmatprep.subr.bf16.mxu0 %v28398_v44 }
 0xb06   : > { %14575 = vmatpush1.bf16.msra.mxu0 %v21726_v59  ;;  %v14647_v59 = vrot.slane %v27300_v14, 7  ;;  %v21740_v14 = vld [vmem:[%s28261_s7 + $0x248] sm:$0xff]  }
 0xb07   : > { %14744 = vmatprep.subr.bf16.mxu0 %v28398_v44 }
 0xb08   : > { %v14648_v25 = vsel %vm6329_vm4, %v14646_v7, %v14647_v59  ;;  %v14854_v7 = vrot.slane %v27554_v42, 4 }
 0xb09   : > { %14585 = vmatmul.mubr.bf16.vlgmr.msra.gmra.mrb[196].mxu0 %v14429_v56  ;;  %v14658_v56 = vrot.slane %v27641_v20, 7  ;;  %v14656_v20 = vrot.slane %v27655_v21, 7 }
 0xb0a   : > { %18625 = vmatprep.mubr.msk.bf16.mxu0 %vm13602_vm9, %v27465_v17  ;;  %14745 = vmatpush1.bf16.msra.mxu0 %v21727_v29  ;;  %v14445_v17 = vsel %vm5255_vm2, %v14428_v54, %v14444_v57  ;;  %v21739_v54 = vld [vmem:[%s28261_s7 + $0x240] sm:$0xff]   ;;  %v14652_v29 = vrot.slane %v27312_v3, 7  ;;  %v21742_v3 = vld [vmem:[%s28261_s7 + $0x258] sm:$0xff]  }
 0xb0b   : > { %14746 = vmatprep.subr.bf16.mxu0 %v28398_v44  ;;  %v14659_v45 = vsel %vm6329_vm4, %v14654_v22, %v14658_v56  ;;  %v21743_v57 = vld [vmem:[%s28261_s7 + $0x260] sm:$0xff]   ;;  %v21753_v22 = vld [vmem:[%s28261_s7 + $0x2b0] sm:$0xff]   ;;  %v15064_v56 = vrot.slane %v27376_v37, 4 }
 0xb0c   : > { %v14653_v28 = vsel %vm6329_vm4, %v14647_v59, %v14652_v29  ;;  %v14657_v15 = vsel %vm6329_vm4, %v14652_v29, %v14656_v20  ;;  %v14813_v29 = vld [vmem:[#allocation4 + $0x40] sm:$0xf]  ;;  %v21755_v37 = vld [vmem:[%s28261_s7 + $0x2c0] sm:$0xff]  }
 0xb0d   : > { %v14858_v20 = vrot.slane %v14813_v29, 4 }
 0xb0e   : > { %14747 = vmatpush1.bf16.msra.mxu0 %v21728_v32  ;;  %v14852_v32 = vrot.slane %v27340_v53, 4  ;;  %v21744_v53 = vld [vmem:[%s28261_s7 + $0x268] sm:$0xff]  }
 0xb0f   : > { %14748 = vmatprep.subr.bf16.mxu0 %v28398_v44 }
 0xb10   : > { %v14853_v33 = vsel %vm7338_vm6, %v14851_v43, %v14852_v32  ;;  %v21756_v43 = vld [vmem:[%s28261_s7 + $0x2c8] sm:$0xff]  }
 0xb11   : > { %14593 = vmatmul.mubr.bf16.gmra.mrb[200].mxu0 %v14445_v17 }
 0xb12   : > { %18626 = vmatprep.mubr.msk.bf16.mxu0 %vm13602_vm9, %v14467_v9  ;;  %14749 = vmatpush1.bf16.msra.mxu0 %v21729_v8 }
 0xb13   : > { %14750 = vmatprep.subr.bf16.mxu0 %v28398_v44 }
 0xb16   : > { %14751 = vmatpush1.bf16.msra.mxu0 %v21730_v35 }
 0xb17   : > { %14752 = vmatprep.subr.bf16.mxu0 %v28398_v44 }
 0xb19   : > { %14601 = vmatmul.mubr.bf16.gmra.mrb[204].mxu0 %v14458_v30  ;;  %v21747_v30 = vld [vmem:[%s28261_s7 + $0x280] sm:$0xff]  }
 0xb1a   : > { %14753 = vmatpush1.bf16.msra.mxu0 %v21731_v60  ;;  %18663 = vmatprep.mubr.msk.bf16.mxu0 %vm13602_vm9, %v14651_v26 }
 0xb1b   : > { %14754 = vmatprep.subr.bf16.mxu0 %v28398_v44 }
 0xb1c   : > { %v27689_v62 = vpop.f32.mrb[148].mxu0 }
 0xb1d   : > { %v13845_v47 = vpop.f32.mrb[149].mxu0 }
 0xb1e   : > { %14755 = vmatpush1.bf16.msra.mxu0 %v21732_v49  ;;  %v27691_v31 = vpop.f32.mrb[150].mxu0 }
 0xb1f   : > { %v13848_v4 = vpop.f32.mrb[151].mxu0  ;;  %14756 = vmatprep.subr.bf16.mxu0 %v28398_v44 }
 0xb22   : > { %14757 = vmatpush1.bf16.msra.mxu0 %v21733_v6 }
 0xb23   : > { %14758 = vmatprep.subr.bf16.mxu0 %v28398_v44 }
 0xb24   : > { %v27701_v51 = vpop.f32.mrb[152].mxu0 }
 0xb25   : > { %v13853_v18 = vpop.f32.mrb[153].mxu0 }
 0xb26   : > { %14759 = vmatpush1.bf16.msra.mxu0 %v21734_v52  ;;  %v27703_v46 = vpop.f32.mrb[154].mxu0  ;;  %v21749_v52 = vld [vmem:[%s28261_s7 + $0x290] sm:$0xff]  }
 0xb27   : > { %v13856_v40 = vpop.f32.mrb[155].mxu0  ;;  %14760 = vmatprep.subr.bf16.mxu0 %v28398_v44 }
 0xb28   : > { %v27811_v40 = vld [vmem:[#allocation4 + $0x10] sm:$0xf0] }
 0xb2a   : > { %14761 = vmatpush1.bf16.msra.mxu0 %v21735_v48  ;;  %v27808_v48 = vld [vmem:[#allocation4 + $0x38] sm:$0xff] }
 0xb2b   : > { %14762 = vmatprep.subr.bf16.mxu0 %v28398_v44 }
 0xb2c   : > { %v27713_v38 = vpop.f32.mrb[156].mxu0 }
 0xb2d   : > { %v13861_v39 = vpop.f32.mrb[157].mxu0 }
 0xb2e   : > { %14763 = vmatpush1.bf16.msra.mxu0 %v21736_v12  ;;  %v27715_v0 = vpop.f32.mrb[158].mxu0  ;;  %v14849_v12 = vrot.slane %v27552_v55, 4  ;;  %v14848_v39 = vrot.slane %v27811_v40, 4 }
 0xb2f   : > { %v13864_v58 = vpop.f32.mrb[159].mxu0  ;;  %14764 = vmatprep.subr.bf16.mxu0 %v28398_v44 }
 0xb32   : > { %14765 = vmatpush1.bf16.msra.mxu0 %v21737_v61  ;;  %v14850_v61 = vsel %vm7338_vm6, %v14848_v39, %v14849_v12 }
 0xb33   : > { %14766 = vmatprep.subr.bf16.mxu0 %v28398_v44 }
 0xb36   : > { %14767 = vmatpush1.bf16.msra.mxu0 %v21738_v11  ;;  %v14814_v11 = vld [vmem:[#allocation4 + $0x48] sm:$0xf] }
 0xb37   : > { %14946 = vmatprep.subr.bf16.mxu0 %v28398_v44  ;;  %v14860_v59 = vrot.slane %v14814_v11, 4  ;;  %v21762_v11 = vld [vmem:[%s28261_s7 + $0x2f8] sm:$0xff]  }
 0xb39   : > { %14777 = vmatmul.mubr.bf16.vlgmr.msra.gmra.mrb[208].mxu0 %v14648_v25  ;;  %v15057_v25 = vshll.u32 %v27752_v16, 16 }
 0xb3a   : > { %18664 = vmatprep.mubr.msk.bf16.mxu0 %vm13602_vm9, %v14655_v5  ;;  %14947 = vmatpush1.bf16.msra.mxu0 %v21739_v54  ;;  %v15054_v54 = vshrl.u32 %v27752_v16, 16  ;;  %v14855_v5 = vsel %vm7338_vm6, %v14849_v12, %v14854_v7  ;;  %v15037_v12 = vshrl.u32 %v27811_v40, 16 }
 0xb3b   : > { %14948 = vmatprep.subr.bf16.mxu0 %v28398_v44 }
 0xb3e   : > { %14949 = vmatpush1.bf16.msra.mxu0 %v21740_v14 }
 0xb3f   : > { %14950 = vmatprep.subr.bf16.mxu0 %v28398_v44 }
 0xb41   : > { %14785 = vmatmul.mubr.bf16.gmra.mrb[212].mxu0 %v14653_v28  ;;  %v21754_v28 = vld [vmem:[%s28261_s7 + $0x2b8] sm:$0xff]  }
 0xb42   : > { %18665 = vmatprep.mubr.msk.bf16.mxu0 %vm13602_vm9, %v14659_v45  ;;  %14951 = vmatpush1.bf16.msra.mxu0 %v21741_v34  ;;  %v15067_v34 = vrot.slane %v27346_v13, 5  ;;  %v15056_v45 = vrot.slane %v15054_v54, 4  ;;  %v15074_v54 = vshll.u32 %v27554_v42, 16 }
 0xb43   : > { %14952 = vmatprep.subr.bf16.mxu0 %v28398_v44 }
 0xb44   : > { %v27843_v16 = vor.u32 %v15067_v34, %v15064_v56  ;;  %v21763_v56 = vld [vmem:[%s28261_s7 + $0x300] sm:$0xff]  }
 0xb46   : > { %14953 = vmatpush1.bf16.msra.mxu0 %v21742_v3  ;;  %v15059_v3 = vrot.slane %v15057_v25, 5 }
 0xb47   : > { %14954 = vmatprep.subr.bf16.mxu0 %v28398_v44 }
 0xb48   : > { %v15060_v13 = vor.u32 %v15059_v3, %v15056_v45  ;;  %v15076_v45 = vrot.slane %v15074_v54, 5 }
 0xb49   : > { %14793 = vmatmul.mubr.bf16.gmra.mrb[216].mxu0 %v14657_v15 }
 0xb4a   : > { %14955 = vmatpush1.bf16.msra.mxu0 %v21743_v57  ;;  %18702 = vmatprep.mubr.msk.bf16.mxu0 %vm13602_vm9, %v14853_v33  ;;  %v15069_v57 = vsel %vm8272_vm7, %v15060_v13, %v27843_v16  ;;  %v27918_v13 = vld [vmem:[#allocation4 + $0x40] sm:$0x1f] }
 0xb4b   : > { %14956 = vmatprep.subr.bf16.mxu0 %v28398_v44 }
 0xb4c   : > { %v13978_v21 = vpop.f32.mrb[160].mxu0 }
 0xb4d   : > { %v27768_v8 = vadd.f32 %v13978_v21, %v27689_v62  ;;  %v13980_v17 = vpop.f32.mrb[161].mxu0  ;;  %v21748_v62 = vld [vmem:[%s28261_s7 + $0x288] sm:$0xff]  }
 0xb4e   : > { %v13981_v63 = vpop.f32.mrb[162].mxu0  ;;  %14957 = vmatpush1.bf16.msra.mxu0 %v21744_v53  ;;  %v21757_v17 = vld [vmem:[%s28261_s7 + $0x2d0] sm:$0xff]  }
 0xb4f   : > { %v27774_v9 = vadd.f32 %v13981_v63, %v27691_v31  ;;  %v13983_v35 = vpop.f32.mrb[163].mxu0  ;;  %14958 = vmatprep.subr.bf16.mxu0 %v28398_v44 }
 0xb50   : > { %v21758_v35 = vld [vmem:[%s28261_s7 + $0x2d8] sm:$0xff]  }
 0xb52   : > { %14959 = vmatpush1.bf16.msra.mxu0 %v21745_v23 }
 0xb53   : > { %14960 = vmatprep.subr.bf16.mxu0 %v28398_v44 }
 0xb54   : > { %v13986_v41 = vpop.f32.mrb[164].mxu0 }
 0xb55   : > { %v27782_v24 = vadd.f32 %v13986_v41, %v27701_v51  ;;  %v13988_v60 = vpop.f32.mrb[165].mxu0 }
 0xb56   : > { %v13989_v50 = vpop.f32.mrb[166].mxu0  ;;  %14961 = vmatpush1.bf16.msra.mxu0 %v21746_v10 }
 0xb57   : > { %v27788_v26 = vadd.f32 %v13989_v50, %v27703_v46  ;;  %v13991_v49 = vpop.f32.mrb[167].mxu0  ;;  %14962 = vmatprep.subr.bf16.mxu0 %v28398_v44  ;;  %v21750_v46 = vld [vmem:[%s28261_s7 + $0x298] sm:$0xff]  }
 0xb58   : > { %v21760_v49 = vld [vmem:[%s28261_s7 + $0x2e8] sm:$0xff]  }
 0xb5a   : > { %14963 = vmatpush1.bf16.msra.mxu0 %v21747_v30 }
 0xb5b   : > { %14964 = vmatprep.subr.bf16.mxu0 %v28398_v44 }
 0xb5c   : > { %v13994_v47 = vpop.f32.mrb[168].mxu0 }
 0xb5d   : > { %v27796_v31 = vadd.f32 %v13994_v47, %v27713_v38  ;;  %v13996_v6 = vpop.f32.mrb[169].mxu0  ;;  %v14856_v38 = vrot.slane %v27808_v48, 4  ;;  %v15048_v47 = vshll.u32 %v27552_v55, 16 }
 0xb5e   : > { %v13997_v4 = vpop.f32.mrb[170].mxu0  ;;  %14965 = vmatpush1.bf16.msra.mxu0 %v21748_v62  ;;  %v15045_v62 = vshrl.u32 %v27552_v55, 16 }
 0xb5f   : > { %v27802_v51 = vadd.f32 %v13997_v4, %v27715_v0  ;;  %v13999_v18 = vpop.f32.mrb[171].mxu0  ;;  %14966 = vmatprep.subr.bf16.mxu0 %v28398_v44  ;;  %v21751_v0 = vld [vmem:[%s28261_s7 + $0x2a0] sm:$0xff]   ;;  %v14857_v58 = vsel %vm7338_vm6, %v14852_v32, %v14856_v38  ;;  %v14861_v14 = vsel %vm7338_vm6, %v14856_v38, %v14860_v59  ;;  %v14859_v32 = vsel %vm7338_vm6, %v14854_v7, %v14858_v20 }
 0xb60   : > { %v15080_v4 = vshrl.u32 %v27808_v48, 16  ;;  %v15040_v38 = vshll.u32 %v27811_v40, 16  ;;  %v15039_v7 = vrot.slane %v15037_v12, 4  ;;  %v15071_v40 = vshrl.u32 %v27554_v42, 16  ;;  %v21769_v12 = vld [vmem:[%s28261_s7 + $0x330] sm:$0xff]  }
 0xb62   : > { %14967 = vmatpush1.bf16.msra.mxu0 %v21749_v52  ;;  %v15083_v52 = vshll.u32 %v27808_v48, 16  ;;  %v15042_v59 = vrot.slane %v15040_v38, 5 }
 0xb63   : > { %14968 = vmatprep.subr.bf16.mxu0 %v28398_v44 }
 0xb64   : > { %v15043_v29 = vor.u32 %v15042_v59, %v15039_v7  ;;  %v21772_v59 = vld [vmem:[%s28261_s7 + $0x348] sm:$0xff]  }
 0xb66   : > { %14969 = vmatpush1.bf16.msra.mxu0 %v21750_v46  ;;  %v21761_v46 = vld [vmem:[%s28261_s7 + $0x2f0] sm:$0xff]  }
 0xb67   : > { %15190 = vmatprep.subr.bf16.mxu0 %v28398_v44 }
 0xb69   : > { %14979 = vmatmul.mubr.bf16.vlgmr.msra.gmra.mrb[220].mxu0 %v14850_v61  ;;  %v15050_v61 = vrot.slane %v15048_v47, 5 }
 0xb6a   : > { %18703 = vmatprep.mubr.msk.bf16.mxu0 %vm13602_vm9, %v14857_v58  ;;  %15191 = vmatpush1.bf16.msra.mxu0 %v21751_v0  ;;  %v15047_v0 = vrot.slane %v15045_v62, 4  ;;  %v15082_v58 = vrot.slane %v15080_v4, 4 }
 0xb6b   : > { %15192 = vmatprep.subr.bf16.mxu0 %v28398_v44 }
 0xb6e   : > { %15193 = vmatpush1.bf16.msra.mxu0 %v21752_v2  ;;  %v15085_v2 = vrot.slane %v15083_v52, 5 }
 0xb6f   : > { %15194 = vmatprep.subr.bf16.mxu0 %v28398_v44 }
 0xb70   : > { %v15086_v25 = vor.u32 %v15085_v2, %v15082_v58 }
 0xb71   : > { %14987 = vmatmul.mubr.bf16.gmra.mrb[224].mxu0 %v14855_v5 }
 0xb72   : > { %18704 = vmatprep.mubr.msk.bf16.mxu0 %vm13602_vm9, %v14861_v14  ;;  %15195 = vmatpush1.bf16.msra.mxu0 %v21753_v22  ;;  %v27904_v22 = vld [vmem:[#allocation4 + $0x48] sm:$0x1f]  ;;  %v15087_v3 = vsel %vm8272_vm7, %v27843_v16, %v15086_v25  ;;  %v21765_v16 = vld [vmem:[%s28261_s7 + $0x310] sm:$0xff]  }
 0xb73   : > { %15196 = vmatprep.subr.bf16.mxu0 %v28398_v44  ;;  %v15098_v5 = vshrl.u32 %v27904_v22, 16  ;;  %v15101_v14 = vshll.u32 %v27904_v22, 16 }
 0xb75   : > { %v15100_v20 = vrot.slane %v15098_v5, 4 }
 0xb76   : > { %15197 = vmatpush1.bf16.msra.mxu0 %v21754_v28  ;;  %v15073_v28 = vrot.slane %v15071_v40, 4 }
 0xb77   : > { %15198 = vmatprep.subr.bf16.mxu0 %v28398_v44 }
 0xb79   : > { %14995 = vmatmul.mubr.bf16.gmra.mrb[228].mxu0 %v14859_v32  ;;  %v21764_v32 = vld [vmem:[%s28261_s7 + $0x308] sm:$0xff]  }
 0xb7a   : > { %15199 = vmatpush1.bf16.msra.mxu0 %v21755_v37  ;;  %18741 = vmatprep.mubr.msk.bf16.mxu0 %vm13602_vm9, %v15069_v57  ;;  %v15103_v37 = vrot.slane %v15101_v14, 5  ;;  %v15077_v57 = vor.u32 %v15076_v45, %v15073_v28  ;;  %v21774_v14 = vld [vmem:[%s28261_s7 + $0x358] sm:$0xff]   ;;  %v15296_v28 = vrot.slane %v27904_v22, 5 }
 0xb7b   : > { %15200 = vmatprep.subr.bf16.mxu0 %v28398_v44 }
 0xb7c   : > { %v14168_v15 = vpop.f32.mrb[172].mxu0 }
 0xb7d   : > { %v27858_v33 = vadd.f32 %v14168_v15, %v27768_v8  ;;  %v14170_v53 = vpop.f32.mrb[173].mxu0  ;;  %v15092_v15 = vshll.u32 %v27918_v13, 16 }
 0xb7e   : > { %v14171_v21 = vpop.f32.mrb[174].mxu0  ;;  %15201 = vmatpush1.bf16.msra.mxu0 %v21756_v43  ;;  %v15089_v43 = vshrl.u32 %v27918_v13, 16  ;;  %v15104_v53 = vor.u32 %v15103_v37, %v15100_v20 }
 0xb7f   : > { %v27864_v63 = vadd.f32 %v14171_v21, %v27774_v9  ;;  %v14173_v23 = vpop.f32.mrb[175].mxu0  ;;  %15202 = vmatprep.subr.bf16.mxu0 %v28398_v44  ;;  %v21759_v9 = vld [vmem:[%s28261_s7 + $0x2e0] sm:$0xff]  }
 0xb80   : > { %v15094_v23 = vrot.slane %v15092_v15, 5 }
 0xb82   : > { %15203 = vmatpush1.bf16.msra.mxu0 %v21757_v17  ;;  %v15091_v17 = vrot.slane %v15089_v43, 4 }
 0xb83   : > { %15204 = vmatprep.subr.bf16.mxu0 %v28398_v44 }
 0xb84   : > { %v14176_v8 = vpop.f32.mrb[176].mxu0 }
 0xb85   : > { %v27872_v10 = vadd.f32 %v14176_v8, %v27782_v24  ;;  %v14178_v41 = vpop.f32.mrb[177].mxu0  ;;  %v21766_v8 = vld [vmem:[%s28261_s7 + $0x318] sm:$0xff]  }
 0xb86   : > { %v14179_v60 = vpop.f32.mrb[178].mxu0  ;;  %15205 = vmatpush1.bf16.msra.mxu0 %v21758_v35  ;;  %v15105_v35 = vsel %vm8272_vm7, %v15086_v25, %v15104_v53  ;;  %v15095_v41 = vor.u32 %v15094_v23, %v15091_v17  ;;  %v21775_v23 = vld [vmem:[%s28263_s9] sm:$0xff]  }
 0xb87   : > { %v27878_v50 = vadd.f32 %v14179_v60, %v27788_v26  ;;  %v14181_v30 = vpop.f32.mrb[179].mxu0  ;;  %15206 = vmatprep.subr.bf16.mxu0 %v28398_v44  ;;  %v15254_v60 = vld [vmem:[#allocation4 + $0x18] sm:$0xe0] }
 0xb88   : > { %v15096_v62 = vsel %vm8272_vm7, %v15077_v57, %v15095_v41 }
 0xb8a   : > { %15207 = vmatpush1.bf16.msra.mxu0 %v21759_v9  ;;  %v21957_v9 = vld [vmem:[#allocation4 + $0x28] sm:$0xff] }
 0xb8b   : > { %15208 = vmatprep.subr.bf16.mxu0 %v28398_v44  ;;  %v15288_v30 = vrot.slane %v21957_v9, 5 }
 0xb8c   : > { %v14184_v24 = vpop.f32.mrb[180].mxu0 }
 0xb8d   : > { %v27888_v6 = vadd.f32 %v14184_v24, %v27796_v31  ;;  %v14186_v26 = vpop.f32.mrb[181].mxu0  ;;  %v15287_v24 = vrot.slane %v15254_v60, 5 }
 0xb8e   : > { %v14187_v18 = vpop.f32.mrb[182].mxu0  ;;  %15209 = vmatpush1.bf16.msra.mxu0 %v21760_v49  ;;  %v21767_v49 = vld [vmem:[%s28261_s7 + $0x320] sm:$0xff]   ;;  %v21768_v26 = vld [vmem:[%s28261_s7 + $0x328] sm:$0xff]  }
 0xb8f   : > { %v27898_v39 = vadd.f32 %v14187_v18, %v27802_v51  ;;  %v14189_v31 = vpop.f32.mrb[183].mxu0  ;;  %15210 = vmatprep.subr.bf16.mxu0 %v28398_v44  ;;  %v15051_v51 = vor.u32 %v15050_v61, %v15047_v0  ;;  %v15289_v47 = vsel %vm9496_vm8, %v15287_v24, %v15288_v30  ;;  %v21770_v0 = vld [vmem:[%s28261_s7 + $0x338] sm:$0xff]  }
 0xb91   : > { %v15052_v34 = vsel %vm8272_vm7, %v15043_v29, %v15051_v51  ;;  %v15078_v21 = vsel %vm8272_vm7, %v15051_v51, %v15077_v57  ;;  %v15292_v29 = vrot.slane %v27808_v48, 5  ;;  %v15294_v48 = vrot.slane %v27918_v13, 5 }
 0xb92   : > { %15211 = vmatpush1.bf16.msra.mxu0 %v21761_v46 }
 0xb93   : > { %15212 = vmatprep.subr.bf16.mxu0 %v28398_v44  ;;  %v15295_v55 = vsel %vm9496_vm8, %v15290_v19, %v15294_v48 }
 0xb96   : > { %15213 = vmatpush1.bf16.msra.mxu0 %v21762_v11 }
 0xb97   : > { %15382 = vmatprep.subr.bf16.mxu0 %v28398_v44 }
 0xb99   : > { %15223 = vmatmul.mubr.bf16.vlgmr.msra.gmra.mrb[232].mxu0 %v15052_v34  ;;  %v15293_v34 = vsel %vm9496_vm8, %v15288_v30, %v15292_v29 }
 0xb9a   : > { %18742 = vmatprep.mubr.msk.bf16.mxu0 %vm13602_vm9, %v15087_v3  ;;  %15383 = vmatpush1.bf16.msra.mxu0 %v21763_v56 }
 0xb9b   : > { %15384 = vmatprep.subr.bf16.mxu0 %v28398_v44 }
 0xb9e   : > { %15385 = vmatpush1.bf16.msra.mxu0 %v21764_v32 }
 0xb9f   : > { %15386 = vmatprep.subr.bf16.mxu0 %v28398_v44 }
 0xba1   : > { %15231 = vmatmul.mubr.bf16.gmra.mrb[236].mxu0 %v15078_v21 }
 0xba2   : > { %18743 = vmatprep.mubr.msk.bf16.mxu0 %vm13602_vm9, %v15105_v35  ;;  %15387 = vmatpush1.bf16.msra.mxu0 %v21765_v16 }
 0xba3   : > { %15388 = vmatprep.subr.bf16.mxu0 %v28398_v44 }
 0xba6   : > { %15389 = vmatpush1.bf16.msra.mxu0 %v21766_v8 }
 0xba7   : > { %15390 = vmatprep.subr.bf16.mxu0 %v28398_v44 }
 0xba9   : > { %15239 = vmatmul.mubr.bf16.gmra.mrb[240].mxu0 %v15096_v62 }
 0xbaa   : > { %15391 = vmatpush1.bf16.msra.mxu0 %v21767_v49  ;;  %18780 = vmatprep.mubr.msk.bf16.mxu0 %vm13602_vm9, %v15289_v47 }
 0xbab   : > { %15392 = vmatprep.subr.bf16.mxu0 %v28398_v44 }
 0xbac   : > { %v14362_v4 = vpop.f32.mrb[184].mxu0 }
 0xbad   : > { %v14385_v52 = vadd.f32 %v14362_v4, %v27858_v33  ;;  %v14364_v18 = vpop.f32.mrb[185].mxu0 }
 0xbae   : > { %v14365_v46 = vpop.f32.mrb[186].mxu0  ;;  %15393 = vmatpush1.bf16.msra.mxu0 %v21768_v26 }
 0xbaf   : > { %v14386_v38 = vadd.f32 %v14365_v46, %v27864_v63  ;;  %v14367_v31 = vpop.f32.mrb[187].mxu0  ;;  %15394 = vmatprep.subr.bf16.mxu0 %v28398_v44  ;;  %v21771_v63 = vld [vmem:[%s28261_s7 + $0x340] sm:$0xff]  }
 0xbb2   : > { %15395 = vmatpush1.bf16.msra.mxu0 %v21769_v12 }
 0xbb3   : > { %15396 = vmatprep.subr.bf16.mxu0 %v28398_v44 }
 0xbb4   : > { %v14370_v33 = vpop.f32.mrb[188].mxu0 }
 0xbb5   : > { %v14387_v61 = vadd.f32 %v14370_v33, %v27872_v10  ;;  %v14372_v58 = vpop.f32.mrb[189].mxu0  ;;  %v21777_v33 = vld [vmem:[%s28263_s9 + $0x10] sm:$0xff]  }
 0xbb6   : > { %v14373_v2 = vpop.f32.mrb[190].mxu0  ;;  %15397 = vmatpush1.bf16.msra.mxu0 %v21770_v0  ;;  %v21776_v0 = vld [vmem:[%s28263_s9 + $0x8] sm:$0xff]   ;;  %v21779_v58 = vld [vmem:[%s28263_s9 + $0x20] sm:$0xff]  }
 0xbb7   : > { %v14388_v11 = vadd.f32 %v14373_v2, %v27878_v50  ;;  %v14375_v7 = vpop.f32.mrb[191].mxu0  ;;  %15398 = vmatprep.subr.bf16.mxu0 %v28398_v44  ;;  %v21773_v50 = vld [vmem:[%s28261_s7 + $0x350] sm:$0xff]   ;;  %19023 = vmatpush3.bf16.msra.mxu1 %v21779_v58  ;;  %v21781_v2 = vld [vmem:[%s28263_s9 + $0x28] sm:$0xff]  }
 0xbb8   : > { %19024 = vmatprep.subr.bf16.mxu1 %v28493_v27 }
 0xbba   : > { %15399 = vmatpush1.bf16.msra.mxu0 %v21771_v63  ;;  %v21783_v63 = vld [vmem:[%s28263_s9 + $0x30] sm:$0xff]  }
 0xbbb   : > { %15400 = vmatprep.subr.bf16.mxu0 %v28398_v44  ;;  %19025 = vmatpush3.bf16.msra.mxu1 %v21781_v2 }
 0xbbc   : > { %v14378_v10 = vpop.f32.mrb[192].mxu0  ;;  %19026 = vmatprep.subr.bf16.mxu1 %v28493_v27 }
 0xbbd   : > { %v14389_v51 = vadd.f32 %v14378_v10, %v27888_v6  ;;  %v14380_v40 = vpop.f32.mrb[193].mxu0  ;;  %v15253_v6 = vld [vmem:[#allocation4 + $0x10] sm:$0xe0] }
 0xbbe   : > { %v14381_v54 = vpop.f32.mrb[194].mxu0  ;;  %15401 = vmatpush1.bf16.msra.mxu0 %v21772_v59  ;;  %v15284_v56 = vrot.slane %v15253_v6, 5 }
 0xbbf   : > { %v14390_v25 = vadd.f32 %v14381_v54, %v27898_v39  ;;  %v14383_v5 = vpop.f32.mrb[195].mxu0  ;;  %15402 = vmatprep.subr.bf16.mxu0 %v28398_v44  ;;  %19027 = vmatpush3.bf16.msra.mxu1 %v21783_v63  ;;  %v21782_v63 = vld [vmem:[%s28263_s9 + $0x48] sm:$0xff]  }
 0xbc0   : > { %v15286_v39 = vsel %vm9496_vm8, %v15284_v56, %v15285_v1  ;;  %19028 = vmatprep.subr.bf16.mxu1 %v28493_v27 }
 0xbc2   : > { %15403 = vmatpush1.bf16.msra.mxu0 %v21773_v50 }
 0xbc3   : > { %15404 = vmatprep.subr.bf16.mxu0 %v28398_v44  ;;  %v15297_v44 = vsel %vm9496_vm8, %v15292_v29, %v15296_v28 }
 0xbc6   : > { %15405 = vmatpush1.bf16.msra.mxu0 %v21774_v14 }
 0xbc7   : > { %19034 = vmatprep.subr.bf16.mxu0 %v28493_v27 }
 0xbc9   : > { %15415 = vmatmul.mubr.bf16.vlgmr.msra.gmra.mrb[244].mxu0 %v15286_v39 }
 0xbca   : > { %18781 = vmatprep.mubr.msk.bf16.mxu0 %vm13602_vm9, %v15293_v34  ;;  %19035 = vmatpush3.bf16.msra.mxu0 %v21775_v23 }
 0xbcb   : > { %19036 = vmatprep.subr.bf16.mxu0 %v28493_v27 }
 0xbce   : > { %19037 = vmatpush3.bf16.msra.mxu0 %v21776_v0 }
 0xbcf   : > { %19038 = vmatprep.subr.bf16.mxu0 %v28493_v27 }
 0xbd1   : > { %15423 = vmatmul.mubr.bf16.gmra.mrb[248].mxu0 %v27570_v36 }
 0xbd2   : > { %18782 = vmatprep.mubr.msk.bf16.mxu0 %vm13602_vm9, %v15297_v44  ;;  %19039 = vmatpush3.bf16.msra.mxu0 %v21777_v33 }
 0xbd3   : > { %19040 = vmatprep.subr.bf16.mxu0 %v28493_v27 }
 0xbd9   : > { %15431 = vmatmul.mubr.bf16.gmra.mrb[252].mxu0 %v15295_v55 }
 0xbda   : > { %19042 = vmatprep.mubr.msk.bf16.mxu0 %vm22024_vm0, %v28493_v27 }
 0xbdc   : > { %v14586_v1 = vpop.f32.mrb[196].mxu0 }
 0xbdd   : > { %v14609_v45 = vadd.f32 %v14586_v1, %v14385_v52  ;;  %v14588_v3 = vpop.f32.mrb[197].mxu0 }
 0xbde   : > { %v14589_v22 = vpop.f32.mrb[198].mxu0 }
 0xbdf   : > { %v14610_v20 = vadd.f32 %v14589_v22, %v14386_v38  ;;  %v14591_v36 = vpop.f32.mrb[199].mxu0 }
 0xbe4   : > { %v14594_v37 = vpop.f32.mrb[200].mxu0 }
 0xbe5   : > { %v14611_v32 = vadd.f32 %v14594_v37, %v14387_v61  ;;  %v14596_v57 = vpop.f32.mrb[201].mxu0  ;;  %v21778_v61 = vld [vmem:[%s28263_s9 + $0x18] sm:$0xff]  }
 0xbe6   : > { %v14597_v43 = vpop.f32.mrb[202].mxu0  ;;  %19041 = vmatpush3.bf16.msra.mxu0 %v21778_v61 }
 0xbe7   : > { %v14612_v15 = vadd.f32 %v14597_v43, %v14388_v11  ;;  %v14599_v13 = vpop.f32.mrb[203].mxu0  ;;  %19046 = vmatprep.subr.bf16.mxu0 %v28493_v27  ;;  %v21785_v11 = vld [vmem:[%s28263_s9 + $0x38] sm:$0xff]  }
 0xbe8   : > { %19029 = vmatpush3.bf16.msra.mxu1 %v21785_v11 }
 0xbec   : > { %v14602_v53 = vpop.f32.mrb[204].mxu0 }
 0xbed   : > { %v14613_v42 = vadd.f32 %v14602_v53, %v14389_v51  ;;  %v14604_v16 = vpop.f32.mrb[205].mxu0 }
 0xbee   : > { %v14605_v19 = vpop.f32.mrb[206].mxu0 }
 0xbef   : > { %v14614_v21 = vadd.f32 %v14605_v19, %v14390_v25  ;;  %v14607_v17 = vpop.f32.mrb[207].mxu0 }
 0xc0c   : > { %v14778_v35 = vpop.f32.mrb[208].mxu0 }
 0xc0d   : > { %v14801_v8 = vadd.f32 %v14778_v35, %v14609_v45  ;;  %v14780_v41 = vpop.f32.mrb[209].mxu0 }
 0xc0e   : > { %v14781_v60 = vpop.f32.mrb[210].mxu0 }
 0xc0f   : > { %v14802_v9 = vadd.f32 %v14781_v60, %v14610_v20  ;;  %v14783_v30 = vpop.f32.mrb[211].mxu0 }
 0xc14   : > { %v14786_v49 = vpop.f32.mrb[212].mxu0 }
 0xc15   : > { %v14803_v24 = vadd.f32 %v14786_v49, %v14611_v32  ;;  %v14788_v62 = vpop.f32.mrb[213].mxu0 }
 0xc16   : > { %v14789_v47 = vpop.f32.mrb[214].mxu0 }
 0xc17   : > { %v14804_v26 = vadd.f32 %v14789_v47, %v14612_v15  ;;  %v14791_v4 = vpop.f32.mrb[215].mxu0 }
 0xc1c   : > { %v14794_v52 = vpop.f32.mrb[216].mxu0 }
 0xc1d   : > { %v14805_v18 = vadd.f32 %v14794_v52, %v14613_v42  ;;  %v14796_v46 = vpop.f32.mrb[217].mxu0 }
 0xc1e   : > { %v14797_v12 = vpop.f32.mrb[218].mxu0 }
 0xc1f   : > { %v14806_v38 = vadd.f32 %v14797_v12, %v14614_v21  ;;  %v14799_v31 = vpop.f32.mrb[219].mxu0 }
 0xc3c   : > { %v14980_v7 = vpop.f32.mrb[220].mxu0 }
 0xc3d   : > { %v15003_v59 = vadd.f32 %v14980_v7, %v14801_v8  ;;  %v14982_v10 = vpop.f32.mrb[221].mxu0  ;;  %v18783_v8 = vld [vmem:[%s28262_s8] ss:$0 sm:$0xff] }
 0xc3e   : > { %v14983_v51 = vpop.f32.mrb[222].mxu0 }
 0xc3f   : > { %v15004_v40 = vadd.f32 %v14983_v51, %v14802_v9  ;;  %v14985_v54 = vpop.f32.mrb[223].mxu0 }
 0xc44   : > { %v14988_v50 = vpop.f32.mrb[224].mxu0 }
 0xc45   : > { %v15005_v25 = vadd.f32 %v14988_v50, %v14803_v24  ;;  %v14990_v5 = vpop.f32.mrb[225].mxu0 }
 0xc46   : > { %v14991_v14 = vpop.f32.mrb[226].mxu0 }
 0xc47   : > { %v15006_v6 = vadd.f32 %v14991_v14, %v14804_v26  ;;  %v14993_v29 = vpop.f32.mrb[227].mxu0 }
 0xc4c   : > { %v14996_v56 = vpop.f32.mrb[228].mxu0 }
 0xc4d   : > { %v15007_v39 = vadd.f32 %v14996_v56, %v14805_v18  ;;  %v14998_v34 = vpop.f32.mrb[229].mxu0 }
 0xc4e   : > { %v14999_v28 = vpop.f32.mrb[230].mxu0 }
 0xc4f   : > { %v15008_v44 = vadd.f32 %v14999_v28, %v14806_v38  ;;  %v15001_v48 = vpop.f32.mrb[231].mxu0  ;;  %v21780_v38 = vld [vmem:[%s28263_s9 + $0x40] sm:$0xff]  }
 0xc50   : > { %v21787_v48 = vld [vmem:[%s28263_s9 + $0x60] sm:$0xff]  }
 0xc6c   : > { %v15224_v55 = vpop.f32.mrb[232].mxu0 }
 0xc6d   : > { %v15247_v1 = vadd.f32 %v15224_v55, %v15003_v59  ;;  %v15226_v45 = vpop.f32.mrb[233].mxu0 }
 0xc6e   : > { %v15227_v3 = vpop.f32.mrb[234].mxu0  ;;  %v21789_v45 = vld [vmem:[%s28263_s9 + $0x70] sm:$0xff]  }
 0xc6f   : > { %v15248_v22 = vadd.f32 %v15227_v3, %v15004_v40  ;;  %v15229_v20 = vpop.f32.mrb[235].mxu0  ;;  %v21784_v40 = vld [vmem:[%s28263_s9 + $0x50] sm:$0xff]  }
 0xc74   : > { %v15232_v36 = vpop.f32.mrb[236].mxu0 }
 0xc75   : > { %v15249_v37 = vadd.f32 %v15232_v36, %v15005_v25  ;;  %v15234_v32 = vpop.f32.mrb[237].mxu0 }
 0xc76   : > { %v15235_v57 = vpop.f32.mrb[238].mxu0  ;;  %v21791_v32 = vld [vmem:[%s28263_s9 + $0x80] sm:$0xff]  }
 0xc77   : > { %v15250_v43 = vadd.f32 %v15235_v57, %v15006_v6  ;;  %v15237_v15 = vpop.f32.mrb[239].mxu0  ;;  %v21786_v6 = vld [vmem:[%s28263_s9 + $0x58] sm:$0xff]  }
 0xc78   : > { %v21792_v15 = vld [vmem:[%s28263_s9 + $0x88] sm:$0xff]  }
 0xc7c   : > { %v15240_v13 = vpop.f32.mrb[240].mxu0 }
 0xc7d   : > { %v15251_v53 = vadd.f32 %v15240_v13, %v15007_v39  ;;  %v15242_v42 = vpop.f32.mrb[241].mxu0 }
 0xc7e   : > { %v15243_v16 = vpop.f32.mrb[242].mxu0  ;;  %v21793_v42 = vld [vmem:[%s28263_s9 + $0x90] sm:$0xff]  }
 0xc7f   : > { %v15252_v19 = vadd.f32 %v15243_v16, %v15008_v44  ;;  %v15245_v21 = vpop.f32.mrb[243].mxu0 }
 0xc9c   : > { %v15416_v17 = vpop.f32.mrb[244].mxu0 }
 0xc9d   : > { %v15439_v23 = vadd.f32 %v15416_v17, %v15247_v1  ;;  %v15418_v35 = vpop.f32.mrb[245].mxu0  ;;  %v21788_v1 = vld [vmem:[%s28263_s9 + $0x68] sm:$0xff]  }
 0xc9e   : > { %v15419_v41 = vpop.f32.mrb[246].mxu0 }
 0xc9f   : > { %v15440_v60 = vadd.f32 %v15419_v41, %v15248_v22  ;;  %v15421_v9 = vpop.f32.mrb[247].mxu0  ;;  %v15452_v30 = vadd.f32 %v18783_v8, %v15439_v23  ;;  %v21790_v22 = vld [vmem:[%s28263_s9 + $0x78] sm:$0xff]  }
 0xca0   : > { %v21794_v23 = vld [vmem:[%s28263_s9 + $0x98] sm:$0xff]   ;;  %v21795_v9 = vld [vmem:[%s28263_s9 + $0xa0] sm:$0xff]  }
 0xca1   : > { %v15453_v49 = vadd.f32 %v18783_v8, %v15440_v60 }
 0xca3   : > { %v15458_v24 = vpack.c.bf16 %v15453_v49, %v15452_v30  ;;  %v21796_v49 = vld [vmem:[%s28263_s9 + $0xa8] sm:$0xff]  }
 0xca4   : > { %v15424_v62 = vpop.f32.mrb[248].mxu0 }
 0xca5   : > { %15461 = vst.msk [vmem:[#allocation5] sm:$0xff] %vm13602_vm9, %v15458_v24  ;;  %v15441_v47 = vadd.f32 %v15424_v62, %v15249_v37  ;;  %v15426_v26 = vpop.f32.mrb[249].mxu0  ;;  %v21797_v24 = vld [vmem:[%s28263_s9 + $0xb0] sm:$0xff]   ;;  %v21798_v62 = vld [vmem:[%s28263_s9 + $0xb8] sm:$0xff]  }
 0xca6   : > { %v15427_v4 = vpop.f32.mrb[250].mxu0 }
 0xca7   : > { %v15442_v52 = vadd.f32 %v15427_v4, %v15250_v43  ;;  %v15429_v18 = vpop.f32.mrb[251].mxu0  ;;  %v15454_v46 = vadd.f32 %v18783_v8, %v15441_v47 }
 0xca9   : > { %v15455_v12 = vadd.f32 %v18783_v8, %v15442_v52  ;;  %v21799_v52 = vld [vmem:[%s28263_s9 + $0xc0] sm:$0xff]  }
 0xcab   : > { %v15459_v31 = vpack.c.bf16 %v15455_v12, %v15454_v46  ;;  %v21800_v46 = vld [vmem:[%s28263_s9 + $0xc8] sm:$0xff]   ;;  %v21801_v12 = vld [vmem:[%s28263_s9 + $0xd0] sm:$0xff]  }
 0xcac   : > { %v15432_v0 = vpop.f32.mrb[252].mxu0  ;;  %v15464_v33 = vld [vmem:[#allocation5] sm:$0xff] }
 0xcad   : > { %15462 = vst.msk [vmem:[#allocation5 + $0x8] sm:$0xff] %vm13602_vm9, %v15459_v31  ;;  %v15443_v61 = vadd.f32 %v15432_v0, %v15251_v53  ;;  %v15434_v58 = vpop.f32.mrb[253].mxu0  ;;  %19043 = vmatmul.mubr.msk.bf16.vlgmr.msra.gmra.mrb[0].mxu0 %vm13602_vm9, %v15464_v33  ;;  %v15486_v59 = vshll.u32 %v15464_v33, 16  ;;  %v15484_v5 = vshrl.u32 %v15464_v33, 16  ;;  %v15630_v39 = vld [vmem:[#allocation5] sm:$0xfe] }
 0xcae   : > { %19047 = vmatpush3.bf16.msra.mxu0 %v21780_v38  ;;  %v15435_v2 = vpop.f32.mrb[254].mxu0  ;;  %19054 = vmatprep.mubr.msk.bf16.mxu0 %vm22024_vm0, %v28493_v27  ;;  %v15642_v44 = vrot.slane %v15630_v39, 1  ;;  %v15715_v20 = vld [vmem:[#allocation5] sm:$0xc0]  ;;  %v21802_v31 = vld [vmem:[%s28263_s9 + $0xd8] sm:$0xff]   ;;  %v21803_v58 = vld [vmem:[%s28263_s9 + $0xe0] sm:$0xff]  }
 0xcaf   : > { %v15444_v11 = vadd.f32 %v15435_v2, %v15252_v19  ;;  %v15437_v7 = vpop.f32.mrb[255].mxu0  ;;  %19048 = vmatprep.subr.bf16.mxu0 %v28493_v27  ;;  %v15456_v10 = vadd.f32 %v18783_v8, %v15443_v61  ;;  %v15488_v50 = vrot.slane %v15486_v59, 1  ;;  %v15728_v37 = vrot.slane %v15715_v20, 6  ;;  %v15898_v47 = vld [vmem:[#allocation5] sm:$0x80] }
 0xcb0   : > { %v15812_v16 = vshrl.u32 %v15715_v20, 16  ;;  %v15815_v19 = vshll.u32 %v15715_v20, 16  ;;  %v15910_v4 = vrot.slane %v15898_v47, 7  ;;  %v16272_v20 = vld [vmem:[%s28265_s11 + $0x10] sm:$0xff] }
 0xcb1   : > { %v15457_v51 = vadd.f32 %v18783_v8, %v15444_v11  ;;  %v15489_v29 = vor.u32 %v15488_v50, %v15484_v5  ;;  %v21804_v11 = vld [vmem:[%s28263_s9 + $0xe8] sm:$0xff]  }
 0xcb2   : > { %19049 = vmatpush3.bf16.msra.mxu0 %v21782_v63  ;;  %v15814_v35 = vrot.slane %v15812_v16, 6  ;;  %v15817_v8 = vrot.slane %v15815_v19, 7 }
 0xcb3   : > { %v15460_v54 = vpack.c.bf16 %v15457_v51, %v15456_v10  ;;  %19050 = vmatprep.subr.bf16.mxu0 %v28493_v27  ;;  %v21805_v10 = vld [vmem:[%s28263_s9 + $0xf0] sm:$0xff]  }
 0xcb4   : > { %v15473_v25 = vld [vmem:[#allocation5 + $0x8] sm:$0x1]  ;;  %v15818_v60 = vor.u32 %v15817_v8, %v15814_v35  ;;  %v15983_v0 = vld [vmem:[#allocation5 + $0x8] sm:$0xf0] }
 0xcb5   : > { %15463 = vst.msk [vmem:[#allocation5 + $0x10] sm:$0xff] %vm13602_vm9, %v15460_v54  ;;  %v15491_v14 = vshll.u32 %v15473_v25, 16  ;;  %v15643_v34 = vrot.slane %v15473_v25, 1  ;;  %v15716_v3 = vld [vmem:[#allocation5 + $0x8] sm:$0x3f]  ;;  %v15996_v61 = vrot.slane %v15983_v0, 4 }
 0xcb6   : > { %19051 = vmatpush3.bf16.msra.mxu0 %v21784_v40  ;;  %v15729_v36 = vrot.slane %v15716_v3, 6  ;;  %v15801_v43 = vld [vmem:[#allocation5 + $0x8] sm:$0x7f]  ;;  %v16080_v51 = vshrl.u32 %v15983_v0, 16  ;;  %v16083_v40 = vshll.u32 %v15983_v0, 16  ;;  %v21806_v25 = vld [vmem:[%s28263_s9 + $0xf8] sm:$0xff]  }
 0xcb7   : > { %19052 = vmatprep.subr.bf16.mxu0 %v28493_v27  ;;  %v15493_v56 = vrot.slane %v15491_v14, 1  ;;  %v15644_v55 = vsel %vm3372_vm3, %v15642_v44, %v15643_v34  ;;  %v15820_v13 = vshrl.u32 %v15801_v43, 16  ;;  %v15823_v53 = vshll.u32 %v15801_v43, 16  ;;  %v21808_v34 = vld [vmem:[%s28263_s9 + $0x108] sm:$0xff]   ;;  %v21810_v44 = vld [vmem:[%s28263_s9 + $0x118] sm:$0xff]   ;;  %v16270_v3 = vld [vmem:[%s28265_s11] sm:$0xff] }
 0xcb8   : > { %v15730_v57 = vsel %vm4321_vm5, %v15728_v37, %v15729_v36  ;;  %v15911_v26 = vrot.slane %v15801_v43, 7  ;;  %v16082_v5 = vrot.slane %v16080_v51, 4  ;;  %v16085_v14 = vrot.slane %v16083_v40, 5 }
 0xcb9   : > { %v15494_v28 = vsel %vm1492_vm1, %v15489_v29, %v15493_v56  ;;  %v15822_v21 = vrot.slane %v15820_v13, 6  ;;  %v15825_v17 = vrot.slane %v15823_v53, 7  ;;  %v21807_v56 = vld [vmem:[%s28263_s9 + $0x100] sm:$0xff]   ;;  %v22025_v36 = vmov 0.0|0.0  }
 0xcba   : > { %19053 = vmatpush3.bf16.msra.mxu0 %v21786_v6  ;;  %19031 = vmatmul.mubr.msk.bf16.vlgmr.msra.gmra.mrb[92].mxu1 %vm13602_vm9, %v15494_v28  ;;  %v15912_v18 = vsel %vm6329_vm4, %v15910_v4, %v15911_v26  ;;  %v16086_v29 = vor.u32 %v16085_v14, %v16082_v5  ;;  %v21809_v28 = vld [vmem:[%s28263_s9 + $0x110] sm:$0xff]   ;;  %v16348_v53 = vld [vmem:[%s28267_s13] sm:$0xff] }
 0xcbb   : > { %19058 = vmatprep.subr.bf16.mxu0 %v28493_v27  ;;  %19138 = vmatprep.mubr.msk.f32.mxu1 %vm22024_vm0, %v28493_v27  ;;  %v15826_v41 = vor.u32 %v15825_v17, %v15822_v21 }
 0xcbc   : > { %v15984_v38 = vld [vmem:[#allocation5 + $0x10] sm:$0xf]  ;;  %19148 = vmatprep.subr.bf16.mxu1 %v22025_v36 }
 0xcbd   : > { %19055 = vmatmul.mubr.msk.bf16.vlgmr.msra.gmra.mrb[4].mxu0 %vm13602_vm9, %v15644_v55  ;;  %v15827_v30 = vsel %vm5255_vm2, %v15818_v60, %v15826_v41  ;;  %v15997_v33 = vrot.slane %v15984_v38, 4  ;;  %v16069_v63 = vld [vmem:[#allocation5 + $0x10] sm:$0x1f] }
 0xcbe   : > { %19059 = vmatpush3.bf16.msra.mxu0 %v21787_v48  ;;  %19066 = vmatprep.mubr.msk.bf16.mxu0 %vm22024_vm0, %v28493_v27  ;;  %v16088_v7 = vshrl.u32 %v16069_v63, 16  ;;  %v16091_v59 = vshll.u32 %v16069_v63, 16  ;;  %v16166_v48 = vld [vmem:[#allocation5 + $0x8] sm:$0xe0]  ;;  %v16179_v55 = vrot.slane %v16069_v63, 5 }
 0xcbf   : > { %19060 = vmatprep.subr.bf16.mxu0 %v28493_v27  ;;  %v15998_v2 = vsel %vm7338_vm6, %v15996_v61, %v15997_v33 }
 0xcc0   : > { %v16090_v54 = vrot.slane %v16088_v7, 4  ;;  %v16093_v50 = vrot.slane %v16091_v59, 5 }
 0xcc2   : > { %19061 = vmatpush3.bf16.msra.mxu0 %v21788_v1  ;;  %v16094_v6 = vor.u32 %v16093_v50, %v16090_v54  ;;  %v16178_v1 = vrot.slane %v16166_v48, 5 }
 0xcc3   : > { %19062 = vmatprep.subr.bf16.mxu0 %v28493_v27 }
 0xcc4   : > { %v16095_v39 = vsel %vm8272_vm7, %v16086_v29, %v16094_v6 }
 0xcc6   : > { %19063 = vmatpush3.bf16.msra.mxu0 %v21789_v45  ;;  %v16180_v45 = vsel %vm9496_vm8, %v16178_v1, %v16179_v55 }
 0xcc7   : > { %19064 = vmatprep.subr.bf16.mxu0 %v28493_v27 }
 0xcca   : > { %19065 = vmatpush3.bf16.msra.mxu0 %v21790_v22  ;;  %v16271_v22 = vld [vmem:[%s28265_s11 + $0x8] sm:$0xff] }
 0xccb   : > { %19070 = vmatprep.subr.bf16.mxu0 %v28493_v27  ;;  %v19149_v37 = vpack.c.bf16 %v16271_v22, %v16270_v3 }
 0xccd   : > { %19067 = vmatmul.mubr.msk.bf16.vlgmr.msra.gmra.mrb[8].mxu0 %vm13602_vm9, %v15730_v57  ;;  %19150 = vmatpush3.bf16.msra.mxu1 %v19149_v37 }
 0xcce   : > { %19071 = vmatpush3.bf16.msra.mxu0 %v21791_v32  ;;  %19078 = vmatprep.mubr.msk.bf16.mxu0 %vm22024_vm0, %v28493_v27  ;;  %v16273_v32 = vld [vmem:[%s28265_s11 + $0x18] sm:$0xff] }
 0xccf   : > { %19072 = vmatprep.subr.bf16.mxu0 %v28493_v27  ;;  %19151 = vmatprep.subr.bf16.mxu1 %v22025_v36 }
 0xcd2   : > { %19073 = vmatpush3.bf16.msra.mxu0 %v21792_v15 }
 0xcd3   : > { %19074 = vmatprep.subr.bf16.mxu0 %v28493_v27 }
 0xcd6   : > { %19075 = vmatpush3.bf16.msra.mxu0 %v21793_v42  ;;  %v16349_v42 = vld [vmem:[%s28267_s13 + $0x8] sm:$0xf] }
 0xcd7   : > { %19076 = vmatprep.subr.bf16.mxu0 %v28493_v27  ;;  %v19155_v16 = vpack.c.bf16 %v16349_v42, %v16348_v53  ;;  %v16350_v42 = vld [vmem:[%s28268_s14] sm:$0x1] }
 0xcda   : > { %19077 = vmatpush3.bf16.msra.mxu0 %v21794_v23 }
 0xcdb   : > { %19082 = vmatprep.subr.bf16.mxu0 %v28493_v27 }
 0xcdd   : > { %19079 = vmatmul.mubr.msk.bf16.vlgmr.msra.gmra.mrb[12].mxu0 %vm13602_vm9, %v15827_v30 }
 0xcde   : > { %19083 = vmatpush3.bf16.msra.mxu0 %v21795_v9  ;;  %19090 = vmatprep.mubr.msk.bf16.mxu0 %vm22024_vm0, %v28493_v27 }
 0xcdf   : > { %19084 = vmatprep.subr.bf16.mxu0 %v28493_v27 }
 0xce2   : > { %19085 = vmatpush3.bf16.msra.mxu0 %v21796_v49 }
 0xce3   : > { %19086 = vmatprep.subr.bf16.mxu0 %v28493_v27 }
 0xce6   : > { %19087 = vmatpush3.bf16.msra.mxu0 %v21797_v24 }
 0xce7   : > { %19088 = vmatprep.subr.bf16.mxu0 %v28493_v27 }
 0xcea   : > { %19089 = vmatpush3.bf16.msra.mxu0 %v21798_v62 }
 0xceb   : > { %19094 = vmatprep.subr.bf16.mxu0 %v28493_v27 }
 0xced   : > { %19091 = vmatmul.mubr.msk.bf16.vlgmr.msra.gmra.mrb[16].mxu0 %vm13602_vm9, %v15912_v18 }
 0xcee   : > { %19095 = vmatpush3.bf16.msra.mxu0 %v21799_v52  ;;  %19102 = vmatprep.mubr.msk.bf16.mxu0 %vm22024_vm0, %v28493_v27 }
 0xcef   : > { %19096 = vmatprep.subr.bf16.mxu0 %v28493_v27 }
 0xcf2   : > { %19097 = vmatpush3.bf16.msra.mxu0 %v21800_v46 }
 0xcf3   : > { %19098 = vmatprep.subr.bf16.mxu0 %v28493_v27 }
 0xcf6   : > { %19099 = vmatpush3.bf16.msra.mxu0 %v21801_v12 }
 0xcf7   : > { %19100 = vmatprep.subr.bf16.mxu0 %v28493_v27 }
 0xcfa   : > { %19101 = vmatpush3.bf16.msra.mxu0 %v21802_v31 }
 0xcfb   : > { %19106 = vmatprep.subr.bf16.mxu0 %v28493_v27 }
 0xcfd   : > { %19103 = vmatmul.mubr.msk.bf16.vlgmr.msra.gmra.mrb[20].mxu0 %vm13602_vm9, %v15998_v2 }
 0xcfe   : > { %19107 = vmatpush3.bf16.msra.mxu0 %v21803_v58  ;;  %19114 = vmatprep.mubr.msk.bf16.mxu0 %vm22024_vm0, %v28493_v27 }
 0xcff   : > { %19108 = vmatprep.subr.bf16.mxu0 %v28493_v27 }
 0xd02   : > { %19109 = vmatpush3.bf16.msra.mxu0 %v21804_v11 }
 0xd03   : > { %19110 = vmatprep.subr.bf16.mxu0 %v28493_v27 }
 0xd06   : > { %19111 = vmatpush3.bf16.msra.mxu0 %v21805_v10 }
 0xd07   : > { %19112 = vmatprep.subr.bf16.mxu0 %v28493_v27 }
 0xd0a   : > { %19113 = vmatpush3.bf16.msra.mxu0 %v21806_v25 }
 0xd0b   : > { %19118 = vmatprep.subr.bf16.mxu0 %v28493_v27 }
 0xd0d   : > { %19115 = vmatmul.mubr.msk.bf16.vlgmr.msra.gmra.mrb[24].mxu0 %vm13602_vm9, %v16095_v39 }
 0xd0e   : > { %19119 = vmatpush3.bf16.msra.mxu0 %v21807_v56  ;;  %19126 = vmatprep.mubr.msk.bf16.mxu0 %vm22024_vm0, %v28493_v27 }
 0xd0f   : > { %19120 = vmatprep.subr.bf16.mxu0 %v28493_v27 }
 0xd12   : > { %19121 = vmatpush3.bf16.msra.mxu0 %v21808_v34  ;;  %v18893_v34 = vld [vmem:[%s28264_s10] ss:$0 sm:$0xff] }
 0xd13   : > { %19122 = vmatprep.subr.bf16.mxu0 %v28493_v27 }
 0xd16   : > { %19123 = vmatpush3.bf16.msra.mxu0 %v21809_v28 }
 0xd17   : > { %19124 = vmatprep.subr.bf16.mxu0 %v28493_v27 }
 0xd1a   : > { %19125 = vmatpush3.bf16.msra.mxu0 %v21810_v44 }
 0xd1b   : > { %19154 = vmatprep.subr.bf16.mxu0 %v22025_v36 }
 0xd1d   : > { %19127 = vmatmul.mubr.msk.bf16.vlgmr.msra.gmra.mrb[28].mxu0 %vm13602_vm9, %v16180_v45 }
 0xd1e   : > { %19145 = vmatprep.mubr.msk.f32.mxu0 %vm22024_vm0, %v28493_v27  ;;  %v19152_v27 = vpack.c.bf16 %v16273_v32, %v16272_v20  ;;  %19157 = vmatpush3.bf16.msk.msra.mxu0 %vm19156_vm11, %v19155_v16 }
 0xd20   : > { %19153 = vmatpush3.bf16.msra.mxu1 %v19152_v27 }
 0xd80   : > { %v15623_v57 = vpop.f32.mrb[0].mxu0 }
 0xd81   : > { %v19044_v43 = vpop.f32.mrb[1].mxu0 }
 0xd82   : > { %v15626_v15 = vpop.f32.mrb[2].mxu0  ;;  %v16274_v43 = vld [vmem:[%s28266_s12] sm:$0x1] }
 0xd83   : > { %v19045_v13 = vpop.f32.mrb[3].mxu0 }
 0xd8d   : > { %v15556_v19 = vpop.f32.mrb[92].mxu1 }
 0xd8e   : > { %v15624_v21 = vadd.f32 %v15623_v57, %v15556_v19  ;;  %v19032_v17 = vpop.f32.mrb[93].mxu1 }
 0xd8f   : > { %v15559_v23 = vpop.f32.mrb[94].mxu1 }
 0xd90   : > { %v15627_v35 = vadd.f32 %v15626_v15, %v15559_v23  ;;  %v15706_v8 = vpop.f32.mrb[4].mxu0  ;;  %v19033_v41 = vpop.f32.mrb[95].mxu1 }
 0xd91   : > { %v15713_v60 = vadd.f32 %v15706_v8, %v15624_v21  ;;  %v19056_v9 = vpop.f32.mrb[5].mxu0 }
 0xd92   : > { %v15709_v30 = vpop.f32.mrb[6].mxu0 }
 0xd93   : > { %v15714_v49 = vadd.f32 %v15709_v30, %v15627_v35  ;;  %v19057_v24 = vpop.f32.mrb[7].mxu0 }
 0xda0   : > { %v15792_v62 = vpop.f32.mrb[8].mxu0 }
 0xda1   : > { %v15799_v47 = vadd.f32 %v15792_v62, %v15713_v60  ;;  %v19068_v26 = vpop.f32.mrb[9].mxu0 }
 0xda2   : > { %v15795_v4 = vpop.f32.mrb[10].mxu0 }
 0xda3   : > { %v15800_v52 = vadd.f32 %v15795_v4, %v15714_v49  ;;  %v19069_v18 = vpop.f32.mrb[11].mxu0 }
 0xdb0   : > { %v15889_v46 = vpop.f32.mrb[12].mxu0 }
 0xdb1   : > { %v15896_v12 = vadd.f32 %v15889_v46, %v15799_v47  ;;  %v19080_v38 = vpop.f32.mrb[13].mxu0 }
 0xdb2   : > { %v15892_v31 = vpop.f32.mrb[14].mxu0 }
 0xdb3   : > { %v15897_v0 = vadd.f32 %v15892_v31, %v15800_v52  ;;  %v19081_v33 = vpop.f32.mrb[15].mxu0 }
 0xdc0   : > { %v15974_v61 = vpop.f32.mrb[16].mxu0 }
 0xdc1   : > { %v15981_v58 = vadd.f32 %v15974_v61, %v15896_v12  ;;  %v19092_v2 = vpop.f32.mrb[17].mxu0 }
 0xdc2   : > { %v15977_v63 = vpop.f32.mrb[18].mxu0 }
 0xdc3   : > { %v15982_v11 = vadd.f32 %v15977_v63, %v15897_v0  ;;  %v19093_v7 = vpop.f32.mrb[19].mxu0 }
 0xdd0   : > { %v16060_v59 = vpop.f32.mrb[20].mxu0 }
 0xdd1   : > { %v16067_v10 = vadd.f32 %v16060_v59, %v15981_v58  ;;  %v19104_v51 = vpop.f32.mrb[21].mxu0 }
 0xdd2   : > { %v16063_v40 = vpop.f32.mrb[22].mxu0 }
 0xdd3   : > { %v16068_v54 = vadd.f32 %v16063_v40, %v15982_v11  ;;  %v19105_v50 = vpop.f32.mrb[23].mxu0 }
 0xde0   : > { %v16157_v25 = vpop.f32.mrb[24].mxu0 }
 0xde1   : > { %v16164_v5 = vadd.f32 %v16157_v25, %v16067_v10  ;;  %v19116_v14 = vpop.f32.mrb[25].mxu0 }
 0xde2   : > { %v16160_v6 = vpop.f32.mrb[26].mxu0 }
 0xde3   : > { %v16165_v29 = vadd.f32 %v16160_v6, %v16068_v54  ;;  %v19117_v56 = vpop.f32.mrb[27].mxu0 }
 0xdf0   : > { %v16242_v39 = vpop.f32.mrb[28].mxu0 }
 0xdf1   : > { %v16249_v28 = vadd.f32 %v16242_v39, %v16164_v5  ;;  %v19128_v44 = vpop.f32.mrb[29].mxu0 }
 0xdf2   : > { %v16245_v48 = vpop.f32.mrb[30].mxu0 }
 0xdf3   : > { %v16258_v55 = vadd.f32 %v18893_v34, %v16249_v28  ;;  %v16250_v1 = vadd.f32 %v16245_v48, %v16165_v29  ;;  %v19129_v45 = vpop.f32.mrb[31].mxu0 }
 0xdf5   : > { %16261 = vst.msk [vmem:[#allocation6] sm:$0xff] %vm16260_vm12, %v16258_v55  ;;  %v16259_v3 = vadd.f32 %v18893_v34, %v16250_v1 }
 0xdf7   : > { %16262 = vst.msk [vmem:[#allocation6 + $0x8] sm:$0xff] %vm16260_vm12, %v16259_v3 }
 0xdfc   : > { %v16263_v22 = vld [vmem:[#allocation6] sm:$0x1]  ;;  %v16264_v20 = vld [vmem:[#allocation6 + $0x1] sm:$0x1] }
 0xdfd   : > { %v16265_v36 = vadd.f32 %v16264_v20, %v16263_v22 }
 0xdfe   : > { %v16266_v37 = vld [vmem:[#allocation6 + $0xc] sm:$0x1]  ;;  %v16268_v27 = vld [vmem:[#allocation6 + $0xd] sm:$0x1] }
 0xdff   : > { %v16267_v32 = vadd.f32 %v16266_v37, %v16265_v36 }
 0xe01   : > { %v16269_v57 = vadd.f32 %v16268_v27, %v16267_v32 }
 0xe03   : > { %19139 = vmatmul.mubr.msk.f32.vlgmr.msra.gmra.mrb[96].mxu1 %vm16260_vm12, %v16269_v57 }
 0xed6   : > { %v16344_v15 = vpop.f32.mrb[96].mxu1 }
 0xed7   : > { %v16345_v13 = vadd.f32 %v16344_v15, %v16274_v43  ;;  %v19140_v53 = vpop.f32.mrb[97].mxu1 }
 0xed9   : > { %19146 = vmatmul.mubr.msk.f32.vlgmr.msra.gmra.mrb[32].mxu0 %vm16351_vm13, %v16345_v13 }
 0xfac   : > { %v16425_v16 = vpop.f32.mrb[32].mxu0 }
 0xfad   : > { %v16426_v19 = vadd.f32 %v16425_v16, %v16350_v42  ;;  %v19147_v21 = vpop.f32.mrb[33].mxu0 }
 0xfaf   : > { %16429 = vst [vmem:[%s487_s30] sm:$0x1] %v16426_v19 }
 0xfb0   : > { %21971 = shalt.err (!%p21968_p3)
}
 0xfb1   : > { %s21972_s20 = scalar_lea.hbm %s28212_s24, 16  ;;  %s21976_s30 = scalar_lea.hbm %s28269_s15, 32 }
 0xfb2   : > { %p21973_p4 = scmp.ne.s32.totalorder %s28212_s24, %s21972_s20  ;;  %p21977_p9 = scmp.lt.u32.totalorder %s28212_s24, %s28269_s15 }
 0xfb3   : > { %p21978_p10 = scmp.lt.u32.totalorder %s21976_s30, %s21972_s20  ;;  %p21980_p12 = scmp.lt.u32.totalorder %s21972_s20, %s28212_s24 }
 0xfb4   : > { %p21974_p7 = pnand %p21973_p4, %p22146_p5 }
 0xfb5   : > { %p21979_p11 = por %p21978_p10, %p21977_p9 }
 0xfb6   : > { %p21975_p8 = pneg %p21974_p7 }
 0xfb7   : > { %p21981_p13 = por %p21980_p12, %p21979_p11 }
 0xfb9   : > { %p21982_p0 = pnand %p21981_p13, %p21975_p8 }
 0xfbb   : > { %21985 = shalt.err (!%p21982_p0)
}
 0xfbc   : > { %20046 = dma.vmem_to_hbm [thread:$0]  (%p22146_p5), %s28214_s18, 16, %s28212_s24, %s16431_s16  }
 0xfbd PF: > { %s28511_s17 = sld [smem:[#allocation12_spill]]  ;;  %s28512_s22 = sld [smem:[#allocation10_spill]] }
 0xfc3   : > { %p20052_p1 = scmp.ge.s32.totalorder %s28511_s17, 2  ;;  %s16455_s29 = sand.u32 1, %s28512_s22  }
 0xfc4   : > { %s16456_s26 = scalar_lea.sflag [#allocation8], %s16455_s29 }
 0xfc5   : > { %p20049_p2 = pnand %p20052_p1, %p22150_p6 }
 0xfc7   : > { %22003 = dma.done.wait (!%p20049_p2), %s16456_s26, 16  }
 0xfc8   : > { %22005 = vsyncadd (!%p20049_p2), %s16456_s26, 4294967280  ;;  %s28514_s21 = sld [smem:[#allocation13_spill]]  ;;  %s28515_s20 = sld [smem:[#allocation11_spill]] }
 0xfc9   : > { %s28516_s27 = sld [smem:[#allocation14_spill]]  ;;  %s28517_s18 = smov %s22012_s19 }
 0xfce   : > { %p25_p3 = scmp.ge.s32.totalorder %s28514_s21, 4   ;;  %s28518_s19 = smov %s28515_s20 }
 0xfcf   : > { %s28519_s20 = smov %s28516_s27 }
 0xfd0   :  { %27 = sbr.rel (!%p25_p3) target bundleno = 3 (0x3), region = 147 }
 0xfd7   :  { %16460 = vsyncpa [#allocation8], 1 }
 0xfd8   :  { %16462 = vsyncpa [#allocation8 + $0x1], 1 }

</bundles_post_ra>
